<compile_context>
chip_gen: v7x
topology: tpu7x:2x2x1
jax: 0.10.0
libtpu: 0.0.40
codegen_flags: <defaults>
</compile_context>

<pallas_src>
import functools

import jax
import jax.numpy as jnp
from jax.experimental import pallas as pl
from jax.experimental.pallas import tpu as pltpu

VMEM_SPEC = pl.BlockSpec(memory_space=pltpu.MemorySpace.VMEM)
P = 128        # lane width every feature dim is padded to
FE_PAD = 8     # padded edge-feature dim (sublane-friendly theta contraction)


def _round_up(v, m):
    return (v + m - 1) // m * m


# ----------------------------------------------------------------------------
# Fused forward kernel
# ----------------------------------------------------------------------------
def _nnnet_fused_kernel(*refs, n_blocks, gw, out_dim):
    (x_ref, eattr_ref, src_ref, dst_ref, brow_ref, isd_ref, invc_ref, bcast_ref,
     wnn1, bnn1, wr1, bb1,
     wnn2, bnn2, wr2, bb2,
     wnn3, bnn3, wr3, bb3,
     s1, t1, s2, t2,
     w1, b1, w2, b2,
     out_ref) = refs

    f32 = jnp.float32
    bf16 = jnp.bfloat16
    x = x_ref[...]                       # (N, P) zero-padded node features
    N = x.shape[0]
    E = eattr_ref.shape[0]
    G = out_ref.shape[0]

    def mm(a, b):                        # bf16 MXU operands, f32 accumulation
        return jnp.dot(a.astype(bf16), b.astype(bf16),
                       preferred_element_type=f32)

    eattr = eattr_ref[...].astype(bf16)  # (E, FE_PAD)

    # Structural 0/1 matrices (exact in bf16), built once, shared by all convs.
    onehot_src = (jax.lax.broadcasted_iota(jnp.int32, (E, N), 1)
                  == src_ref[...]).astype(bf16)               # (E, N) gather
    onehot_dst = (jax.lax.broadcasted_iota(jnp.int32, (N, E), 0)
                  == dst_ref[...]).astype(bf16)               # (N, E) scatter-add
    member_gn = (jax.lax.broadcasted_iota(jnp.int32, (G, N), 0)
                 == brow_ref[...]).astype(bf16)               # (G, N) pooling

    isd = isd_ref[...]                                         # (N, 1) deg^-1/2
    out_mask = jax.lax.broadcasted_iota(jnp.int32, (1, P), 1) < out_dim

    def nnconv(h, wnn_ref, bnn_ref, wr_ref, bb_ref, nb):
        # edge MLP; each 128-lane block packs (P // gw) in-channels x gw lanes
        theta = mm(eattr, wnn_ref[...]) + bnn_ref[...]         # (E, nb*P) f32
        # gather x_j = h[src] on the MXU
        xj = mm(onehot_src, h)                                 # (E, P)
        # broadcast each in-channel of x_j across its gw-lane group
        xje = mm(xj, bcast_ref[:, :nb * P])                    # (E, nb*P)
        acc = jnp.zeros((E, P), f32)
        for b in range(nb):                                    # in_dim/4 iters
            acc = acc + xje[:, b * P:(b + 1) * P] * theta[:, b * P:(b + 1) * P]
        s = P // 2                                             # XLU group reduce
        while s >= gw:
            acc = acc + pltpu.roll(acc, s, 1)
            s //= 2
        msg = jnp.where(out_mask, acc, 0.0)                    # (E, P), pads = 0
        agg = mm(onehot_dst, msg)                              # scatter-add (N,P)
        return agg + mm(h, wr_ref[...]) + bb_ref[...]

    def norm_bn_relu(h, s_ref, t_ref):
        # GraphSizeNorm + BatchNorm(running stats, pre-folded) + ReLU (f32 VPU)
        return jnp.maximum(h * isd * s_ref[...] + t_ref[...], 0.0)

    h = nnconv(x, wnn1, bnn1, wr1, bb1, n_blocks[0])
    h = norm_bn_relu(h, s1, t1)
    h = nnconv(h, wnn2, bnn2, wr2, bb2, n_blocks[1])
    h = norm_bn_relu(h, s2, t2)
    h = nnconv(h, wnn3, bnn3, wr3, bb3, n_blocks[2])

    # scatter-mean pooling + MLP head (dropout = identity in eval mode)
    pooled = mm(member_gn, h) * invc_ref[...]                   # (G, P)
    hid = jnp.maximum(
        jnp.dot(pooled, w1[...], preferred_element_type=f32) + b1[...], 0.0)
    out_ref[...] = jnp.dot(hid, w2[...], preferred_element_type=f32) + b2[...]


# ----------------------------------------------------------------------------
# Wrapper: pad / repack params and launch the fused kernel.
# ----------------------------------------------------------------------------
def _pad_cols(a, width, fill=0.0):
    return jnp.pad(a, ((0, 0), (0, width - a.shape[1])), constant_values=fill)


def _pack_conv(w_nn, b_nn, w_root, bias, in_dim, out_dim, gpb):
    """Repack NNConv params: each 128-lane theta block packs gpb in-channels."""
    fe = w_nn.shape[0]
    gw = P // gpb
    nb = -(-in_dim // gpb)
    w3 = jnp.pad(w_nn.reshape(fe, in_dim, out_dim),
                 ((0, FE_PAD - fe), (0, nb * gpb - in_dim), (0, gw - out_dim)))
    b3 = jnp.pad(b_nn.reshape(1, in_dim, out_dim),
                 ((0, 0), (0, nb * gpb - in_dim), (0, gw - out_dim)))
    wp = w3.reshape(FE_PAD, nb * P).astype(jnp.bfloat16)
    bp = b3.reshape(1, nb * P).astype(jnp.float32)
    wr = jnp.pad(w_root, ((0, P - in_dim), (0, P - out_dim))).astype(jnp.bfloat16)
    bb = _pad_cols(bias, P).astype(jnp.float32)
    return (wp, bp, wr, bb), nb


def _fold_bn(gamma, beta, mean, var, eps):
    scale = gamma / jnp.sqrt(var + eps)
    shift = beta - mean * scale
    return (_pad_cols(scale, P).astype(jnp.float32),
            _pad_cols(shift, P).astype(jnp.float32))


def _make_bcast(nb_max, gpb):
    """(P, nb_max*P) 0/1 matrix mapping channel i -> its gw-lane group."""
    gw = P // gpb
    i = jnp.arange(P)[:, None]
    j = jnp.arange(nb_max * P)[None, :]
    chan = (j // P) * gpb + (j % P) // gw
    return (i == chan).astype(jnp.bfloat16)


def nnnet_forward(params, x, src, dst, edge_attr, batch, num_graphs,
                  hidden, num_tasks, eps=1e-5):
    N, f_in = x.shape
    E, f_e = edge_attr.shape
    assert f_e <= FE_PAD
    gpb = P // hidden if (hidden <= P and P % hidden == 0) else 1
    gw = P // gpb

    N_pad = _round_up(N, P)
    E_pad = _round_up(E, P)
    G_pad = _round_up(num_graphs, 8)

    f32 = jnp.float32
    # node / edge / batch tensors, zero-padded to full-vreg shapes
    x_p = jnp.pad(x.astype(f32), ((0, N_pad - N), (0, P - f_in)))
    eattr_p = jnp.pad(edge_attr.astype(f32), ((0, E_pad - E), (0, FE_PAD - f_e)))
    src_p = jnp.pad(src.astype(jnp.int32), (0, E_pad - E), constant_values=-1)
    dst_p = jnp.pad(dst.astype(jnp.int32), (0, E_pad - E), constant_values=-1)
    bat_p = jnp.pad(batch.astype(jnp.int32), (0, N_pad - N), constant_values=-1)

    # graph-size statistics precomputed in plain XLA (hoisted from the kernel)
    counts = jax.ops.segment_sum(jnp.ones((N,), f32), batch,
                                 num_segments=num_graphs)
    inv_counts = 1.0 / jnp.maximum(counts, 1.0)                 # empty-graph guard
    inv_counts_p = jnp.pad(inv_counts, (0, G_pad - num_graphs),
                           constant_values=1.0).reshape(G_pad, 1)
    isd = jax.lax.rsqrt(jnp.maximum(counts, 1.0))[batch]
    isd_p = jnp.pad(isd, (0, N_pad - N), constant_values=1.0).reshape(N_pad, 1)

    # parameter repacking (bf16 weights, f32 biases, folded BN)
    conv1, nb1 = _pack_conv(*params["conv1"], f_in, hidden, gpb)
    conv2, nb2 = _pack_conv(*params["conv2"], hidden, hidden, gpb)
    conv3, nb3 = _pack_conv(*params["conv3"], hidden, hidden, gpb)
    bn1 = _fold_bn(*params["bn1"], eps)
    bn2 = _fold_bn(*params["bn2"], eps)
    w1, b1, w2, b2 = params["mlp"]
    mlp = (jnp.pad(w1, ((0, P - w1.shape[0]), (0, P - w1.shape[1]))).astype(f32),
           _pad_cols(b1, P).astype(f32),
           jnp.pad(w2, ((0, P - w2.shape[0]), (0, P - w2.shape[1]))).astype(f32),
           _pad_cols(b2, P).astype(f32))

    nb_max = max(nb1, nb2, nb3)
    bcast = _make_bcast(nb_max, gpb)

    inputs = (x_p, eattr_p, src_p.reshape(E_pad, 1), dst_p.reshape(1, E_pad),
              bat_p.reshape(1, N_pad), isd_p, inv_counts_p, bcast,
              *conv1, *conv2, *conv3, *bn1, *bn2, *mlp)

    # advisory cost + VMEM budget
    flops = 0
    for nb in (nb1, nb2, nb3):
        flops += 2 * E_pad * N_pad * P * 2            # gather + scatter
        flops += 2 * E_pad * (FE_PAD + P) * nb * P    # theta + channel broadcast
        flops += 2 * N_pad * P * P                    # root transform
        flops += 2 * E_pad * nb * P                   # message FMAs
    flops += 2 * G_pad * N_pad * P + 4 * G_pad * P * P
    bytes_accessed = sum(int(a.size) * a.dtype.itemsize for a in inputs)
    bytes_accessed += G_pad * P * 4
    vmem_est = (bytes_accessed
                + 2 * E_pad * N_pad * 2               # one-hots (bf16)
                + 2 * E_pad * nb_max * P * 4          # theta + broadcast xj (f32)
                + 8 * N_pad * P * 4)                  # hidden intermediates
    vmem_limit = int(min(100 * 2 ** 20, max(32 * 2 ** 20, 2 * vmem_est)))

    kern = functools.partial(_nnnet_fused_kernel,
                             n_blocks=(nb1, nb2, nb3), gw=gw, out_dim=hidden)
    out_p = pl.pallas_call(
        kern,
        out_shape=jax.ShapeDtypeStruct((G_pad, P), jnp.float32),
        in_specs=[VMEM_SPEC] * len(inputs),
        out_specs=VMEM_SPEC,
        compiler_params=pltpu.CompilerParams(vmem_limit_bytes=vmem_limit),
        cost_estimate=pl.CostEstimate(flops=int(flops), transcendentals=0,
                                      bytes_accessed=int(bytes_accessed)),
    )(*inputs)
    return out_p[:num_graphs, :num_tasks]


# ----------------------------------------------------------------------------
# Pure-JAX reference (correctness check only).
# ----------------------------------------------------------------------------
def _nnconv_ref(x, edge_attr, src, dst, w_nn, b_nn, w_root, bias):
    n, in_dim = x.shape
    out_dim = w_root.shape[1]
    theta = (edge_attr @ w_nn + b_nn).reshape(-1, in_dim, out_dim)
    msg = jnp.einsum("ei,eio->eo", x[src], theta)
    agg = jax.ops.segment_sum(msg, dst, num_segments=n)
    return agg + x @ w_root + bias


def _norm_bn_relu_ref(x, batch, num_graphs, gamma, beta, mean, var, eps=1e-5):
    deg = jax.ops.segment_sum(jnp.ones((x.shape[0],), jnp.float32), batch,
                              num_segments=num_graphs)
    xn = x * (deg[batch] ** -0.5)[:, None]
    y = (xn - mean) * gamma / jnp.sqrt(var + eps) + beta
    return jnp.maximum(y, 0.0)


def nnnet_ref(params, x, src, dst, edge_attr, batch, num_graphs):
    h = _nnconv_ref(x, edge_attr, src, dst, *params["conv1"])
    h = _norm_bn_relu_ref(h, batch, num_graphs, *params["bn1"])
    h = _nnconv_ref(h, edge_attr, src, dst, *params["conv2"])
    h = _norm_bn_relu_ref(h, batch, num_graphs, *params["bn2"])
    h = _nnconv_ref(h, edge_attr, src, dst, *params["conv3"])
    counts = jax.ops.segment_sum(jnp.ones((x.shape[0],), jnp.float32), batch,
                                 num_segments=num_graphs)
    pooled = jax.ops.segment_sum(h, batch, num_segments=num_graphs) / counts[:, None]
    w1, b1, w2, b2 = params["mlp"]
    return jnp.maximum(pooled @ w1 + b1, 0.0) @ w2 + b2


# ----------------------------------------------------------------------------
if __name__ == "__main__":
    _key = [jax.random.PRNGKey(0)]

    def nk():
        _key[0], sub = jax.random.split(_key[0])
        return sub

    # model hyper-params
    num_node_features = 8
    num_edge_features = 4
    hidden = 32
    num_tasks = 3

    # small graph batch: 64 nodes, 128 edges, 4 graphs
    N, E, G = 64, 128, 4

    def w(shape, scale=0.1):
        return (scale * jax.random.normal(nk(), shape)).astype(jnp.float32)

    def conv_params(in_dim, out_dim):
        return (
            w((num_edge_features, in_dim * out_dim)),   # edge-MLP weight
            w((1, in_dim * out_dim), 0.05),             # edge-MLP bias
            w((in_dim, out_dim)),                       # root weight
            w((1, out_dim), 0.05),                      # conv bias
        )

    def bn_params():
        return (
            1.0 + w((1, hidden), 0.05),                 # gamma
            w((1, hidden), 0.05),                       # beta
            w((1, hidden), 0.05),                       # running_mean
            0.5 + jnp.abs(w((1, hidden), 0.2)),         # running_var (>0)
        )

    params = {
        "conv1": conv_params(num_node_features, hidden),
        "conv2": conv_params(hidden, hidden),
        "conv3": conv_params(hidden, hidden),
        "bn1": bn_params(),
        "bn2": bn_params(),
        "mlp": (w((hidden, hidden)), w((1, hidden), 0.05),
                w((hidden, num_tasks)), w((1, num_tasks), 0.05)),
    }

    x = jax.random.normal(nk(), (N, num_node_features)).astype(jnp.float32)
    edge_attr = jax.random.normal(nk(), (E, num_edge_features)).astype(jnp.float32)
    src = jax.random.randint(nk(), (E,), 0, N, dtype=jnp.int32)
    dst = jax.random.randint(nk(), (E,), 0, N, dtype=jnp.int32)
    batch = jnp.repeat(jnp.arange(G, dtype=jnp.int32), N // G)   # (N,)

    out = nnnet_forward(params, x, src, dst, edge_attr, batch, G,
                        hidden=hidden, num_tasks=num_tasks)
    out = jax.block_until_ready(out)

    ref = nnnet_ref(params, x, src, dst, edge_attr, batch, G)
    assert out.shape == (G, num_tasks), out.shape
    # bf16 MXU operands with f32 accumulation -> 2e-2 numerical contract
    assert jnp.allclose(out, ref, rtol=2e-2, atol=2e-2), (out, ref)

    print("KERNEL_OK")
</pallas_src>

<mosaic_0001>
module attributes {stable_mosaic.version = 11 : i64} {
  func.func @_nnnet_fused_kernel(%arg0: memref<128x128xf32, #tpu.memory_space<vmem>>, %arg1: memref<128x8xf32, #tpu.memory_space<vmem>>, %arg2: memref<128x1xi32, #tpu.memory_space<vmem>>, %arg3: memref<1x128xi32, #tpu.memory_space<vmem>>, %arg4: memref<1x128xi32, #tpu.memory_space<vmem>>, %arg5: memref<128x1xf32, #tpu.memory_space<vmem>>, %arg6: memref<8x1xf32, #tpu.memory_space<vmem>>, %arg7: memref<128x1024xbf16, #tpu.memory_space<vmem>>, %arg8: memref<8x256xbf16, #tpu.memory_space<vmem>>, %arg9: memref<1x256xf32, #tpu.memory_space<vmem>>, %arg10: memref<128x128xbf16, #tpu.memory_space<vmem>>, %arg11: memref<1x128xf32, #tpu.memory_space<vmem>>, %arg12: memref<8x1024xbf16, #tpu.memory_space<vmem>>, %arg13: memref<1x1024xf32, #tpu.memory_space<vmem>>, %arg14: memref<128x128xbf16, #tpu.memory_space<vmem>>, %arg15: memref<1x128xf32, #tpu.memory_space<vmem>>, %arg16: memref<8x1024xbf16, #tpu.memory_space<vmem>>, %arg17: memref<1x1024xf32, #tpu.memory_space<vmem>>, %arg18: memref<128x128xbf16, #tpu.memory_space<vmem>>, %arg19: memref<1x128xf32, #tpu.memory_space<vmem>>, %arg20: memref<1x128xf32, #tpu.memory_space<vmem>>, %arg21: memref<1x128xf32, #tpu.memory_space<vmem>>, %arg22: memref<1x128xf32, #tpu.memory_space<vmem>>, %arg23: memref<1x128xf32, #tpu.memory_space<vmem>>, %arg24: memref<128x128xf32, #tpu.memory_space<vmem>>, %arg25: memref<1x128xf32, #tpu.memory_space<vmem>>, %arg26: memref<128x128xf32, #tpu.memory_space<vmem>>, %arg27: memref<1x128xf32, #tpu.memory_space<vmem>>, %arg28: memref<8x128xf32, #tpu.memory_space<vmem>>) attributes {dimension_semantics = [], scalar_prefetch = 0 : i64, scratch_operands = 0 : i64, tpu.core_type = #tpu.core_type<tc>} {
    %c0 = arith.constant 0 : index
    %c0_0 = arith.constant 0 : index
    %0 = vector.load %arg0[%c0, %c0_0] : memref<128x128xf32, #tpu.memory_space<vmem>>, vector<128x128xf32>
    %c0_1 = arith.constant 0 : index
    %c0_2 = arith.constant 0 : index
    %1 = vector.load %arg1[%c0_1, %c0_2] : memref<128x8xf32, #tpu.memory_space<vmem>>, vector<128x8xf32>
    %2 = arith.truncf %1 : vector<128x8xf32> to vector<128x8xbf16>
    %3 = tpu.iota {dimensions = array<i32: 1>} : vector<128x128xi32>
    %c0_3 = arith.constant 0 : index
    %c0_4 = arith.constant 0 : index
    %4 = vector.load %arg2[%c0_3, %c0_4] : memref<128x1xi32, #tpu.memory_space<vmem>>, vector<128x1xi32>
    %5 = vector.broadcast %4 : vector<128x1xi32> to vector<128x128xi32>
    %6 = arith.cmpi eq, %3, %5 : vector<128x128xi32>
    %7 = arith.extui %6 : vector<128x128xi1> to vector<128x128xi32>
    %8 = arith.sitofp %7 : vector<128x128xi32> to vector<128x128xf32>
    %9 = arith.truncf %8 : vector<128x128xf32> to vector<128x128xbf16>
    %10 = tpu.iota {dimensions = array<i32: 0>} : vector<128x128xi32>
    %c0_5 = arith.constant 0 : index
    %c0_6 = arith.constant 0 : index
    %11 = vector.load %arg3[%c0_5, %c0_6] : memref<1x128xi32, #tpu.memory_space<vmem>>, vector<1x128xi32>
    %12 = vector.broadcast %11 : vector<1x128xi32> to vector<128x128xi32>
    %13 = arith.cmpi eq, %10, %12 : vector<128x128xi32>
    %14 = arith.extui %13 : vector<128x128xi1> to vector<128x128xi32>
    %15 = arith.sitofp %14 : vector<128x128xi32> to vector<128x128xf32>
    %16 = arith.truncf %15 : vector<128x128xf32> to vector<128x128xbf16>
    %17 = tpu.iota {dimensions = array<i32: 0>} : vector<8x128xi32>
    %c0_7 = arith.constant 0 : index
    %c0_8 = arith.constant 0 : index
    %18 = vector.load %arg4[%c0_7, %c0_8] : memref<1x128xi32, #tpu.memory_space<vmem>>, vector<1x128xi32>
    %19 = vector.broadcast %18 : vector<1x128xi32> to vector<8x128xi32>
    %20 = arith.cmpi eq, %17, %19 : vector<8x128xi32>
    %21 = arith.extui %20 : vector<8x128xi1> to vector<8x128xi32>
    %22 = arith.sitofp %21 : vector<8x128xi32> to vector<8x128xf32>
    %23 = arith.truncf %22 : vector<8x128xf32> to vector<8x128xbf16>
    %c0_9 = arith.constant 0 : index
    %c0_10 = arith.constant 0 : index
    %24 = vector.load %arg5[%c0_9, %c0_10] : memref<128x1xf32, #tpu.memory_space<vmem>>, vector<128x1xf32>
    %25 = tpu.iota {dimensions = array<i32: 1>} : vector<1x128xi32>
    %c32_i32 = arith.constant 32 : i32
    %26 = vector.broadcast %c32_i32 : i32 to vector<1x128xi32>
    %27 = arith.cmpi slt, %25, %26 : vector<1x128xi32>
    %c0_11 = arith.constant 0 : index
    %c0_12 = arith.constant 0 : index
    %28 = vector.load %arg8[%c0_11, %c0_12] : memref<8x256xbf16, #tpu.memory_space<vmem>>, vector<8x256xbf16>
    %cst = arith.constant dense<0.000000e+00> : vector<128x256xf32>
    %29 = tpu.matmul %2, %28, %cst {dimension_numbers = #tpu.dot_dimension_numbers<[1], [0], [0], [1], [0, 0, 1, 1], [], []>} : vector<128x8xbf16>, vector<8x256xbf16>, vector<128x256xf32> -> vector<128x256xf32>
    %c0_13 = arith.constant 0 : index
    %c0_14 = arith.constant 0 : index
    %30 = vector.load %arg9[%c0_13, %c0_14] : memref<1x256xf32, #tpu.memory_space<vmem>>, vector<1x256xf32>
    %31 = vector.broadcast %30 : vector<1x256xf32> to vector<128x256xf32>
    %32 = arith.addf %29, %31 : vector<128x256xf32>
    %33 = arith.truncf %0 : vector<128x128xf32> to vector<128x128xbf16>
    %cst_15 = arith.constant dense<0.000000e+00> : vector<128x128xf32>
    %34 = tpu.matmul %9, %33, %cst_15 {dimension_numbers = #tpu.dot_dimension_numbers<[1], [0], [0], [1], [0, 0, 1, 1], [], []>} : vector<128x128xbf16>, vector<128x128xbf16>, vector<128x128xf32> -> vector<128x128xf32>
    %c0_16 = arith.constant 0 : index
    %c0_17 = arith.constant 0 : index
    %35 = vector.load %arg7[%c0_16, %c0_17] : memref<128x1024xbf16, #tpu.memory_space<vmem>>, vector<128x256xbf16>
    %36 = arith.truncf %34 : vector<128x128xf32> to vector<128x128xbf16>
    %cst_18 = arith.constant dense<0.000000e+00> : vector<128x256xf32>
    %37 = tpu.matmul %36, %35, %cst_18 {dimension_numbers = #tpu.dot_dimension_numbers<[1], [0], [0], [1], [0, 0, 1, 1], [], []>} : vector<128x128xbf16>, vector<128x256xbf16>, vector<128x256xf32> -> vector<128x256xf32>
    %cst_19 = arith.constant 0.000000e+00 : f32
    %38 = vector.broadcast %cst_19 : f32 to vector<128x128xf32>
    %39 = vector.extract_strided_slice %37 {offsets = [0, 0], sizes = [128, 128], strides = [1, 1]} : vector<128x256xf32> to vector<128x128xf32>
    %40 = vector.extract_strided_slice %32 {offsets = [0, 0], sizes = [128, 128], strides = [1, 1]} : vector<128x256xf32> to vector<128x128xf32>
    %41 = arith.mulf %39, %40 : vector<128x128xf32>
    %42 = arith.addf %38, %41 : vector<128x128xf32>
    %43 = vector.extract_strided_slice %37 {offsets = [0, 128], sizes = [128, 128], strides = [1, 1]} : vector<128x256xf32> to vector<128x128xf32>
    %44 = vector.extract_strided_slice %32 {offsets = [0, 128], sizes = [128, 128], strides = [1, 1]} : vector<128x256xf32> to vector<128x128xf32>
    %45 = arith.mulf %43, %44 : vector<128x128xf32>
    %46 = arith.addf %42, %45 : vector<128x128xf32>
    %c64_i32 = arith.constant 64 : i32
    %47 = tpu.dynamic_rotate %46 by %c64_i32 dim 1 : vector<128x128xf32>, i32 -> vector<128x128xf32>
    %48 = arith.addf %46, %47 : vector<128x128xf32>
    %c32_i32_20 = arith.constant 32 : i32
    %49 = tpu.dynamic_rotate %48 by %c32_i32_20 dim 1 : vector<128x128xf32>, i32 -> vector<128x128xf32>
    %50 = arith.addf %48, %49 : vector<128x128xf32>
    %cst_21 = arith.constant 0.000000e+00 : f32
    %51 = vector.shape_cast %27 : vector<1x128xi1> to vector<1x128xi1>
    %52 = vector.broadcast %51 : vector<1x128xi1> to vector<128x128xi1>
    %53 = vector.broadcast %cst_21 : f32 to vector<128x128xf32>
    %54 = arith.select %52, %50, %53 : vector<128x128xi1>, vector<128x128xf32>
    %55 = arith.truncf %54 : vector<128x128xf32> to vector<128x128xbf16>
    %cst_22 = arith.constant dense<0.000000e+00> : vector<128x128xf32>
    %56 = tpu.matmul %16, %55, %cst_22 {dimension_numbers = #tpu.dot_dimension_numbers<[1], [0], [0], [1], [0, 0, 1, 1], [], []>} : vector<128x128xbf16>, vector<128x128xbf16>, vector<128x128xf32> -> vector<128x128xf32>
    %c0_23 = arith.constant 0 : index
    %c0_24 = arith.constant 0 : index
    %57 = vector.load %arg10[%c0_23, %c0_24] : memref<128x128xbf16, #tpu.memory_space<vmem>>, vector<128x128xbf16>
    %58 = arith.truncf %0 : vector<128x128xf32> to vector<128x128xbf16>
    %cst_25 = arith.constant dense<0.000000e+00> : vector<128x128xf32>
    %59 = tpu.matmul %58, %57, %cst_25 {dimension_numbers = #tpu.dot_dimension_numbers<[1], [0], [0], [1], [0, 0, 1, 1], [], []>} : vector<128x128xbf16>, vector<128x128xbf16>, vector<128x128xf32> -> vector<128x128xf32>
    %60 = arith.addf %56, %59 : vector<128x128xf32>
    %c0_26 = arith.constant 0 : index
    %c0_27 = arith.constant 0 : index
    %61 = vector.load %arg11[%c0_26, %c0_27] : memref<1x128xf32, #tpu.memory_space<vmem>>, vector<1x128xf32>
    %62 = vector.broadcast %61 : vector<1x128xf32> to vector<128x128xf32>
    %63 = arith.addf %60, %62 : vector<128x128xf32>
    %64 = vector.broadcast %24 : vector<128x1xf32> to vector<128x128xf32>
    %65 = arith.mulf %63, %64 : vector<128x128xf32>
    %c0_28 = arith.constant 0 : index
    %c0_29 = arith.constant 0 : index
    %66 = vector.load %arg20[%c0_28, %c0_29] : memref<1x128xf32, #tpu.memory_space<vmem>>, vector<1x128xf32>
    %67 = vector.broadcast %66 : vector<1x128xf32> to vector<128x128xf32>
    %68 = arith.mulf %65, %67 : vector<128x128xf32>
    %c0_30 = arith.constant 0 : index
    %c0_31 = arith.constant 0 : index
    %69 = vector.load %arg21[%c0_30, %c0_31] : memref<1x128xf32, #tpu.memory_space<vmem>>, vector<1x128xf32>
    %70 = vector.broadcast %69 : vector<1x128xf32> to vector<128x128xf32>
    %71 = arith.addf %68, %70 : vector<128x128xf32>
    %cst_32 = arith.constant 0.000000e+00 : f32
    %72 = vector.broadcast %cst_32 : f32 to vector<128x128xf32>
    %73 = arith.maximumf %71, %72 : vector<128x128xf32>
    %c0_33 = arith.constant 0 : index
    %c0_34 = arith.constant 0 : index
    %74 = vector.load %arg12[%c0_33, %c0_34] : memref<8x1024xbf16, #tpu.memory_space<vmem>>, vector<8x1024xbf16>
    %cst_35 = arith.constant dense<0.000000e+00> : vector<128x1024xf32>
    %75 = tpu.matmul %2, %74, %cst_35 {dimension_numbers = #tpu.dot_dimension_numbers<[1], [0], [0], [1], [0, 0, 1, 1], [], []>} : vector<128x8xbf16>, vector<8x1024xbf16>, vector<128x1024xf32> -> vector<128x1024xf32>
    %c0_36 = arith.constant 0 : index
    %c0_37 = arith.constant 0 : index
    %76 = vector.load %arg13[%c0_36, %c0_37] : memref<1x1024xf32, #tpu.memory_space<vmem>>, vector<1x1024xf32>
    %77 = vector.broadcast %76 : vector<1x1024xf32> to vector<128x1024xf32>
    %78 = arith.addf %75, %77 : vector<128x1024xf32>
    %79 = arith.truncf %73 : vector<128x128xf32> to vector<128x128xbf16>
    %cst_38 = arith.constant dense<0.000000e+00> : vector<128x128xf32>
    %80 = tpu.matmul %9, %79, %cst_38 {dimension_numbers = #tpu.dot_dimension_numbers<[1], [0], [0], [1], [0, 0, 1, 1], [], []>} : vector<128x128xbf16>, vector<128x128xbf16>, vector<128x128xf32> -> vector<128x128xf32>
    %c0_39 = arith.constant 0 : index
    %c0_40 = arith.constant 0 : index
    %81 = vector.load %arg7[%c0_39, %c0_40] : memref<128x1024xbf16, #tpu.memory_space<vmem>>, vector<128x1024xbf16>
    %82 = arith.truncf %80 : vector<128x128xf32> to vector<128x128xbf16>
    %cst_41 = arith.constant dense<0.000000e+00> : vector<128x1024xf32>
    %83 = tpu.matmul %82, %81, %cst_41 {dimension_numbers = #tpu.dot_dimension_numbers<[1], [0], [0], [1], [0, 0, 1, 1], [], []>} : vector<128x128xbf16>, vector<128x1024xbf16>, vector<128x1024xf32> -> vector<128x1024xf32>
    %cst_42 = arith.constant 0.000000e+00 : f32
    %84 = vector.broadcast %cst_42 : f32 to vector<128x128xf32>
    %85 = vector.extract_strided_slice %83 {offsets = [0, 0], sizes = [128, 128], strides = [1, 1]} : vector<128x1024xf32> to vector<128x128xf32>
    %86 = vector.extract_strided_slice %78 {offsets = [0, 0], sizes = [128, 128], strides = [1, 1]} : vector<128x1024xf32> to vector<128x128xf32>
    %87 = arith.mulf %85, %86 : vector<128x128xf32>
    %88 = arith.addf %84, %87 : vector<128x128xf32>
    %89 = vector.extract_strided_slice %83 {offsets = [0, 128], sizes = [128, 128], strides = [1, 1]} : vector<128x1024xf32> to vector<128x128xf32>
    %90 = vector.extract_strided_slice %78 {offsets = [0, 128], sizes = [128, 128], strides = [1, 1]} : vector<128x1024xf32> to vector<128x128xf32>
    %91 = arith.mulf %89, %90 : vector<128x128xf32>
    %92 = arith.addf %88, %91 : vector<128x128xf32>
    %93 = vector.extract_strided_slice %83 {offsets = [0, 256], sizes = [128, 128], strides = [1, 1]} : vector<128x1024xf32> to vector<128x128xf32>
    %94 = vector.extract_strided_slice %78 {offsets = [0, 256], sizes = [128, 128], strides = [1, 1]} : vector<128x1024xf32> to vector<128x128xf32>
    %95 = arith.mulf %93, %94 : vector<128x128xf32>
    %96 = arith.addf %92, %95 : vector<128x128xf32>
    %97 = vector.extract_strided_slice %83 {offsets = [0, 384], sizes = [128, 128], strides = [1, 1]} : vector<128x1024xf32> to vector<128x128xf32>
    %98 = vector.extract_strided_slice %78 {offsets = [0, 384], sizes = [128, 128], strides = [1, 1]} : vector<128x1024xf32> to vector<128x128xf32>
    %99 = arith.mulf %97, %98 : vector<128x128xf32>
    %100 = arith.addf %96, %99 : vector<128x128xf32>
    %101 = vector.extract_strided_slice %83 {offsets = [0, 512], sizes = [128, 128], strides = [1, 1]} : vector<128x1024xf32> to vector<128x128xf32>
    %102 = vector.extract_strided_slice %78 {offsets = [0, 512], sizes = [128, 128], strides = [1, 1]} : vector<128x1024xf32> to vector<128x128xf32>
    %103 = arith.mulf %101, %102 : vector<128x128xf32>
    %104 = arith.addf %100, %103 : vector<128x128xf32>
    %105 = vector.extract_strided_slice %83 {offsets = [0, 640], sizes = [128, 128], strides = [1, 1]} : vector<128x1024xf32> to vector<128x128xf32>
    %106 = vector.extract_strided_slice %78 {offsets = [0, 640], sizes = [128, 128], strides = [1, 1]} : vector<128x1024xf32> to vector<128x128xf32>
    %107 = arith.mulf %105, %106 : vector<128x128xf32>
    %108 = arith.addf %104, %107 : vector<128x128xf32>
    %109 = vector.extract_strided_slice %83 {offsets = [0, 768], sizes = [128, 128], strides = [1, 1]} : vector<128x1024xf32> to vector<128x128xf32>
    %110 = vector.extract_strided_slice %78 {offsets = [0, 768], sizes = [128, 128], strides = [1, 1]} : vector<128x1024xf32> to vector<128x128xf32>
    %111 = arith.mulf %109, %110 : vector<128x128xf32>
    %112 = arith.addf %108, %111 : vector<128x128xf32>
    %113 = vector.extract_strided_slice %83 {offsets = [0, 896], sizes = [128, 128], strides = [1, 1]} : vector<128x1024xf32> to vector<128x128xf32>
    %114 = vector.extract_strided_slice %78 {offsets = [0, 896], sizes = [128, 128], strides = [1, 1]} : vector<128x1024xf32> to vector<128x128xf32>
    %115 = arith.mulf %113, %114 : vector<128x128xf32>
    %116 = arith.addf %112, %115 : vector<128x128xf32>
    %c64_i32_43 = arith.constant 64 : i32
    %117 = tpu.dynamic_rotate %116 by %c64_i32_43 dim 1 : vector<128x128xf32>, i32 -> vector<128x128xf32>
    %118 = arith.addf %116, %117 : vector<128x128xf32>
    %c32_i32_44 = arith.constant 32 : i32
    %119 = tpu.dynamic_rotate %118 by %c32_i32_44 dim 1 : vector<128x128xf32>, i32 -> vector<128x128xf32>
    %120 = arith.addf %118, %119 : vector<128x128xf32>
    %cst_45 = arith.constant 0.000000e+00 : f32
    %121 = vector.shape_cast %27 : vector<1x128xi1> to vector<1x128xi1>
    %122 = vector.broadcast %121 : vector<1x128xi1> to vector<128x128xi1>
    %123 = vector.broadcast %cst_45 : f32 to vector<128x128xf32>
    %124 = arith.select %122, %120, %123 : vector<128x128xi1>, vector<128x128xf32>
    %125 = arith.truncf %124 : vector<128x128xf32> to vector<128x128xbf16>
    %cst_46 = arith.constant dense<0.000000e+00> : vector<128x128xf32>
    %126 = tpu.matmul %16, %125, %cst_46 {dimension_numbers = #tpu.dot_dimension_numbers<[1], [0], [0], [1], [0, 0, 1, 1], [], []>} : vector<128x128xbf16>, vector<128x128xbf16>, vector<128x128xf32> -> vector<128x128xf32>
    %c0_47 = arith.constant 0 : index
    %c0_48 = arith.constant 0 : index
    %127 = vector.load %arg14[%c0_47, %c0_48] : memref<128x128xbf16, #tpu.memory_space<vmem>>, vector<128x128xbf16>
    %128 = arith.truncf %73 : vector<128x128xf32> to vector<128x128xbf16>
    %cst_49 = arith.constant dense<0.000000e+00> : vector<128x128xf32>
    %129 = tpu.matmul %128, %127, %cst_49 {dimension_numbers = #tpu.dot_dimension_numbers<[1], [0], [0], [1], [0, 0, 1, 1], [], []>} : vector<128x128xbf16>, vector<128x128xbf16>, vector<128x128xf32> -> vector<128x128xf32>
    %130 = arith.addf %126, %129 : vector<128x128xf32>
    %c0_50 = arith.constant 0 : index
    %c0_51 = arith.constant 0 : index
    %131 = vector.load %arg15[%c0_50, %c0_51] : memref<1x128xf32, #tpu.memory_space<vmem>>, vector<1x128xf32>
    %132 = vector.broadcast %131 : vector<1x128xf32> to vector<128x128xf32>
    %133 = arith.addf %130, %132 : vector<128x128xf32>
    %134 = vector.broadcast %24 : vector<128x1xf32> to vector<128x128xf32>
    %135 = arith.mulf %133, %134 : vector<128x128xf32>
    %c0_52 = arith.constant 0 : index
    %c0_53 = arith.constant 0 : index
    %136 = vector.load %arg22[%c0_52, %c0_53] : memref<1x128xf32, #tpu.memory_space<vmem>>, vector<1x128xf32>
    %137 = vector.broadcast %136 : vector<1x128xf32> to vector<128x128xf32>
    %138 = arith.mulf %135, %137 : vector<128x128xf32>
    %c0_54 = arith.constant 0 : index
    %c0_55 = arith.constant 0 : index
    %139 = vector.load %arg23[%c0_54, %c0_55] : memref<1x128xf32, #tpu.memory_space<vmem>>, vector<1x128xf32>
    %140 = vector.broadcast %139 : vector<1x128xf32> to vector<128x128xf32>
    %141 = arith.addf %138, %140 : vector<128x128xf32>
    %cst_56 = arith.constant 0.000000e+00 : f32
    %142 = vector.broadcast %cst_56 : f32 to vector<128x128xf32>
    %143 = arith.maximumf %141, %142 : vector<128x128xf32>
    %c0_57 = arith.constant 0 : index
    %c0_58 = arith.constant 0 : index
    %144 = vector.load %arg16[%c0_57, %c0_58] : memref<8x1024xbf16, #tpu.memory_space<vmem>>, vector<8x1024xbf16>
    %cst_59 = arith.constant dense<0.000000e+00> : vector<128x1024xf32>
    %145 = tpu.matmul %2, %144, %cst_59 {dimension_numbers = #tpu.dot_dimension_numbers<[1], [0], [0], [1], [0, 0, 1, 1], [], []>} : vector<128x8xbf16>, vector<8x1024xbf16>, vector<128x1024xf32> -> vector<128x1024xf32>
    %c0_60 = arith.constant 0 : index
    %c0_61 = arith.constant 0 : index
    %146 = vector.load %arg17[%c0_60, %c0_61] : memref<1x1024xf32, #tpu.memory_space<vmem>>, vector<1x1024xf32>
    %147 = vector.broadcast %146 : vector<1x1024xf32> to vector<128x1024xf32>
    %148 = arith.addf %145, %147 : vector<128x1024xf32>
    %149 = arith.truncf %143 : vector<128x128xf32> to vector<128x128xbf16>
    %cst_62 = arith.constant dense<0.000000e+00> : vector<128x128xf32>
    %150 = tpu.matmul %9, %149, %cst_62 {dimension_numbers = #tpu.dot_dimension_numbers<[1], [0], [0], [1], [0, 0, 1, 1], [], []>} : vector<128x128xbf16>, vector<128x128xbf16>, vector<128x128xf32> -> vector<128x128xf32>
    %c0_63 = arith.constant 0 : index
    %c0_64 = arith.constant 0 : index
    %151 = vector.load %arg7[%c0_63, %c0_64] : memref<128x1024xbf16, #tpu.memory_space<vmem>>, vector<128x1024xbf16>
    %152 = arith.truncf %150 : vector<128x128xf32> to vector<128x128xbf16>
    %cst_65 = arith.constant dense<0.000000e+00> : vector<128x1024xf32>
    %153 = tpu.matmul %152, %151, %cst_65 {dimension_numbers = #tpu.dot_dimension_numbers<[1], [0], [0], [1], [0, 0, 1, 1], [], []>} : vector<128x128xbf16>, vector<128x1024xbf16>, vector<128x1024xf32> -> vector<128x1024xf32>
    %cst_66 = arith.constant 0.000000e+00 : f32
    %154 = vector.broadcast %cst_66 : f32 to vector<128x128xf32>
    %155 = vector.extract_strided_slice %153 {offsets = [0, 0], sizes = [128, 128], strides = [1, 1]} : vector<128x1024xf32> to vector<128x128xf32>
    %156 = vector.extract_strided_slice %148 {offsets = [0, 0], sizes = [128, 128], strides = [1, 1]} : vector<128x1024xf32> to vector<128x128xf32>
    %157 = arith.mulf %155, %156 : vector<128x128xf32>
    %158 = arith.addf %154, %157 : vector<128x128xf32>
    %159 = vector.extract_strided_slice %153 {offsets = [0, 128], sizes = [128, 128], strides = [1, 1]} : vector<128x1024xf32> to vector<128x128xf32>
    %160 = vector.extract_strided_slice %148 {offsets = [0, 128], sizes = [128, 128], strides = [1, 1]} : vector<128x1024xf32> to vector<128x128xf32>
    %161 = arith.mulf %159, %160 : vector<128x128xf32>
    %162 = arith.addf %158, %161 : vector<128x128xf32>
    %163 = vector.extract_strided_slice %153 {offsets = [0, 256], sizes = [128, 128], strides = [1, 1]} : vector<128x1024xf32> to vector<128x128xf32>
    %164 = vector.extract_strided_slice %148 {offsets = [0, 256], sizes = [128, 128], strides = [1, 1]} : vector<128x1024xf32> to vector<128x128xf32>
    %165 = arith.mulf %163, %164 : vector<128x128xf32>
    %166 = arith.addf %162, %165 : vector<128x128xf32>
    %167 = vector.extract_strided_slice %153 {offsets = [0, 384], sizes = [128, 128], strides = [1, 1]} : vector<128x1024xf32> to vector<128x128xf32>
    %168 = vector.extract_strided_slice %148 {offsets = [0, 384], sizes = [128, 128], strides = [1, 1]} : vector<128x1024xf32> to vector<128x128xf32>
    %169 = arith.mulf %167, %168 : vector<128x128xf32>
    %170 = arith.addf %166, %169 : vector<128x128xf32>
    %171 = vector.extract_strided_slice %153 {offsets = [0, 512], sizes = [128, 128], strides = [1, 1]} : vector<128x1024xf32> to vector<128x128xf32>
    %172 = vector.extract_strided_slice %148 {offsets = [0, 512], sizes = [128, 128], strides = [1, 1]} : vector<128x1024xf32> to vector<128x128xf32>
    %173 = arith.mulf %171, %172 : vector<128x128xf32>
    %174 = arith.addf %170, %173 : vector<128x128xf32>
    %175 = vector.extract_strided_slice %153 {offsets = [0, 640], sizes = [128, 128], strides = [1, 1]} : vector<128x1024xf32> to vector<128x128xf32>
    %176 = vector.extract_strided_slice %148 {offsets = [0, 640], sizes = [128, 128], strides = [1, 1]} : vector<128x1024xf32> to vector<128x128xf32>
    %177 = arith.mulf %175, %176 : vector<128x128xf32>
    %178 = arith.addf %174, %177 : vector<128x128xf32>
    %179 = vector.extract_strided_slice %153 {offsets = [0, 768], sizes = [128, 128], strides = [1, 1]} : vector<128x1024xf32> to vector<128x128xf32>
    %180 = vector.extract_strided_slice %148 {offsets = [0, 768], sizes = [128, 128], strides = [1, 1]} : vector<128x1024xf32> to vector<128x128xf32>
    %181 = arith.mulf %179, %180 : vector<128x128xf32>
    %182 = arith.addf %178, %181 : vector<128x128xf32>
    %183 = vector.extract_strided_slice %153 {offsets = [0, 896], sizes = [128, 128], strides = [1, 1]} : vector<128x1024xf32> to vector<128x128xf32>
    %184 = vector.extract_strided_slice %148 {offsets = [0, 896], sizes = [128, 128], strides = [1, 1]} : vector<128x1024xf32> to vector<128x128xf32>
    %185 = arith.mulf %183, %184 : vector<128x128xf32>
    %186 = arith.addf %182, %185 : vector<128x128xf32>
    %c64_i32_67 = arith.constant 64 : i32
    %187 = tpu.dynamic_rotate %186 by %c64_i32_67 dim 1 : vector<128x128xf32>, i32 -> vector<128x128xf32>
    %188 = arith.addf %186, %187 : vector<128x128xf32>
    %c32_i32_68 = arith.constant 32 : i32
    %189 = tpu.dynamic_rotate %188 by %c32_i32_68 dim 1 : vector<128x128xf32>, i32 -> vector<128x128xf32>
    %190 = arith.addf %188, %189 : vector<128x128xf32>
    %cst_69 = arith.constant 0.000000e+00 : f32
    %191 = vector.shape_cast %27 : vector<1x128xi1> to vector<1x128xi1>
    %192 = vector.broadcast %191 : vector<1x128xi1> to vector<128x128xi1>
    %193 = vector.broadcast %cst_69 : f32 to vector<128x128xf32>
    %194 = arith.select %192, %190, %193 : vector<128x128xi1>, vector<128x128xf32>
    %195 = arith.truncf %194 : vector<128x128xf32> to vector<128x128xbf16>
    %cst_70 = arith.constant dense<0.000000e+00> : vector<128x128xf32>
    %196 = tpu.matmul %16, %195, %cst_70 {dimension_numbers = #tpu.dot_dimension_numbers<[1], [0], [0], [1], [0, 0, 1, 1], [], []>} : vector<128x128xbf16>, vector<128x128xbf16>, vector<128x128xf32> -> vector<128x128xf32>
    %c0_71 = arith.constant 0 : index
    %c0_72 = arith.constant 0 : index
    %197 = vector.load %arg18[%c0_71, %c0_72] : memref<128x128xbf16, #tpu.memory_space<vmem>>, vector<128x128xbf16>
    %198 = arith.truncf %143 : vector<128x128xf32> to vector<128x128xbf16>
    %cst_73 = arith.constant dense<0.000000e+00> : vector<128x128xf32>
    %199 = tpu.matmul %198, %197, %cst_73 {dimension_numbers = #tpu.dot_dimension_numbers<[1], [0], [0], [1], [0, 0, 1, 1], [], []>} : vector<128x128xbf16>, vector<128x128xbf16>, vector<128x128xf32> -> vector<128x128xf32>
    %200 = arith.addf %196, %199 : vector<128x128xf32>
    %c0_74 = arith.constant 0 : index
    %c0_75 = arith.constant 0 : index
    %201 = vector.load %arg19[%c0_74, %c0_75] : memref<1x128xf32, #tpu.memory_space<vmem>>, vector<1x128xf32>
    %202 = vector.broadcast %201 : vector<1x128xf32> to vector<128x128xf32>
    %203 = arith.addf %200, %202 : vector<128x128xf32>
    %204 = arith.truncf %203 : vector<128x128xf32> to vector<128x128xbf16>
    %cst_76 = arith.constant dense<0.000000e+00> : vector<8x128xf32>
    %205 = tpu.matmul %23, %204, %cst_76 {dimension_numbers = #tpu.dot_dimension_numbers<[1], [0], [0], [1], [0, 0, 1, 1], [], []>} : vector<8x128xbf16>, vector<128x128xbf16>, vector<8x128xf32> -> vector<8x128xf32>
    %c0_77 = arith.constant 0 : index
    %c0_78 = arith.constant 0 : index
    %206 = vector.load %arg6[%c0_77, %c0_78] : memref<8x1xf32, #tpu.memory_space<vmem>>, vector<8x1xf32>
    %207 = vector.broadcast %206 : vector<8x1xf32> to vector<8x128xf32>
    %208 = arith.mulf %205, %207 : vector<8x128xf32>
    %c0_79 = arith.constant 0 : index
    %c0_80 = arith.constant 0 : index
    %209 = vector.load %arg24[%c0_79, %c0_80] : memref<128x128xf32, #tpu.memory_space<vmem>>, vector<128x128xf32>
    %cst_81 = arith.constant dense<0.000000e+00> : vector<8x128xf32>
    %210 = tpu.matmul %208, %209, %cst_81 {dimension_numbers = #tpu.dot_dimension_numbers<[1], [0], [0], [1], [0, 0, 1, 1], [], []>} : vector<8x128xf32>, vector<128x128xf32>, vector<8x128xf32> -> vector<8x128xf32>
    %c0_82 = arith.constant 0 : index
    %c0_83 = arith.constant 0 : index
    %211 = vector.load %arg25[%c0_82, %c0_83] : memref<1x128xf32, #tpu.memory_space<vmem>>, vector<1x128xf32>
    %212 = vector.broadcast %211 : vector<1x128xf32> to vector<8x128xf32>
    %213 = arith.addf %210, %212 : vector<8x128xf32>
    %cst_84 = arith.constant 0.000000e+00 : f32
    %214 = vector.broadcast %cst_84 : f32 to vector<8x128xf32>
    %215 = arith.maximumf %213, %214 : vector<8x128xf32>
    %c0_85 = arith.constant 0 : index
    %c0_86 = arith.constant 0 : index
    %216 = vector.load %arg26[%c0_85, %c0_86] : memref<128x128xf32, #tpu.memory_space<vmem>>, vector<128x128xf32>
    %cst_87 = arith.constant dense<0.000000e+00> : vector<8x128xf32>
    %217 = tpu.matmul %215, %216, %cst_87 {dimension_numbers = #tpu.dot_dimension_numbers<[1], [0], [0], [1], [0, 0, 1, 1], [], []>} : vector<8x128xf32>, vector<128x128xf32>, vector<8x128xf32> -> vector<8x128xf32>
    %c0_88 = arith.constant 0 : index
    %c0_89 = arith.constant 0 : index
    %218 = vector.load %arg27[%c0_88, %c0_89] : memref<1x128xf32, #tpu.memory_space<vmem>>, vector<1x128xf32>
    %219 = vector.broadcast %218 : vector<1x128xf32> to vector<8x128xf32>
    %220 = arith.addf %217, %219 : vector<8x128xf32>
    %c0_90 = arith.constant 0 : index
    %c0_91 = arith.constant 0 : index
    %221 = vector.load %arg28[%c0_90, %c0_91] : memref<8x128xf32, #tpu.memory_space<vmem>>, vector<8x128xf32>
    tpu.vector_store %arg28[%c0_90, %c0_91], %220 {strides = array<i32>} : memref<8x128xf32, #tpu.memory_space<vmem>>, vector<8x128xf32>,
    return
  }
}

</mosaic_0001>

<bundles_post_ra>
// kernel: tpu_custom_call.1
= control target key start
LH: loop header
LB: loop body
LE: loop exit
PB: predicated region body
PF: predicated region fallthrough
CT: control target
= control target key end

     0   :  { %s10989_s0 = inlined_call_operand.vmem [shape: f32[128,128], index: 0, kind: input, shape index: {}]   ;;  %s10990_s1 = inlined_call_operand.vmem [shape: f32[128,8], index: 1, kind: input, shape index: {}]   ;;  %s10991_s2 = inlined_call_operand.vmem [shape: s32[128,1], index: 2, kind: input, shape index: {}]   ;;  %s10992_s3 = inlined_call_operand.hbm [shape: s32[1,128], index: 3, kind: input, shape index: {}]   ;;  %s10993_s4 = inlined_call_operand.hbm [shape: s32[1,128], index: 4, kind: input, shape index: {}]   ;;  %s10994_s5 = inlined_call_operand.vmem [shape: f32[128,1], index: 5, kind: input, shape index: {}]   ;;  %s10995_s6 = inlined_call_operand.vmem [shape: f32[8,1], index: 6, kind: input, shape index: {}]   ;;  %s10996_s7 = inlined_call_operand.hbm [shape: bf16[128,1024], index: 7, kind: input, shape index: {}]   ;;  %s10997_s8 = inlined_call_operand.hbm [shape: bf16[8,256], index: 8, kind: input, shape index: {}]   ;;  %s10998_s9 = inlined_call_operand.hbm [shape: f32[1,256], index: 9, kind: input, shape index: {}]   ;;  %s10999_s10 = inlined_call_operand.hbm [shape: bf16[128,128], index: 10, kind: input, shape index: {}]   ;;  %s11000_s11 = inlined_call_operand.hbm [shape: f32[1,128], index: 11, kind: input, shape index: {}]   ;;  %s11001_s12 = inlined_call_operand.hbm [shape: bf16[8,1024], index: 12, kind: input, shape index: {}]   ;;  %s11002_s13 = inlined_call_operand.hbm [shape: f32[1,1024], index: 13, kind: input, shape index: {}]   ;;  %s11003_s14 = inlined_call_operand.vmem [shape: bf16[128,128], index: 14, kind: input, shape index: {}]   ;;  %s11004_s15 = inlined_call_operand.vmem [shape: f32[1,128], index: 15, kind: input, shape index: {}]   ;;  %s11005_s16 = inlined_call_operand.hbm [shape: bf16[8,1024], index: 16, kind: input, shape index: {}]   ;;  %s11006_s17 = inlined_call_operand.vmem [shape: f32[1,1024], index: 17, kind: input, shape index: {}]   ;;  %s11007_s18 = inlined_call_operand.hbm [shape: bf16[128,128], index: 18, kind: input, shape index: {}]   ;;  %s11008_s19 = inlined_call_operand.vmem [shape: f32[1,128], index: 19, kind: input, shape index: {}]   ;;  %s11009_s20 = inlined_call_operand.vmem [shape: f32[1,128], index: 20, kind: input, shape index: {}]   ;;  %s11010_s21 = inlined_call_operand.vmem [shape: f32[1,128], index: 21, kind: input, shape index: {}]   ;;  %s11011_s22 = inlined_call_operand.vmem [shape: f32[1,128], index: 22, kind: input, shape index: {}]   ;;  %s11012_s23 = inlined_call_operand.vmem [shape: f32[1,128], index: 23, kind: input, shape index: {}]   ;;  %s11013_s24 = inlined_call_operand.vmem [shape: f32[128,128], index: 24, kind: input, shape index: {}]   ;;  %s11014_s25 = inlined_call_operand.vmem [shape: f32[1,128], index: 25, kind: input, shape index: {}]   ;;  %s11015_s26 = inlined_call_operand.vmem [shape: f32[128,128], index: 26, kind: input, shape index: {}]   ;;  %s11016_s27 = inlined_call_operand.vmem [shape: f32[1,128], index: 27, kind: input, shape index: {}]   ;;  %s11017_s28 = inlined_call_operand.hbm [shape: f32[8,128], index: 28, kind: output, shape index: {}]  }
   0x1   :  { %11197 = sst [smem:[#allocation231_spill]] %s10989_s0 }
   0x2   :  { %11198 = sst [smem:[#allocation232_spill]] %s10990_s1 }
   0x3   :  { %11199 = sst [smem:[#allocation233_spill]] %s10991_s2 }
   0x4   :  { %11200 = sst [smem:[#allocation234_spill]] %s10992_s3 }
   0x5   :  { %11201 = sst [smem:[#allocation235_spill]] %s10993_s4 }
   0x6   :  { %11202 = sst [smem:[#allocation236_spill]] %s10994_s5 }
   0x7   :  { %11203 = sst [smem:[#allocation237_spill]] %s10995_s6 }
   0x8   :  { %11204 = sst [smem:[#allocation238_spill]] %s10996_s7 }
   0x9   :  { %11205 = sst [smem:[#allocation239_spill]] %s10997_s8 }
   0xa   :  { %11206 = sst [smem:[#allocation240_spill]] %s10998_s9 }
   0xb   :  { %11207 = sst [smem:[#allocation241_spill]] %s10999_s10 }
   0xc   :  { %11208 = sst [smem:[#allocation242_spill]] %s11000_s11 }
   0xd   :  { %11209 = sst [smem:[#allocation243_spill]] %s11001_s12 }
   0xe   :  { %11210 = sst [smem:[#allocation244_spill]] %s11014_s25 }
   0xf   :  { %11211 = sst [smem:[#allocation245_spill]] %s11016_s27 }
  0x10   :  { %11212 = sst [smem:[#allocation246_spill]] %s11017_s28 }
  0x11   :  { %33 = vsyncpa [#allocation3], 0 }
  0x12   :  { %34 = vsyncpa [#allocation6], 0 }
  0x13   :  { %35 = vsyncpa [#allocation9], 0 }
  0x14   :  { %36 = vsyncpa [#allocation12], 0 }
  0x15   :  { %37 = vsyncpa [#allocation15], 0 }
  0x16   :  { %38 = vsyncpa [#allocation18], 0 }
  0x17   :  { %39 = vsyncpa [#allocation4], 0  ;;  %s7276_s8 = smov [#allocation5]   ;;  %s7277_s9 = smov [#allocation8]  }
  0x18   :  { %s62_s5 = sshll.u32 %s7276_s8, 4  ;;  %s88_s30 = sshll.u32 %s7277_s9, 4  ;;  %s63_s5 = int_to_ptr.vmem [resolvable:$true] %s62_s5  ;;  %s89_s30 = int_to_ptr.vmem [resolvable:$true] %s88_s30 }
  0x19   :  { %s11213_s10 = sld [smem:[#allocation235_spill]] }
  0x1f   :  { %s6998_s0 = scalar_lea.hbm %s11213_s10, 16 }
  0x20   :  { %p6999_p0 = scmp.ne.s32.totalorder %s11213_s10, %s6998_s0  ;;  %p7002_p1 = scmp.lt.u32.totalorder %s6998_s0, %s11213_s10 }
  0x22   :  { %p7004_p2 = pnand %p7002_p1, %p6999_p0 }
  0x24   :  { %7007 = shalt.err (!%p7004_p2)
}
  0x25   :  { %s7008_s12 = scalar_lea.vmem %s63_s5, 16  ;;  %s7012_s1 = scalar_lea.vmem %s63_s5, 32 }
  0x26   :  { %p7009_p3 = scmp.ne.s32.totalorder %s63_s5, %s7008_s12  ;;  %p7013_p4 = scmp.lt.s32.totalorder %s63_s5, %s63_s5 }
  0x27   :  { %p7014_p5 = scmp.lt.s32.totalorder %s7012_s1, %s7008_s12 }
  0x29   :  { %p7015_p6 = por %p7014_p5, %p7013_p4 }
  0x2b   :  { %p7016_p7 = pnand %p7015_p6, %p7009_p3 }
  0x2d   :  { %7019 = shalt.err (!%p7016_p7)
}
  0x2e   :  { %65 = dma.hbm_to_vmem [thread:$0]  %s11213_s10, 16, %s63_s5, [#allocation6]  }
  0x2f   :  { %s11214_s6 = sld [smem:[#allocation239_spill]] }
  0x35   :  { %s7020_s11 = scalar_lea.hbm %s11214_s6, 128 }
  0x36   :  { %p7021_p8 = scmp.ne.s32.totalorder %s11214_s6, %s7020_s11  ;;  %p7024_p9 = scmp.lt.u32.totalorder %s7020_s11, %s11214_s6 }
  0x38   :  { %p7026_p10 = pnand %p7024_p9, %p7021_p8 }
  0x3a   :  { %7029 = shalt.err (!%p7026_p10)
}
  0x3b   :  { %s7030_s12 = scalar_lea.vmem %s89_s30, 128  ;;  %p7035_p12 = scmp.lt.s32.totalorder %s89_s30, %s89_s30 }
  0x3c   :  { %p7031_p11 = scmp.ne.s32.totalorder %s89_s30, %s7030_s12  ;;  %p7036_p13 = scmp.lt.s32.totalorder %s7030_s12, %s7030_s12 }
  0x3e   :  { %p7037_p0 = por %p7036_p13, %p7035_p12 }
  0x40   :  { %p7038_p1 = pnand %p7037_p0, %p7031_p11 }
  0x42   :  { %7041 = shalt.err (!%p7038_p1)
}
  0x43   :  { %91 = dma.hbm_to_vmem [thread:$0]  %s11214_s6, 128, %s89_s30, [#allocation9]  }
  0x44   :  { %s7278_s1 = smov [#allocation11]   ;;  %s11215_s3 = sld [smem:[#allocation241_spill]] }
  0x45   :  { %s107_s4 = sshll.u32 %s7278_s1, 4  ;;  %s108_s4 = int_to_ptr.vmem [resolvable:$true] %s107_s4 }
  0x4a   :  { %s7042_s11 = scalar_lea.hbm %s11215_s3, 1024 }
  0x4b   :  { %p7043_p2 = scmp.ne.s32.totalorder %s11215_s3, %s7042_s11  ;;  %p7046_p3 = scmp.lt.u32.totalorder %s7042_s11, %s11215_s3 }
  0x4d   :  { %p7048_p4 = pnand %p7046_p3, %p7043_p2 }
  0x4f   :  { %7051 = shalt.err (!%p7048_p4)
}
  0x50   :  { %s7052_s12 = scalar_lea.vmem %s108_s4, 1024  ;;  %p7057_p6 = scmp.lt.s32.totalorder %s108_s4, %s108_s4 }
  0x51   :  { %p7053_p5 = scmp.ne.s32.totalorder %s108_s4, %s7052_s12  ;;  %p7058_p7 = scmp.lt.s32.totalorder %s7052_s12, %s7052_s12 }
  0x53   :  { %p7059_p8 = por %p7058_p7, %p7057_p6 }
  0x55   :  { %p7060_p9 = pnand %p7059_p8, %p7053_p5 }
  0x57   :  { %7063 = shalt.err (!%p7060_p9)
}
  0x58   :  { %s11031_s30 = smov 64   ;;  %s7280_s6 = smov 4  }
  0x59   :  { %113 = dma.hbm_to_vmem [thread:$0]  %s11215_s3, 1024, %s108_s4, [#allocation12], %s11031_s30, %s11031_s30, %s7280_s6  }
  0x5a   :  { %s7281_s1 = smov [#allocation14]   ;;  %s7282_s9 = smov [#allocation17]  }
  0x5b   :  { %s130_s8 = sshll.u32 %s7281_s1, 4  ;;  %s154_s11 = sshll.u32 %s7282_s9, 4  ;;  %s131_s8 = int_to_ptr.vmem [resolvable:$true] %s130_s8  ;;  %s155_s11 = int_to_ptr.vmem [resolvable:$true] %s154_s11 }
  0x5c   :  { %s11216_s2 = sld [smem:[#allocation243_spill]] }
  0x62   :  { %s7064_s7 = scalar_lea.hbm %s11216_s2, 512 }
  0x63   :  { %p7065_p10 = scmp.ne.s32.totalorder %s11216_s2, %s7064_s7  ;;  %p7068_p11 = scmp.lt.u32.totalorder %s7064_s7, %s11216_s2 }
  0x65   :  { %p7070_p12 = pnand %p7068_p11, %p7065_p10 }
  0x67   :  { %7073 = shalt.err (!%p7070_p12)
}
  0x68   :  { %s7074_s4 = scalar_lea.vmem %s131_s8, 512  ;;  %p7079_p0 = scmp.lt.s32.totalorder %s131_s8, %s131_s8 }
  0x69   :  { %p7075_p13 = scmp.ne.s32.totalorder %s131_s8, %s7074_s4  ;;  %p7080_p1 = scmp.lt.s32.totalorder %s7074_s4, %s7074_s4 }
  0x6b   :  { %p7081_p2 = por %p7080_p1, %p7079_p0 }
  0x6d   :  { %p7082_p3 = pnand %p7081_p2, %p7075_p13 }
  0x6f   :  { %7085 = shalt.err (!%p7082_p3)
}
  0x70   :  { %133 = dma.hbm_to_vmem [thread:$0]  %s11216_s2, 512, %s131_s8, [#allocation15]  }
  0x71   :  { %s7086_s1 = scalar_lea.hbm %s11005_s16, 512 }
  0x72   :  { %p7087_p4 = scmp.ne.s32.totalorder %s11005_s16, %s7086_s1  ;;  %p7090_p5 = scmp.lt.u32.totalorder %s7086_s1, %s11005_s16 }
  0x74   :  { %p7092_p6 = pnand %p7090_p5, %p7087_p4 }
  0x76   :  { %7095 = shalt.err (!%p7092_p6)
}
  0x77   :  { %s7096_s0 = scalar_lea.vmem %s155_s11, 512  ;;  %p7101_p8 = scmp.lt.s32.totalorder %s155_s11, %s155_s11 }
  0x78   :  { %p7097_p7 = scmp.ne.s32.totalorder %s155_s11, %s7096_s0  ;;  %p7102_p9 = scmp.lt.s32.totalorder %s7096_s0, %s7096_s0 }
  0x7a   :  { %p7103_p10 = por %p7102_p9, %p7101_p8 }
  0x7c   :  { %p7104_p11 = pnand %p7103_p10, %p7097_p7 }
  0x7e   :  { %7107 = shalt.err (!%p7104_p11)
}
  0x7f   :  { %157 = dma.hbm_to_vmem [thread:$0]  %s11005_s16, 512, %s155_s11, [#allocation18]  }
  0x80   :  { %s7283_s7 = smov [#allocation2]   ;;  %s7284_s4 = smov [#allocation7]  }
  0x81   :  { %s52_s12 = sshll.u32 %s7283_s7, 4  ;;  %s75_s3 = sshll.u32 %s7284_s4, 4  ;;  %s53_s12 = int_to_ptr.vmem [resolvable:$true] %s52_s12  ;;  %s76_s3 = int_to_ptr.vmem [resolvable:$true] %s75_s3 }
  0x82   :  { %s11217_s10 = sld [smem:[#allocation234_spill]] }
  0x88   :  { %s7108_s1 = scalar_lea.hbm %s11217_s10, 16 }
  0x89   :  { %p7109_p12 = scmp.ne.s32.totalorder %s11217_s10, %s7108_s1  ;;  %p7112_p13 = scmp.lt.u32.totalorder %s7108_s1, %s11217_s10 }
  0x8b   :  { %p7114_p0 = pnand %p7112_p13, %p7109_p12 }
  0x8d   :  { %7117 = shalt.err (!%p7114_p0)
}
  0x8e   :  { %s7118_s16 = scalar_lea.vmem %s53_s12, 16  ;;  %s7122_s11 = scalar_lea.vmem %s53_s12, 32 }
  0x8f   :  { %p7119_p1 = scmp.ne.s32.totalorder %s53_s12, %s7118_s16  ;;  %p7123_p2 = scmp.lt.s32.totalorder %s53_s12, %s53_s12 }
  0x90   :  { %p7124_p3 = scmp.lt.s32.totalorder %s7122_s11, %s7118_s16 }
  0x92   :  { %p7125_p4 = por %p7124_p3, %p7123_p2 }
  0x94   :  { %p7126_p5 = pnand %p7125_p4, %p7119_p1 }
  0x96   :  { %7129 = shalt.err (!%p7126_p5)
}
  0x97   :  { %55 = dma.hbm_to_vmem [thread:$0]  %s11217_s10, 16, %s53_s12, [#allocation3]  }
  0x98   :  { %s11218_s4 = sld [smem:[#allocation238_spill]] }
  0x9e   :  { %s7130_s5 = scalar_lea.hbm %s11218_s4, 8192 }
  0x9f   :  { %p7131_p6 = scmp.ne.s32.totalorder %s11218_s4, %s7130_s5  ;;  %p7134_p7 = scmp.lt.u32.totalorder %s7130_s5, %s11218_s4 }
  0xa1   :  { %p7136_p8 = pnand %p7134_p7, %p7131_p6 }
  0xa3   :  { %7139 = shalt.err (!%p7136_p8)
}
  0xa4   :  { %s7140_s9 = scalar_lea.vmem %s76_s3, 8192  ;;  %p7145_p10 = scmp.lt.s32.totalorder %s76_s3, %s76_s3 }
  0xa5   :  { %p7141_p9 = scmp.ne.s32.totalorder %s76_s3, %s7140_s9  ;;  %p7146_p11 = scmp.lt.s32.totalorder %s7140_s9, %s7140_s9 }
  0xa7   :  { %p7147_p12 = por %p7146_p11, %p7145_p10 }
  0xa9   :  { %p7148_p13 = pnand %p7147_p12, %p7141_p9 }
  0xab   :  { %7151 = shalt.err (!%p7148_p13)
}
  0xac   :  { %s7285_s12 = smov 512   ;;  %s7286_s10 = smov 32  }
  0xad   :  { %81 = dma.hbm_to_vmem [thread:$0]  %s11218_s4, 8192, %s76_s3, [#allocation6], %s7285_s12, %s7285_s12, %s7286_s10  }
  0xae   :  { %s7287_s11 = smov [#allocation10]   ;;  %s7288_s8 = smov [#allocation13]  }
  0xaf   :  { %s98_s0 = sshll.u32 %s7287_s11, 4  ;;  %s120_s2 = sshll.u32 %s7288_s8, 4  ;;  %s99_s0 = int_to_ptr.vmem [resolvable:$true] %s98_s0  ;;  %s121_s2 = int_to_ptr.vmem [resolvable:$true] %s120_s2 }
  0xb0   :  { %s11219_s28 = sld [smem:[#allocation240_spill]] }
  0xb6   :  { %s7152_s1 = scalar_lea.hbm %s11219_s28, 32 }
  0xb7   :  { %p7153_p0 = scmp.ne.s32.totalorder %s11219_s28, %s7152_s1  ;;  %p7156_p1 = scmp.lt.u32.totalorder %s7152_s1, %s11219_s28 }
  0xb9   :  { %p7158_p2 = pnand %p7156_p1, %p7153_p0 }
  0xbb   :  { %7161 = shalt.err (!%p7158_p2)
}
  0xbc   :  { %s7162_s3 = scalar_lea.vmem %s99_s0, 32  ;;  %p7167_p4 = scmp.lt.s32.totalorder %s99_s0, %s99_s0 }
  0xbd   :  { %p7163_p3 = scmp.ne.s32.totalorder %s99_s0, %s7162_s3  ;;  %p7168_p5 = scmp.lt.s32.totalorder %s7162_s3, %s7162_s3 }
  0xbf   :  { %p7169_p6 = por %p7168_p5, %p7167_p4 }
  0xc1   :  { %p7170_p7 = pnand %p7169_p6, %p7163_p3 }
  0xc3   :  { %7173 = shalt.err (!%p7170_p7)
}
  0xc4   :  { %101 = dma.hbm_to_vmem [thread:$0]  %s11219_s28, 32, %s99_s0, [#allocation9]  }
  0xc5   :  { %s11220_s11 = sld [smem:[#allocation242_spill]] }
  0xcb   :  { %s7174_s8 = scalar_lea.hbm %s11220_s11, 16 }
  0xcc   :  { %p7175_p8 = scmp.ne.s32.totalorder %s11220_s11, %s7174_s8  ;;  %p7178_p9 = scmp.lt.u32.totalorder %s7174_s8, %s11220_s11 }
  0xce   :  { %p7180_p10 = pnand %p7178_p9, %p7175_p8 }
  0xd0   :  { %7183 = shalt.err (!%p7180_p10)
}
  0xd1   :  { %s7184_s25 = scalar_lea.vmem %s121_s2, 16  ;;  %s7188_s27 = scalar_lea.vmem %s121_s2, 32 }
  0xd2   :  { %p7185_p11 = scmp.ne.s32.totalorder %s121_s2, %s7184_s25  ;;  %p7189_p12 = scmp.lt.s32.totalorder %s121_s2, %s121_s2 }
  0xd3   :  { %p7190_p13 = scmp.lt.s32.totalorder %s7188_s27, %s7184_s25 }
  0xd5   :  { %p7191_p0 = por %p7190_p13, %p7189_p12 }
  0xd7   :  { %p7192_p1 = pnand %p7191_p0, %p7185_p11 }
  0xd9   :  { %7195 = shalt.err (!%p7192_p1)
}
  0xda   :  { %123 = dma.hbm_to_vmem [thread:$0]  %s11220_s11, 16, %s121_s2, [#allocation12]  }
  0xdb   :  { %s7289_s9 = smov [#allocation16]   ;;  %s7290_s4 = smov [#allocation19]  }
  0xdc   :  { %s140_s3 = sshll.u32 %s7289_s9, 4  ;;  %s165_s12 = sshll.u32 %s7290_s4, 4  ;;  %s141_s3 = int_to_ptr.vmem [resolvable:$true] %s140_s3  ;;  %s166_s12 = int_to_ptr.vmem [resolvable:$true] %s165_s12 }
  0xdd   :  { %s7196_s8 = scalar_lea.hbm %s11002_s13, 128 }
  0xde   :  { %p7197_p2 = scmp.ne.s32.totalorder %s11002_s13, %s7196_s8  ;;  %p7200_p3 = scmp.lt.u32.totalorder %s7196_s8, %s11002_s13 }
  0xe0   :  { %p7202_p4 = pnand %p7200_p3, %p7197_p2 }
  0xe2   :  { %7205 = shalt.err (!%p7202_p4)
}
  0xe3   :  { %s7206_s2 = scalar_lea.vmem %s141_s3, 128  ;;  %p7211_p6 = scmp.lt.s32.totalorder %s141_s3, %s141_s3 }
  0xe4   :  { %p7207_p5 = scmp.ne.s32.totalorder %s141_s3, %s7206_s2  ;;  %p7212_p7 = scmp.lt.s32.totalorder %s7206_s2, %s7206_s2 }
  0xe6   :  { %p7213_p8 = por %p7212_p7, %p7211_p6 }
  0xe8   :  { %p7214_p9 = pnand %p7213_p8, %p7207_p5 }
  0xea   :  { %7217 = shalt.err (!%p7214_p9)
}
  0xeb   :  { %143 = dma.hbm_to_vmem [thread:$0]  %s11002_s13, 128, %s141_s3, [#allocation15]  }
  0xec   :  { %s7218_s28 = scalar_lea.hbm %s11007_s18, 1024 }
  0xed   :  { %p7219_p10 = scmp.ne.s32.totalorder %s11007_s18, %s7218_s28  ;;  %p7222_p11 = scmp.lt.u32.totalorder %s7218_s28, %s11007_s18 }
  0xef   :  { %p7224_p12 = pnand %p7222_p11, %p7219_p10 }
  0xf1   :  { %7227 = shalt.err (!%p7224_p12)
}
  0xf2   :  { %s7228_s8 = scalar_lea.vmem %s166_s12, 1024  ;;  %p7233_p0 = scmp.lt.s32.totalorder %s166_s12, %s166_s12 }
  0xf3   :  { %p7229_p13 = scmp.ne.s32.totalorder %s166_s12, %s7228_s8  ;;  %p7234_p1 = scmp.lt.s32.totalorder %s7228_s8, %s7228_s8 }
  0xf5   :  { %p7235_p2 = por %p7234_p1, %p7233_p0 }
  0xf7   :  { %p7236_p3 = pnand %p7235_p2, %p7229_p13 }
  0xf9   :  { %7239 = shalt.err (!%p7236_p3)
}
  0xfa   :  { %s11221_s13 = smov 64  }
  0xfb   :  { %171 = dma.hbm_to_vmem [thread:$0]  %s11007_s18, 1024, %s166_s12, [#allocation18], %s11221_s13, %s11221_s13, %s7280_s6  }
  0xfc   :  { %7262 = dma.done.wait [#allocation3], 16  }
  0xfd   :  { %7263 = vsyncadd [#allocation3], 4294967280 }
  0xfe   :  { %7264 = dma.done.wait [#allocation6], 8208  }
  0xff   :  { %7265 = vsyncadd [#allocation6], 4294959088 }
 0x100   :  { %7266 = dma.done.wait [#allocation9], 160  }
 0x101   :  { %7267 = vsyncadd [#allocation9], 4294967136 }
 0x102   :  { %7268 = dma.done.wait [#allocation12], 1040  }
 0x103   :  { %7269 = vsyncadd [#allocation12], 4294966256 }
 0x104   :  { %7270 = dma.done.wait [#allocation15], 640  }
 0x105   :  { %7271 = vsyncadd [#allocation15], 4294966656 }
 0x106   :  { %7272 = dma.done.wait [#allocation18], 1536  }
 0x107   :  { %7273 = vsyncadd [#allocation18], 4294965760  ;;  %v11037_v0 = vmov 0   ;;  %s11222_s12 = sld [smem:[#allocation233_spill]]  ;;  %s11223_s4 = sld [smem:[#allocation231_spill]]  ;;  %v758_v41 = vld [vmem:[#allocation7] sm:$0xff]  ;;  %v264_v49 = vlaneseq }
 0x108   :  { %6955 = vset.pattern.permute.xlu1 %v11037_v0  ;;  %6954 = vset.pattern.permute.xlu0 %v11037_v0  ;;  %v759_v42 = vld [vmem:[#allocation7 + $0x20] sm:$0xff]  ;;  %vm11061_vm0 = vcmask 1043456   ;;  %v11224_v57 = vmov 0  ;;  %v11227_v58 = vmov 0  ;;  %v11040_v60 = vmov 1.0|1.0  }
 0x109   :  { %572 = vmatprep.mubr.bf16.mxu0 %v11037_v0  ;;  %v5915_v43 = vcombine.low %v758_v41, %v759_v42  ;;  %v5916_v44 = vcombine.high %v758_v41, %v759_v42  ;;  %v490_v45 = vld [vmem:[#allocation8] sm:$0xff]  ;;  %v7715_v52 = vand.u32 127, %v264_v49  ;;  %s11248_s16 = sld [smem:[#allocation232_spill]]  ;;  %s11264_s28 = sld [smem:[#allocation236_spill]] }
 0x10a   :  { %v5889_v46 = vcombine.high %v490_v45, %v490_v45  ;;  %v5888_v47 = vcombine.low %v490_v45, %v490_v45  ;;  %v760_v55 = vld [vmem:[#allocation7 + $0x40] sm:$0xff]  ;;  %s11925_s11 = sld [smem:[#allocation237_spill]] }
 0x10b   :  { %v761_v56 = vld [vmem:[#allocation7 + $0x60] sm:$0xff]  ;;  %s11941_s3 = sld [smem:[#allocation245_spill]] }
 0x10c   :  { %5890 = vmatprep.subr.msk.bf16.mxu0 %vm11061_vm0, %v5889_v46  ;;  %v535_v48 = vsel %vm11061_vm0, %v5888_v47, 0  ;;  %v5918_v59 = vcombine.high %v760_v55, %v761_v56  ;;  %v762_v63 = vld [vmem:[#allocation7 + $0x80] sm:$0xff] }
 0x10d   :  { %v268_v1 = vld [vmem:[%s11222_s12 + $0x10] sm:$0xff]  ;;  %v266_v2 = vld [vmem:[%s11222_s12] sm:$0xff]  ;;  %v269_v3 = vld [vmem:[%s11222_s12 + $0x18] sm:$0xff]  ;;  %541 = vmatpush1.bf16.msra.mxu0 %v535_v48 }
 0x10e   :  { %289 = vperm.xlu1 %6955, %v268_v1   ;;  %283 = vperm.xlu0 %6954, %v266_v2   ;;  %v267_v4 = vld [vmem:[%s11222_s12 + $0x8] sm:$0xff]  ;;  %v224_v6 = vld [vmem:[%s11223_s4] sm:$0xff]  ;;  %v226_v10 = vld [vmem:[%s11223_s4 + $0x10] sm:$0xff]  ;;  %v11230_v2 = vmov 0 }
 0x10f   :  { %v271_v5 = vld [vmem:[%s11222_s12 + $0x28] sm:$0xff]  ;;  %v270_v8 = vld [vmem:[%s11222_s12 + $0x20] sm:$0xff]  ;;  %v227_v11 = vld [vmem:[%s11223_s4 + $0x18] sm:$0xff] }
 0x110   :  { %v225_v7 = vld [vmem:[%s11223_s4 + $0x8] sm:$0xff]  ;;  %v7616_v12 = vpack.c.bf16 %v227_v11, %v226_v10  ;;  %v228_v13 = vld [vmem:[%s11223_s4 + $0x20] sm:$0xff]  ;;  %v273_v15 = vld [vmem:[%s11222_s12 + $0x38] sm:$0xff]  ;;  %v11233_v10 = vmov 0 }
 0x111   :  { %v7608_v9 = vpack.c.bf16 %v225_v7, %v224_v6  ;;  %v229_v14 = vld [vmem:[%s11223_s4 + $0x28] sm:$0xff]  ;;  %v272_v16 = vld [vmem:[%s11222_s12 + $0x30] sm:$0xff]  ;;  %v231_v18 = vld [vmem:[%s11223_s4 + $0x38] sm:$0xff] }
 0x112   :  { %292 = vperm.xlu1 %6955, %v269_v3   ;;  %286 = vperm.xlu0 %6954, %v267_v4   ;;  %v230_v17 = vld [vmem:[%s11223_s4 + $0x30] sm:$0xff]  ;;  %v7639_v19 = vpack.c.bf16 %v229_v14, %v228_v13  ;;  %v275_v20 = vld [vmem:[%s11222_s12 + $0x48] sm:$0xff]  ;;  %v274_v21 = vld [vmem:[%s11222_s12 + $0x40] sm:$0xff]  ;;  %v5917_v3 = vcombine.low %v760_v55, %v761_v56 }
 0x113   :  { %6457 = vmatprep.subr.bf16.mxu1 %v7608_v9  ;;  %v232_v22 = vld [vmem:[%s11223_s4 + $0x40] sm:$0xff]  ;;  %v233_v23 = vld [vmem:[%s11223_s4 + $0x48] sm:$0xff]  ;;  %v7655_v24 = vpack.c.bf16 %v231_v18, %v230_v17  ;;  %v277_v25 = vld [vmem:[%s11222_s12 + $0x58] sm:$0xff]  ;;  %v11236_v18 = vmov 0 }
 0x114   :  { %6458 = vmatpush3.bf16.msra.mxu1 %v7608_v9  ;;  %v276_v26 = vld [vmem:[%s11222_s12 + $0x50] sm:$0xff]  ;;  %v235_v28 = vld [vmem:[%s11223_s4 + $0x58] sm:$0xff]  ;;  %v7671_v29 = vpack.c.bf16 %v233_v23, %v232_v22  ;;  %v279_v30 = vld [vmem:[%s11222_s12 + $0x68] sm:$0xff] }
 0x115   :  { %6459 = vmatprep.subr.bf16.mxu1 %v7616_v12  ;;  %v234_v27 = vld [vmem:[%s11223_s4 + $0x50] sm:$0xff]  ;;  %v278_v31 = vld [vmem:[%s11222_s12 + $0x60] sm:$0xff]  ;;  %v237_v33 = vld [vmem:[%s11223_s4 + $0x68] sm:$0xff] }
 0x116   :  { %298 = vperm.xlu1 %6955, %v271_v5   ;;  %295 = vperm.xlu0 %6954, %v270_v8   ;;  %v236_v32 = vld [vmem:[%s11223_s4 + $0x60] sm:$0xff]  ;;  %v7687_v34 = vpack.c.bf16 %v235_v28, %v234_v27  ;;  %v281_v35 = vld [vmem:[%s11222_s12 + $0x78] sm:$0xff]  ;;  %v280_v36 = vld [vmem:[%s11222_s12 + $0x70] sm:$0xff]  ;;  %v11239_v27 = vmov 0  ;;  %s11940_s12 = sld [smem:[#allocation244_spill]] }
 0x117   :  { %v7697_v37 = vpack.c.bf16 %v237_v33, %v236_v32  ;;  %v238_v38 = vld [vmem:[%s11223_s4 + $0x70] sm:$0xff]  ;;  %v239_v39 = vld [vmem:[%s11223_s4 + $0x78] sm:$0xff]  ;;  %v763_v1 = vld [vmem:[#allocation7 + $0xa0] sm:$0xff] }
 0x118   :  { %6460 = vmatpush3.bf16.msra.mxu1 %v7616_v12  ;;  %v7707_v40 = vpack.c.bf16 %v239_v39, %v238_v38  ;;  %v5920_v4 = vcombine.high %v762_v63, %v763_v1  ;;  %v764_v7 = vld [vmem:[#allocation7 + $0xc0] sm:$0xff]  ;;  %v5919_v11 = vcombine.low %v762_v63, %v763_v1  ;;  %v243_v55 = vld [vmem:[%s11248_s16 + $0x18] sm:$0xff]  ;;  %v246_v63 = vld [vmem:[%s11248_s16 + $0x30] sm:$0xff] }
 0x119   :  { %6461 = vmatprep.subr.bf16.mxu1 %v7639_v19  ;;  %v765_v8 = vld [vmem:[#allocation7 + $0xe0] sm:$0xff]  ;;  %v247_v1 = vld [vmem:[%s11248_s16 + $0x38] sm:$0xff] }
 0x11a   :  { %304 = vperm.xlu1 %6955, %v273_v15   ;;  %301 = vperm.xlu0 %6954, %v272_v16   ;;  %v5922_v13 = vcombine.high %v764_v7, %v765_v8  ;;  %v766_v16 = vld [vmem:[#allocation7 + $0x100] sm:$0xff] }
 0x11b   :  { %v767_v17 = vld [vmem:[#allocation7 + $0x120] sm:$0xff] }
 0x11c   :  { %6462 = vmatpush3.bf16.msra.mxu1 %v7639_v19  ;;  %v5923_v28 = vcombine.low %v766_v16, %v767_v17  ;;  %v770_v33 = vld [vmem:[#allocation7 + $0x180] sm:$0xff] }
 0x11d   :  { %6463 = vmatprep.subr.bf16.mxu1 %v7655_v24  ;;  %v240_v45 = vld [vmem:[%s11248_s16] sm:$0xff]  ;;  %v241_v46 = vld [vmem:[%s11248_s16 + $0x8] sm:$0xff] }
 0x11e   :  { %310 = vperm.xlu1 %6955, %v275_v20   ;;  %307 = vperm.xlu0 %6954, %v274_v21   ;;  %v5921_v20 = vcombine.low %v764_v7, %v765_v8  ;;  %v5924_v21 = vcombine.high %v766_v16, %v767_v17  ;;  %v7796_v47 = vpack.c.bf16 %v241_v46, %v240_v45  ;;  %v772_v48 = vld [vmem:[#allocation7 + $0x1c0] sm:$0xff]  ;;  %v250_v7 = vld [vmem:[%s11248_s16 + $0x50] sm:$0xff]  ;;  %v251_v8 = vld [vmem:[%s11248_s16 + $0x58] sm:$0xff] }
 0x11f   :  { %v254_v16 = vld [vmem:[%s11248_s16 + $0x70] sm:$0xff]  ;;  %v255_v17 = vld [vmem:[%s11248_s16 + $0x78] sm:$0xff] }
 0x120   :  { %6464 = vmatpush3.bf16.msra.mxu1 %v7655_v24  ;;  %11249 = vst [vmem:[#allocation36_spill] sm:$0xff] %v7796_v47 }
 0x121   :  { %6465 = vmatprep.subr.bf16.mxu1 %v7671_v29 }
 0x122   :  { %316 = vperm.xlu1 %6955, %v277_v25   ;;  %313 = vperm.xlu0 %6954, %v276_v26   ;;  %v768_v25 = vld [vmem:[#allocation7 + $0x140] sm:$0xff] }
 0x123   :  { %v769_v26 = vld [vmem:[#allocation7 + $0x160] sm:$0xff] }
 0x124   :  { %6466 = vmatpush3.bf16.msra.mxu1 %v7671_v29  ;;  %v5925_v38 = vcombine.low %v768_v25, %v769_v26 }
 0x125   :  { %6467 = vmatprep.subr.bf16.mxu1 %v7687_v34 }
 0x126   :  { %322 = vperm.xlu1 %6955, %v279_v30   ;;  %319 = vperm.xlu0 %6954, %v278_v31   ;;  %v5926_v30 = vcombine.high %v768_v25, %v769_v26 }
 0x128   :  { %6468 = vmatpush3.bf16.msra.mxu1 %v7687_v34 }
 0x129   :  { %6469 = vmatprep.subr.bf16.mxu1 %v7697_v37 }
 0x12a   :  { %328 = vperm.xlu1 %6955, %v281_v35   ;;  %325 = vperm.xlu0 %6954, %v280_v36   ;;  %v771_v35 = vld [vmem:[#allocation7 + $0x1a0] sm:$0xff]  ;;  %v11242_v36 = vmov 0 }
 0x12b   :  { %v5928_v39 = vcombine.high %v770_v33, %v771_v35 }
 0x12c   :  { %6470 = vmatpush3.bf16.msra.mxu1 %v7697_v37 }
 0x12d   :  { %6471 = vmatprep.subr.bf16.mxu1 %v7707_v40 }
 0x130   :  { %6472 = vmatpush3.bf16.msra.mxu1 %v7707_v40 }
 0x131   :  { %862 = vmatprep.subr.bf16.mxu1 %v5916_v44  ;;  %v5927_v44 = vcombine.low %v770_v33, %v771_v35 }
 0x18d   :  { %v290_v50 = vpop.permute.xlu1 %289  ;;  %v284_v51 = vpop.permute.xlu0 %283 }
 0x18e   :  { %vm332_vm1 = vcmp.eq.s32.totalorder %v7715_v52, %v290_v50  ;;  %vm330_vm4 = vcmp.eq.s32.totalorder %v7715_v52, %v284_v51  ;;  %v773_v50 = vld [vmem:[#allocation7 + $0x1e0] sm:$0xff] }
 0x18f   :  { %v5930_v51 = vcombine.high %v772_v48, %v773_v50 }
 0x191   :  { %v293_v53 = vpop.permute.xlu1 %292  ;;  %v287_v54 = vpop.permute.xlu0 %286 }
 0x192   :  { %vm333_vm2 = vcmp.eq.s32.totalorder %v7715_v52, %v293_v53  ;;  %vm331_vm3 = vcmp.eq.s32.totalorder %v7715_v52, %v287_v54  ;;  %v5929_v53 = vcombine.low %v772_v48, %v773_v50  ;;  %v242_v54 = vld [vmem:[%s11248_s16 + $0x10] sm:$0xff] }
 0x193   :  { %vm7721_vm5 = vmpackc.low %vm333_vm2, %vm332_vm1  ;;  %v7807_v56 = vpack.c.bf16 %v243_v55, %v242_v54 }
 0x194   :  { %v11225_v57 = vsel %vm7721_vm5, 4294967295, %v11224_v57  ;;  %vm7725_vm6 = vmpackc.low %vm331_vm3, %vm330_vm4 }
 0x195   :  { %11226 = vst [vmem:[#allocation28_spill] sm:$0xff] %v11225_v57  ;;  %v11228_v58 = vsel %vm7725_vm6, 4294967295, %v11227_v58  ;;  %6473 = vmatprep.mubr.msk.bf16.mxu1 %vm7725_vm6, %v11040_v60  ;;  %v299_v61 = vpop.permute.xlu1 %298  ;;  %v296_v62 = vpop.permute.xlu0 %295  ;;  %11250 = vst [vmem:[#allocation37_spill] sm:$0xff] %v7807_v56 }
 0x196   :  { %11229 = vst [vmem:[#allocation29_spill] sm:$0xff] %v11228_v58  ;;  %vm335_vm7 = vcmp.eq.s32.totalorder %v7715_v52, %v299_v61  ;;  %vm334_vm8 = vcmp.eq.s32.totalorder %v7715_v52, %v296_v62  ;;  %6474 = vmatmul.mubr.msk.bf16.vlgmr.msra.gmra.mrb[0].mxu1 %vm7721_vm5, %v11040_v60  ;;  %v245_v61 = vld [vmem:[%s11248_s16 + $0x28] sm:$0xff] }
 0x197   :  { %vm7737_vm9 = vmpackc.low %vm335_vm7, %vm334_vm8  ;;  %863 = vmatpush1.bf16.msra.mxu1 %v5915_v43  ;;  %v11245_v43 = vmov 0 }
 0x198   :  { %v11231_v2 = vsel %vm7737_vm9, 4294967295, %v11230_v2  ;;  %6477 = vmatprep.mubr.msk.bf16.mxu1 %vm7737_vm9, %v11040_v60  ;;  %864 = vmatprep.subr.bf16.mxu1 %v5918_v59  ;;  %v244_v59 = vld [vmem:[%s11248_s16 + $0x20] sm:$0xff] }
 0x199   :  { %11232 = vst [vmem:[#allocation30_spill] sm:$0xff] %v11231_v2  ;;  %v305_v5 = vpop.permute.xlu1 %304  ;;  %v302_v6 = vpop.permute.xlu0 %301  ;;  %v7818_v62 = vpack.c.bf16 %v245_v61, %v244_v59 }
 0x19a   :  { %vm337_vm10 = vcmp.eq.s32.totalorder %v7715_v52, %v305_v5  ;;  %vm336_vm11 = vcmp.eq.s32.totalorder %v7715_v52, %v302_v6  ;;  %v249_v5 = vld [vmem:[%s11248_s16 + $0x48] sm:$0xff] }
 0x19b   :  { %vm7746_vm12 = vmpackc.low %vm337_vm10, %vm336_vm11  ;;  %865 = vmatpush1.bf16.msra.mxu1 %v5917_v3  ;;  %11251 = vst [vmem:[#allocation38_spill] sm:$0xff] %v7818_v62  ;;  %v7829_v3 = vpack.c.bf16 %v247_v1, %v246_v63 }
 0x19c   :  { %v11234_v10 = vsel %vm7746_vm12, 4294967295, %v11233_v10  ;;  %866 = vmatprep.subr.bf16.mxu1 %v5920_v4  ;;  %v248_v4 = vld [vmem:[%s11248_s16 + $0x40] sm:$0xff] }
 0x19d   :  { %11235 = vst [vmem:[#allocation31_spill] sm:$0xff] %v11234_v10  ;;  %v311_v14 = vpop.permute.xlu1 %310  ;;  %v308_v15 = vpop.permute.xlu0 %307  ;;  %11252 = vst [vmem:[#allocation39_spill] sm:$0xff] %v7829_v3  ;;  %v7840_v6 = vpack.c.bf16 %v249_v5, %v248_v4 }
 0x19e   :  { %vm339_vm13 = vcmp.eq.s32.totalorder %v7715_v52, %v311_v14  ;;  %vm338_vm14 = vcmp.eq.s32.totalorder %v7715_v52, %v308_v15  ;;  %6478 = vmatmul.mubr.msk.bf16.gmra.mrb[4].mxu1 %vm7746_vm12, %v11040_v60  ;;  %v253_v14 = vld [vmem:[%s11248_s16 + $0x68] sm:$0xff] }
 0x19f   :  { %vm7755_vm15 = vmpackc.low %vm339_vm13, %vm338_vm14  ;;  %867 = vmatpush1.bf16.msra.mxu1 %v5919_v11  ;;  %vm11060_vm14 = vcmask 64512   ;;  %11253 = vst [vmem:[#allocation40_spill] sm:$0xff] %v7840_v6  ;;  %v7851_v11 = vpack.c.bf16 %v251_v8, %v250_v7 }
 0x1a0   :  { %v11237_v18 = vsel %vm7755_vm15, 4294967295, %v11236_v18  ;;  %6481 = vmatprep.mubr.msk.bf16.mxu1 %vm7755_vm15, %v11040_v60  ;;  %868 = vmatprep.subr.bf16.mxu1 %v5922_v13  ;;  %v252_v13 = vld [vmem:[%s11248_s16 + $0x60] sm:$0xff] }
 0x1a1   :  { %11238 = vst [vmem:[#allocation32_spill] sm:$0xff] %v11237_v18  ;;  %v317_v22 = vpop.permute.xlu1 %316  ;;  %v314_v23 = vpop.permute.xlu0 %313  ;;  %5891 = vmatmul.mubr.msk.bf16.vlgmr.msra.gmra.mrb[0].mxu0 %vm11060_vm14, %v7796_v47  ;;  %11254 = vst [vmem:[#allocation41_spill] sm:$0xff] %v7851_v11  ;;  %v7862_v15 = vpack.c.bf16 %v253_v14, %v252_v13 }
 0x1a2   :  { %vm341_vm1 = vcmp.eq.s32.totalorder %v7715_v52, %v317_v22  ;;  %vm340_vm2 = vcmp.eq.s32.totalorder %v7715_v52, %v314_v23  ;;  %582 = vmatprep.mubr.bf16.mxu0 %v11037_v0 }
 0x1a3   :  { %vm7764_vm3 = vmpackc.low %vm341_vm1, %vm340_vm2  ;;  %869 = vmatpush1.bf16.msra.mxu1 %v5921_v20  ;;  %11255 = vst [vmem:[#allocation42_spill] sm:$0xff] %v7862_v15  ;;  %v7873_v20 = vpack.c.bf16 %v255_v17, %v254_v16 }
 0x1a4   :  { %v11240_v27 = vsel %vm7764_vm3, 4294967295, %v11239_v27  ;;  %870 = vmatprep.subr.bf16.mxu1 %v5924_v21  ;;  %v1600_v21 = vld [vmem:[#allocation14] sm:$0xff] }
 0x1a5   :  { %11241 = vst [vmem:[#allocation33_spill] sm:$0xff] %v11240_v27  ;;  %v323_v31 = vpop.permute.xlu1 %322  ;;  %v320_v32 = vpop.permute.xlu0 %319  ;;  %11256 = vst [vmem:[#allocation43_spill] sm:$0xff] %v7873_v20  ;;  %v7878_v22 = vcombine.high %v1600_v21, %v1600_v21  ;;  %v5982_v25 = vcombine.low %v1600_v21, %v1600_v21 }
 0x1a6   :  { %vm343_vm4 = vcmp.eq.s32.totalorder %v7715_v52, %v323_v31  ;;  %vm342_vm7 = vcmp.eq.s32.totalorder %v7715_v52, %v320_v32  ;;  %6482 = vmatmul.mubr.msk.bf16.gmra.mrb[8].mxu1 %vm7764_vm3, %v11040_v60 }
 0x1a7   :  { %vm7773_vm8 = vmpackc.low %vm343_vm4, %vm342_vm7  ;;  %871 = vmatpush1.bf16.msra.mxu1 %v5923_v28  ;;  %v1602_v28 = vld [vmem:[#allocation14 + $0x10] sm:$0xff]  ;;  %v7883_v35 = vsel %vm11061_vm0, %v5982_v25, 0  ;;  %vm489_vm7 = vcmp.lt.s32.totalorder %v7715_v52, 32 }
 0x1a8   :  { %v11243_v36 = vsel %vm7773_vm8, 4294967295, %v11242_v36  ;;  %6485 = vmatprep.mubr.msk.bf16.mxu1 %vm7773_vm8, %v11040_v60  ;;  %872 = vmatprep.subr.bf16.mxu1 %v5926_v30  ;;  %v5986_v5 = vcombine.low %v1602_v28, %v1602_v28 }
 0x1a9   :  { %11244 = vst [vmem:[#allocation34_spill] sm:$0xff] %v11243_v36  ;;  %v329_v41 = vpop.permute.xlu1 %328  ;;  %v326_v42 = vpop.permute.xlu0 %325  ;;  %5892 = vmatmul.mubr.msk.bf16.gmra.mrb[4].mxu0 %vm11060_vm14, %v7807_v56 }
 0x1aa   :  { %vm345_vm10 = vcmp.eq.s32.totalorder %v7715_v52, %v329_v41  ;;  %vm344_vm11 = vcmp.eq.s32.totalorder %v7715_v52, %v326_v42  ;;  %592 = vmatprep.mubr.bf16.mxu0 %v11037_v0  ;;  %v1679_v7 = vsel %vm11061_vm0, %v5986_v5, 0 }
 0x1ab   :  { %vm7782_vm13 = vmpackc.low %vm345_vm10, %vm344_vm11  ;;  %873 = vmatpush1.bf16.msra.mxu1 %v5925_v38  ;;  %v5987_v38 = vcombine.high %v1602_v28, %v1602_v28 }
 0x1ac   :  { %v11246_v43 = vsel %vm7782_vm13, 4294967295, %v11245_v43  ;;  %874 = vmatprep.subr.bf16.mxu1 %v5928_v39  ;;  %vm8301_vm10 = vmpackc.low %vm489_vm7, %vm489_vm7 }
 0x1ad   :  { %11247 = vst [vmem:[#allocation35_spill] sm:$0xff] %v11246_v43 }
 0x1ae   :  { %6486 = vmatmul.mubr.msk.bf16.gmra.mrb[12].mxu1 %vm7782_vm13, %v11040_v60 }
 0x1af   :  { %875 = vmatpush1.bf16.msra.mxu1 %v5927_v44  ;;  %894 = vmatprep.mubr.bf16.mxu1 %v11037_v0 }
 0x1b0   :  { %876 = vmatprep.subr.bf16.mxu1 %v5930_v51 }
 0x1b1   :  { %5893 = vmatmul.mubr.msk.bf16.gmra.mrb[8].mxu0 %vm11060_vm14, %v7818_v62 }
 0x1b2   :  { %602 = vmatprep.mubr.bf16.mxu0 %v11037_v0 }
 0x1b3   :  { %877 = vmatpush1.bf16.msra.mxu1 %v5929_v53 }
 0x1b4   :  { %6883 = vmatprep.subr.msk.bf16.mxu1 %vm11061_vm0, %v7878_v22 }
 0x1b9   :  { %5894 = vmatmul.mubr.msk.bf16.gmra.mrb[12].mxu0 %vm11060_vm14, %v7829_v3 }
 0x1ba   :  { %612 = vmatprep.mubr.bf16.mxu0 %v11037_v0 }
 0x1c1   :  { %5895 = vmatmul.mubr.msk.bf16.gmra.mrb[16].mxu0 %vm11060_vm14, %v7840_v6 }
 0x1c2   :  { %622 = vmatprep.mubr.bf16.mxu0 %v11037_v0 }
 0x1c9   :  { %5896 = vmatmul.mubr.msk.bf16.gmra.mrb[20].mxu0 %vm11060_vm14, %v7851_v11 }
 0x1ca   :  { %632 = vmatprep.mubr.bf16.mxu0 %v11037_v0 }
 0x1d1   :  { %5897 = vmatmul.mubr.msk.bf16.gmra.mrb[24].mxu0 %vm11060_vm14, %v7862_v15 }
 0x1d2   :  { %642 = vmatprep.mubr.bf16.mxu0 %v11037_v0 }
 0x1d9   :  { %5898 = vmatmul.mubr.msk.bf16.gmra.mrb[28].mxu0 %vm11060_vm14, %v7873_v20 }
 0x1da   :  { %6505 = vmatprep.mubr.bf16.mxu0 %v7608_v9 }
 0x269   :  { %v6475_v23 = vpop.f32.mrb[0].mxu1 }
 0x26a   :  { %v695_v26 = vpop.f32.mrb[1].mxu1 }
 0x26b   :  { %v6476_v30 = vpop.f32.mrb[2].mxu1 }
 0x26c   :  { %v775_v31 = vpack.c.bf16 %v6476_v30, %v6475_v23  ;;  %v698_v32 = vpop.f32.mrb[3].mxu1 }
 0x26d   :  { %v774_v33 = vpack.c.bf16 %v698_v32, %v695_v26 }
 0x26f   :  { %895 = vmatmul.mubr.bf16.vlgmr.msra.gmra.mrb[16].mxu1 %v774_v33 }
 0x270   :  { %904 = vmatprep.mubr.bf16.mxu1 %v11037_v0  ;;  %6884 = vmatpush1.bf16.msra.mxu1 %v7883_v35 }
 0x271   :  { %v6479_v9 = vpop.f32.mrb[4].mxu1  ;;  %6008 = vmatprep.subr.msk.bf16.mxu1 %vm11061_vm0, %v5987_v38 }
 0x272   :  { %v711_v39 = vpop.f32.mrb[5].mxu1 }
 0x273   :  { %v6480_v41 = vpop.f32.mrb[6].mxu1 }
 0x274   :  { %v777_v42 = vpack.c.bf16 %v6480_v41, %v6479_v9  ;;  %v714_v44 = vpop.f32.mrb[7].mxu1  ;;  %v7902_v8 = vpop.f32.mrb[0].mxu0 }
 0x275   :  { %v776_v45 = vpack.c.bf16 %v714_v44, %v711_v39  ;;  %v7904_v13 = vpop.f32.mrb[1].mxu0 }
 0x276   :  { %v7908_v14 = vpop.f32.mrb[2].mxu0 }
 0x277   :  { %905 = vmatmul.mubr.bf16.gmra.mrb[20].mxu1 %v775_v31  ;;  %v7911_v16 = vpop.f32.mrb[3].mxu0 }
 0x278   :  { %914 = vmatprep.mubr.bf16.mxu1 %v11037_v0 }
 0x279   :  { %v6483_v46 = vpop.f32.mrb[8].mxu1 }
 0x27a   :  { %v727_v48 = vpop.f32.mrb[9].mxu1 }
 0x27b   :  { %v6484_v50 = vpop.f32.mrb[10].mxu1 }
 0x27c   :  { %v779_v51 = vpack.c.bf16 %v6484_v50, %v6483_v46  ;;  %v730_v53 = vpop.f32.mrb[11].mxu1  ;;  %v7913_v17 = vpop.f32.mrb[4].mxu0 }
 0x27d   :  { %v778_v54 = vpack.c.bf16 %v730_v53, %v727_v48  ;;  %v7915_v21 = vpop.f32.mrb[5].mxu0 }
 0x27e   :  { %v7919_v23 = vpop.f32.mrb[6].mxu0 }
 0x27f   :  { %915 = vmatmul.mubr.bf16.gmra.mrb[24].mxu1 %v776_v45  ;;  %v7922_v25 = vpop.f32.mrb[7].mxu0 }
 0x280   :  { %924 = vmatprep.mubr.bf16.mxu1 %v11037_v0 }
 0x281   :  { %v6487_v55 = vpop.f32.mrb[12].mxu1 }
 0x282   :  { %v743_v59 = vpop.f32.mrb[13].mxu1 }
 0x283   :  { %v6488_v61 = vpop.f32.mrb[14].mxu1 }
 0x284   :  { %v781_v63 = vpack.c.bf16 %v6488_v61, %v6487_v55  ;;  %v746_v1 = vpop.f32.mrb[15].mxu1  ;;  %v7924_v26 = vpop.f32.mrb[8].mxu0 }
 0x285   :  { %v780_v4 = vpack.c.bf16 %v746_v1, %v743_v59  ;;  %v7926_v28 = vpop.f32.mrb[9].mxu0 }
 0x286   :  { %v7930_v30 = vpop.f32.mrb[10].mxu0 }
 0x287   :  { %925 = vmatmul.mubr.bf16.gmra.mrb[28].mxu1 %v777_v42  ;;  %v7933_v31 = vpop.f32.mrb[11].mxu0 }
 0x288   :  { %934 = vmatprep.mubr.bf16.mxu1 %v11037_v0 }
 0x28c   :  { %v7935_v32 = vpop.f32.mrb[12].mxu0 }
 0x28d   :  { %v7937_v33 = vpop.f32.mrb[13].mxu0 }
 0x28e   :  { %v7941_v38 = vpop.f32.mrb[14].mxu0 }
 0x28f   :  { %935 = vmatmul.mubr.bf16.gmra.mrb[32].mxu1 %v778_v54  ;;  %v7944_v9 = vpop.f32.mrb[15].mxu0 }
 0x290   :  { %944 = vmatprep.mubr.bf16.mxu1 %v11037_v0 }
 0x294   :  { %v7946_v39 = vpop.f32.mrb[16].mxu0 }
 0x295   :  { %v7948_v41 = vpop.f32.mrb[17].mxu0 }
 0x296   :  { %v7952_v42 = vpop.f32.mrb[18].mxu0 }
 0x297   :  { %945 = vmatmul.mubr.bf16.gmra.mrb[36].mxu1 %v779_v51  ;;  %v7955_v44 = vpop.f32.mrb[19].mxu0 }
 0x298   :  { %954 = vmatprep.mubr.bf16.mxu1 %v11037_v0 }
 0x29c   :  { %v7957_v45 = vpop.f32.mrb[20].mxu0 }
 0x29d   :  { %v7959_v46 = vpop.f32.mrb[21].mxu0 }
 0x29e   :  { %v7963_v48 = vpop.f32.mrb[22].mxu0 }
 0x29f   :  { %955 = vmatmul.mubr.bf16.gmra.mrb[40].mxu1 %v780_v4  ;;  %v7966_v50 = vpop.f32.mrb[23].mxu0  ;;  %v8008_v4 = vshrl.u32 %v264_v49, 7 }
 0x2a0   :  { %964 = vmatprep.mubr.bf16.mxu1 %v11037_v0 }
 0x2a1   :  { %11257 = vst [vmem:[#allocation44_spill] sm:$0xff] %v8008_v4  ;;  %v8011_v5 = vsub.s32 0, %v8008_v4  ;;  %v8014_v43 = vsub.s32 1, %v8008_v4 }
 0x2a3   :  { %11258 = vst [vmem:[#allocation45_spill] sm:$0xff] %v8011_v5  ;;  %11259 = vst [vmem:[#allocation46_spill] sm:$0xff] %v8014_v43 }
 0x2a4   :  { %v7968_v51 = vpop.f32.mrb[24].mxu0 }
 0x2a5   :  { %v7970_v53 = vpop.f32.mrb[25].mxu0 }
 0x2a6   :  { %v7974_v54 = vpop.f32.mrb[26].mxu0 }
 0x2a7   :  { %965 = vmatmul.mubr.bf16.gmra.mrb[44].mxu1 %v781_v63  ;;  %v7977_v55 = vpop.f32.mrb[27].mxu0 }
 0x2a8   :  { %1732 = vmatprep.mubr.bf16.mxu1 %v11037_v0 }
 0x2ac   :  { %v7979_v59 = vpop.f32.mrb[28].mxu0 }
 0x2ad   :  { %v7981_v61 = vpop.f32.mrb[29].mxu0 }
 0x2ae   :  { %v7985_v63 = vpop.f32.mrb[30].mxu0 }
 0x2af   :  { %5992 = vmatmul.mubr.msk.bf16.vlgmr.msra.gmra.mrb[48].mxu1 %vm11060_vm14, %v7807_v56  ;;  %v7988_v1 = vpop.f32.mrb[31].mxu0 }
 0x2b0   :  { %1742 = vmatprep.mubr.bf16.mxu1 %v11037_v0  ;;  %1917 = vmatpush1.bf16.msra.mxu1 %v1679_v7  ;;  %v491_v7 = vld [vmem:[#allocation10] sm:$0x3] }
 0x2b1   :  { %v8017_v36 = vrot.slane %v491_v7, %v8011_v5 }
 0x2b3   :  { %v575_v58 = vadd.f32 %v7902_v8, %v8017_v36  ;;  %v579_v27 = vadd.f32 %v7908_v14, %v8017_v36  ;;  %v585_v8 = vadd.f32 %v7913_v17, %v8017_v36 }
 0x2b7   :  { %5993 = vmatmul.mubr.msk.bf16.gmra.mrb[52].mxu1 %vm11060_vm14, %v7818_v62 }
 0x2b8   :  { %1752 = vmatprep.mubr.bf16.mxu1 %v11037_v0 }
 0x2bf   :  { %5994 = vmatmul.mubr.msk.bf16.gmra.mrb[56].mxu1 %vm11060_vm14, %v7829_v3 }
 0x2c0   :  { %1762 = vmatprep.mubr.bf16.mxu1 %v11037_v0 }
 0x2c7   :  { %5995 = vmatmul.mubr.msk.bf16.gmra.mrb[60].mxu1 %vm11060_vm14, %v7840_v6 }
 0x2c8   :  { %1772 = vmatprep.mubr.bf16.mxu1 %v11037_v0 }
 0x2cf   :  { %5996 = vmatmul.mubr.msk.bf16.gmra.mrb[64].mxu1 %vm11060_vm14, %v7851_v11 }
 0x2d0   :  { %1782 = vmatprep.mubr.bf16.mxu1 %v11037_v0 }
 0x2d7   :  { %5997 = vmatmul.mubr.msk.bf16.gmra.mrb[68].mxu1 %vm11060_vm14, %v7862_v15 }
 0x2d8   :  { %1792 = vmatprep.mubr.bf16.mxu1 %v11037_v0 }
 0x2df   :  { %5998 = vmatmul.mubr.msk.bf16.gmra.mrb[72].mxu1 %vm11060_vm14, %v7873_v20 }
 0x2e0   :  { %1948 = vmatprep.mubr.bf16.mxu1 %v11037_v0 }
 0x2e7   :  { %6009 = vmatmul.mubr.msk.bf16.vlgmr.msra.gmra.mrb[76].mxu1 %vm11060_vm14, %v7796_v47 }
 0x2e8   :  { %1958 = vmatprep.mubr.bf16.mxu1 %v11037_v0 }
 0x2ef   :  { %6010 = vmatmul.mubr.msk.bf16.gmra.mrb[80].mxu1 %vm11060_vm14, %v7807_v56 }
 0x2f0   :  { %1968 = vmatprep.mubr.bf16.mxu1 %v11037_v0 }
 0x2f7   :  { %6011 = vmatmul.mubr.msk.bf16.gmra.mrb[84].mxu1 %vm11060_vm14, %v7818_v62 }
 0x2f8   :  { %1978 = vmatprep.mubr.bf16.mxu1 %v11037_v0 }
 0x2ff   :  { %6012 = vmatmul.mubr.msk.bf16.gmra.mrb[88].mxu1 %vm11060_vm14, %v7829_v3 }
 0x300   :  { %1988 = vmatprep.mubr.bf16.mxu1 %v11037_v0 }
 0x307   :  { %6013 = vmatmul.mubr.msk.bf16.gmra.mrb[92].mxu1 %vm11060_vm14, %v7840_v6 }
 0x308   :  { %1998 = vmatprep.mubr.bf16.mxu1 %v11037_v0 }
 0x30f   :  { %6014 = vmatmul.mubr.msk.bf16.gmra.mrb[96].mxu1 %vm11060_vm14, %v7851_v11 }
 0x310   :  { %2008 = vmatprep.mubr.bf16.mxu1 %v11037_v0 }
 0x317   :  { %6015 = vmatmul.mubr.msk.bf16.gmra.mrb[100].mxu1 %vm11060_vm14, %v7862_v15 }
 0x318   :  { %2018 = vmatprep.mubr.bf16.mxu1 %v11037_v0  ;;  %v8020_v0 = vrot.slane %v491_v7, %v8014_v43 }
 0x31a   :  { %v577_v49 = vadd.f32 %v7904_v13, %v8020_v0  ;;  %v581_v2 = vadd.f32 %v7911_v16, %v8020_v0  ;;  %v587_v13 = vadd.f32 %v7915_v21, %v8020_v0  ;;  %v595_v21 = vadd.f32 %v7924_v26, %v8017_v36 }
 0x31b   :  { %v601_v26 = vadd.f32 %v7933_v31, %v8020_v0 }
 0x31f   :  { %6016 = vmatmul.mubr.msk.bf16.gmra.mrb[104].mxu1 %vm11060_vm14, %v7873_v20 }
 0x320   :  { %6569 = vmatprep.mubr.msk.bf16.mxu1 %vm7725_vm6, %v11040_v60  ;;  %vm11274_vm6 = vcmask 1043456  }
 0x342   :  { %v896_v60 = vpop.f32.mrb[16].mxu1 }
 0x343   :  { %v898_v18 = vpop.f32.mrb[17].mxu1  ;;  %v975_v10 = vmul.f32 %v896_v60, %v575_v58 }
 0x344   :  { %v900_v5 = vpop.f32.mrb[18].mxu1  ;;  %v1007_v57 = vmul.f32 %v898_v18, %v577_v49  ;;  %v591_v18 = vadd.f32 %v7922_v25, %v8020_v0  ;;  %v599_v49 = vadd.f32 %v7930_v30, %v8017_v36 }
 0x345   :  { %v902_v20 = vpop.f32.mrb[19].mxu1  ;;  %v976_v7 = vmul.f32 %v900_v5, %v579_v27  ;;  %v597_v5 = vadd.f32 %v7926_v28, %v8020_v0 }
 0x346   :  { %v8030_v43 = vadd.f32 %v1007_v57, %v975_v10  ;;  %v1008_v15 = vmul.f32 %v902_v20, %v581_v2  ;;  %v589_v57 = vadd.f32 %v7919_v23, %v8017_v36 }
 0x348   :  { %1039 = vrot.lane.b32.xlu0 %v8030_v43, %s11221_s13  ;;  %v8038_v58 = vadd.f32 %v1008_v15, %v976_v7 }
 0x34a   :  { %1041 = vrot.lane.b32.xlu1 %v8038_v58, %s11221_s13  ;;  %v906_v60 = vpop.f32.mrb[20].mxu1 }
 0x34b   :  { %v908_v10 = vpop.f32.mrb[21].mxu1  ;;  %v977_v2 = vmul.f32 %v906_v60, %v585_v8 }
 0x34c   :  { %v910_v27 = vpop.f32.mrb[22].mxu1  ;;  %v1009_v20 = vmul.f32 %v908_v10, %v587_v13 }
 0x34d   :  { %v912_v14 = vpop.f32.mrb[23].mxu1  ;;  %v978_v16 = vmul.f32 %v910_v27, %v589_v57  ;;  %v607_v27 = vadd.f32 %v7937_v33, %v8020_v0 }
 0x34e   :  { %v8046_v17 = vadd.f32 %v1009_v20, %v977_v2  ;;  %v1010_v15 = vmul.f32 %v912_v14, %v591_v18  ;;  %v605_v18 = vadd.f32 %v7935_v32, %v8017_v36  ;;  %v609_v20 = vadd.f32 %v7941_v38, %v8017_v36 }
 0x34f   :  { %v611_v32 = vadd.f32 %v7944_v9, %v8020_v0 }
 0x350   :  { %1043 = vrot.lane.b32.xlu0 %v8046_v17, %s11221_s13  ;;  %v8054_v23 = vadd.f32 %v1010_v15, %v978_v16 }
 0x352   :  { %1045 = vrot.lane.b32.xlu1 %v8054_v23, %s11221_s13  ;;  %v916_v25 = vpop.f32.mrb[24].mxu1 }
 0x353   :  { %v918_v7 = vpop.f32.mrb[25].mxu1  ;;  %v979_v8 = vmul.f32 %v916_v25, %v595_v21 }
 0x354   :  { %v920_v13 = vpop.f32.mrb[26].mxu1  ;;  %v1011_v60 = vmul.f32 %v918_v7, %v597_v5  ;;  %v615_v7 = vadd.f32 %v7946_v39, %v8017_v36  ;;  %v621_v39 = vadd.f32 %v7955_v44, %v8020_v0 }
 0x355   :  { %v922_v28 = vpop.f32.mrb[27].mxu1  ;;  %v980_v57 = vmul.f32 %v920_v13, %v599_v49 }
 0x356   :  { %v8062_v10 = vadd.f32 %v1011_v60, %v979_v8  ;;  %v1012_v2 = vmul.f32 %v922_v28, %v601_v26  ;;  %v617_v8 = vadd.f32 %v7948_v41, %v8020_v0  ;;  %v619_v26 = vadd.f32 %v7952_v42, %v8017_v36 }
 0x358   :  { %1047 = vrot.lane.b32.xlu0 %v8062_v10, %s11221_s13  ;;  %v8070_v30 = vadd.f32 %v1012_v2, %v980_v57 }
 0x35a   :  { %1049 = vrot.lane.b32.xlu1 %v8070_v30, %s11221_s13  ;;  %v926_v31 = vpop.f32.mrb[28].mxu1 }
 0x35b   :  { %v928_v14 = vpop.f32.mrb[29].mxu1  ;;  %v981_v16 = vmul.f32 %v926_v31, %v605_v18  ;;  %v625_v31 = vadd.f32 %v7957_v45, %v8017_v36  ;;  %v631_v45 = vadd.f32 %v7966_v50, %v8020_v0 }
 0x35c   :  { %v930_v15 = vpop.f32.mrb[30].mxu1  ;;  %v1013_v21 = vmul.f32 %v928_v14, %v607_v27  ;;  %v629_v14 = vadd.f32 %v7963_v48, %v8017_v36 }
 0x35d   :  { %v932_v33 = vpop.f32.mrb[31].mxu1  ;;  %v982_v5 = vmul.f32 %v930_v15, %v609_v20  ;;  %v627_v20 = vadd.f32 %v7959_v46, %v8020_v0 }
 0x35e   :  { %v8078_v25 = vadd.f32 %v1013_v21, %v981_v16  ;;  %v1014_v49 = vmul.f32 %v932_v33, %v611_v32 }
 0x360   :  { %1051 = vrot.lane.b32.xlu0 %v8078_v25, %s11221_s13  ;;  %v8086_v38 = vadd.f32 %v1014_v49, %v982_v5 }
 0x362   :  { %1053 = vrot.lane.b32.xlu1 %v8086_v38, %s11221_s13  ;;  %v936_v9 = vpop.f32.mrb[32].mxu1 }
 0x363   :  { %v938_v13 = vpop.f32.mrb[33].mxu1  ;;  %v983_v60 = vmul.f32 %v936_v9, %v615_v7  ;;  %v635_v7 = vadd.f32 %v7968_v51, %v8017_v36  ;;  %v639_v9 = vadd.f32 %v7974_v54, %v8017_v36  ;;  %v641_v51 = vadd.f32 %v7977_v55, %v8020_v0 }
 0x364   :  { %v940_v28 = vpop.f32.mrb[34].mxu1  ;;  %v1015_v57 = vmul.f32 %v938_v13, %v617_v8  ;;  %v637_v8 = vadd.f32 %v7970_v53, %v8020_v0 }
 0x365   :  { %v942_v41 = vpop.f32.mrb[35].mxu1  ;;  %v984_v2 = vmul.f32 %v940_v28, %v619_v26 }
 0x366   :  { %v8094_v18 = vadd.f32 %v1015_v57, %v983_v60  ;;  %v1016_v27 = vmul.f32 %v942_v41, %v621_v39 }
 0x368   :  { %1055 = vrot.lane.b32.xlu0 %v8094_v18, %s11221_s13  ;;  %v8102_v42 = vadd.f32 %v1016_v27, %v984_v2  ;;  %v645_v2 = vadd.f32 %v7979_v59, %v8017_v36  ;;  %v647_v27 = vadd.f32 %v7981_v61, %v8020_v0  ;;  %v651_v59 = vadd.f32 %v7988_v1, %v8020_v0  ;;  %v6964_v0 = vld [vmem:[#allocation11 + $0x10] sm:$0xff]   ;;  %v6965_v1 = vld [vmem:[#allocation11 + $0x18] sm:$0xff]  }
 0x36a   :  { %1057 = vrot.lane.b32.xlu1 %v8102_v42, %s11221_s13  ;;  %v946_v44 = vpop.f32.mrb[36].mxu1 }
 0x36b   :  { %v948_v16 = vpop.f32.mrb[37].mxu1  ;;  %v985_v32 = vmul.f32 %v946_v44, %v625_v31  ;;  %v649_v31 = vadd.f32 %v7985_v63, %v8017_v36  ;;  %v6962_v36 = vld [vmem:[#allocation11] sm:$0xff]   ;;  %v6963_v63 = vld [vmem:[#allocation11 + $0x8] sm:$0xff]  }
 0x36c   :  { %v950_v15 = vpop.f32.mrb[38].mxu1  ;;  %v1017_v21 = vmul.f32 %v948_v16, %v627_v20  ;;  %6489 = vmatprep.subr.bf16.mxu0 %v6962_v36 }
 0x36d   :  { %v952_v46 = vpop.f32.mrb[39].mxu1  ;;  %v986_v33 = vmul.f32 %v950_v15, %v629_v14  ;;  %6490 = vmatpush3.bf16.msra.mxu0 %v6962_v36  ;;  %v483_v36 = vld [vmem:[%s11264_s28 + $0x50] sm:$0xff] }
 0x36e   :  { %v8110_v5 = vadd.f32 %v1017_v21, %v985_v32  ;;  %v1018_v49 = vmul.f32 %v952_v46, %v631_v45  ;;  %6491 = vmatprep.subr.bf16.mxu0 %v6963_v63  ;;  %v6966_v46 = vld [vmem:[#allocation11 + $0x20] sm:$0xff]  }
 0x370   :  { %1059 = vrot.lane.b32.xlu0 %v8110_v5, %s11221_s13  ;;  %v8118_v48 = vadd.f32 %v1018_v49, %v986_v33  ;;  %v6967_v33 = vld [vmem:[#allocation11 + $0x28] sm:$0xff]   ;;  %v6968_v49 = vld [vmem:[#allocation11 + $0x30] sm:$0xff]  }
 0x371   :  { %6492 = vmatpush3.bf16.msra.mxu0 %v6963_v63  ;;  %v484_v63 = vld [vmem:[%s11264_s28 + $0x58] sm:$0xff] }
 0x372   :  { %1061 = vrot.lane.b32.xlu1 %v8118_v48, %s11221_s13  ;;  %v956_v50 = vpop.f32.mrb[40].mxu1  ;;  %6493 = vmatprep.subr.bf16.mxu0 %v6964_v0 }
 0x373   :  { %v958_v26 = vpop.f32.mrb[41].mxu1  ;;  %v987_v13 = vmul.f32 %v956_v50, %v635_v7  ;;  %v6969_v7 = vld [vmem:[#allocation11 + $0x38] sm:$0xff]  }
 0x374   :  { %v960_v60 = vpop.f32.mrb[42].mxu1  ;;  %v1019_v39 = vmul.f32 %v958_v26, %v637_v8 }
 0x375   :  { %v962_v53 = vpop.f32.mrb[43].mxu1  ;;  %v988_v28 = vmul.f32 %v960_v60, %v639_v9  ;;  %6494 = vmatpush3.bf16.msra.mxu0 %v6964_v0  ;;  %v485_v0 = vld [vmem:[%s11264_s28 + $0x60] sm:$0xff] }
 0x376   :  { %v8126_v57 = vadd.f32 %v1019_v39, %v987_v13  ;;  %v1020_v41 = vmul.f32 %v962_v53, %v641_v51  ;;  %6495 = vmatprep.subr.bf16.mxu0 %v6965_v1 }
 0x378   :  { %1063 = vrot.lane.b32.xlu0 %v8126_v57, %s11221_s13  ;;  %v8134_v54 = vadd.f32 %v1020_v41, %v988_v28  ;;  %v388_v41 = vadd.s32 8, %v8008_v4 }
 0x379   :  { %6496 = vmatpush3.bf16.msra.mxu0 %v6965_v1  ;;  %v486_v1 = vld [vmem:[%s11264_s28 + $0x68] sm:$0xff] }
 0x37a   :  { %1065 = vrot.lane.b32.xlu1 %v8134_v54, %s11221_s13  ;;  %v966_v55 = vpop.f32.mrb[44].mxu1  ;;  %6497 = vmatprep.subr.bf16.mxu0 %v6966_v46 }
 0x37b   :  { %v968_v20 = vpop.f32.mrb[45].mxu1  ;;  %v989_v44 = vmul.f32 %v966_v55, %v645_v2  ;;  %v8226_v2 = vld [vmem:[#allocation2] ss:$0 sm:$0xff] }
 0x37c   :  { %v970_v14 = vpop.f32.mrb[46].mxu1  ;;  %v1021_v16 = vmul.f32 %v968_v20, %v647_v27  ;;  %vm408_vm1 = vcmp.eq.s32.totalorder %v8008_v4, %v8226_v2  ;;  %vm409_vm2 = vcmp.eq.s32.totalorder %v388_v41, %v8226_v2  ;;  %v473_v20 = vld [vmem:[%s11264_s28] sm:$0xff] }
 0x37d   :  { %v972_v61 = vpop.f32.mrb[47].mxu1  ;;  %v990_v32 = vmul.f32 %v970_v14, %v649_v31  ;;  %6498 = vmatpush3.bf16.msra.mxu0 %v6966_v46  ;;  %vm8233_vm4 = vmpackc.low %vm409_vm2, %vm408_vm1  ;;  %v476_v14 = vld [vmem:[%s11264_s28 + $0x18] sm:$0xff]  ;;  %v487_v46 = vld [vmem:[%s11264_s28 + $0x70] sm:$0xff] }
 0x37e   :  { %v8142_v45 = vadd.f32 %v1021_v16, %v989_v44  ;;  %v1022_v15 = vmul.f32 %v972_v61, %v651_v59  ;;  %6499 = vmatprep.subr.bf16.mxu0 %v6967_v33  ;;  %v474_v44 = vld [vmem:[%s11264_s28 + $0x8] sm:$0xff]  ;;  %v475_v59 = vld [vmem:[%s11264_s28 + $0x10] sm:$0xff]  ;;  %v477_v16 = vld [vmem:[%s11264_s28 + $0x20] sm:$0xff] }
 0x37f   :  { %v478_v61 = vld [vmem:[%s11264_s28 + $0x28] sm:$0xff] }
 0x380   :  { %1067 = vrot.lane.b32.xlu0 %v8142_v45, %s11221_s13  ;;  %v8146_v21 = vadd.f32 %v1022_v15, %v990_v32  ;;  %v479_v32 = vld [vmem:[%s11264_s28 + $0x30] sm:$0xff]  ;;  %v481_v15 = vld [vmem:[%s11264_s28 + $0x40] sm:$0xff] }
 0x381   :  { %6500 = vmatpush3.bf16.msra.mxu0 %v6967_v33  ;;  %v488_v33 = vld [vmem:[%s11264_s28 + $0x78] sm:$0xff] }
 0x382   :  { %1069 = vrot.lane.b32.xlu1 %v8146_v21, %s11221_s13  ;;  %6501 = vmatprep.subr.bf16.mxu0 %v6968_v49 }
 0x385   :  { %6502 = vmatpush3.bf16.msra.mxu0 %v6968_v49 }
 0x386   :  { %6503 = vmatprep.subr.bf16.mxu0 %v6969_v7 }
 0x389   :  { %6504 = vmatpush3.bf16.msra.mxu0 %v6969_v7 }
 0x38c   :  { %6506 = vmatmul.mubr.bf16.vlgmr.msra.gmra.mrb[32].mxu0 %v7616_v12 }
 0x38d   :  { %6509 = vmatprep.mubr.bf16.mxu0 %v7639_v19 }
 0x394   :  { %6510 = vmatmul.mubr.bf16.gmra.mrb[36].mxu0 %v7655_v24 }
 0x395   :  { %6513 = vmatprep.mubr.bf16.mxu0 %v7671_v29 }
 0x39c   :  { %6514 = vmatmul.mubr.bf16.gmra.mrb[40].mxu0 %v7687_v34 }
 0x39d   :  { %6517 = vmatprep.mubr.bf16.mxu0 %v7697_v37 }
 0x3a4   :  { %6518 = vmatmul.mubr.bf16.gmra.mrb[44].mxu0 %v7707_v40 }
 0x3ba   :  { %v1040_v8 = vpop.permute.xlu0 %1039 }
 0x3bb   :  { %v8153_v50 = vadd.f32 %v1040_v8, %v8030_v43 }
 0x3bc   :  { %v1042_v9 = vpop.permute.xlu1 %1041 }
 0x3bd   :  { %1087 = vrot.lane.b32.xlu0 %v8153_v50, %s7286_s10  ;;  %v8158_v26 = vadd.f32 %v1042_v9, %v8038_v58 }
 0x3bf   :  { %1089 = vrot.lane.b32.xlu1 %v8158_v26, %s7286_s10 }
 0x3c2   :  { %v1044_v12 = vpop.permute.xlu0 %1043 }
 0x3c3   :  { %v8165_v19 = vadd.f32 %v1044_v12, %v8046_v17  ;;  %v11265_v12 = vmov 0 }
 0x3c4   :  { %v1046_v43 = vpop.permute.xlu1 %1045  ;;  %v11266_v12 = vsel %vm8301_vm10, 4294967295, %v11265_v12 }
 0x3c5   :  { %1091 = vrot.lane.b32.xlu0 %v8165_v19, %s7286_s10  ;;  %v8170_v13 = vadd.f32 %v1046_v43, %v8054_v23  ;;  %11267 = vst [vmem:[#allocation48_spill] sm:$0xff] %v11266_v12 }
 0x3c7   :  { %1093 = vrot.lane.b32.xlu1 %v8170_v13, %s7286_s10 }
 0x3ca   :  { %v1048_v24 = vpop.permute.xlu0 %1047 }
 0x3cb   :  { %v8177_v29 = vadd.f32 %v1048_v24, %v8062_v10 }
 0x3cc   :  { %v1050_v58 = vpop.permute.xlu1 %1049 }
 0x3cd   :  { %1095 = vrot.lane.b32.xlu0 %v8177_v29, %s7286_s10  ;;  %v8182_v17 = vadd.f32 %v1050_v58, %v8070_v30 }
 0x3cf   :  { %1097 = vrot.lane.b32.xlu1 %v8182_v17, %s7286_s10 }
 0x3d2   :  { %v1052_v34 = vpop.permute.xlu0 %1051 }
 0x3d3   :  { %v8188_v23 = vadd.f32 %v1052_v34, %v8078_v25 }
 0x3d4   :  { %v1054_v37 = vpop.permute.xlu1 %1053 }
 0x3d5   :  { %1099 = vrot.lane.b32.xlu0 %v8188_v23, %s7286_s10  ;;  %v8193_v10 = vadd.f32 %v1054_v37, %v8086_v38 }
 0x3d7   :  { %1101 = vrot.lane.b32.xlu1 %v8193_v10, %s7286_s10 }
 0x3da   :  { %v1056_v30 = vpop.permute.xlu0 %1055 }
 0x3db   :  { %v8198_v40 = vadd.f32 %v1056_v30, %v8094_v18 }
 0x3dc   :  { %v1058_v51 = vpop.permute.xlu1 %1057 }
 0x3dd   :  { %1103 = vrot.lane.b32.xlu0 %v8198_v40, %s7286_s10  ;;  %v8203_v25 = vadd.f32 %v1058_v51, %v8102_v42 }
 0x3df   :  { %1105 = vrot.lane.b32.xlu1 %v8203_v25, %s7286_s10 }
 0x3e2   :  { %v1060_v60 = vpop.permute.xlu0 %1059 }
 0x3e3   :  { %v8208_v38 = vadd.f32 %v1060_v60, %v8110_v5 }
 0x3e4   :  { %v1062_v39 = vpop.permute.xlu1 %1061 }
 0x3e5   :  { %1107 = vrot.lane.b32.xlu0 %v8208_v38, %s7286_s10  ;;  %v8213_v18 = vadd.f32 %v1062_v39, %v8118_v48  ;;  %v11260_v48 = vmov 0 }
 0x3e6   :  { %v11261_v48 = vsel %vm8233_vm4, 4294967295, %v11260_v48 }
 0x3e7   :  { %1109 = vrot.lane.b32.xlu1 %v8213_v18, %s7286_s10  ;;  %11262 = vst [vmem:[#allocation47_spill] sm:$0xff] %v11261_v48 }
 0x3ea   :  { %v1064_v53 = vpop.permute.xlu0 %1063 }
 0x3eb   :  { %v8218_v42 = vadd.f32 %v1064_v53, %v8126_v57  ;;  %v11263_v57 = vmov 1.0|1.0  }
 0x3ec   :  { %v1066_v28 = vpop.permute.xlu1 %1065  ;;  %6537 = vmatprep.mubr.msk.bf16.mxu0 %vm8233_vm4, %v11263_v57 }
 0x3ed   :  { %1111 = vrot.lane.b32.xlu0 %v8218_v42, %s7286_s10  ;;  %v8223_v5 = vadd.f32 %v1066_v28, %v8134_v54 }
 0x3ef   :  { %1113 = vrot.lane.b32.xlu1 %v8223_v5, %s7286_s10 }
 0x3f2   :  { %v1068_v27 = vpop.permute.xlu0 %1067 }
 0x3f3   :  { %v8241_v54 = vadd.f32 %v1068_v27, %v8142_v45  ;;  %v480_v45 = vld [vmem:[%s11264_s28 + $0x38] sm:$0xff] }
 0x3f4   :  { %v1070_v55 = vpop.permute.xlu1 %1069 }
 0x3f5   :  { %v8244_v31 = vadd.f32 %v1070_v55, %v8146_v21  ;;  %1115 = vrot.lane.b32.xlu0 %v8241_v54, %s7286_s10  ;;  %v482_v21 = vld [vmem:[%s11264_s28 + $0x48] sm:$0xff] }
 0x3f7   :  { %1117 = vrot.lane.b32.xlu1 %v8244_v31, %s7286_s10 }
 0x3f9   :  { %1444 = vperm.xlu0 %6954, %v473_v20  }
 0x3fb   :  { %1449 = vperm.xlu1 %6955, %v474_v44  }
 0x3fd   :  { %1454 = vperm.xlu0 %6954, %v475_v59  }
 0x3ff   :  { %1459 = vperm.xlu1 %6955, %v476_v14  }
 0x401   :  { %1464 = vperm.xlu0 %6954, %v477_v16  }
 0x403   :  { %1469 = vperm.xlu1 %6955, %v478_v61  }
 0x405   :  { %1474 = vperm.xlu0 %6954, %v479_v32   ;;  %v390_v32 = vadd.s32 24, %v8008_v4 }
 0x407   :  { %1479 = vperm.xlu1 %6955, %v480_v45   ;;  %vm411_vm1 = vcmp.eq.s32.totalorder %v390_v32, %v8226_v2 }
 0x409   :  { %1484 = vperm.xlu0 %6954, %v481_v15   ;;  %v391_v15 = vadd.s32 32, %v8008_v4 }
 0x40b   :  { %1489 = vperm.xlu1 %6955, %v482_v21   ;;  %v392_v21 = vadd.s32 40, %v8008_v4  ;;  %vm412_vm2 = vcmp.eq.s32.totalorder %v391_v15, %v8226_v2 }
 0x40d   :  { %1494 = vperm.xlu0 %6954, %v483_v36   ;;  %vm413_vm7 = vcmp.eq.s32.totalorder %v392_v21, %v8226_v2 }
 0x40e   :  { %vm8363_vm0 = vmpackc.low %vm413_vm7, %vm412_vm2 }
 0x40f   :  { %1499 = vperm.xlu1 %6955, %v484_v63   ;;  %v11268_v63 = vmov 0 }
 0x411   :  { %1504 = vperm.xlu0 %6954, %v485_v0   ;;  %v394_v0 = vadd.s32 56, %v8008_v4 }
 0x413   :  { %1509 = vperm.xlu1 %6955, %v486_v1   ;;  %v395_v1 = vadd.s32 64, %v8008_v4 }
 0x415   :  { %1514 = vperm.xlu0 %6954, %v487_v46   ;;  %v396_v46 = vadd.s32 72, %v8008_v4 }
 0x417   :  { %1519 = vperm.xlu1 %6955, %v488_v33   ;;  %vm417_vm2 = vcmp.eq.s32.totalorder %v396_v46, %v8226_v2  ;;  %v11278_v33 = vmov 0 }
 0x42f   :  { %v1088_v49 = vpop.permute.xlu0 %1087 }
 0x430   :  { %v1119_v8 = vadd.f32 %v1088_v49, %v8153_v50  ;;  %v397_v49 = vadd.s32 80, %v8008_v4 }
 0x431   :  { %v1090_v7 = vpop.permute.xlu1 %1089 }
 0x432   :  { %v1120_v9 = vadd.f32 %v1090_v7, %v8158_v26  ;;  %v399_v7 = vadd.s32 96, %v8008_v4 }
 0x434   :  { %v5940_v43 = vpack.c.bf16 %v1120_v9, %v1119_v8  ;;  %v400_v8 = vadd.s32 104, %v8008_v4  ;;  %v11281_v9 = vmov 0 }
 0x436   :  { %6521 = vmatprep.subr.msk.bf16.mxu0 %vm8301_vm10, %v5940_v43 }
 0x437   :  { %v1092_v24 = vpop.permute.xlu0 %1091  ;;  %6522 = vmatpush3.bf16.msk.msra.mxu0 %vm8301_vm10, %v5940_v43  ;;  %v11284_v43 = vmov 0 }
 0x438   :  { %v1121_v52 = vadd.f32 %v1092_v24, %v8165_v19  ;;  %v401_v24 = vadd.s32 112, %v8008_v4 }
 0x439   :  { %v1094_v58 = vpop.permute.xlu1 %1093 }
 0x43a   :  { %v1122_v34 = vadd.f32 %v1094_v58, %v8170_v13  ;;  %v402_v58 = vadd.s32 120, %v8008_v4 }
 0x43c   :  { %v5943_v50 = vpack.c.bf16 %v1122_v34, %v1121_v52  ;;  %v11287_v52 = vmov 0  ;;  %v11290_v34 = vmov 0  }
 0x43e   :  { %6523 = vmatprep.subr.msk.bf16.mxu0 %vm8301_vm10, %v5943_v50 }
 0x43f   :  { %v1096_v26 = vpop.permute.xlu0 %1095  ;;  %6524 = vmatpush3.bf16.msk.msra.mxu0 %vm8301_vm10, %v5943_v50  ;;  %v1601_v50 = vld [vmem:[#allocation14 + $0x8] sm:$0xff] }
 0x440   :  { %v1123_v30 = vadd.f32 %v1096_v26, %v8177_v29  ;;  %v8435_v26 = vpop.f32.mrb[48].mxu1 }
 0x441   :  { %v1098_v37 = vpop.permute.xlu1 %1097 }
 0x442   :  { %v1124_v51 = vadd.f32 %v1098_v37, %v8182_v17  ;;  %v1603_v37 = vld [vmem:[#allocation14 + $0x18] sm:$0xff] }
 0x444   :  { %v5946_v60 = vpack.c.bf16 %v1124_v51, %v1123_v30  ;;  %v5984_v30 = vcombine.low %v1601_v50, %v1601_v50  ;;  %v8437_v51 = vpop.f32.mrb[49].mxu1 }
 0x446   :  { %6525 = vmatprep.subr.msk.bf16.mxu0 %vm8301_vm10, %v5946_v60 }
 0x447   :  { %v1100_v19 = vpop.permute.xlu0 %1099  ;;  %6526 = vmatpush3.bf16.msk.msra.mxu0 %vm8301_vm10, %v5946_v60  ;;  %v5989_v60 = vcombine.high %v1603_v37, %v1603_v37 }
 0x448   :  { %v1125_v39 = vadd.f32 %v1100_v19, %v8188_v23  ;;  %v5988_v19 = vcombine.low %v1603_v37, %v1603_v37 }
 0x449   :  { %v1102_v13 = vpop.permute.xlu1 %1101 }
 0x44a   :  { %v1126_v53 = vadd.f32 %v1102_v13, %v8193_v10  ;;  %v2247_v13 = vld [vmem:[#allocation7] sm:$0xff] }
 0x44c   :  { %v5949_v28 = vpack.c.bf16 %v1126_v53, %v1125_v39  ;;  %v2251_v39 = vld [vmem:[#allocation7 + $0x20] sm:$0xff]  ;;  %v8439_v53 = vpop.f32.mrb[50].mxu1 }
 0x44e   :  { %6527 = vmatprep.subr.msk.bf16.mxu0 %vm8301_vm10, %v5949_v28 }
 0x44f   :  { %v1104_v29 = vpop.permute.xlu0 %1103  ;;  %6528 = vmatpush3.bf16.msk.msra.mxu0 %vm8301_vm10, %v5949_v28  ;;  %v8441_v28 = vcombine.low %v2247_v13, %v2251_v39 }
 0x450   :  { %v1127_v41 = vadd.f32 %v1104_v29, %v8198_v40 }
 0x451   :  { %v1106_v17 = vpop.permute.xlu1 %1105  ;;  %11292 = vst [vmem:[#allocation56_spill] sm:$0xff] %v8441_v28 }
 0x452   :  { %v1128_v27 = vadd.f32 %v1106_v17, %v8203_v25  ;;  %v8445_v17 = vpop.f32.mrb[51].mxu1 }
 0x454   :  { %v5952_v55 = vpack.c.bf16 %v1128_v27, %v1127_v41  ;;  %v8447_v41 = vpop.f32.mrb[52].mxu1 }
 0x455   :  { %11295 = vst [vmem:[#allocation57_spill] sm:$0xff] %v8447_v41  ;;  %v8449_v27 = vpop.f32.mrb[53].mxu1 }
 0x456   :  { %6529 = vmatprep.subr.msk.bf16.mxu0 %vm8301_vm10, %v5952_v55  ;;  %11296 = vst [vmem:[#allocation58_spill] sm:$0xff] %v8449_v27 }
 0x457   :  { %v1108_v23 = vpop.permute.xlu0 %1107  ;;  %6530 = vmatpush3.bf16.msk.msra.mxu0 %vm8301_vm10, %v5952_v55 }
 0x458   :  { %v1129_v20 = vadd.f32 %v1108_v23, %v8208_v38  ;;  %v8453_v23 = vcombine.high %v2247_v13, %v2251_v39 }
 0x459   :  { %v1110_v10 = vpop.permute.xlu1 %1109 }
 0x45a   :  { %v1130_v44 = vadd.f32 %v1110_v10, %v8213_v18  ;;  %v389_v18 = vadd.s32 16, %v8008_v4  ;;  %11299 = vst [vmem:[#allocation59_spill] sm:$0xff] %v8453_v23  ;;  %v8455_v10 = vpop.f32.mrb[54].mxu1 }
 0x45b   :  { %11300 = vst [vmem:[#allocation60_spill] sm:$0xff] %v8455_v10 }
 0x45c   :  { %v5955_v59 = vpack.c.bf16 %v1130_v44, %v1129_v20  ;;  %vm410_vm11 = vcmp.eq.s32.totalorder %v389_v18, %v8226_v2  ;;  %v8459_v20 = vpop.f32.mrb[55].mxu1 }
 0x45d   :  { %vm8359_vm14 = vmpackc.low %vm411_vm1, %vm410_vm11  ;;  %vm415_vm1 = vcmp.eq.s32.totalorder %v394_v0, %v8226_v2  ;;  %11302 = vst [vmem:[#allocation61_spill] sm:$0xff] %v8459_v20  ;;  %v8462_v44 = vpop.f32.mrb[56].mxu1 }
 0x45e   :  { %6531 = vmatprep.subr.msk.bf16.mxu0 %vm8301_vm10, %v5955_v59  ;;  %v11269_v63 = vsel %vm8359_vm14, 4294967295, %v11268_v63  ;;  %11303 = vst [vmem:[#allocation62_spill] sm:$0xff] %v8462_v44 }
 0x45f   :  { %v1112_v40 = vpop.permute.xlu0 %1111  ;;  %6532 = vmatpush3.bf16.msk.msra.mxu0 %vm8301_vm10, %v5955_v59  ;;  %11270 = vst [vmem:[#allocation49_spill] sm:$0xff] %v11269_v63  ;;  %v8464_v59 = vpop.f32.mrb[57].mxu1 }
 0x460   :  { %v1131_v14 = vadd.f32 %v1112_v40, %v8218_v42  ;;  %11304 = vst [vmem:[#allocation63_spill] sm:$0xff] %v8464_v59  ;;  %v8467_v40 = vpop.f32.mrb[58].mxu1  ;;  %v2270_v59 = vld [vmem:[#allocation7 + $0xb8] sm:$0xff] }
 0x461   :  { %v1114_v25 = vpop.permute.xlu1 %1113  ;;  %11305 = vst [vmem:[#allocation64_spill] sm:$0xff] %v8467_v40  ;;  %v2262_v40 = vld [vmem:[#allocation7 + $0x78] sm:$0xff] }
 0x462   :  { %v1132_v16 = vadd.f32 %v1114_v25, %v8223_v5  ;;  %v8469_v25 = vpop.f32.mrb[59].mxu1 }
 0x463   :  { %11306 = vst [vmem:[#allocation65_spill] sm:$0xff] %v8469_v25  ;;  %v2257_v25 = vld [vmem:[#allocation7 + $0x50] sm:$0xff] }
 0x464   :  { %v5958_v61 = vpack.c.bf16 %v1132_v16, %v1131_v14  ;;  %v8471_v14 = vpop.f32.mrb[60].mxu1 }
 0x465   :  { %11307 = vst [vmem:[#allocation66_spill] sm:$0xff] %v8471_v14  ;;  %v8473_v16 = vpop.f32.mrb[61].mxu1 }
 0x466   :  { %6533 = vmatprep.subr.msk.bf16.mxu0 %vm8301_vm10, %v5958_v61  ;;  %11308 = vst [vmem:[#allocation67_spill] sm:$0xff] %v8473_v16 }
 0x467   :  { %v1116_v38 = vpop.permute.xlu0 %1115  ;;  %6534 = vmatpush3.bf16.msk.msra.mxu0 %vm8301_vm10, %v5958_v61  ;;  %v8475_v61 = vpop.f32.mrb[62].mxu1 }
 0x468   :  { %v1133_v42 = vadd.f32 %v1116_v38, %v8241_v54  ;;  %v11271_v54 = vmov 0  ;;  %11309 = vst [vmem:[#allocation68_spill] sm:$0xff] %v8475_v61  ;;  %v8479_v38 = vpop.f32.mrb[63].mxu1 }
 0x469   :  { %v1118_v45 = vpop.permute.xlu1 %1117  ;;  %v11272_v54 = vsel %vm8363_vm0, 4294967295, %v11271_v54  ;;  %11310 = vst [vmem:[#allocation69_spill] sm:$0xff] %v8479_v38  ;;  %v8482_v18 = vpop.f32.mrb[64].mxu1 }
 0x46a   :  { %v1134_v5 = vadd.f32 %v1118_v45, %v8244_v31  ;;  %11273 = vst [vmem:[#allocation50_spill] sm:$0xff] %v11272_v54  ;;  %v393_v31 = vadd.s32 48, %v8008_v4  ;;  %11311 = vst [vmem:[#allocation70_spill] sm:$0xff] %v8482_v18  ;;  %v8484_v32 = vpop.f32.mrb[65].mxu1 }
 0x46b   :  { %11312 = vst [vmem:[#allocation71_spill] sm:$0xff] %v8484_v32  ;;  %v8486_v45 = vpop.f32.mrb[66].mxu1 }
 0x46c   :  { %v5961_v36 = vpack.c.bf16 %v1134_v5, %v1133_v42  ;;  %vm414_vm11 = vcmp.eq.s32.totalorder %v393_v31, %v8226_v2  ;;  %11313 = vst [vmem:[#allocation72_spill] sm:$0xff] %v8486_v45  ;;  %v8488_v15 = vpop.f32.mrb[67].mxu1 }
 0x46d   :  { %vm8384_vm7 = vmpackc.low %vm415_vm1, %vm414_vm11  ;;  %vm418_vm11 = vcmp.eq.s32.totalorder %v397_v49, %v8226_v2  ;;  %11314 = vst [vmem:[#allocation73_spill] sm:$0xff] %v8488_v15  ;;  %v8490_v21 = vpop.f32.mrb[68].mxu1 }
 0x46e   :  { %6535 = vmatprep.subr.msk.bf16.mxu0 %vm8301_vm10, %v5961_v36  ;;  %11315 = vst [vmem:[#allocation74_spill] sm:$0xff] %v8490_v21  ;;  %v8492_v42 = vpop.f32.mrb[69].mxu1 }
 0x46f   :  { %6536 = vmatpush3.bf16.msk.msra.mxu0 %vm8301_vm10, %v5961_v36  ;;  %11316 = vst [vmem:[#allocation75_spill] sm:$0xff] %v8492_v42  ;;  %v8494_v5 = vpop.f32.mrb[70].mxu1 }
 0x470   :  { %5990 = vmatprep.subr.msk.bf16.mxu0 %vm11274_vm6, %v7878_v22  ;;  %vm416_vm6 = vcmp.eq.s32.totalorder %v395_v1, %v8226_v2  ;;  %v11275_v22 = vmov 0  ;;  %11317 = vst [vmem:[#allocation76_spill] sm:$0xff] %v8494_v5  ;;  %v8498_v36 = vpop.f32.mrb[71].mxu1 }
 0x471   :  { %v11276_v22 = vsel %vm8384_vm7, 4294967295, %v11275_v22  ;;  %vm8388_vm10 = vmpackc.low %vm417_vm2, %vm416_vm6  ;;  %vm420_vm6 = vcmp.eq.s32.totalorder %v399_v7, %v8226_v2  ;;  %vm421_vm2 = vcmp.eq.s32.totalorder %v400_v8, %v8226_v2  ;;  %11319 = vst [vmem:[#allocation77_spill] sm:$0xff] %v8498_v36  ;;  %v8501_v31 = vpop.f32.mrb[72].mxu1 }
 0x472   :  { %6538 = vmatmul.mubr.msk.bf16.vlgmr.msra.gmra.mrb[32].mxu0 %vm8359_vm14, %v11263_v57  ;;  %11277 = vst [vmem:[#allocation51_spill] sm:$0xff] %v11276_v22  ;;  %v11279_v33 = vsel %vm8388_vm10, 4294967295, %v11278_v33  ;;  %vm8410_vm14 = vmpackc.low %vm421_vm2, %vm420_vm6  ;;  %vm11291_vm2 = vcmask 64512   ;;  %v8503_v0 = vpop.f32.mrb[73].mxu1 }
 0x473   :  { %6541 = vmatprep.mubr.msk.bf16.mxu0 %vm8363_vm0, %v11263_v57  ;;  %1691 = vmatpush1.bf16.msra.mxu0 %v7883_v35  ;;  %11280 = vst [vmem:[#allocation52_spill] sm:$0xff] %v11279_v33  ;;  %v398_v35 = vadd.s32 88, %v8008_v4  ;;  %v11285_v43 = vsel %vm8410_vm14, 4294967295, %v11284_v43  ;;  %11320 = vst [vmem:[#allocation78_spill] sm:$0xff] %v8501_v31  ;;  %v8505_v1 = vpop.f32.mrb[74].mxu1  ;;  %v2259_v31 = vld [vmem:[#allocation7 + $0x60] sm:$0xff] }
 0x474   :  { %11286 = vst [vmem:[#allocation54_spill] sm:$0xff] %v11285_v43  ;;  %11321 = vst [vmem:[#allocation79_spill] sm:$0xff] %v8503_v0  ;;  %v8507_v46 = vpop.f32.mrb[75].mxu1  ;;  %v2255_v0 = vld [vmem:[#allocation7 + $0x40] sm:$0xff] }
 0x475   :  { %vm419_vm1 = vcmp.eq.s32.totalorder %v398_v35, %v8226_v2  ;;  %11322 = vst [vmem:[#allocation80_spill] sm:$0xff] %v8505_v1  ;;  %11323 = vst [vmem:[#allocation81_spill] sm:$0xff] %v8507_v46  ;;  %v8509_v49 = vpop.f32.mrb[76].mxu1 }
 0x476   :  { %vm8406_vm0 = vmpackc.low %vm419_vm1, %vm418_vm11  ;;  %vm422_vm11 = vcmp.eq.s32.totalorder %v401_v24, %v8226_v2  ;;  %vm423_vm1 = vcmp.eq.s32.totalorder %v402_v58, %v8226_v2  ;;  %v5985_v2 = vcombine.high %v1601_v50, %v1601_v50  ;;  %11324 = vst [vmem:[#allocation82_spill] sm:$0xff] %v8509_v49  ;;  %v8511_v35 = vpop.f32.mrb[77].mxu1 }
 0x477   :  { %v11282_v9 = vsel %vm8406_vm0, 4294967295, %v11281_v9  ;;  %vm8424_vm6 = vmpackc.low %vm423_vm1, %vm422_vm11  ;;  %vm11293_vm11 = vcmask 1043456   ;;  %11325 = vst [vmem:[#allocation83_spill] sm:$0xff] %v8511_v35  ;;  %v8513_v7 = vpop.f32.mrb[78].mxu1 }
 0x478   :  { %11283 = vst [vmem:[#allocation53_spill] sm:$0xff] %v11282_v9  ;;  %v11288_v52 = vsel %vm8424_vm6, 4294967295, %v11287_v52  ;;  %5999 = vmatprep.subr.msk.bf16.mxu0 %vm11293_vm11, %v5985_v2  ;;  %vm11294_vm1 = vmmov %vm11293_vm11  ;;  %v8517_v8 = vpop.f32.mrb[79].mxu1 }
 0x479   :  { %11289 = vst [vmem:[#allocation55_spill] sm:$0xff] %v11288_v52  ;;  %v1673_v29 = vsel %vm11294_vm1, %v5984_v30, 0  ;;  %11326 = vst [vmem:[#allocation84_spill] sm:$0xff] %v8513_v7  ;;  %v8520_v24 = vpop.f32.mrb[80].mxu1  ;;  %v8530_v30 = vpop.permute.xlu0 %1444 }
 0x47a   :  { %6542 = vmatmul.mubr.msk.bf16.gmra.mrb[36].mxu0 %vm8384_vm7, %v11263_v57  ;;  %11328 = vst [vmem:[#allocation85_spill] sm:$0xff] %v8517_v8  ;;  %11329 = vst [vmem:[#allocation86_spill] sm:$0xff] %v8520_v24  ;;  %v8522_v58 = vpop.f32.mrb[81].mxu1 }
 0x47b   :  { %6545 = vmatprep.mubr.msk.bf16.mxu0 %vm8388_vm10, %v11263_v57  ;;  %11330 = vst [vmem:[#allocation87_spill] sm:$0xff] %v8522_v58  ;;  %v8524_v50 = vpop.f32.mrb[82].mxu1  ;;  %11334 = vst [vmem:[#allocation91_spill] sm:$0xff] %v8530_v30 }
 0x47c   :  { %11331 = vst [vmem:[#allocation88_spill] sm:$0xff] %v8524_v50  ;;  %v8526_v37 = vpop.f32.mrb[83].mxu1 }
 0x47d   :  { %11332 = vst [vmem:[#allocation89_spill] sm:$0xff] %v8526_v37  ;;  %v8528_v2 = vpop.f32.mrb[84].mxu1  ;;  %v8549_v52 = vpop.permute.xlu0 %1454 }
 0x47e   :  { %11333 = vst [vmem:[#allocation90_spill] sm:$0xff] %v8528_v2  ;;  %11343 = vst [vmem:[#allocation99_spill] sm:$0xff] %v8549_v52 }
 0x482   :  { %6546 = vmatmul.mubr.msk.bf16.gmra.mrb[40].mxu0 %vm8406_vm0, %v11263_v57 }
 0x483   :  { %6549 = vmatprep.mubr.msk.bf16.mxu0 %vm8410_vm14, %v11263_v57  ;;  %vm11301_vm14 = vcmask 64512  }
 0x48a   :  { %6550 = vmatmul.mubr.msk.bf16.gmra.mrb[44].mxu0 %vm8424_vm6, %v11263_v57  ;;  %vm11298_vm6 = vmmov %vm11294_vm1 }
 0x48b   :  { %1722 = vmatprep.mubr.bf16.mxu0 %v11290_v34  ;;  %v1685_v55 = vsel %vm11298_vm6, %v5988_v19, 0  ;;  %vm11318_vm6 = vmmov %vm11301_vm14 }
 0x48c   :  { %vm11327_vm11 = vmmov %vm11318_vm6 }
 0x492   :  { %5991 = vmatmul.mubr.msk.bf16.vlgmr.msra.gmra.mrb[48].mxu0 %vm11291_vm2, %v7796_v47  ;;  %vm11297_vm2 = vmmov %vm11294_vm1 }
 0x493   :  { %1835 = vmatprep.mubr.bf16.mxu0 %v11290_v34  ;;  %1804 = vmatpush1.bf16.msra.mxu0 %v1673_v29  ;;  %vm11337_vm1 = vmmov %vm11318_vm6 }
 0x494   :  { %6017 = vmatprep.subr.msk.bf16.mxu0 %vm11297_vm2, %v5989_v60  ;;  %v8532_v60 = vpop.f32.mrb[85].mxu1  ;;  %vm11348_vm2 = vmmov %vm11337_vm1 }
 0x495   :  { %11335 = vst [vmem:[#allocation92_spill] sm:$0xff] %v8532_v60  ;;  %v8534_v19 = vpop.f32.mrb[86].mxu1 }
 0x496   :  { %11336 = vst [vmem:[#allocation93_spill] sm:$0xff] %v8534_v19  ;;  %v8538_v13 = vpop.f32.mrb[87].mxu1 }
 0x497   :  { %11338 = vst [vmem:[#allocation94_spill] sm:$0xff] %v8538_v13  ;;  %v8541_v39 = vpop.f32.mrb[88].mxu1 }
 0x498   :  { %11339 = vst [vmem:[#allocation95_spill] sm:$0xff] %v8541_v39  ;;  %v8543_v29 = vpop.f32.mrb[89].mxu1 }
 0x499   :  { %11340 = vst [vmem:[#allocation96_spill] sm:$0xff] %v8543_v29 }
 0x49a   :  { %6000 = vmatmul.mubr.msk.bf16.vlgmr.msra.gmra.mrb[52].mxu0 %vm11301_vm14, %v7796_v47 }
 0x49b   :  { %1845 = vmatprep.mubr.bf16.mxu0 %v11290_v34  ;;  %2030 = vmatpush1.bf16.msra.mxu0 %v1685_v55  ;;  %v8545_v55 = vpop.permute.xlu1 %1449 }
 0x49c   :  { %2639 = vmatprep.subr.bf16.mxu0 %v8453_v23  ;;  %11341 = vst [vmem:[#allocation97_spill] sm:$0xff] %v8545_v55  ;;  %v8547_v23 = vpop.f32.mrb[90].mxu1 }
 0x49d   :  { %11342 = vst [vmem:[#allocation98_spill] sm:$0xff] %v8547_v23  ;;  %v8551_v43 = vpop.f32.mrb[91].mxu1  ;;  %v8568_v23 = vpop.permute.xlu0 %1464 }
 0x49e   :  { %11344 = vst [vmem:[#allocation100_spill] sm:$0xff] %v8551_v43  ;;  %v8553_v9 = vpop.f32.mrb[92].mxu1  ;;  %11352 = vst [vmem:[#allocation107_spill] sm:$0xff] %v8568_v23 }
 0x49f   :  { %11345 = vst [vmem:[#allocation101_spill] sm:$0xff] %v8553_v9  ;;  %v8555_v33 = vpop.f32.mrb[93].mxu1  ;;  %v8563_v63 = vpop.permute.xlu1 %1459 }
 0x4a0   :  { %11346 = vst [vmem:[#allocation102_spill] sm:$0xff] %v8555_v33  ;;  %v8557_v22 = vpop.f32.mrb[94].mxu1  ;;  %11350 = vst [vmem:[#allocation105_spill] sm:$0xff] %v8563_v63 }
 0x4a1   :  { %11347 = vst [vmem:[#allocation103_spill] sm:$0xff] %v8557_v22  ;;  %v8561_v54 = vpop.f32.mrb[95].mxu1  ;;  %v8586_v19 = vpop.permute.xlu0 %1474 }
 0x4a2   :  { %6001 = vmatmul.mubr.msk.bf16.gmra.mrb[56].mxu0 %vm11301_vm14, %v7807_v56  ;;  %11349 = vst [vmem:[#allocation104_spill] sm:$0xff] %v8561_v54  ;;  %v8566_v12 = vpop.f32.mrb[96].mxu1  ;;  %v8582_v54 = vld [vmem:[#allocation13] ss:$0 sm:$0xff]  ;;  %11360 = vst [vmem:[#allocation115_spill] sm:$0xff] %v8586_v19 }
 0x4a3   :  { %1855 = vmatprep.mubr.bf16.mxu0 %v11290_v34  ;;  %11351 = vst [vmem:[#allocation106_spill] sm:$0xff] %v8566_v12  ;;  %v8570_v43 = vpop.f32.mrb[97].mxu1  ;;  %v8580_v39 = vpop.permute.xlu1 %1469  ;;  %v11361_v12 = vld [vmem:[#allocation42_spill] sm:$0xff]  ;;  %vm11362_vm14 = vmmov %vm11337_vm1 }
 0x4a4   :  { %11353 = vst [vmem:[#allocation108_spill] sm:$0xff] %v8570_v43  ;;  %v8572_v9 = vpop.f32.mrb[98].mxu1  ;;  %11358 = vst [vmem:[#allocation113_spill] sm:$0xff] %v8580_v39 }
 0x4a5   :  { %11354 = vst [vmem:[#allocation109_spill] sm:$0xff] %v8572_v9  ;;  %v8574_v33 = vpop.f32.mrb[99].mxu1 }
 0x4a6   :  { %11355 = vst [vmem:[#allocation110_spill] sm:$0xff] %v8574_v33  ;;  %v8576_v22 = vpop.f32.mrb[100].mxu1 }
 0x4a7   :  { %11356 = vst [vmem:[#allocation111_spill] sm:$0xff] %v8576_v22  ;;  %v8578_v29 = vpop.f32.mrb[101].mxu1 }
 0x4a8   :  { %11357 = vst [vmem:[#allocation112_spill] sm:$0xff] %v8578_v29  ;;  %v8584_v13 = vpop.f32.mrb[102].mxu1 }
 0x4a9   :  { %11359 = vst [vmem:[#allocation114_spill] sm:$0xff] %v8584_v13  ;;  %v8590_v43 = vpop.f32.mrb[103].mxu1  ;;  %v8601_v13 = vld [vmem:[%s11009_s20] ss:$0 sm:$0xff] }
 0x4aa   :  { %6002 = vmatmul.mubr.msk.bf16.gmra.mrb[60].mxu0 %vm11318_vm6, %v7818_v62  ;;  %11363 = vst [vmem:[#allocation116_spill] sm:$0xff] %v8590_v43  ;;  %v8593_v33 = vpop.f32.mrb[104].mxu1  ;;  %vm11370_vm6 = vmmov %vm11337_vm1 }
 0x4ab   :  { %1865 = vmatprep.mubr.bf16.mxu0 %v11290_v34  ;;  %11364 = vst [vmem:[#allocation117_spill] sm:$0xff] %v8593_v33  ;;  %v8596_v60 = vpop.f32.mrb[105].mxu1 }
 0x4ac   :  { %11365 = vst [vmem:[#allocation118_spill] sm:$0xff] %v8596_v60  ;;  %v8604_v50 = vpop.f32.mrb[106].mxu1 }
 0x4ad   :  { %11366 = vst [vmem:[#allocation119_spill] sm:$0xff] %v8604_v50  ;;  %v8608_v24 = vpop.f32.mrb[107].mxu1 }
 0x4ae   :  { %11367 = vst [vmem:[#allocation120_spill] sm:$0xff] %v8608_v24 }
 0x4b2   :  { %6003 = vmatmul.mubr.msk.bf16.gmra.mrb[64].mxu0 %vm11327_vm11, %v7829_v3  ;;  %vm11375_vm11 = vmmov %vm11337_vm1 }
 0x4b3   :  { %1875 = vmatprep.mubr.bf16.mxu0 %v11290_v34 }
 0x4ba   :  { %6004 = vmatmul.mubr.msk.bf16.gmra.mrb[68].mxu0 %vm11337_vm1, %v7840_v6 }
 0x4bb   :  { %1885 = vmatprep.mubr.bf16.mxu0 %v11290_v34 }
 0x4c2   :  { %6005 = vmatmul.mubr.msk.bf16.gmra.mrb[72].mxu0 %vm11348_vm2, %v7851_v11  ;;  %vm11389_vm2 = vmmov %vm11337_vm1 }
 0x4c3   :  { %1895 = vmatprep.mubr.bf16.mxu0 %v11290_v34 }
 0x4ca   :  { %6006 = vmatmul.mubr.msk.bf16.gmra.mrb[76].mxu0 %vm11362_vm14, %v11361_v12  ;;  %vm11393_vm14 = vmmov %vm11337_vm1 }
 0x4cb   :  { %1905 = vmatprep.mubr.bf16.mxu0 %v11290_v34 }
 0x545   :  { %v6539_v9 = vpop.f32.mrb[32].mxu0 }
 0x546   :  { %v1428_v29 = vadd.f32 %v6539_v9, %v8582_v54  ;;  %v1356_v22 = vpop.f32.mrb[33].mxu0  ;;  %v8610_v9 = vpop.permute.xlu1 %1479 }
 0x547   :  { %v1426_v2 = vadd.f32 %v8582_v54, %v1356_v22  ;;  %v6540_v37 = vpop.f32.mrb[34].mxu0  ;;  %11368 = vst [vmem:[#allocation121_spill] sm:$0xff] %v8610_v9  ;;  %v8617_v22 = vld [vmem:[%s11010_s21] ss:$0 sm:$0xff] }
 0x548   :  { %v1524_v43 = vmul.f32 %v8549_v52, %v1428_v29  ;;  %v1429_v58 = vadd.f32 %v6540_v37, %v8582_v54  ;;  %v1359_v33 = vpop.f32.mrb[35].mxu0 }
 0x549   :  { %v1522_v60 = vmul.f32 %v8530_v30, %v1426_v2  ;;  %v1427_v8 = vadd.f32 %v8582_v54, %v1359_v33  ;;  %v11369_v2 = vld [vmem:[#allocation43_spill] sm:$0xff]  ;;  %v8627_v33 = vpop.permute.xlu0 %1484 }
 0x54a   :  { %v1547_v50 = vmul.f32 %v8601_v13, %v1524_v43  ;;  %v1525_v29 = vmul.f32 %v8563_v63, %v1429_v58  ;;  %6007 = vmatmul.mubr.msk.bf16.gmra.mrb[80].mxu0 %vm11370_vm6, %v11369_v2  ;;  %11371 = vst [vmem:[#allocation122_spill] sm:$0xff] %v8627_v33  ;;  %vm11397_vm6 = vmmov %vm11337_vm1 }
 0x54b   :  { %v1545_v37 = vmul.f32 %v8601_v13, %v1522_v60  ;;  %v1523_v52 = vmul.f32 %v8545_v55, %v1427_v8  ;;  %2061 = vmatprep.mubr.bf16.mxu0 %v11290_v34 }
 0x54c   :  { %v1548_v24 = vmul.f32 %v8601_v13, %v1525_v29  ;;  %v1570_v7 = vadd.f32 %v8617_v22, %v1547_v50  ;;  %v8634_v29 = vpop.permute.xlu1 %1489 }
 0x54d   :  { %v1546_v30 = vmul.f32 %v8601_v13, %v1523_v52  ;;  %v6543_v35 = vpop.f32.mrb[36].mxu0  ;;  %v1568_v43 = vadd.f32 %v8617_v22, %v1545_v37  ;;  %11372 = vst [vmem:[#allocation123_spill] sm:$0xff] %v8634_v29 }
 0x54e   :  { %v1432_v58 = vadd.f32 %v6543_v35, %v8582_v54  ;;  %v1372_v60 = vpop.f32.mrb[37].mxu0  ;;  %v1571_v8 = vadd.f32 %v8617_v22, %v1548_v24  ;;  %v1586_v37 = vmax.f32 %v1570_v7, 0.0 }
 0x54f   :  { %v1430_v50 = vadd.f32 %v8582_v54, %v1372_v60  ;;  %v6544_v55 = vpop.f32.mrb[38].mxu0  ;;  %v1569_v63 = vadd.f32 %v8617_v22, %v1546_v30  ;;  %v1584_v36 = vmax.f32 %v1568_v43, 0.0 }
 0x550   :  { %v1528_v49 = vmul.f32 %v8586_v19, %v1432_v58  ;;  %v1433_v52 = vadd.f32 %v6544_v55, %v8582_v54  ;;  %v1375_v46 = vpop.f32.mrb[39].mxu0  ;;  %v1587_v1 = vmax.f32 %v1571_v8, 0.0  ;;  %v8646_v58 = vpop.permute.xlu0 %1494  ;;  %v8652_v19 = vcombine.high %v2255_v0, %v2259_v31 }
 0x551   :  { %v1526_v35 = vmul.f32 %v8568_v23, %v1430_v50  ;;  %v1431_v24 = vadd.f32 %v8582_v54, %v1375_v46  ;;  %v1585_v5 = vmax.f32 %v1569_v63, 0.0  ;;  %11373 = vst [vmem:[#allocation124_spill] sm:$0xff] %v8646_v58  ;;  %v2263_v50 = vld [vmem:[#allocation7 + $0x80] sm:$0xff] }
 0x552   :  { %v1551_v60 = vmul.f32 %v8601_v13, %v1528_v49  ;;  %v1529_v42 = vmul.f32 %v8610_v9, %v1433_v52  ;;  %v8644_v30 = vpack.c.bf16 %v1587_v1, %v1586_v37  ;;  %11374 = vst [vmem:[#allocation125_spill] sm:$0xff] %v8652_v19  ;;  %v2267_v46 = vld [vmem:[#allocation7 + $0xa0] sm:$0xff]  ;;  %6018 = vmatmul.mubr.msk.bf16.vlgmr.msra.gmra.mrb[84].mxu0 %vm11375_vm11, %v7796_v47  ;;  %v8658_v1 = vpop.permute.xlu1 %1499  ;;  %vm11404_vm11 = vmmov %vm11337_vm1 }
 0x553   :  { %v1549_v55 = vmul.f32 %v8601_v13, %v1526_v35  ;;  %v1527_v7 = vmul.f32 %v8580_v39, %v1431_v24  ;;  %v8650_v8 = vpack.c.bf16 %v1585_v5, %v1584_v36  ;;  %11376 = vst [vmem:[#allocation126_spill] sm:$0xff] %v8658_v1  ;;  %2071 = vmatprep.mubr.bf16.mxu0 %v11290_v34  ;;  %v2271_v9 = vld [vmem:[#allocation7 + $0xc0] sm:$0xff] }
 0x554   :  { %v1552_v63 = vmul.f32 %v8601_v13, %v1529_v42  ;;  %v1574_v49 = vadd.f32 %v8617_v22, %v1551_v60  ;;  %v8664_v36 = vcombine.low %v2255_v0, %v2259_v31  ;;  %2640 = vmatpush1.bf16.msra.mxu0 %v8441_v28  ;;  %v8670_v24 = vcombine.low %v2263_v50, %v2267_v46  ;;  %v2275_v23 = vld [vmem:[#allocation7 + $0xe0] sm:$0xff]  ;;  %v8680_v21 = vpop.permute.xlu0 %1504 }
 0x555   :  { %v1550_v43 = vmul.f32 %v8601_v13, %v1527_v7  ;;  %v6547_v52 = vpop.f32.mrb[40].mxu0  ;;  %6553 = vmatprep.subr.bf16.mxu1 %v8650_v8  ;;  %v1572_v5 = vadd.f32 %v8617_v22, %v1549_v55  ;;  %2641 = vmatprep.subr.bf16.mxu0 %v8652_v19  ;;  %v8676_v31 = vcombine.high %v2263_v50, %v2267_v46 }
 0x556   :  { %11377 = vst [vmem:[#allocation127_spill] sm:$0xff] %v8664_v36  ;;  %v1436_v42 = vadd.f32 %v6547_v52, %v8582_v54  ;;  %v1388_v37 = vpop.f32.mrb[41].mxu0  ;;  %6554 = vmatpush3.bf16.msra.mxu1 %v8650_v8  ;;  %v1575_v35 = vadd.f32 %v8617_v22, %v1552_v63  ;;  %11378 = vst [vmem:[#allocation128_spill] sm:$0xff] %v8670_v24  ;;  %v1590_v39 = vmax.f32 %v1574_v49, 0.0  ;;  %v8690_v49 = vpop.permute.xlu1 %1509 }
 0x557   :  { %v1434_v60 = vadd.f32 %v8582_v54, %v1388_v37  ;;  %v6548_v7 = vpop.f32.mrb[42].mxu0  ;;  %6555 = vmatprep.subr.bf16.mxu1 %v8644_v30  ;;  %v1573_v55 = vadd.f32 %v8617_v22, %v1550_v43  ;;  %11379 = vst [vmem:[#allocation129_spill] sm:$0xff] %v8676_v31  ;;  %11380 = vst [vmem:[#allocation130_spill] sm:$0xff] %v8680_v21  ;;  %v1588_v43 = vmax.f32 %v1572_v5, 0.0 }
 0x558   :  { %v1532_v0 = vmul.f32 %v8646_v58, %v1436_v42  ;;  %v1437_v52 = vadd.f32 %v6548_v7, %v8582_v54  ;;  %v1391_v63 = vpop.f32.mrb[43].mxu0  ;;  %v1591_v28 = vmax.f32 %v1575_v35, 0.0  ;;  %2642 = vmatpush1.bf16.msra.mxu0 %v8664_v36  ;;  %11381 = vst [vmem:[#allocation131_spill] sm:$0xff] %v8690_v49  ;;  %v8697_v5 = vcombine.high %v2271_v9, %v2275_v23 }
 0x559   :  { %v1530_v37 = vmul.f32 %v8627_v33, %v1434_v60  ;;  %v1435_v15 = vadd.f32 %v8582_v54, %v1391_v63  ;;  %v1589_v45 = vmax.f32 %v1573_v55, 0.0  ;;  %2643 = vmatprep.subr.bf16.mxu0 %v8676_v31  ;;  %v2279_v55 = vld [vmem:[#allocation7 + $0x100] sm:$0xff] }
 0x55a   :  { %v1555_v50 = vmul.f32 %v8601_v13, %v1532_v0  ;;  %v1533_v46 = vmul.f32 %v8658_v1, %v1437_v52  ;;  %6556 = vmatpush3.bf16.msra.mxu1 %v8644_v30  ;;  %v8687_v42 = vpack.c.bf16 %v1591_v28, %v1590_v39  ;;  %11382 = vst [vmem:[#allocation132_spill] sm:$0xff] %v8697_v5  ;;  %v2283_v0 = vld [vmem:[#allocation7 + $0x120] sm:$0xff]  ;;  %v8725_v33 = vpop.permute.xlu1 %1519 }
 0x55b   :  { %v1553_v35 = vmul.f32 %v8601_v13, %v1530_v37  ;;  %v1531_v60 = vmul.f32 %v8634_v29, %v1435_v15  ;;  %v8694_v7 = vpack.c.bf16 %v1589_v45, %v1588_v43  ;;  %6019 = vmatmul.mubr.msk.bf16.gmra.mrb[88].mxu0 %vm11337_vm1, %v7807_v56  ;;  %v8707_v15 = vcombine.low %v2271_v9, %v2275_v23  ;;  %v2287_v29 = vld [vmem:[#allocation7 + $0x140] sm:$0xff] }
 0x55c   :  { %v1556_v52 = vmul.f32 %v8601_v13, %v1533_v46  ;;  %v1578_v28 = vadd.f32 %v8617_v22, %v1555_v50  ;;  %2081 = vmatprep.mubr.bf16.mxu0 %v11290_v34  ;;  %2644 = vmatpush1.bf16.msra.mxu0 %v8670_v24  ;;  %v8713_v46 = vcombine.low %v2279_v55, %v2283_v0  ;;  %v2291_v1 = vld [vmem:[#allocation7 + $0x160] sm:$0xff] }
 0x55d   :  { %v1554_v39 = vmul.f32 %v8601_v13, %v1531_v60  ;;  %v6551_v63 = vpop.f32.mrb[44].mxu0  ;;  %6557 = vmatprep.subr.bf16.mxu1 %v8694_v7  ;;  %v1576_v45 = vadd.f32 %v8617_v22, %v1553_v35  ;;  %11383 = vst [vmem:[#allocation133_spill] sm:$0xff] %v8707_v15  ;;  %v8715_v60 = vpop.permute.xlu0 %1514  ;;  %2645 = vmatprep.subr.bf16.mxu0 %v8697_v5  ;;  %11387 = vst [vmem:[#allocation137_spill] sm:$0xff] %v8725_v33  ;;  %v2249_v5 = vld [vmem:[#allocation7 + $0x10] sm:$0xff] }
 0x55e   :  { %v1440_v37 = vadd.f32 %v6551_v63, %v8582_v54  ;;  %v1404_v43 = vpop.f32.mrb[45].mxu0  ;;  %6558 = vmatpush3.bf16.msra.mxu1 %v8694_v7  ;;  %v1579_v50 = vadd.f32 %v8617_v22, %v1556_v52  ;;  %11384 = vst [vmem:[#allocation134_spill] sm:$0xff] %v8713_v46  ;;  %11385 = vst [vmem:[#allocation135_spill] sm:$0xff] %v8715_v60  ;;  %v8721_v9 = vcombine.high %v2279_v55, %v2283_v0 }
 0x55f   :  { %v1438_v31 = vadd.f32 %v8582_v54, %v1404_v43  ;;  %v6552_v35 = vpop.f32.mrb[46].mxu0  ;;  %6559 = vmatprep.subr.bf16.mxu1 %v8687_v42  ;;  %v1577_v23 = vadd.f32 %v8617_v22, %v1554_v39  ;;  %v1594_v36 = vmax.f32 %v1578_v28, 0.0  ;;  %v1592_v39 = vmax.f32 %v1576_v45, 0.0 }
 0x560   :  { %11386 = vst [vmem:[#allocation136_spill] sm:$0xff] %v8721_v9  ;;  %v1536_v63 = vmul.f32 %v8715_v60, %v1440_v37  ;;  %v1441_v52 = vadd.f32 %v6552_v35, %v8582_v54  ;;  %v1407_v24 = vpop.f32.mrb[47].mxu0  ;;  %v1595_v19 = vmax.f32 %v1579_v50, 0.0  ;;  %2646 = vmatpush1.bf16.msra.mxu0 %v8707_v15  ;;  %v2296_v15 = vld [vmem:[#allocation7 + $0x188] sm:$0xff] }
 0x561   :  { %v1534_v43 = vmul.f32 %v8680_v21, %v1438_v31  ;;  %v1439_v58 = vadd.f32 %v8582_v54, %v1407_v24  ;;  %v1593_v32 = vmax.f32 %v1577_v23, 0.0  ;;  %2647 = vmatprep.subr.bf16.mxu0 %v8721_v9  ;;  %v8740_v54 = vcombine.high %v2287_v29, %v2291_v1 }
 0x562   :  { %v1559_v55 = vmul.f32 %v8601_v13, %v1536_v63  ;;  %v1537_v0 = vmul.f32 %v8725_v33, %v1441_v52  ;;  %6560 = vmatpush3.bf16.msra.mxu1 %v8687_v42  ;;  %v8732_v37 = vpack.c.bf16 %v1595_v19, %v1594_v36  ;;  %v2295_v19 = vld [vmem:[#allocation7 + $0x180] sm:$0xff]  ;;  %v8753_v23 = vcombine.low %v2287_v29, %v2291_v1 }
 0x563   :  { %v1557_v28 = vmul.f32 %v8601_v13, %v1534_v43  ;;  %v1535_v50 = vmul.f32 %v8690_v49, %v1439_v58  ;;  %v8737_v35 = vpack.c.bf16 %v1593_v32, %v1592_v39  ;;  %11388 = vst [vmem:[#allocation138_spill] sm:$0xff] %v8740_v54  ;;  %6020 = vmatmul.mubr.msk.bf16.gmra.mrb[92].mxu0 %vm11389_vm2, %v7818_v62  ;;  %v2299_v36 = vld [vmem:[#allocation7 + $0x1a0] sm:$0xff]  ;;  %vm11416_vm2 = vmmov %vm11337_vm1 }
 0x564   :  { %v1560_v24 = vmul.f32 %v8601_v13, %v1537_v0  ;;  %v1582_v31 = vadd.f32 %v8617_v22, %v1559_v55  ;;  %2091 = vmatprep.mubr.bf16.mxu0 %v11290_v34  ;;  %2648 = vmatpush1.bf16.msra.mxu0 %v8713_v46  ;;  %11390 = vst [vmem:[#allocation139_spill] sm:$0xff] %v8753_v23 }
 0x565   :  { %v1558_v45 = vmul.f32 %v8601_v13, %v1535_v50  ;;  %6561 = vmatprep.subr.bf16.mxu1 %v8737_v35  ;;  %v1580_v32 = vadd.f32 %v8617_v22, %v1557_v28  ;;  %2649 = vmatprep.subr.bf16.mxu0 %v8740_v54  ;;  %v8758_v13 = vcombine.high %v2295_v19, %v2299_v36  ;;  %v2252_v28 = vld [vmem:[#allocation7 + $0x28] sm:$0xff] }
 0x566   :  { %6562 = vmatpush3.bf16.msra.mxu1 %v8737_v35  ;;  %v1583_v58 = vadd.f32 %v8617_v22, %v1560_v24  ;;  %v1598_v52 = vmax.f32 %v1582_v31, 0.0  ;;  %v8764_v29 = vcombine.low %v2295_v19, %v2299_v36  ;;  %v2256_v24 = vld [vmem:[#allocation7 + $0x48] sm:$0xff] }
 0x567   :  { %6563 = vmatprep.subr.bf16.mxu1 %v8732_v37  ;;  %v1581_v63 = vadd.f32 %v8617_v22, %v1558_v45  ;;  %11391 = vst [vmem:[#allocation140_spill] sm:$0xff] %v8758_v13  ;;  %v1596_v39 = vmax.f32 %v1580_v32, 0.0  ;;  %v2248_v22 = vld [vmem:[#allocation7 + $0x8] sm:$0xff] }
 0x568   :  { %v1599_v43 = vmax.f32 %v1583_v58, 0.0  ;;  %2650 = vmatpush1.bf16.msra.mxu0 %v8753_v23  ;;  %11392 = vst [vmem:[#allocation141_spill] sm:$0xff] %v8764_v29  ;;  %v8776_v50 = vcombine.high %v2248_v22, %v2252_v28  ;;  %v2260_v31 = vld [vmem:[#allocation7 + $0x68] sm:$0xff]  ;;  %v8779_v19 = vcombine.low %v2248_v22, %v2252_v28 }
 0x569   :  { %v1597_v55 = vmax.f32 %v1581_v63, 0.0  ;;  %2651 = vmatprep.subr.bf16.mxu0 %v8758_v13  ;;  %v8782_v36 = vcombine.high %v2256_v24, %v2260_v31  ;;  %v2264_v45 = vld [vmem:[#allocation7 + $0x88] sm:$0xff] }
 0x56a   :  { %6564 = vmatpush3.bf16.msra.mxu1 %v8732_v37  ;;  %v8761_v0 = vpack.c.bf16 %v1599_v43, %v1598_v52  ;;  %11394 = vst [vmem:[#allocation142_spill] sm:$0xff] %v8776_v50  ;;  %11395 = vst [vmem:[#allocation143_spill] sm:$0xff] %v8779_v19  ;;  %v2268_v32 = vld [vmem:[#allocation7 + $0xa8] sm:$0xff]  ;;  %v8794_v52 = vcombine.low %v2256_v24, %v2260_v31 }
 0x56b   :  { %v8766_v1 = vpack.c.bf16 %v1597_v55, %v1596_v39  ;;  %6021 = vmatmul.mubr.msk.bf16.gmra.mrb[96].mxu0 %vm11393_vm14, %v7829_v3  ;;  %11396 = vst [vmem:[#allocation144_spill] sm:$0xff] %v8782_v36  ;;  %v8797_v43 = vcombine.high %v2264_v45, %v2268_v32  ;;  %v2272_v39 = vld [vmem:[#allocation7 + $0xc8] sm:$0xff]  ;;  %v8800_v22 = vcombine.low %v2264_v45, %v2268_v32  ;;  %vm11483_vm14 = vcmask 1043456  }
 0x56c   :  { %2101 = vmatprep.mubr.bf16.mxu0 %v11290_v34  ;;  %2652 = vmatpush1.bf16.msra.mxu0 %v8764_v29  ;;  %11400 = vst [vmem:[#allocation145_spill] sm:$0xff] %v8794_v52  ;;  %v2276_v55 = vld [vmem:[#allocation7 + $0xe8] sm:$0xff] }
 0x56d   :  { %6565 = vmatprep.subr.bf16.mxu1 %v8766_v1  ;;  %11401 = vst [vmem:[#allocation146_spill] sm:$0xff] %v8797_v43  ;;  %11402 = vst [vmem:[#allocation147_spill] sm:$0xff] %v8800_v22  ;;  %v8803_v28 = vcombine.high %v2272_v39, %v2276_v55  ;;  %v2280_v29 = vld [vmem:[#allocation7 + $0x108] sm:$0xff]  ;;  %v8815_v45 = vcombine.low %v2272_v39, %v2276_v55 }
 0x56e   :  { %6566 = vmatpush3.bf16.msra.mxu1 %v8766_v1  ;;  %v2284_v24 = vld [vmem:[#allocation7 + $0x128] sm:$0xff] }
 0x56f   :  { %6567 = vmatprep.subr.bf16.mxu1 %v8761_v0  ;;  %11403 = vst [vmem:[#allocation148_spill] sm:$0xff] %v8803_v28  ;;  %11407 = vst [vmem:[#allocation149_spill] sm:$0xff] %v8815_v45  ;;  %v8818_v32 = vcombine.high %v2280_v29, %v2284_v24  ;;  %v2288_v23 = vld [vmem:[#allocation7 + $0x148] sm:$0xff]  ;;  %v8821_v46 = vcombine.low %v2280_v29, %v2284_v24 }
 0x570   :  { %v2292_v54 = vld [vmem:[#allocation7 + $0x168] sm:$0xff] }
 0x571   :  { %11408 = vst [vmem:[#allocation150_spill] sm:$0xff] %v8818_v32  ;;  %11409 = vst [vmem:[#allocation151_spill] sm:$0xff] %v8821_v46  ;;  %v8824_v9 = vcombine.high %v2288_v23, %v2292_v54  ;;  %v2300_v39 = vld [vmem:[#allocation7 + $0x1a8] sm:$0xff]  ;;  %v8836_v29 = vcombine.low %v2288_v23, %v2292_v54  ;;  %v2303_v54 = vld [vmem:[#allocation7 + $0x1c0] sm:$0xff] }
 0x572   :  { %6568 = vmatpush3.bf16.msra.mxu1 %v8761_v0  ;;  %v8839_v24 = vcombine.high %v2296_v15, %v2300_v39  ;;  %v8842_v13 = vcombine.low %v2296_v15, %v2300_v39  ;;  %v2307_v23 = vld [vmem:[#allocation7 + $0x1e0] sm:$0xff]  ;;  %v2304_v55 = vld [vmem:[#allocation7 + $0x1c8] sm:$0xff] }
 0x573   :  { %2752 = vmatprep.subr.bf16.mxu1 %v8776_v50  ;;  %6022 = vmatmul.mubr.msk.bf16.gmra.mrb[100].mxu0 %vm11397_vm6, %v7840_v6  ;;  %11410 = vst [vmem:[#allocation152_spill] sm:$0xff] %v8824_v9  ;;  %11413 = vst [vmem:[#allocation153_spill] sm:$0xff] %v8836_v29  ;;  %v8853_v15 = vcombine.high %v2303_v54, %v2307_v23  ;;  %v2308_v39 = vld [vmem:[#allocation7 + $0x1e8] sm:$0xff]  ;;  %v8855_v31 = vcombine.low %v2303_v54, %v2307_v23 }
 0x574   :  { %2111 = vmatprep.mubr.bf16.mxu0 %v11290_v34  ;;  %11414 = vst [vmem:[#allocation154_spill] sm:$0xff] %v8839_v24  ;;  %11415 = vst [vmem:[#allocation155_spill] sm:$0xff] %v8842_v13  ;;  %v8857_v63 = vcombine.low %v2304_v55, %v2308_v39  ;;  %v8859_v58 = vcombine.high %v2304_v55, %v2308_v39  ;;  %v8875_v39 = vpop.f32.mrb[48].mxu0 }
 0x575   :  { %6570 = vmatmul.mubr.msk.bf16.vlgmr.msra.gmra.mrb[108].mxu1 %vm7721_vm5, %v11263_v57  ;;  %11418 = vst [vmem:[#allocation156_spill] sm:$0xff] %v8853_v15  ;;  %11419 = vst [vmem:[#allocation157_spill] sm:$0xff] %v8855_v31  ;;  %2653 = vmatprep.subr.bf16.mxu0 %v8853_v15 }
 0x576   :  { %6573 = vmatprep.mubr.msk.bf16.mxu1 %vm7737_vm9, %v11263_v57  ;;  %2753 = vmatpush1.bf16.msra.mxu1 %v8779_v19  ;;  %11420 = vst [vmem:[#allocation158_spill] sm:$0xff] %v8857_v63  ;;  %11421 = vst [vmem:[#allocation159_spill] sm:$0xff] %v8859_v58 }
 0x577   :  { %2754 = vmatprep.subr.bf16.mxu1 %v8782_v36  ;;  %2654 = vmatpush1.bf16.msra.mxu0 %v8855_v31  ;;  %v8877_v31 = vpop.f32.mrb[49].mxu0  ;;  %vm11493_vm6 = vmmov %vm11483_vm14 }
 0x578   :  { %v8879_v15 = vpop.f32.mrb[50].mxu0 }
 0x57a   :  { %2755 = vmatpush1.bf16.msra.mxu1 %v8794_v52 }
 0x57b   :  { %2756 = vmatprep.subr.bf16.mxu1 %v8797_v43  ;;  %6023 = vmatmul.mubr.msk.bf16.gmra.mrb[104].mxu0 %vm11404_vm11, %v7851_v11  ;;  %vm11495_vm11 = vmmov %vm11493_vm6 }
 0x57c   :  { %2121 = vmatprep.mubr.bf16.mxu0 %v11290_v34 }
 0x57d   :  { %6574 = vmatmul.mubr.msk.bf16.gmra.mrb[112].mxu1 %vm7746_vm12, %v11263_v57 }
 0x57e   :  { %6577 = vmatprep.mubr.msk.bf16.mxu1 %vm7755_vm15, %v11263_v57  ;;  %2757 = vmatpush1.bf16.msra.mxu1 %v8800_v22 }
 0x57f   :  { %2758 = vmatprep.subr.bf16.mxu1 %v8803_v28 }
 0x582   :  { %2759 = vmatpush1.bf16.msra.mxu1 %v8815_v45 }
 0x583   :  { %2760 = vmatprep.subr.bf16.mxu1 %v8818_v32  ;;  %6024 = vmatmul.mubr.msk.bf16.gmra.mrb[108].mxu0 %vm11337_vm1, %v11361_v12  ;;  %vm11496_vm1 = vmmov %vm11493_vm6 }
 0x584   :  { %2131 = vmatprep.mubr.bf16.mxu0 %v11290_v34 }
 0x585   :  { %6578 = vmatmul.mubr.msk.bf16.gmra.mrb[116].mxu1 %vm7764_vm3, %v11263_v57 }
 0x586   :  { %6581 = vmatprep.mubr.msk.bf16.mxu1 %vm7773_vm8, %v11263_v57  ;;  %2761 = vmatpush1.bf16.msra.mxu1 %v8821_v46 }
 0x587   :  { %2762 = vmatprep.subr.bf16.mxu1 %v8824_v9  ;;  %v2254_v9 = vld [vmem:[#allocation7 + $0x38] sm:$0xff] }
 0x58a   :  { %2763 = vmatpush1.bf16.msra.mxu1 %v8836_v29 }
 0x58b   :  { %2764 = vmatprep.subr.bf16.mxu1 %v8839_v24  ;;  %6025 = vmatmul.mubr.msk.bf16.gmra.mrb[112].mxu0 %vm11416_vm2, %v11369_v2  ;;  %v2250_v24 = vld [vmem:[#allocation7 + $0x18] sm:$0xff] }
 0x58c   :  { %2671 = vmatprep.mubr.bf16.mxu0 %v11290_v34  ;;  %v8869_v23 = vcombine.low %v2250_v24, %v2254_v9  ;;  %v8871_v55 = vcombine.high %v2250_v24, %v2254_v9 }
 0x58d   :  { %6582 = vmatmul.mubr.msk.bf16.gmra.mrb[120].mxu1 %vm7782_vm13, %v11263_v57 }
 0x58e   :  { %2765 = vmatpush1.bf16.msra.mxu1 %v8842_v13  ;;  %2784 = vmatprep.mubr.bf16.mxu1 %v11290_v34  ;;  %v2253_v13 = vld [vmem:[#allocation7 + $0x30] sm:$0xff]  ;;  %11424 = vst [vmem:[#allocation162_spill] sm:$0xff] %v8869_v23  ;;  %11425 = vst [vmem:[#allocation163_spill] sm:$0xff] %v8871_v55 }
 0x58f   :  { %2766 = vmatprep.subr.bf16.mxu1 %v8859_v58  ;;  %v8865_v29 = vcombine.high %v2249_v5, %v2253_v13  ;;  %v8867_v54 = vcombine.low %v2249_v5, %v2253_v13 }
 0x591   :  { %11422 = vst [vmem:[#allocation160_spill] sm:$0xff] %v8865_v29  ;;  %11423 = vst [vmem:[#allocation161_spill] sm:$0xff] %v8867_v54  ;;  %2865 = vmatprep.subr.bf16.mxu0 %v8865_v29 }
 0x592   :  { %2767 = vmatpush1.bf16.msra.mxu1 %v8857_v63  ;;  %v8881_v63 = vpop.f32.mrb[51].mxu0 }
 0x593   :  { %2978 = vmatprep.subr.bf16.mxu1 %v8871_v55  ;;  %v8883_v58 = vpop.f32.mrb[52].mxu0 }
 0x594   :  { %v8885_v5 = vpop.f32.mrb[53].mxu0 }
 0x595   :  { %v8887_v13 = vpop.f32.mrb[54].mxu0 }
 0x596   :  { %v8889_v9 = vpop.f32.mrb[55].mxu0 }
 0x597   :  { %v8891_v24 = vpop.f32.mrb[56].mxu0 }
 0x598   :  { %v8893_v29 = vpop.f32.mrb[57].mxu0 }
 0x599   :  { %v8895_v55 = vpop.f32.mrb[58].mxu0 }
 0x59a   :  { %v8897_v46 = vpop.f32.mrb[59].mxu0 }
 0x59b   :  { %v8899_v32 = vpop.f32.mrb[60].mxu0 }
 0x59c   :  { %11426 = vst [vmem:[#allocation164_spill] sm:$0xff] %v8899_v32  ;;  %v8901_v49 = vpop.f32.mrb[61].mxu0 }
 0x59d   :  { %11427 = vst [vmem:[#allocation165_spill] sm:$0xff] %v8901_v49  ;;  %v8903_v45 = vpop.f32.mrb[62].mxu0 }
 0x59e   :  { %11428 = vst [vmem:[#allocation166_spill] sm:$0xff] %v8903_v45  ;;  %v8905_v33 = vpop.f32.mrb[63].mxu0 }
 0x59f   :  { %11429 = vst [vmem:[#allocation167_spill] sm:$0xff] %v8905_v33  ;;  %v8907_v21 = vpop.f32.mrb[64].mxu0 }
 0x5a0   :  { %11430 = vst [vmem:[#allocation168_spill] sm:$0xff] %v8907_v21  ;;  %v8909_v60 = vpop.f32.mrb[65].mxu0 }
 0x5a1   :  { %11431 = vst [vmem:[#allocation169_spill] sm:$0xff] %v8909_v60  ;;  %v8911_v28 = vpop.f32.mrb[66].mxu0 }
 0x5a2   :  { %11432 = vst [vmem:[#allocation170_spill] sm:$0xff] %v8911_v28  ;;  %v8913_v22 = vpop.f32.mrb[67].mxu0  ;;  %v2261_v28 = vld [vmem:[#allocation7 + $0x70] sm:$0xff] }
 0x5a3   :  { %11433 = vst [vmem:[#allocation171_spill] sm:$0xff] %v8913_v22  ;;  %v8915_v43 = vpop.f32.mrb[68].mxu0 }
 0x5a4   :  { %11434 = vst [vmem:[#allocation172_spill] sm:$0xff] %v8915_v43  ;;  %v8917_v52 = vpop.f32.mrb[69].mxu0 }
 0x5a5   :  { %11435 = vst [vmem:[#allocation173_spill] sm:$0xff] %v8917_v52  ;;  %v8919_v36 = vpop.f32.mrb[70].mxu0  ;;  %v2258_v52 = vld [vmem:[#allocation7 + $0x58] sm:$0xff] }
 0x5a6   :  { %11436 = vst [vmem:[#allocation174_spill] sm:$0xff] %v8919_v36  ;;  %v8921_v19 = vpop.f32.mrb[71].mxu0 }
 0x5a7   :  { %11437 = vst [vmem:[#allocation175_spill] sm:$0xff] %v8921_v19  ;;  %v8923_v50 = vpop.f32.mrb[72].mxu0 }
 0x5a8   :  { %11438 = vst [vmem:[#allocation176_spill] sm:$0xff] %v8923_v50  ;;  %v8925_v18 = vpop.f32.mrb[73].mxu0  ;;  %v8937_v50 = vcombine.high %v2257_v25, %v2261_v28 }
 0x5a9   :  { %11439 = vst [vmem:[#allocation177_spill] sm:$0xff] %v8925_v18  ;;  %v8927_v38 = vpop.f32.mrb[74].mxu0  ;;  %v8939_v18 = vcombine.high %v2258_v52, %v2262_v40 }
 0x5aa   :  { %11440 = vst [vmem:[#allocation178_spill] sm:$0xff] %v8927_v38  ;;  %v8929_v16 = vpop.f32.mrb[75].mxu0  ;;  %11443 = vst [vmem:[#allocation181_spill] sm:$0xff] %v8937_v50  ;;  %v2265_v38 = vld [vmem:[#allocation7 + $0x90] sm:$0xff] }
 0x5ab   :  { %11441 = vst [vmem:[#allocation179_spill] sm:$0xff] %v8929_v16  ;;  %v8931_v22 = vpop.f32.mrb[76].mxu0  ;;  %11444 = vst [vmem:[#allocation182_spill] sm:$0xff] %v8939_v18  ;;  %v2269_v16 = vld [vmem:[#allocation7 + $0xb0] sm:$0xff] }
 0x5ac   :  { %11442 = vst [vmem:[#allocation180_spill] sm:$0xff] %v8931_v22  ;;  %v2266_v22 = vld [vmem:[#allocation7 + $0x98] sm:$0xff]  ;;  %v8943_v21 = vpop.f32.mrb[77].mxu0 }
 0x5ad   :  { %11445 = vst [vmem:[#allocation183_spill] sm:$0xff] %v8943_v21  ;;  %v8959_v21 = vcombine.high %v2265_v38, %v2269_v16  ;;  %v8961_v20 = vcombine.high %v2266_v22, %v2270_v59 }
 0x5af   :  { %11450 = vst [vmem:[#allocation188_spill] sm:$0xff] %v8959_v21  ;;  %11451 = vst [vmem:[#allocation189_spill] sm:$0xff] %v8961_v20 }
 0x648   :  { %v6571_v61 = vpop.f32.mrb[108].mxu1 }
 0x649   :  { %v2184_v14 = vpop.f32.mrb[109].mxu1 }
 0x64a   :  { %v6572_v43 = vpop.f32.mrb[110].mxu1 }
 0x64b   :  { %v8933_v36 = vpack.c.bf16 %v6572_v43, %v6571_v61  ;;  %v2187_v19 = vpop.f32.mrb[111].mxu1  ;;  %v8953_v43 = vcombine.low %v2258_v52, %v2262_v40 }
 0x64c   :  { %v8935_v60 = vpack.c.bf16 %v2187_v19, %v2184_v14  ;;  %v8947_v14 = vpop.f32.mrb[78].mxu0  ;;  %v8951_v19 = vcombine.low %v2257_v25, %v2261_v28  ;;  %v2274_v25 = vld [vmem:[#allocation7 + $0xd8] sm:$0xff] }
 0x64d   :  { %11446 = vst [vmem:[#allocation184_spill] sm:$0xff] %v8947_v14  ;;  %11448 = vst [vmem:[#allocation186_spill] sm:$0xff] %v8953_v43  ;;  %v8955_v44 = vpop.f32.mrb[79].mxu0  ;;  %v2273_v14 = vld [vmem:[#allocation7 + $0xd0] sm:$0xff]  ;;  %v2278_v28 = vld [vmem:[#allocation7 + $0xf8] sm:$0xff] }
 0x64e   :  { %2672 = vmatmul.mubr.bf16.vlgmr.msra.gmra.mrb[116].mxu0 %v8935_v60  ;;  %2785 = vmatmul.mubr.bf16.vlgmr.msra.gmra.mrb[124].mxu1 %v8935_v60  ;;  %11447 = vst [vmem:[#allocation185_spill] sm:$0xff] %v8951_v19  ;;  %11449 = vst [vmem:[#allocation187_spill] sm:$0xff] %v8955_v44  ;;  %v8963_v45 = vpop.f32.mrb[80].mxu0  ;;  %v8979_v10 = vcombine.high %v2274_v25, %v2278_v28 }
 0x64f   :  { %2681 = vmatprep.mubr.bf16.mxu0 %v11290_v34  ;;  %2794 = vmatprep.mubr.bf16.mxu1 %v11290_v34  ;;  %11452 = vst [vmem:[#allocation190_spill] sm:$0xff] %v8963_v45 }
 0x650   :  { %v6575_v61 = vpop.f32.mrb[112].mxu1  ;;  %2866 = vmatpush1.bf16.msra.mxu0 %v8867_v54  ;;  %2979 = vmatpush1.bf16.msra.mxu1 %v8869_v23  ;;  %v2277_v23 = vld [vmem:[#allocation7 + $0xf0] sm:$0xff]  ;;  %11456 = vst [vmem:[#allocation194_spill] sm:$0xff] %v8979_v10 }
 0x651   :  { %v2200_v33 = vpop.f32.mrb[113].mxu1  ;;  %2867 = vmatprep.subr.bf16.mxu0 %v8937_v50  ;;  %2980 = vmatprep.subr.bf16.mxu1 %v8939_v18  ;;  %v8971_v18 = vcombine.low %v2265_v38, %v2269_v16  ;;  %v8973_v50 = vcombine.low %v2266_v22, %v2270_v59  ;;  %v8977_v45 = vcombine.high %v2273_v14, %v2277_v23  ;;  %v8983_v16 = vpop.f32.mrb[81].mxu0 }
 0x652   :  { %v6576_v54 = vpop.f32.mrb[114].mxu1  ;;  %11457 = vst [vmem:[#allocation195_spill] sm:$0xff] %v8983_v16  ;;  %v8987_v59 = vpop.f32.mrb[82].mxu0  ;;  %v8991_v22 = vcombine.low %v2273_v14, %v2277_v23  ;;  %v2290_v23 = vld [vmem:[#allocation7 + $0x158] sm:$0xff] }
 0x653   :  { %v8965_v40 = vpack.c.bf16 %v6576_v54, %v6575_v61  ;;  %v2203_v52 = vpop.f32.mrb[115].mxu1  ;;  %11453 = vst [vmem:[#allocation191_spill] sm:$0xff] %v8971_v18  ;;  %11454 = vst [vmem:[#allocation192_spill] sm:$0xff] %v8973_v50  ;;  %v2281_v54 = vld [vmem:[#allocation7 + $0x110] sm:$0xff]  ;;  %v2282_v61 = vld [vmem:[#allocation7 + $0x118] sm:$0xff] }
 0x654   :  { %v8967_v44 = vpack.c.bf16 %v2203_v52, %v2200_v33  ;;  %2868 = vmatpush1.bf16.msra.mxu0 %v8951_v19  ;;  %2981 = vmatpush1.bf16.msra.mxu1 %v8953_v43  ;;  %11455 = vst [vmem:[#allocation193_spill] sm:$0xff] %v8977_v45  ;;  %v2285_v33 = vld [vmem:[#allocation7 + $0x130] sm:$0xff]  ;;  %v2286_v52 = vld [vmem:[#allocation7 + $0x138] sm:$0xff]  ;;  %11458 = vst [vmem:[#allocation196_spill] sm:$0xff] %v8987_v59 }
 0x655   :  { %2869 = vmatprep.subr.bf16.mxu0 %v8959_v21  ;;  %2982 = vmatprep.subr.bf16.mxu1 %v8961_v20  ;;  %11459 = vst [vmem:[#allocation197_spill] sm:$0xff] %v8991_v22  ;;  %v8993_v20 = vcombine.low %v2274_v25, %v2278_v28  ;;  %v8995_v21 = vpop.f32.mrb[83].mxu0  ;;  %v8999_v19 = vcombine.high %v2281_v54, %v2285_v33  ;;  %v2289_v59 = vld [vmem:[#allocation7 + $0x150] sm:$0xff]  ;;  %v2294_v14 = vld [vmem:[#allocation7 + $0x178] sm:$0xff] }
 0x656   :  { %2682 = vmatmul.mubr.bf16.gmra.mrb[120].mxu0 %v8933_v36  ;;  %2795 = vmatmul.mubr.bf16.gmra.mrb[128].mxu1 %v8933_v36  ;;  %11461 = vst [vmem:[#allocation199_spill] sm:$0xff] %v8995_v21  ;;  %v9001_v16 = vcombine.high %v2282_v61, %v2286_v52  ;;  %v9003_v49 = vpop.f32.mrb[84].mxu0  ;;  %v9019_v27 = vcombine.high %v2290_v23, %v2294_v14 }
 0x657   :  { %2691 = vmatprep.mubr.bf16.mxu0 %v11290_v34  ;;  %2804 = vmatprep.mubr.bf16.mxu1 %v11290_v34  ;;  %11460 = vst [vmem:[#allocation198_spill] sm:$0xff] %v8993_v20  ;;  %11462 = vst [vmem:[#allocation200_spill] sm:$0xff] %v8999_v19 }
 0x658   :  { %v6579_v38 = vpop.f32.mrb[116].mxu1  ;;  %2870 = vmatpush1.bf16.msra.mxu0 %v8971_v18  ;;  %2983 = vmatpush1.bf16.msra.mxu1 %v8973_v50  ;;  %11463 = vst [vmem:[#allocation201_spill] sm:$0xff] %v9001_v16  ;;  %11464 = vst [vmem:[#allocation202_spill] sm:$0xff] %v9003_v49  ;;  %v2293_v50 = vld [vmem:[#allocation7 + $0x170] sm:$0xff] }
 0x659   :  { %v2216_v43 = vpop.f32.mrb[117].mxu1  ;;  %2871 = vmatprep.subr.bf16.mxu0 %v8977_v45  ;;  %2984 = vmatprep.subr.bf16.mxu1 %v8979_v10  ;;  %v9011_v10 = vcombine.low %v2281_v54, %v2285_v33  ;;  %v9013_v45 = vcombine.low %v2282_v61, %v2286_v52  ;;  %v9017_v49 = vcombine.high %v2289_v59, %v2293_v50  ;;  %v9023_v54 = vpop.f32.mrb[85].mxu0 }
 0x65a   :  { %v6580_v18 = vpop.f32.mrb[118].mxu1  ;;  %11468 = vst [vmem:[#allocation206_spill] sm:$0xff] %v9019_v27  ;;  %11469 = vst [vmem:[#allocation207_spill] sm:$0xff] %v9023_v54  ;;  %v9027_v33 = vpop.f32.mrb[86].mxu0  ;;  %v9031_v52 = vcombine.low %v2289_v59, %v2293_v50  ;;  %v2306_v50 = vld [vmem:[#allocation7 + $0x1d8] sm:$0xff] }
 0x65b   :  { %v9005_v25 = vpack.c.bf16 %v6580_v18, %v6579_v38  ;;  %v2219_v28 = vpop.f32.mrb[119].mxu1  ;;  %11465 = vst [vmem:[#allocation203_spill] sm:$0xff] %v9011_v10  ;;  %11466 = vst [vmem:[#allocation204_spill] sm:$0xff] %v9013_v45  ;;  %v2297_v18 = vld [vmem:[#allocation7 + $0x190] sm:$0xff]  ;;  %v2298_v38 = vld [vmem:[#allocation7 + $0x198] sm:$0xff] }
 0x65c   :  { %v9007_v21 = vpack.c.bf16 %v2219_v28, %v2216_v43  ;;  %2872 = vmatpush1.bf16.msra.mxu0 %v8991_v22  ;;  %2985 = vmatpush1.bf16.msra.mxu1 %v8993_v20  ;;  %11467 = vst [vmem:[#allocation205_spill] sm:$0xff] %v9017_v49  ;;  %v2301_v43 = vld [vmem:[#allocation7 + $0x1b0] sm:$0xff]  ;;  %v2302_v28 = vld [vmem:[#allocation7 + $0x1b8] sm:$0xff]  ;;  %11470 = vst [vmem:[#allocation208_spill] sm:$0xff] %v9027_v33 }
 0x65d   :  { %2873 = vmatprep.subr.bf16.mxu0 %v8999_v19  ;;  %2986 = vmatprep.subr.bf16.mxu1 %v9001_v16  ;;  %11471 = vst [vmem:[#allocation209_spill] sm:$0xff] %v9031_v52  ;;  %v9033_v16 = vcombine.low %v2290_v23, %v2294_v14  ;;  %v9035_v19 = vpop.f32.mrb[87].mxu0  ;;  %v9039_v22 = vcombine.high %v2297_v18, %v2301_v43  ;;  %v2305_v33 = vld [vmem:[#allocation7 + $0x1d0] sm:$0xff]  ;;  %v2310_v59 = vld [vmem:[#allocation7 + $0x1f8] sm:$0xff] }
 0x65e   :  { %2692 = vmatmul.mubr.bf16.gmra.mrb[124].mxu0 %v8967_v44  ;;  %2805 = vmatmul.mubr.bf16.gmra.mrb[132].mxu1 %v8967_v44  ;;  %11473 = vst [vmem:[#allocation211_spill] sm:$0xff] %v9035_v19  ;;  %v9041_v54 = vcombine.high %v2298_v38, %v2302_v28  ;;  %v9043_v32 = vpop.f32.mrb[88].mxu0  ;;  %v9059_v41 = vcombine.high %v2306_v50, %v2310_v59 }
 0x65f   :  { %2701 = vmatprep.mubr.bf16.mxu0 %v11290_v34  ;;  %2814 = vmatprep.mubr.bf16.mxu1 %v11290_v34  ;;  %11472 = vst [vmem:[#allocation210_spill] sm:$0xff] %v9033_v16  ;;  %11474 = vst [vmem:[#allocation212_spill] sm:$0xff] %v9039_v22 }
 0x660   :  { %v6583_v61 = vpop.f32.mrb[120].mxu1  ;;  %2874 = vmatpush1.bf16.msra.mxu0 %v9011_v10  ;;  %2987 = vmatpush1.bf16.msra.mxu1 %v9013_v45  ;;  %11475 = vst [vmem:[#allocation213_spill] sm:$0xff] %v9041_v54  ;;  %11476 = vst [vmem:[#allocation214_spill] sm:$0xff] %v9043_v32  ;;  %v2309_v45 = vld [vmem:[#allocation7 + $0x1f0] sm:$0xff] }
 0x661   :  { %v2232_v20 = vpop.f32.mrb[121].mxu1  ;;  %2875 = vmatprep.subr.bf16.mxu0 %v9017_v49  ;;  %2988 = vmatprep.subr.bf16.mxu1 %v9019_v27  ;;  %v9051_v27 = vcombine.low %v2297_v18, %v2301_v43  ;;  %v9053_v49 = vcombine.low %v2298_v38, %v2302_v28  ;;  %v9057_v32 = vcombine.high %v2305_v33, %v2309_v45 }
 0x662   :  { %v6584_v10 = vpop.f32.mrb[122].mxu1  ;;  %11480 = vst [vmem:[#allocation218_spill] sm:$0xff] %v9059_v41  ;;  %v9071_v43 = vcombine.low %v2305_v33, %v2309_v45  ;;  %v9073_v38 = vcombine.low %v2306_v50, %v2310_v59 }
 0x663   :  { %v9045_v23 = vpack.c.bf16 %v6584_v10, %v6583_v61  ;;  %v2235_v14 = vpop.f32.mrb[123].mxu1  ;;  %11477 = vst [vmem:[#allocation215_spill] sm:$0xff] %v9051_v27  ;;  %11478 = vst [vmem:[#allocation216_spill] sm:$0xff] %v9053_v49  ;;  %v3826_v10 = vld [vmem:[#allocation17] sm:$0xff]  ;;  %v6974_v61 = vld [vmem:[%s11003_s14] sm:$0xff]  }
 0x664   :  { %v9047_v19 = vpack.c.bf16 %v2235_v14, %v2232_v20  ;;  %2876 = vmatpush1.bf16.msra.mxu0 %v9031_v52  ;;  %2989 = vmatpush1.bf16.msra.mxu1 %v9033_v16  ;;  %11479 = vst [vmem:[#allocation217_spill] sm:$0xff] %v9057_v32  ;;  %v9063_v20 = vpop.f32.mrb[89].mxu0  ;;  %11481 = vst [vmem:[#allocation219_spill] sm:$0xff] %v9071_v43  ;;  %v6158_v14 = vcombine.high %v3826_v10, %v3826_v10 }
 0x665   :  { %2877 = vmatprep.subr.bf16.mxu0 %v9039_v22  ;;  %2990 = vmatprep.subr.bf16.mxu1 %v9041_v54  ;;  %v9067_v18 = vpop.f32.mrb[90].mxu0  ;;  %11482 = vst [vmem:[#allocation220_spill] sm:$0xff] %v9073_v38 }
 0x666   :  { %2702 = vmatmul.mubr.bf16.gmra.mrb[128].mxu0 %v8965_v40  ;;  %2815 = vmatmul.mubr.bf16.gmra.mrb[136].mxu1 %v8965_v40  ;;  %v9075_v28 = vpop.f32.mrb[91].mxu0 }
 0x667   :  { %2711 = vmatprep.mubr.bf16.mxu0 %v11290_v34  ;;  %2824 = vmatprep.mubr.bf16.mxu1 %v11290_v34  ;;  %v9082_v54 = vpop.f32.mrb[92].mxu0 }
 0x668   :  { %2878 = vmatpush1.bf16.msra.mxu0 %v9051_v27  ;;  %2991 = vmatpush1.bf16.msra.mxu1 %v9053_v49  ;;  %v9089_v45 = vpop.f32.mrb[93].mxu0 }
 0x669   :  { %2879 = vmatprep.subr.bf16.mxu0 %v9057_v32  ;;  %2992 = vmatprep.subr.bf16.mxu1 %v9059_v41  ;;  %v9093_v33 = vpop.f32.mrb[94].mxu0 }
 0x66a   :  { %v9095_v50 = vpop.f32.mrb[95].mxu0 }
 0x66b   :  { %v9097_v59 = vpop.f32.mrb[96].mxu0 }
 0x66c   :  { %2880 = vmatpush1.bf16.msra.mxu0 %v9071_v43  ;;  %2993 = vmatpush1.bf16.msra.mxu1 %v9073_v38 }
 0x66d   :  { %6585 = vmatprep.subr.bf16.mxu0 %v6974_v61  ;;  %6165 = vmatprep.subr.msk.bf16.mxu1 %vm11483_vm14, %v6158_v14  ;;  %v9101_v14 = vpop.f32.mrb[97].mxu0  ;;  %vm11497_vm14 = vmmov %vm11416_vm2 }
 0x66e   :  { %2712 = vmatmul.mubr.bf16.gmra.mrb[132].mxu0 %v9007_v21  ;;  %2825 = vmatmul.mubr.bf16.gmra.mrb[140].mxu1 %v9007_v21  ;;  %v9105_v38 = vpop.f32.mrb[98].mxu0 }
 0x66f   :  { %2721 = vmatprep.mubr.bf16.mxu0 %v11290_v34  ;;  %2834 = vmatprep.mubr.bf16.mxu1 %v11290_v34  ;;  %v9107_v43 = vpop.f32.mrb[99].mxu0 }
 0x670   :  { %11484 = vst [vmem:[#allocation221_spill] sm:$0xff] %v9107_v43  ;;  %v9109_v41 = vpop.f32.mrb[100].mxu0 }
 0x671   :  { %11485 = vst [vmem:[#allocation222_spill] sm:$0xff] %v9109_v41  ;;  %v9113_v32 = vpop.f32.mrb[101].mxu0  ;;  %v6157_v41 = vcombine.low %v3826_v10, %v3826_v10 }
 0x672   :  { %11486 = vst [vmem:[#allocation223_spill] sm:$0xff] %v9113_v32  ;;  %v9117_v49 = vpop.f32.mrb[102].mxu0 }
 0x673   :  { %11487 = vst [vmem:[#allocation224_spill] sm:$0xff] %v9117_v49  ;;  %v9119_v27 = vpop.f32.mrb[103].mxu0  ;;  %v3893_v43 = vsel %vm11493_vm6, %v6157_v41, 0  ;;  %v6976_v41 = vld [vmem:[%s11003_s14 + $0x10] sm:$0xff]   ;;  %vm11498_vm6 = vmmov %vm11416_vm2 }
 0x674   :  { %11488 = vst [vmem:[#allocation225_spill] sm:$0xff] %v9119_v27  ;;  %v9121_v22 = vpop.f32.mrb[104].mxu0  ;;  %v9135_v27 = vld [vmem:[#allocation17 + $0x10] sm:$0xff] }
 0x675   :  { %11489 = vst [vmem:[#allocation226_spill] sm:$0xff] %v9121_v22  ;;  %v9125_v16 = vpop.f32.mrb[105].mxu0  ;;  %v6975_v22 = vld [vmem:[%s11003_s14 + $0x8] sm:$0xff]  }
 0x676   :  { %2722 = vmatmul.mubr.bf16.gmra.mrb[136].mxu0 %v9005_v25  ;;  %2835 = vmatmul.mubr.bf16.gmra.mrb[144].mxu1 %v9005_v25  ;;  %11490 = vst [vmem:[#allocation227_spill] sm:$0xff] %v9125_v16  ;;  %v9129_v52 = vpop.f32.mrb[106].mxu0  ;;  %v6162_v16 = vcombine.high %v9135_v27, %v9135_v27 }
 0x677   :  { %2731 = vmatprep.mubr.bf16.mxu0 %v11290_v34  ;;  %2844 = vmatprep.mubr.bf16.mxu1 %v11290_v34  ;;  %11491 = vst [vmem:[#allocation228_spill] sm:$0xff] %v9129_v52  ;;  %v9131_v32 = vpop.f32.mrb[107].mxu0 }
 0x678   :  { %v9133_v49 = vpop.f32.mrb[108].mxu0 }
 0x679   :  { %11492 = vst [vmem:[#allocation229_spill] sm:$0xff] %v9133_v49  ;;  %v9145_v52 = vpop.f32.mrb[109].mxu0 }
 0x67a   :  { %11494 = vst [vmem:[#allocation230_spill] sm:$0xff] %v9145_v52  ;;  %v9149_v10 = vpop.f32.mrb[110].mxu0  ;;  %v6977_v52 = vld [vmem:[%s11003_s14 + $0x18] sm:$0xff]  }
 0x67b   :  { %v9151_v49 = vpop.f32.mrb[111].mxu0 }
 0x67e   :  { %2732 = vmatmul.mubr.bf16.gmra.mrb[140].mxu0 %v9047_v19  ;;  %2845 = vmatmul.mubr.bf16.gmra.mrb[148].mxu1 %v9047_v19 }
 0x67f   :  { %2741 = vmatprep.mubr.bf16.mxu0 %v11290_v34  ;;  %2854 = vmatprep.mubr.bf16.mxu1 %v11290_v34 }
 0x686   :  { %2742 = vmatmul.mubr.bf16.gmra.mrb[144].mxu0 %v9045_v23  ;;  %2855 = vmatmul.mubr.bf16.gmra.mrb[152].mxu1 %v9045_v23 }
 0x687   :  { %2897 = vmatprep.mubr.bf16.mxu0 %v11290_v34  ;;  %3010 = vmatprep.mubr.bf16.mxu1 %v11290_v34 }
 0x68e   :  { %2898 = vmatmul.mubr.bf16.vlgmr.msra.gmra.mrb[148].mxu0 %v8935_v60  ;;  %3011 = vmatmul.mubr.bf16.vlgmr.msra.gmra.mrb[156].mxu1 %v8935_v60  ;;  %v9157_v60 = vpop.f32.mrb[112].mxu0 }
 0x68f   :  { %2907 = vmatprep.mubr.bf16.mxu0 %v11290_v34  ;;  %3020 = vmatprep.mubr.bf16.mxu1 %v11290_v34 }
 0x690   :  { %6586 = vmatpush3.bf16.msra.mxu0 %v6974_v61  ;;  %3917 = vmatpush1.bf16.msra.mxu1 %v3893_v43  ;;  %v9164_v43 = vpop.f32.mrb[113].mxu0 }
 0x691   :  { %6587 = vmatprep.subr.bf16.mxu0 %v6975_v22  ;;  %6183 = vmatprep.subr.msk.bf16.mxu1 %vm11495_vm11, %v6162_v16  ;;  %v9168_v61 = vpop.f32.mrb[114].mxu0  ;;  %vm11499_vm11 = vmmov %vm11416_vm2 }
 0x692   :  { %v9170_v16 = vpop.f32.mrb[115].mxu0 }
 0x694   :  { %6588 = vmatpush3.bf16.msra.mxu0 %v6975_v22  ;;  %v6978_v22 = vld [vmem:[%s11003_s14 + $0x20] sm:$0xff]  }
 0x695   :  { %6589 = vmatprep.subr.bf16.mxu0 %v6976_v41 }
 0x696   :  { %2908 = vmatmul.mubr.bf16.gmra.mrb[152].mxu0 %v8933_v36  ;;  %3021 = vmatmul.mubr.bf16.gmra.mrb[160].mxu1 %v8933_v36  ;;  %v6979_v36 = vld [vmem:[%s11003_s14 + $0x28] sm:$0xff]  }
 0x697   :  { %2917 = vmatprep.mubr.bf16.mxu0 %v11290_v34  ;;  %3030 = vmatprep.mubr.bf16.mxu1 %v11290_v34 }
 0x698   :  { %6590 = vmatpush3.bf16.msra.mxu0 %v6976_v41  ;;  %v6980_v41 = vld [vmem:[%s11003_s14 + $0x30] sm:$0xff]  }
 0x699   :  { %6591 = vmatprep.subr.bf16.mxu0 %v6977_v52 }
 0x69c   :  { %6592 = vmatpush3.bf16.msra.mxu0 %v6977_v52  ;;  %v6981_v52 = vld [vmem:[%s11003_s14 + $0x38] sm:$0xff]  }
 0x69d   :  { %6593 = vmatprep.subr.bf16.mxu0 %v6978_v22 }
 0x69e   :  { %2918 = vmatmul.mubr.bf16.gmra.mrb[156].mxu0 %v8967_v44  ;;  %3031 = vmatmul.mubr.bf16.gmra.mrb[164].mxu1 %v8967_v44  ;;  %v6161_v44 = vcombine.low %v9135_v27, %v9135_v27  ;;  %v11170_v27 = vsub.s32 2, %v8008_v4 }
 0x69f   :  { %2927 = vmatprep.mubr.bf16.mxu0 %v11290_v34  ;;  %3040 = vmatprep.mubr.bf16.mxu1 %v11290_v34 }
 0x6a0   :  { %6594 = vmatpush3.bf16.msra.mxu0 %v6978_v22 }
 0x6a1   :  { %6595 = vmatprep.subr.bf16.mxu0 %v6979_v36 }
 0x6a4   :  { %6596 = vmatpush3.bf16.msra.mxu0 %v6979_v36 }
 0x6a5   :  { %6597 = vmatprep.subr.bf16.mxu0 %v6980_v41 }
 0x6a6   :  { %2928 = vmatmul.mubr.bf16.gmra.mrb[160].mxu0 %v8965_v40  ;;  %3041 = vmatmul.mubr.bf16.gmra.mrb[168].mxu1 %v8965_v40 }
 0x6a7   :  { %2937 = vmatprep.mubr.bf16.mxu0 %v11290_v34  ;;  %3050 = vmatprep.mubr.bf16.mxu1 %v11290_v34 }
 0x6a8   :  { %6598 = vmatpush3.bf16.msra.mxu0 %v6980_v41 }
 0x6a9   :  { %6599 = vmatprep.subr.bf16.mxu0 %v6981_v52 }
 0x6ac   :  { %6600 = vmatpush3.bf16.msra.mxu0 %v6981_v52 }
 0x6ae   :  { %2938 = vmatmul.mubr.bf16.gmra.mrb[164].mxu0 %v9007_v21  ;;  %3051 = vmatmul.mubr.bf16.gmra.mrb[172].mxu1 %v9007_v21  ;;  %v3905_v21 = vsel %vm11496_vm1, %v6161_v44, 0  ;;  %vm11500_vm1 = vmmov %vm11416_vm2 }
 0x6af   :  { %2947 = vmatprep.mubr.bf16.mxu0 %v11290_v34  ;;  %3060 = vmatprep.mubr.bf16.mxu1 %v11290_v34 }
 0x6b6   :  { %2948 = vmatmul.mubr.bf16.gmra.mrb[168].mxu0 %v9005_v25  ;;  %3061 = vmatmul.mubr.bf16.gmra.mrb[176].mxu1 %v9005_v25 }
 0x6b7   :  { %2957 = vmatprep.mubr.bf16.mxu0 %v11290_v34  ;;  %3070 = vmatprep.mubr.bf16.mxu1 %v11290_v34 }
 0x6be   :  { %2958 = vmatmul.mubr.bf16.gmra.mrb[172].mxu0 %v9047_v19  ;;  %3071 = vmatmul.mubr.bf16.gmra.mrb[180].mxu1 %v9047_v19 }
 0x6bf   :  { %2967 = vmatprep.mubr.bf16.mxu0 %v11290_v34  ;;  %3080 = vmatprep.mubr.bf16.mxu1 %v11290_v34 }
 0x6c6   :  { %2968 = vmatmul.mubr.bf16.gmra.mrb[176].mxu0 %v9045_v23  ;;  %3081 = vmatmul.mubr.bf16.gmra.mrb[184].mxu1 %v9045_v23 }
 0x6c7   :  { %6601 = vmatprep.mubr.bf16.mxu0 %v8650_v8  ;;  %3948 = vmatprep.mubr.bf16.mxu1 %v11290_v34  ;;  %v9253_v8 = vld [vmem:[#allocation16] sm:$0xff] }
 0x6ce   :  { %6602 = vmatmul.mubr.bf16.vlgmr.msra.gmra.mrb[180].mxu0 %v8644_v30  ;;  %6166 = vmatmul.mubr.msk.bf16.vlgmr.msra.gmra.mrb[188].mxu1 %vm11416_vm2, %v7796_v47  ;;  %vm11501_vm2 = vmmov %vm11500_vm1  ;;  %v11169_v30 = vsub.s32 3, %v8008_v4 }
 0x6cf   :  { %6605 = vmatprep.mubr.bf16.mxu0 %v8694_v7  ;;  %3958 = vmatprep.mubr.bf16.mxu1 %v11290_v34 }
 0x6d0   :  { %4143 = vmatpush1.bf16.msra.mxu1 %v3905_v21  ;;  %v9263_v7 = vrot.slane %v9253_v8, %v11169_v30 }
 0x6d2   :  { %v1840_v36 = vadd.f32 %v8885_v5, %v9263_v7  ;;  %v1844_v5 = vadd.f32 %v8889_v9, %v9263_v7 }
 0x6d6   :  { %6606 = vmatmul.mubr.bf16.gmra.mrb[184].mxu0 %v8687_v42  ;;  %6167 = vmatmul.mubr.msk.bf16.gmra.mrb[192].mxu1 %vm11497_vm14, %v7807_v56  ;;  %vm11502_vm14 = vmmov %vm11500_vm1  ;;  %v9258_v42 = vrot.slane %v9253_v8, %v11170_v27 }
 0x6d7   :  { %6609 = vmatprep.mubr.bf16.mxu0 %v8737_v35  ;;  %3968 = vmatprep.mubr.bf16.mxu1 %v11290_v34 }
 0x6d8   :  { %v1838_v40 = vadd.f32 %v8883_v58, %v9258_v42  ;;  %v1848_v9 = vadd.f32 %v8891_v24, %v9258_v42  ;;  %v1852_v24 = vadd.f32 %v8895_v55, %v9258_v42 }
 0x6de   :  { %6610 = vmatmul.mubr.bf16.gmra.mrb[188].mxu0 %v8732_v37  ;;  %6168 = vmatmul.mubr.msk.bf16.gmra.mrb[196].mxu1 %vm11498_vm6, %v7818_v62  ;;  %vm11503_vm6 = vmmov %vm11500_vm1  ;;  %v11506_v37 = vld [vmem:[#allocation45_spill] sm:$0xff] }
 0x6df   :  { %6613 = vmatprep.mubr.bf16.mxu0 %v8766_v1  ;;  %3978 = vmatprep.mubr.bf16.mxu1 %v11290_v34  ;;  %v9269_v35 = vrot.slane %v9253_v8, %v11506_v37 }
 0x6e1   :  { %v1725_v19 = vadd.f32 %v8875_v39, %v9269_v35  ;;  %v1729_v30 = vadd.f32 %v8879_v15, %v9269_v35  ;;  %v1842_v39 = vadd.f32 %v8887_v13, %v9258_v42 }
 0x6e6   :  { %6614 = vmatmul.mubr.bf16.gmra.mrb[192].mxu0 %v8761_v0  ;;  %6169 = vmatmul.mubr.msk.bf16.gmra.mrb[200].mxu1 %vm11499_vm11, %v7829_v3  ;;  %vm11504_vm11 = vmmov %vm11500_vm1  ;;  %v11507_v0 = vld [vmem:[#allocation46_spill] sm:$0xff] }
 0x6e7   :  { %3988 = vmatprep.mubr.bf16.mxu1 %v11290_v34  ;;  %6633 = vmatprep.mubr.msk.bf16.mxu0 %vm8233_vm4, %v11263_v57  ;;  %v9273_v1 = vrot.slane %v9253_v8, %v11507_v0 }
 0x6e9   :  { %v1727_v22 = vadd.f32 %v8877_v31, %v9273_v1  ;;  %v1731_v31 = vadd.f32 %v8881_v63, %v9273_v1  ;;  %v1735_v63 = vadd.f32 %v8435_v26, %v9269_v35 }
 0x6ee   :  { %6170 = vmatmul.mubr.msk.bf16.gmra.mrb[204].mxu1 %vm11500_vm1, %v7840_v6 }
 0x6ef   :  { %3998 = vmatprep.mubr.bf16.mxu1 %v11290_v34 }
 0x6f6   :  { %6171 = vmatmul.mubr.msk.bf16.gmra.mrb[208].mxu1 %vm11501_vm2, %v7851_v11  ;;  %vm11505_vm2 = vmmov %vm11500_vm1 }
 0x6f7   :  { %4008 = vmatprep.mubr.bf16.mxu1 %v11290_v34 }
 0x6fe   :  { %6172 = vmatmul.mubr.msk.bf16.gmra.mrb[212].mxu1 %vm11502_vm14, %v11361_v12  ;;  %vm11508_vm14 = vmmov %vm11500_vm1 }
 0x6ff   :  { %4018 = vmatprep.mubr.bf16.mxu1 %v11290_v34 }
 0x706   :  { %6173 = vmatmul.mubr.msk.bf16.gmra.mrb[216].mxu1 %vm11503_vm6, %v11369_v2  ;;  %vm11509_vm6 = vmmov %vm11500_vm1 }
 0x707   :  { %4174 = vmatprep.mubr.bf16.mxu1 %v11290_v34 }
 0x70e   :  { %6184 = vmatmul.mubr.msk.bf16.vlgmr.msra.gmra.mrb[220].mxu1 %vm11504_vm11, %v7796_v47  ;;  %vm11518_vm11 = vmmov %vm11500_vm1 }
 0x70f   :  { %4184 = vmatprep.mubr.bf16.mxu1 %v11290_v34 }
 0x716   :  { %6185 = vmatmul.mubr.msk.bf16.gmra.mrb[224].mxu1 %vm11500_vm1, %v7807_v56  ;;  %v11546_v56 = vld [vmem:[#allocation180_spill] sm:$0xff] }
 0x717   :  { %4194 = vmatprep.mubr.bf16.mxu1 %v11290_v34 }
 0x71e   :  { %6186 = vmatmul.mubr.msk.bf16.gmra.mrb[228].mxu1 %vm11505_vm2, %v7818_v62  ;;  %vm11535_vm2 = vmmov %vm11500_vm1 }
 0x71f   :  { %4204 = vmatprep.mubr.bf16.mxu1 %v11290_v34 }
 0x721   :  { %v2673_v25 = vpop.f32.mrb[116].mxu0  ;;  %v2786_v23 = vpop.f32.mrb[124].mxu1 }
 0x722   :  { %v3091_v41 = vmul.f32 %v2673_v25, %v1725_v19  ;;  %v3155_v52 = vmul.f32 %v2786_v23, %v1838_v40  ;;  %v2675_v44 = vpop.f32.mrb[117].mxu0  ;;  %v2788_v21 = vpop.f32.mrb[125].mxu1 }
 0x723   :  { %v3123_v27 = vmul.f32 %v2675_v44, %v1727_v22  ;;  %v3187_v58 = vmul.f32 %v2788_v21, %v1840_v36  ;;  %v2677_v0 = vpop.f32.mrb[118].mxu0  ;;  %v2790_v37 = vpop.f32.mrb[126].mxu1 }
 0x724   :  { %v3092_v19 = vmul.f32 %v2677_v0, %v1729_v30  ;;  %v3156_v40 = vmul.f32 %v2790_v37, %v1842_v39  ;;  %v2679_v25 = vpop.f32.mrb[119].mxu0  ;;  %v2792_v23 = vpop.f32.mrb[127].mxu1  ;;  %v1737_v30 = vadd.f32 %v8437_v51, %v9273_v1  ;;  %v1741_v51 = vadd.f32 %v8445_v17, %v9273_v1 }
 0x725   :  { %v3139_v48 = vadd.f32 %v3123_v27, %v3091_v41  ;;  %v3124_v62 = vmul.f32 %v2679_v25, %v1731_v31  ;;  %v3188_v15 = vmul.f32 %v2792_v23, %v1844_v5 }
 0x726   :  { %6187 = vmatmul.mubr.msk.bf16.gmra.mrb[232].mxu1 %vm11508_vm14, %v7829_v3 }
 0x727   :  { %v3171_v13 = vadd.f32 %v3155_v52, %v3139_v48  ;;  %v3140_v22 = vadd.f32 %v3124_v62, %v3092_v19  ;;  %4214 = vmatprep.mubr.bf16.mxu1 %v11290_v34  ;;  %v1850_v48 = vadd.f32 %v8893_v29, %v9263_v7  ;;  %v1739_v62 = vadd.f32 %v8439_v53, %v9269_v35 }
 0x728   :  { %v1854_v29 = vadd.f32 %v8897_v46, %v9263_v7 }
 0x729   :  { %v9301_v37 = vadd.f32 %v3187_v58, %v3171_v13  ;;  %v3172_v27 = vadd.f32 %v3156_v40, %v3140_v22  ;;  %v2683_v0 = vpop.f32.mrb[120].mxu0  ;;  %v2796_v36 = vpop.f32.mrb[128].mxu1 }
 0x72a   :  { %v3093_v41 = vmul.f32 %v2683_v0, %v1735_v63  ;;  %v3157_v52 = vmul.f32 %v2796_v36, %v1848_v9  ;;  %v2685_v26 = vpop.f32.mrb[121].mxu0  ;;  %v2798_v44 = vpop.f32.mrb[129].mxu1  ;;  %v11511_v9 = vld [vmem:[#allocation164_spill] sm:$0xff] }
 0x72b   :  { %v9311_v21 = vadd.f32 %v3188_v15, %v3172_v27  ;;  %v3125_v39 = vmul.f32 %v2685_v26, %v1737_v30  ;;  %v3189_v58 = vmul.f32 %v2798_v44, %v1850_v48  ;;  %v2687_v31 = vpop.f32.mrb[122].mxu0  ;;  %v2800_v5 = vpop.f32.mrb[130].mxu1  ;;  %v11510_v15 = vld [vmem:[#allocation57_spill] sm:$0xff]  ;;  %v1858_v46 = vadd.f32 %v11511_v9, %v9258_v42  ;;  %v11512_v30 = vld [vmem:[#allocation58_spill] sm:$0xff]  ;;  %v11514_v26 = vld [vmem:[#allocation60_spill] sm:$0xff] }
 0x72c   :  { %v3094_v53 = vmul.f32 %v2687_v31, %v1739_v62  ;;  %v3158_v19 = vmul.f32 %v2800_v5, %v1852_v24  ;;  %v2689_v40 = vpop.f32.mrb[123].mxu0  ;;  %v2802_v25 = vpop.f32.mrb[131].mxu1  ;;  %v1745_v63 = vadd.f32 %v11510_v15, %v9269_v35  ;;  %v1747_v27 = vadd.f32 %v11512_v30, %v9273_v1  ;;  %v11515_v5 = vld [vmem:[#allocation166_spill] sm:$0xff] }
 0x72d   :  { %v3141_v23 = vadd.f32 %v3125_v39, %v3093_v41  ;;  %v3126_v13 = vmul.f32 %v2689_v40, %v1741_v51  ;;  %v3190_v22 = vmul.f32 %v2802_v25, %v1854_v29  ;;  %v11513_v41 = vld [vmem:[#allocation165_spill] sm:$0xff]  ;;  %v1749_v44 = vadd.f32 %v11514_v26, %v9269_v35 }
 0x72e   :  { %6188 = vmatmul.mubr.msk.bf16.gmra.mrb[236].mxu1 %vm11509_vm6, %v7840_v6  ;;  %v1862_v29 = vadd.f32 %v11515_v5, %v9258_v42 }
 0x72f   :  { %v3173_v17 = vadd.f32 %v3157_v52, %v3141_v23  ;;  %v3142_v55 = vadd.f32 %v3126_v13, %v3094_v53  ;;  %4224 = vmatprep.mubr.bf16.mxu1 %v11290_v34  ;;  %v1860_v52 = vadd.f32 %v11513_v41, %v9263_v7  ;;  %v11516_v53 = vld [vmem:[#allocation61_spill] sm:$0xff] }
 0x731   :  { %v9324_v0 = vadd.f32 %v3189_v58, %v3173_v17  ;;  %v3174_v36 = vadd.f32 %v3158_v19, %v3142_v55  ;;  %v2693_v48 = vpop.f32.mrb[124].mxu0  ;;  %v2806_v62 = vpop.f32.mrb[132].mxu1  ;;  %v1751_v58 = vadd.f32 %v11516_v53, %v9273_v1  ;;  %v11517_v17 = vld [vmem:[#allocation167_spill] sm:$0xff]  ;;  %v11522_v53 = vld [vmem:[#allocation169_spill] sm:$0xff] }
 0x732   :  { %v3095_v24 = vmul.f32 %v2693_v48, %v1745_v63  ;;  %v3159_v51 = vmul.f32 %v2806_v62, %v1858_v46  ;;  %v2695_v39 = vpop.f32.mrb[125].mxu0  ;;  %v2808_v31 = vpop.f32.mrb[133].mxu1  ;;  %v1864_v55 = vadd.f32 %v11517_v17, %v9263_v7 }
 0x733   :  { %v9334_v40 = vadd.f32 %v3190_v22, %v3174_v36  ;;  %v3127_v19 = vmul.f32 %v2695_v39, %v1747_v27  ;;  %v3191_v25 = vmul.f32 %v2808_v31, %v1860_v52  ;;  %v2697_v23 = vpop.f32.mrb[126].mxu0  ;;  %v2810_v13 = vpop.f32.mrb[134].mxu1  ;;  %v11519_v27 = vld [vmem:[#allocation62_spill] sm:$0xff]  ;;  %v11520_v52 = vld [vmem:[#allocation168_spill] sm:$0xff] }
 0x734   :  { %v3096_v15 = vmul.f32 %v2697_v23, %v1749_v44  ;;  %v3160_v63 = vmul.f32 %v2810_v13, %v1862_v29  ;;  %v2699_v9 = vpop.f32.mrb[127].mxu0  ;;  %v2812_v46 = vpop.f32.mrb[135].mxu1  ;;  %v1755_v36 = vadd.f32 %v11519_v27, %v9269_v35  ;;  %v1868_v26 = vadd.f32 %v11520_v52, %v9258_v42  ;;  %v11521_v44 = vld [vmem:[#allocation63_spill] sm:$0xff] }
 0x735   :  { %v3143_v30 = vadd.f32 %v3127_v19, %v3095_v24  ;;  %v3128_v48 = vmul.f32 %v2699_v9, %v1751_v58  ;;  %v3192_v62 = vmul.f32 %v2812_v46, %v1864_v55  ;;  %v1757_v39 = vadd.f32 %v11521_v44, %v9273_v1  ;;  %v11523_v58 = vld [vmem:[#allocation64_spill] sm:$0xff]  ;;  %v11525_v46 = vld [vmem:[#allocation65_spill] sm:$0xff]  ;;  %v11526_v27 = vld [vmem:[#allocation171_spill] sm:$0xff] }
 0x736   :  { %6189 = vmatmul.mubr.msk.bf16.gmra.mrb[240].mxu1 %vm11518_vm11, %v7851_v11  ;;  %v1759_v19 = vadd.f32 %v11523_v58, %v9269_v35  ;;  %v1874_v52 = vadd.f32 %v11526_v27, %v9263_v7 }
 0x737   :  { %v3175_v41 = vadd.f32 %v3159_v51, %v3143_v30  ;;  %v3144_v22 = vadd.f32 %v3128_v48, %v3096_v15  ;;  %4234 = vmatprep.mubr.bf16.mxu1 %v11290_v34  ;;  %v1870_v51 = vadd.f32 %v11522_v53, %v9263_v7  ;;  %v11524_v15 = vld [vmem:[#allocation170_spill] sm:$0xff] }
 0x738   :  { %v1872_v9 = vadd.f32 %v11524_v15, %v9258_v42 }
 0x739   :  { %v9347_v31 = vadd.f32 %v3191_v25, %v3175_v41  ;;  %v3176_v24 = vadd.f32 %v3160_v63, %v3144_v22  ;;  %v2703_v5 = vpop.f32.mrb[128].mxu0  ;;  %v2816_v29 = vpop.f32.mrb[136].mxu1  ;;  %v1761_v25 = vadd.f32 %v11525_v46, %v9273_v1 }
 0x73a   :  { %v3097_v23 = vmul.f32 %v2703_v5, %v1755_v36  ;;  %v3161_v13 = vmul.f32 %v2816_v29, %v1868_v26  ;;  %v2705_v17 = vpop.f32.mrb[129].mxu0  ;;  %v2818_v55 = vpop.f32.mrb[137].mxu1 }
 0x73b   :  { %v9357_v30 = vadd.f32 %v3192_v62, %v3176_v24  ;;  %v3129_v63 = vmul.f32 %v2705_v17, %v1757_v39  ;;  %v3193_v48 = vmul.f32 %v2818_v55, %v1870_v51  ;;  %v2707_v41 = vpop.f32.mrb[130].mxu0  ;;  %v2820_v22 = vpop.f32.mrb[138].mxu1  ;;  %v11527_v39 = vld [vmem:[#allocation66_spill] sm:$0xff]  ;;  %v11528_v51 = vld [vmem:[#allocation172_spill] sm:$0xff] }
 0x73c   :  { %v3098_v44 = vmul.f32 %v2707_v41, %v1759_v19  ;;  %v3162_v36 = vmul.f32 %v2820_v22, %v1872_v9  ;;  %v2709_v26 = vpop.f32.mrb[131].mxu0  ;;  %v2822_v5 = vpop.f32.mrb[139].mxu1  ;;  %v1765_v24 = vadd.f32 %v11527_v39, %v9269_v35  ;;  %v1878_v17 = vadd.f32 %v11528_v51, %v9258_v42  ;;  %v11529_v19 = vld [vmem:[#allocation67_spill] sm:$0xff]  ;;  %v11531_v41 = vld [vmem:[#allocation68_spill] sm:$0xff] }
 0x73d   :  { %v3145_v29 = vadd.f32 %v3129_v63, %v3097_v23  ;;  %v3130_v53 = vmul.f32 %v2709_v26, %v1761_v25  ;;  %v3194_v58 = vmul.f32 %v2822_v5, %v1874_v52  ;;  %v1767_v55 = vadd.f32 %v11529_v19, %v9273_v1  ;;  %v11530_v63 = vld [vmem:[#allocation173_spill] sm:$0xff]  ;;  %v11532_v5 = vld [vmem:[#allocation174_spill] sm:$0xff]  ;;  %v11534_v19 = vld [vmem:[#allocation175_spill] sm:$0xff] }
 0x73e   :  { %6190 = vmatmul.mubr.msk.bf16.gmra.mrb[244].mxu1 %vm11500_vm1, %v11361_v12  ;;  %v1769_v22 = vadd.f32 %v11531_v41, %v9269_v35 }
 0x73f   :  { %v3177_v15 = vadd.f32 %v3161_v13, %v3145_v29  ;;  %v3146_v62 = vadd.f32 %v3130_v53, %v3098_v44  ;;  %4244 = vmatprep.mubr.bf16.mxu1 %v11290_v34  ;;  %v1880_v13 = vadd.f32 %v11530_v63, %v9263_v7  ;;  %v1882_v29 = vadd.f32 %v11532_v5, %v9258_v42  ;;  %v11533_v53 = vld [vmem:[#allocation69_spill] sm:$0xff] }
 0x740   :  { %v1884_v63 = vadd.f32 %v11534_v19, %v9263_v7  ;;  %v11543_v19 = vld [vmem:[#allocation178_spill] sm:$0xff] }
 0x741   :  { %v9370_v9 = vadd.f32 %v3193_v48, %v3177_v15  ;;  %v3178_v23 = vadd.f32 %v3162_v36, %v3146_v62  ;;  %v2713_v46 = vpop.f32.mrb[132].mxu0  ;;  %v2826_v25 = vpop.f32.mrb[140].mxu1  ;;  %v1771_v48 = vadd.f32 %v11533_v53, %v9273_v1 }
 0x742   :  { %v3099_v27 = vmul.f32 %v2713_v46, %v1765_v24  ;;  %v3163_v52 = vmul.f32 %v2826_v25, %v1878_v17  ;;  %v2715_v44 = vpop.f32.mrb[133].mxu0  ;;  %v2828_v26 = vpop.f32.mrb[141].mxu1 }
 0x743   :  { %v9380_v15 = vadd.f32 %v3194_v58, %v3178_v23  ;;  %v3131_v36 = vmul.f32 %v2715_v44, %v1767_v55  ;;  %v3195_v62 = vmul.f32 %v2828_v26, %v1880_v13  ;;  %v2717_v39 = vpop.f32.mrb[134].mxu0  ;;  %v2830_v51 = vpop.f32.mrb[142].mxu1  ;;  %v11536_v55 = vld [vmem:[#allocation29_spill] sm:$0xff]  ;;  %v11538_v23 = vld [vmem:[#allocation70_spill] sm:$0xff]  ;;  %v11540_v26 = vld [vmem:[#allocation71_spill] sm:$0xff] }
 0x744   :  { %v3100_v41 = vmul.f32 %v2717_v39, %v1769_v22  ;;  %v3164_v24 = vmul.f32 %v2830_v51, %v1882_v29  ;;  %v2719_v17 = vpop.f32.mrb[135].mxu0  ;;  %v2832_v46 = vpop.f32.mrb[143].mxu1  ;;  %vm11537_vm14 = vnez %v11536_v55  ;;  %v1775_v13 = vadd.f32 %v11538_v23, %v9269_v35  ;;  %v11539_v22 = vld [vmem:[#allocation176_spill] sm:$0xff]  ;;  %v11544_v55 = vld [vmem:[#allocation73_spill] sm:$0xff] }
 0x745   :  { %v3147_v25 = vadd.f32 %v3131_v36, %v3099_v27  ;;  %v3132_v12 = vmul.f32 %v2719_v17, %v1771_v48  ;;  %v3196_v11 = vmul.f32 %v2832_v46, %v1884_v63  ;;  %v1888_v44 = vadd.f32 %v11539_v22, %v9258_v42  ;;  %v11542_v39 = vld [vmem:[#allocation72_spill] sm:$0xff] }
 0x746   :  { %6191 = vmatmul.mubr.msk.bf16.gmra.mrb[248].mxu1 %vm11535_vm2, %v11369_v2  ;;  %v1777_v27 = vadd.f32 %v11540_v26, %v9273_v1  ;;  %v1779_v51 = vadd.f32 %v11542_v39, %v9269_v35  ;;  %v1892_v63 = vadd.f32 %v11543_v19, %v9258_v42 }
 0x747   :  { %v3179_v5 = vadd.f32 %v3163_v52, %v3147_v25  ;;  %v3148_v58 = vadd.f32 %v3132_v12, %v3100_v41  ;;  %6665 = vmatprep.mubr.msk.bf16.mxu1 %vm11537_vm14, %v11263_v57  ;;  %v11541_v12 = vld [vmem:[#allocation177_spill] sm:$0xff]  ;;  %v11572_v57 = vld [vmem:[#allocation214_spill] sm:$0xff] }
 0x748   :  { %v1890_v52 = vadd.f32 %v11541_v12, %v9263_v7 }
 0x749   :  { %v9395_v29 = vadd.f32 %v3195_v62, %v3179_v5  ;;  %v3180_v53 = vadd.f32 %v3164_v24, %v3148_v58  ;;  %v2723_v48 = vpop.f32.mrb[136].mxu0  ;;  %v2836_v36 = vpop.f32.mrb[144].mxu1  ;;  %v1781_v62 = vadd.f32 %v11544_v55, %v9273_v1  ;;  %v11545_v24 = vld [vmem:[#allocation179_spill] sm:$0xff] }
 0x74a   :  { %v3101_v41 = vmul.f32 %v2723_v48, %v1775_v13  ;;  %v3165_v17 = vmul.f32 %v2836_v36, %v1888_v44  ;;  %v2725_v46 = vpop.f32.mrb[137].mxu0  ;;  %v2838_v25 = vpop.f32.mrb[145].mxu1  ;;  %v1894_v5 = vadd.f32 %v11545_v24, %v9263_v7  ;;  %v1898_v24 = vadd.f32 %v11546_v56, %v9258_v42 }
 0x74b   :  { %v9407_v58 = vadd.f32 %v3196_v11, %v3180_v53  ;;  %v3133_v23 = vmul.f32 %v2725_v46, %v1777_v27  ;;  %v3197_v22 = vmul.f32 %v2838_v25, %v1890_v52  ;;  %v2727_v26 = vpop.f32.mrb[138].mxu0  ;;  %v2840_v12 = vpop.f32.mrb[146].mxu1  ;;  %v11547_v11 = vld [vmem:[#allocation74_spill] sm:$0xff]  ;;  %v11548_v53 = vld [vmem:[#allocation75_spill] sm:$0xff]  ;;  %v11550_v25 = vld [vmem:[#allocation76_spill] sm:$0xff] }
 0x74c   :  { %v3102_v39 = vmul.f32 %v2727_v26, %v1779_v51  ;;  %v3166_v2 = vmul.f32 %v2840_v12, %v1892_v63  ;;  %v2729_v6 = vpop.f32.mrb[139].mxu0  ;;  %v2842_v19 = vpop.f32.mrb[147].mxu1  ;;  %v1785_v27 = vadd.f32 %v11547_v11, %v9269_v35  ;;  %v1787_v52 = vadd.f32 %v11548_v53, %v9273_v1  ;;  %v11549_v51 = vld [vmem:[#allocation183_spill] sm:$0xff] }
 0x74d   :  { %v3149_v13 = vadd.f32 %v3133_v23, %v3101_v41  ;;  %v3134_v44 = vmul.f32 %v2729_v6, %v1781_v62  ;;  %v3198_v48 = vmul.f32 %v2842_v19, %v1894_v5  ;;  %v1900_v63 = vadd.f32 %v11549_v51, %v9263_v7  ;;  %v11551_v5 = vld [vmem:[#allocation184_spill] sm:$0xff]  ;;  %v11552_v19 = vld [vmem:[#allocation77_spill] sm:$0xff] }
 0x74e   :  { %v1789_v62 = vadd.f32 %v11550_v25, %v9269_v35  ;;  %v1902_v56 = vadd.f32 %v11551_v5, %v9258_v42 }
 0x74f   :  { %v3181_v36 = vadd.f32 %v3165_v17, %v3149_v13  ;;  %v3150_v3 = vadd.f32 %v3134_v44, %v3102_v39  ;;  %v1791_v13 = vadd.f32 %v11552_v19, %v9273_v1  ;;  %v11553_v44 = vld [vmem:[#allocation187_spill] sm:$0xff]  ;;  %v11554_v19 = vsub.s32 4, %v8008_v4 }
 0x751   :  { %v9418_v46 = vadd.f32 %v3197_v22, %v3181_v36  ;;  %v3182_v6 = vadd.f32 %v3166_v2, %v3150_v3  ;;  %v2733_v41 = vpop.f32.mrb[140].mxu0  ;;  %v2846_v17 = vpop.f32.mrb[148].mxu1  ;;  %v1904_v22 = vadd.f32 %v11553_v44, %v9263_v7  ;;  %v9434_v47 = vrot.slane %v9253_v8, %v11554_v19  ;;  %v11559_v44 = vld [vmem:[#allocation195_spill] sm:$0xff] }
 0x752   :  { %v3103_v23 = vmul.f32 %v2733_v41, %v1785_v27  ;;  %v3167_v26 = vmul.f32 %v2846_v17, %v1898_v24  ;;  %v2735_v12 = vpop.f32.mrb[141].mxu0  ;;  %v2848_v39 = vpop.f32.mrb[149].mxu1  ;;  %v11186_v17 = vsub.s32 5, %v8008_v4 }
 0x753   :  { %v9428_v36 = vadd.f32 %v3198_v48, %v3182_v6  ;;  %v3135_v3 = vmul.f32 %v2735_v12, %v1787_v52  ;;  %v3199_v2 = vmul.f32 %v2848_v39, %v1900_v63  ;;  %v2737_v11 = vpop.f32.mrb[142].mxu0  ;;  %v2850_v53 = vpop.f32.mrb[150].mxu1  ;;  %v11555_v52 = vld [vmem:[#allocation78_spill] sm:$0xff]  ;;  %v11558_v39 = vld [vmem:[#allocation80_spill] sm:$0xff] }
 0x754   :  { %v3104_v51 = vmul.f32 %v2737_v11, %v1789_v62  ;;  %v3168_v25 = vmul.f32 %v2850_v53, %v1902_v56  ;;  %v2739_v55 = vpop.f32.mrb[143].mxu0  ;;  %v2852_v5 = vpop.f32.mrb[151].mxu1  ;;  %v1795_v63 = vadd.f32 %v11555_v52, %v9269_v35  ;;  %v11556_v62 = vld [vmem:[#allocation190_spill] sm:$0xff] }
 0x755   :  { %v3151_v27 = vadd.f32 %v3135_v3, %v3103_v23  ;;  %v3136_v24 = vmul.f32 %v2739_v55, %v1791_v13  ;;  %v3200_v41 = vmul.f32 %v2852_v5, %v1904_v22  ;;  %v1908_v56 = vadd.f32 %v11556_v62, %v9258_v42  ;;  %v11557_v55 = vld [vmem:[#allocation79_spill] sm:$0xff]  ;;  %v11560_v5 = vld [vmem:[#allocation196_spill] sm:$0xff] }
 0x756   :  { %v1797_v23 = vadd.f32 %v11557_v55, %v9273_v1  ;;  %v1799_v13 = vadd.f32 %v11558_v39, %v9269_v35  ;;  %v1910_v22 = vadd.f32 %v11559_v44, %v9263_v7  ;;  %v11561_v55 = vld [vmem:[#allocation81_spill] sm:$0xff]  ;;  %v11562_v39 = vld [vmem:[#allocation199_spill] sm:$0xff] }
 0x757   :  { %v3183_v48 = vadd.f32 %v3167_v26, %v3151_v27  ;;  %v3152_v6 = vadd.f32 %v3136_v24, %v3104_v51  ;;  %v11187_v26 = vsub.s32 7, %v8008_v4  ;;  %v1912_v27 = vadd.f32 %v11560_v5, %v9258_v42 }
 0x758   :  { %v1801_v35 = vadd.f32 %v11561_v55, %v9273_v1  ;;  %v1914_v44 = vadd.f32 %v11562_v39, %v9263_v7  ;;  %v9461_v42 = vrot.slane %v9253_v8, %v11186_v17  ;;  %v11565_v39 = vld [vmem:[#allocation82_spill] sm:$0xff] }
 0x759   :  { %v9448_v3 = vadd.f32 %v3199_v2, %v3183_v48  ;;  %v3184_v11 = vadd.f32 %v3168_v25, %v3152_v6  ;;  %v2743_v53 = vpop.f32.mrb[144].mxu0  ;;  %v2856_v51 = vpop.f32.mrb[152].mxu1 }
 0x75a   :  { %v3105_v24 = vmul.f32 %v2743_v53, %v1795_v63  ;;  %v3169_v19 = vmul.f32 %v2856_v51, %v1908_v56  ;;  %v2745_v52 = vpop.f32.mrb[145].mxu0  ;;  %v2858_v62 = vpop.f32.mrb[153].mxu1  ;;  %v11563_v63 = vsub.s32 6, %v8008_v4 }
 0x75b   :  { %v9456_v12 = vadd.f32 %v3200_v41, %v3184_v11  ;;  %v3137_v2 = vmul.f32 %v2745_v52, %v1797_v23  ;;  %v3201_v48 = vmul.f32 %v2858_v62, %v1910_v22  ;;  %v2747_v25 = vpop.f32.mrb[146].mxu0  ;;  %v2860_v6 = vpop.f32.mrb[154].mxu1  ;;  %v9471_v41 = vrot.slane %v9253_v8, %v11187_v26  ;;  %v11564_v62 = vld [vmem:[#allocation202_spill] sm:$0xff] }
 0x75c   :  { %v9466_v56 = vrot.slane %v9253_v8, %v11563_v63  ;;  %v3106_v1 = vmul.f32 %v2747_v25, %v1799_v13  ;;  %v3170_v53 = vmul.f32 %v2860_v6, %v1912_v27  ;;  %v2749_v51 = vpop.f32.mrb[147].mxu0  ;;  %v2862_v7 = vpop.f32.mrb[155].mxu1  ;;  %v1951_v63 = vadd.f32 %v11565_v39, %v9434_v47  ;;  %v11566_v13 = vld [vmem:[#allocation83_spill] sm:$0xff] }
 0x75d   :  { %v3153_v23 = vadd.f32 %v3137_v2, %v3105_v24  ;;  %v3138_v22 = vmul.f32 %v2749_v51, %v1801_v35  ;;  %v3202_v11 = vmul.f32 %v2862_v7, %v1914_v44  ;;  %v1953_v27 = vadd.f32 %v11566_v13, %v9461_v42  ;;  %v11567_v25 = vld [vmem:[#allocation207_spill] sm:$0xff]  ;;  %v11569_v2 = vld [vmem:[#allocation208_spill] sm:$0xff] }
 0x75e   :  { %v2064_v55 = vadd.f32 %v11564_v62, %v9466_v56  ;;  %v2066_v6 = vadd.f32 %v11567_v25, %v9471_v41  ;;  %v11570_v62 = vld [vmem:[#allocation85_spill] sm:$0xff]  ;;  %v11571_v13 = vld [vmem:[#allocation211_spill] sm:$0xff] }
 0x75f   :  { %v3185_v5 = vadd.f32 %v3169_v19, %v3153_v23  ;;  %v3154_v52 = vadd.f32 %v3138_v22, %v3106_v1  ;;  %v11568_v19 = vld [vmem:[#allocation84_spill] sm:$0xff]  ;;  %v2068_v1 = vadd.f32 %v11569_v2, %v9466_v56  ;;  %v1957_v39 = vadd.f32 %v11570_v62, %v9461_v42 }
 0x760   :  { %v1955_v44 = vadd.f32 %v11568_v19, %v9434_v47 }
 0x761   :  { %v9481_v17 = vadd.f32 %v3201_v48, %v3185_v5  ;;  %v3186_v8 = vadd.f32 %v3170_v53, %v3154_v52  ;;  %v2899_v24 = vpop.f32.mrb[148].mxu0  ;;  %v3012_v35 = vpop.f32.mrb[156].mxu1  ;;  %v2070_v48 = vadd.f32 %v11571_v13, %v9471_v41  ;;  %v2074_v13 = vadd.f32 %v11572_v57, %v9466_v56 }
 0x762   :  { %v3219_v51 = vmul.f32 %v2899_v24, %v1951_v63  ;;  %v3283_v7 = vmul.f32 %v3012_v35, %v2064_v55  ;;  %v2901_v23 = vpop.f32.mrb[149].mxu0  ;;  %v3014_v22 = vpop.f32.mrb[157].mxu1 }
 0x763   :  { %v9491_v5 = vadd.f32 %v3202_v11, %v3186_v8  ;;  %v3251_v53 = vmul.f32 %v2901_v23, %v1953_v27  ;;  %v3315_v52 = vmul.f32 %v3014_v22, %v2066_v6  ;;  %v2903_v25 = vpop.f32.mrb[150].mxu0  ;;  %v3016_v26 = vpop.f32.mrb[158].mxu1  ;;  %v11573_v27 = vld [vmem:[#allocation86_spill] sm:$0xff] }
 0x764   :  { %v3235_v19 = vadd.f32 %v3219_v51, %v9301_v37  ;;  %v3220_v4 = vmul.f32 %v2903_v25, %v1955_v44  ;;  %v3284_v2 = vmul.f32 %v3016_v26, %v2068_v1  ;;  %v2905_v63 = vpop.f32.mrb[151].mxu0  ;;  %v3018_v55 = vpop.f32.mrb[159].mxu1  ;;  %v1961_v6 = vadd.f32 %v11573_v27, %v9434_v47  ;;  %v11574_v51 = vld [vmem:[#allocation87_spill] sm:$0xff] }
 0x765   :  { %v3252_v24 = vmul.f32 %v2905_v63, %v1957_v39  ;;  %v3316_v35 = vmul.f32 %v3018_v55, %v2070_v48  ;;  %v2076_v37 = vadd.f32 %v9063_v20, %v9471_v41  ;;  %v2078_v26 = vadd.f32 %v9067_v18, %v9466_v56  ;;  %v11576_v63 = vld [vmem:[#allocation89_spill] sm:$0xff] }
 0x766   :  { %v3267_v34 = vadd.f32 %v3251_v53, %v3235_v19  ;;  %v3236_v62 = vadd.f32 %v3220_v4, %v9311_v21  ;;  %v1963_v23 = vadd.f32 %v11574_v51, %v9461_v42  ;;  %v11575_v4 = vld [vmem:[#allocation88_spill] sm:$0xff]  ;;  %v2080_v20 = vadd.f32 %v9075_v28, %v9471_v41 }
 0x767   :  { %v1965_v21 = vadd.f32 %v11575_v4, %v9434_v47  ;;  %v1967_v55 = vadd.f32 %v11576_v63, %v9461_v42  ;;  %v2088_v51 = vadd.f32 %v9093_v33, %v9466_v56 }
 0x768   :  { %v3268_v11 = vadd.f32 %v3252_v24, %v3236_v62  ;;  %v3299_v8 = vadd.f32 %v3283_v7, %v3267_v34 }
 0x769   :  { %v2909_v44 = vpop.f32.mrb[152].mxu0  ;;  %v3022_v1 = vpop.f32.mrb[160].mxu1 }
 0x76a   :  { %v3221_v57 = vmul.f32 %v2909_v44, %v1961_v6  ;;  %v3285_v22 = vmul.f32 %v3022_v1, %v2074_v13  ;;  %v2911_v39 = vpop.f32.mrb[153].mxu0  ;;  %v3024_v48 = vpop.f32.mrb[161].mxu1  ;;  %v9507_v53 = vadd.f32 %v3315_v52, %v3299_v8  ;;  %v3300_v34 = vadd.f32 %v3284_v2, %v3268_v11 }
 0x76b   :  { %v3253_v7 = vmul.f32 %v2911_v39, %v1963_v23  ;;  %v3317_v18 = vmul.f32 %v3024_v48, %v2076_v37  ;;  %v2913_v25 = vpop.f32.mrb[154].mxu0  ;;  %v3026_v19 = vpop.f32.mrb[162].mxu1 }
 0x76c   :  { %v3237_v24 = vadd.f32 %v3221_v57, %v9324_v0  ;;  %v3222_v62 = vmul.f32 %v2913_v25, %v1965_v21  ;;  %v3286_v27 = vmul.f32 %v3026_v19, %v2078_v26  ;;  %v3028_v13 = vpop.f32.mrb[163].mxu1  ;;  %3347 = vrot.lane.b32.xlu0 %v9507_v53, %s11221_s13  ;;  %v2915_v52 = vpop.f32.mrb[155].mxu0  ;;  %v9516_v2 = vadd.f32 %v3316_v35, %v3300_v34  ;;  %v11577_v26 = vld [vmem:[#allocation90_spill] sm:$0xff]  ;;  %v11579_v57 = vld [vmem:[#allocation93_spill] sm:$0xff] }
 0x76d   :  { %v3318_v11 = vmul.f32 %v3028_v13, %v2080_v20  ;;  %v3254_v28 = vmul.f32 %v2915_v52, %v1967_v55  ;;  %v2084_v0 = vadd.f32 %v9082_v54, %v9466_v56  ;;  %v1971_v44 = vadd.f32 %v11577_v26, %v9434_v47  ;;  %v11580_v55 = vld [vmem:[#allocation94_spill] sm:$0xff]  ;;  %v11581_v26 = vld [vmem:[#allocation95_spill] sm:$0xff] }
 0x76e   :  { %v3269_v6 = vadd.f32 %v3253_v7, %v3237_v24  ;;  %v3238_v8 = vadd.f32 %v3222_v62, %v9334_v40  ;;  %3349 = vrot.lane.b32.xlu1 %v9516_v2, %s11221_s13  ;;  %v2086_v35 = vadd.f32 %v9089_v45, %v9471_v41  ;;  %v11578_v40 = vld [vmem:[#allocation92_spill] sm:$0xff]  ;;  %v1975_v39 = vadd.f32 %v11579_v57, %v9434_v47 }
 0x76f   :  { %v1973_v21 = vadd.f32 %v11578_v40, %v9461_v42  ;;  %v2090_v45 = vadd.f32 %v9095_v50, %v9471_v41  ;;  %v1977_v24 = vadd.f32 %v11580_v55, %v9461_v42  ;;  %v11583_v40 = vld [vmem:[#allocation98_spill] sm:$0xff] }
 0x770   :  { %v3270_v37 = vadd.f32 %v3254_v28, %v3238_v8  ;;  %v3301_v1 = vadd.f32 %v3285_v22, %v3269_v6 }
 0x771   :  { %v2919_v23 = vpop.f32.mrb[156].mxu0  ;;  %v3032_v4 = vpop.f32.mrb[164].mxu1 }
 0x772   :  { %v3223_v54 = vmul.f32 %v2919_v23, %v1971_v44  ;;  %v3287_v48 = vmul.f32 %v3032_v4, %v2084_v0  ;;  %v2921_v34 = vpop.f32.mrb[157].mxu0  ;;  %v3034_v20 = vpop.f32.mrb[165].mxu1  ;;  %v9533_v7 = vadd.f32 %v3317_v18, %v3301_v1  ;;  %v3302_v22 = vadd.f32 %v3286_v27, %v3270_v37 }
 0x773   :  { %v3255_v25 = vmul.f32 %v2921_v34, %v1973_v21  ;;  %v3319_v33 = vmul.f32 %v3034_v20, %v2086_v35  ;;  %v2923_v19 = vpop.f32.mrb[158].mxu0  ;;  %v3036_v63 = vpop.f32.mrb[166].mxu1  ;;  %v1981_v44 = vadd.f32 %v11581_v26, %v9434_v47  ;;  %v2098_v35 = vadd.f32 %v9105_v38, %v9466_v56 }
 0x774   :  { %v3239_v62 = vadd.f32 %v3223_v54, %v9347_v31  ;;  %v3224_v13 = vmul.f32 %v2923_v19, %v1975_v39  ;;  %v3288_v52 = vmul.f32 %v3036_v63, %v2088_v51  ;;  %v3038_v28 = vpop.f32.mrb[167].mxu1  ;;  %3351 = vrot.lane.b32.xlu0 %v9533_v7, %s11221_s13  ;;  %v2925_v18 = vpop.f32.mrb[159].mxu0  ;;  %v9542_v27 = vadd.f32 %v3318_v11, %v3302_v22  ;;  %v11585_v19 = vld [vmem:[#allocation100_spill] sm:$0xff] }
 0x775   :  { %v3320_v6 = vmul.f32 %v3038_v28, %v2090_v45  ;;  %v3256_v50 = vmul.f32 %v2925_v18, %v1977_v24  ;;  %v2094_v31 = vadd.f32 %v9097_v59, %v9466_v56  ;;  %v2096_v11 = vadd.f32 %v9101_v14, %v9471_v41  ;;  %v11584_v14 = vld [vmem:[#allocation221_spill] sm:$0xff] }
 0x776   :  { %v3271_v8 = vadd.f32 %v3255_v25, %v3239_v62  ;;  %v3240_v0 = vadd.f32 %v3224_v13, %v9357_v30  ;;  %3353 = vrot.lane.b32.xlu1 %v9542_v27, %s11221_s13  ;;  %v11582_v30 = vld [vmem:[#allocation96_spill] sm:$0xff]  ;;  %v1985_v21 = vadd.f32 %v11583_v40, %v9434_v47  ;;  %v2100_v20 = vadd.f32 %v11584_v14, %v9471_v41 }
 0x777   :  { %v1983_v4 = vadd.f32 %v11582_v30, %v9461_v42  ;;  %v1987_v63 = vadd.f32 %v11585_v19, %v9461_v42  ;;  %v11592_v14 = vld [vmem:[#allocation104_spill] sm:$0xff] }
 0x778   :  { %v3272_v37 = vadd.f32 %v3256_v50, %v3240_v0  ;;  %v3303_v1 = vadd.f32 %v3287_v48, %v3271_v8  ;;  %v11586_v0 = vld [vmem:[#allocation222_spill] sm:$0xff] }
 0x779   :  { %v2929_v51 = vpop.f32.mrb[160].mxu0  ;;  %v3042_v23 = vpop.f32.mrb[168].mxu1 }
 0x77a   :  { %v3225_v59 = vmul.f32 %v2929_v51, %v1981_v44  ;;  %v3289_v57 = vmul.f32 %v3042_v23, %v2094_v31  ;;  %v2931_v39 = vpop.f32.mrb[161].mxu0  ;;  %v3044_v54 = vpop.f32.mrb[169].mxu1  ;;  %v9559_v34 = vadd.f32 %v3319_v33, %v3303_v1  ;;  %v3304_v48 = vadd.f32 %v3288_v52, %v3272_v37  ;;  %v11587_v37 = vld [vmem:[#allocation101_spill] sm:$0xff]  ;;  %v11588_v1 = vld [vmem:[#allocation103_spill] sm:$0xff]  ;;  %v11590_v51 = vld [vmem:[#allocation224_spill] sm:$0xff] }
 0x77b   :  { %v3257_v22 = vmul.f32 %v2931_v39, %v1983_v4  ;;  %v3321_v38 = vmul.f32 %v3044_v54, %v2096_v11  ;;  %v2933_v45 = vpop.f32.mrb[162].mxu0  ;;  %v3046_v25 = vpop.f32.mrb[170].mxu1  ;;  %v1991_v26 = vadd.f32 %v11587_v37, %v9434_v47  ;;  %v11589_v11 = vld [vmem:[#allocation223_spill] sm:$0xff]  ;;  %v11591_v4 = vld [vmem:[#allocation102_spill] sm:$0xff] }
 0x77c   :  { %v3241_v55 = vadd.f32 %v3225_v59, %v9370_v9  ;;  %v3226_v24 = vmul.f32 %v2933_v45, %v1985_v21  ;;  %v3290_v62 = vmul.f32 %v3046_v25, %v2098_v35  ;;  %v3048_v13 = vpop.f32.mrb[171].mxu1  ;;  %3355 = vrot.lane.b32.xlu0 %v9559_v34, %s11221_s13  ;;  %v2935_v33 = vpop.f32.mrb[163].mxu0  ;;  %v9568_v52 = vadd.f32 %v3320_v6, %v3304_v48  ;;  %v11595_v37 = vld [vmem:[#allocation226_spill] sm:$0xff] }
 0x77d   :  { %v3322_v28 = vmul.f32 %v3048_v13, %v2100_v20  ;;  %v3258_v18 = vmul.f32 %v2935_v33, %v1987_v63  ;;  %v2104_v9 = vadd.f32 %v11586_v0, %v9466_v56  ;;  %v1995_v6 = vadd.f32 %v11588_v1, %v9434_v47 }
 0x77e   :  { %v3273_v50 = vadd.f32 %v3257_v22, %v3241_v55  ;;  %v3242_v8 = vadd.f32 %v3226_v24, %v9380_v15  ;;  %3357 = vrot.lane.b32.xlu1 %v9568_v52, %s11221_s13  ;;  %v2106_v35 = vadd.f32 %v11589_v11, %v9471_v41  ;;  %v2108_v15 = vadd.f32 %v11590_v51, %v9466_v56  ;;  %v11593_v22 = vld [vmem:[#allocation225_spill] sm:$0xff]  ;;  %v11598_v51 = vld [vmem:[#allocation227_spill] sm:$0xff] }
 0x77f   :  { %v1993_v40 = vadd.f32 %v11591_v4, %v9461_v42  ;;  %v1997_v20 = vadd.f32 %v11592_v14, %v9461_v42  ;;  %v2110_v45 = vadd.f32 %v11593_v22, %v9471_v41  ;;  %v11597_v11 = vld [vmem:[#allocation109_spill] sm:$0xff]  ;;  %v11600_v14 = vld [vmem:[#allocation110_spill] sm:$0xff]  ;;  %v2120_v22 = vadd.f32 %v9131_v32, %v9471_v41 }
 0x780   :  { %v3274_v31 = vadd.f32 %v3258_v18, %v3242_v8  ;;  %v3305_v44 = vadd.f32 %v3289_v57, %v3273_v50 }
 0x781   :  { %v2939_v23 = vpop.f32.mrb[164].mxu0  ;;  %v3052_v30 = vpop.f32.mrb[172].mxu1 }
 0x782   :  { %v3227_v21 = vmul.f32 %v2939_v23, %v1991_v26  ;;  %v3291_v59 = vmul.f32 %v3052_v30, %v2104_v9  ;;  %v2941_v39 = vpop.f32.mrb[165].mxu0  ;;  %v3054_v54 = vpop.f32.mrb[173].mxu1  ;;  %v9585_v48 = vadd.f32 %v3321_v38, %v3305_v44  ;;  %v3306_v57 = vadd.f32 %v3290_v62, %v3274_v31  ;;  %v11594_v31 = vld [vmem:[#allocation106_spill] sm:$0xff] }
 0x783   :  { %v3259_v25 = vmul.f32 %v2941_v39, %v1993_v40  ;;  %v3323_v19 = vmul.f32 %v3054_v54, %v2106_v35  ;;  %v2943_v63 = vpop.f32.mrb[166].mxu0  ;;  %v3056_v55 = vpop.f32.mrb[174].mxu1  ;;  %v2114_v26 = vadd.f32 %v11595_v37, %v9466_v56  ;;  %v2005_v35 = vadd.f32 %v11597_v11, %v9434_v47  ;;  %v11605_v11 = vld [vmem:[#allocation230_spill] sm:$0xff] }
 0x784   :  { %v3243_v24 = vadd.f32 %v3227_v21, %v9395_v29  ;;  %v3228_v13 = vmul.f32 %v2943_v63, %v1995_v6  ;;  %v3292_v33 = vmul.f32 %v3056_v55, %v2108_v15  ;;  %v3058_v18 = vpop.f32.mrb[175].mxu1  ;;  %3359 = vrot.lane.b32.xlu0 %v9585_v48, %s11221_s13  ;;  %v2945_v38 = vpop.f32.mrb[167].mxu0  ;;  %v9594_v62 = vadd.f32 %v3322_v28, %v3306_v57  ;;  %v11596_v6 = vld [vmem:[#allocation108_spill] sm:$0xff] }
 0x785   :  { %v3324_v50 = vmul.f32 %v3058_v18, %v2110_v45  ;;  %v3260_v8 = vmul.f32 %v2945_v38, %v1997_v20  ;;  %v2001_v29 = vadd.f32 %v11594_v31, %v9434_v47  ;;  %v2003_v28 = vadd.f32 %v11596_v6, %v9461_v42  ;;  %v11599_v15 = vld [vmem:[#allocation228_spill] sm:$0xff]  ;;  %v11601_v31 = vld [vmem:[#allocation111_spill] sm:$0xff]  ;;  %v11604_v6 = vld [vmem:[#allocation114_spill] sm:$0xff] }
 0x786   :  { %v3275_v0 = vadd.f32 %v3259_v25, %v3243_v24  ;;  %v3244_v9 = vadd.f32 %v3228_v13, %v9407_v58  ;;  %3361 = vrot.lane.b32.xlu1 %v9594_v62, %s11221_s13  ;;  %v2116_v58 = vadd.f32 %v11598_v51, %v9471_v41  ;;  %v2118_v23 = vadd.f32 %v11599_v15, %v9466_v56 }
 0x787   :  { %v2007_v20 = vadd.f32 %v11600_v14, %v9461_v42 }
 0x788   :  { %v3276_v44 = vadd.f32 %v3260_v8, %v3244_v9  ;;  %v3307_v1 = vadd.f32 %v3291_v59, %v3275_v0 }
 0x789   :  { %v2949_v30 = vpop.f32.mrb[168].mxu0  ;;  %v3062_v4 = vpop.f32.mrb[176].mxu1 }
 0x78a   :  { %v3229_v40 = vmul.f32 %v2949_v30, %v2001_v29  ;;  %v3293_v21 = vmul.f32 %v3062_v4, %v2114_v26  ;;  %v2951_v39 = vpop.f32.mrb[169].mxu0  ;;  %v3064_v54 = vpop.f32.mrb[177].mxu1  ;;  %v9611_v57 = vadd.f32 %v3323_v19, %v3307_v1  ;;  %v3308_v59 = vadd.f32 %v3292_v33, %v3276_v44  ;;  %v11602_v29 = vld [vmem:[#allocation229_spill] sm:$0xff]  ;;  %v11603_v1 = vld [vmem:[#allocation112_spill] sm:$0xff] }
 0x78b   :  { %v3261_v45 = vmul.f32 %v2951_v39, %v2003_v28  ;;  %v3325_v25 = vmul.f32 %v3064_v54, %v2116_v58  ;;  %v2953_v63 = vpop.f32.mrb[170].mxu0  ;;  %v3066_v55 = vpop.f32.mrb[178].mxu1  ;;  %v2124_v37 = vadd.f32 %v11602_v29, %v9466_v56  ;;  %v2015_v28 = vadd.f32 %v11604_v6, %v9434_v47  ;;  %v11606_v39 = vld [vmem:[#allocation116_spill] sm:$0xff]  ;;  %v11609_v29 = vld [vmem:[#allocation119_spill] sm:$0xff] }
 0x78c   :  { %v3245_v24 = vadd.f32 %v3229_v40, %v9418_v46  ;;  %v3230_v13 = vmul.f32 %v2953_v63, %v2005_v35  ;;  %v3294_v18 = vmul.f32 %v3066_v55, %v2118_v23  ;;  %v3068_v38 = vpop.f32.mrb[179].mxu1  ;;  %3363 = vrot.lane.b32.xlu0 %v9611_v57, %s11221_s13  ;;  %v2955_v19 = vpop.f32.mrb[171].mxu0  ;;  %v9620_v33 = vadd.f32 %v3324_v50, %v3308_v59 }
 0x78d   :  { %v3326_v8 = vmul.f32 %v3068_v38, %v2120_v22  ;;  %v3262_v0 = vmul.f32 %v2955_v19, %v2007_v20  ;;  %v2011_v46 = vadd.f32 %v11601_v31, %v9434_v47  ;;  %v2013_v50 = vadd.f32 %v11603_v1, %v9461_v42 }
 0x78e   :  { %v3277_v9 = vadd.f32 %v3261_v45, %v3245_v24  ;;  %v3246_v32 = vadd.f32 %v3230_v13, %v9428_v36  ;;  %3365 = vrot.lane.b32.xlu1 %v9620_v33, %s11221_s13  ;;  %v2126_v36 = vadd.f32 %v11605_v11, %v9471_v41  ;;  %v2128_v35 = vadd.f32 %v9149_v10, %v9466_v56 }
 0x78f   :  { %v2017_v54 = vadd.f32 %v11606_v39, %v9461_v42  ;;  %v2130_v59 = vadd.f32 %v9151_v49, %v9471_v41 }
 0x790   :  { %v3278_v26 = vadd.f32 %v3262_v0, %v3246_v32  ;;  %v3309_v44 = vadd.f32 %v3293_v21, %v3277_v9  ;;  %v11607_v0 = vld [vmem:[#allocation117_spill] sm:$0xff]  ;;  %v2134_v9 = vadd.f32 %v9157_v60, %v9466_v56 }
 0x791   :  { %v2959_v51 = vpop.f32.mrb[172].mxu0  ;;  %v3072_v58 = vpop.f32.mrb[180].mxu1 }
 0x792   :  { %v3231_v15 = vmul.f32 %v2959_v51, %v2011_v46  ;;  %v3295_v23 = vmul.f32 %v3072_v58, %v2124_v37  ;;  %v2961_v30 = vpop.f32.mrb[173].mxu0  ;;  %v3074_v4 = vpop.f32.mrb[181].mxu1  ;;  %v9637_v40 = vadd.f32 %v3325_v25, %v3309_v44  ;;  %v3310_v21 = vadd.f32 %v3294_v18, %v3278_v26  ;;  %v11608_v46 = vld [vmem:[#allocation118_spill] sm:$0xff] }
 0x793   :  { %v3263_v14 = vmul.f32 %v2961_v30, %v2013_v50  ;;  %v3327_v20 = vmul.f32 %v3074_v4, %v2126_v36  ;;  %v2963_v22 = vpop.f32.mrb[174].mxu0  ;;  %v3076_v45 = vpop.f32.mrb[182].mxu1  ;;  %v2025_v37 = vadd.f32 %v11609_v29, %v9434_v47  ;;  %v2138_v26 = vadd.f32 %v9168_v61, %v9466_v56 }
 0x794   :  { %v3247_v10 = vadd.f32 %v3231_v15, %v9448_v3  ;;  %v3232_v63 = vmul.f32 %v2963_v22, %v2015_v28  ;;  %v3296_v55 = vmul.f32 %v3076_v45, %v2128_v35  ;;  %v3078_v24 = vpop.f32.mrb[183].mxu1  ;;  %3367 = vrot.lane.b32.xlu0 %v9637_v40, %s11221_s13  ;;  %v2965_v25 = vpop.f32.mrb[175].mxu0  ;;  %v9646_v13 = vadd.f32 %v3326_v8, %v3310_v21  ;;  %v11610_v35 = vld [vmem:[#allocation120_spill] sm:$0xff] }
 0x795   :  { %v3328_v18 = vmul.f32 %v3078_v24, %v2130_v59  ;;  %v3264_v38 = vmul.f32 %v2965_v25, %v2017_v54  ;;  %v2021_v3 = vadd.f32 %v11607_v0, %v9434_v47  ;;  %v2023_v8 = vadd.f32 %v11608_v46, %v9461_v42 }
 0x796   :  { %v3279_v19 = vadd.f32 %v3263_v14, %v3247_v10  ;;  %v3248_v49 = vadd.f32 %v3232_v63, %v9456_v12  ;;  %3369 = vrot.lane.b32.xlu1 %v9646_v13, %s11221_s13  ;;  %v2136_v12 = vadd.f32 %v9164_v43, %v9471_v41  ;;  %v2027_v51 = vadd.f32 %v11610_v35, %v9461_v42 }
 0x797   :  { %v2140_v47 = vadd.f32 %v9170_v16, %v9471_v41 }
 0x798   :  { %v3280_v32 = vadd.f32 %v3264_v38, %v3248_v49  ;;  %v3311_v31 = vadd.f32 %v3295_v23, %v3279_v19 }
 0x799   :  { %v2969_v44 = vpop.f32.mrb[176].mxu0  ;;  %v3082_v1 = vpop.f32.mrb[184].mxu1 }
 0x79a   :  { %v3233_v50 = vmul.f32 %v2969_v44, %v2021_v3  ;;  %v3297_v6 = vmul.f32 %v3082_v1, %v2134_v9  ;;  %v2971_v28 = vpop.f32.mrb[177].mxu0  ;;  %v3084_v60 = vpop.f32.mrb[185].mxu1  ;;  %v9663_v11 = vadd.f32 %v3327_v20, %v3311_v31  ;;  %v3312_v36 = vadd.f32 %v3296_v55, %v3280_v32 }
 0x79b   :  { %v3265_v58 = vmul.f32 %v2971_v28, %v2023_v8  ;;  %v3329_v43 = vmul.f32 %v3084_v60, %v2136_v12  ;;  %v2973_v15 = vpop.f32.mrb[178].mxu0  ;;  %v3086_v23 = vpop.f32.mrb[186].mxu1 }
 0x79c   :  { %v3249_v61 = vadd.f32 %v3233_v50, %v9481_v17  ;;  %v3234_v56 = vmul.f32 %v2973_v15, %v2025_v37  ;;  %v3298_v30 = vmul.f32 %v3086_v23, %v2138_v26  ;;  %v3088_v4 = vpop.f32.mrb[187].mxu1  ;;  %3371 = vrot.lane.b32.xlu0 %v9663_v11, %s11221_s13  ;;  %v2975_v21 = vpop.f32.mrb[179].mxu0  ;;  %v3344_v39 = vadd.f32 %v3328_v18, %v3312_v36 }
 0x79d   :  { %v3330_v54 = vmul.f32 %v3088_v4, %v2140_v47  ;;  %v3266_v59 = vmul.f32 %v2975_v21, %v2027_v51 }
 0x79e   :  { %v3281_v42 = vadd.f32 %v3265_v58, %v3249_v61  ;;  %v3250_v14 = vadd.f32 %v3234_v56, %v9491_v5  ;;  %3373 = vrot.lane.b32.xlu1 %v3344_v39, %s11221_s13 }
 0x7a0   :  { %v3282_v16 = vadd.f32 %v3266_v59, %v3250_v14  ;;  %v3313_v41 = vadd.f32 %v3297_v6, %v3281_v42  ;;  %v11611_v6 = vld [vmem:[#allocation48_spill] sm:$0xff] }
 0x7a1   :  { %vm11612_vm6 = vnez %v11611_v6 }
 0x7a2   :  { %v3345_v20 = vadd.f32 %v3329_v43, %v3313_v41  ;;  %v3314_v22 = vadd.f32 %v3298_v30, %v3282_v16 }
 0x7a4   :  { %3375 = vrot.lane.b32.xlu0 %v3345_v20, %s11221_s13  ;;  %v3346_v17 = vadd.f32 %v3330_v54, %v3314_v22 }
 0x7a6   :  { %3377 = vrot.lane.b32.xlu1 %v3346_v17, %s11221_s13 }
 0x7de   :  { %v3348_v45 = vpop.permute.xlu0 %3347 }
 0x7df   :  { %v3379_v10 = vadd.f32 %v3348_v45, %v9507_v53 }
 0x7e0   :  { %v3350_v63 = vpop.permute.xlu1 %3349 }
 0x7e1   :  { %v3380_v55 = vadd.f32 %v3350_v63, %v9516_v2  ;;  %3395 = vrot.lane.b32.xlu0 %v3379_v10, %s7286_s10 }
 0x7e3   :  { %3397 = vrot.lane.b32.xlu1 %v3380_v55, %s7286_s10 }
 0x7e6   :  { %v3352_v5 = vpop.permute.xlu0 %3351 }
 0x7e7   :  { %v3381_v24 = vadd.f32 %v3352_v5, %v9533_v7 }
 0x7e8   :  { %v3354_v25 = vpop.permute.xlu1 %3353 }
 0x7e9   :  { %v3382_v18 = vadd.f32 %v3354_v25, %v9542_v27  ;;  %3399 = vrot.lane.b32.xlu0 %v3381_v24, %s7286_s10 }
 0x7eb   :  { %3401 = vrot.lane.b32.xlu1 %v3382_v18, %s7286_s10 }
 0x7ee   :  { %v3356_v38 = vpop.permute.xlu0 %3355 }
 0x7ef   :  { %v3383_v53 = vadd.f32 %v3356_v38, %v9559_v34 }
 0x7f0   :  { %v3358_v19 = vpop.permute.xlu1 %3357 }
 0x7f1   :  { %v3384_v2 = vadd.f32 %v3358_v19, %v9568_v52  ;;  %3403 = vrot.lane.b32.xlu0 %v3383_v53, %s7286_s10  ;;  %v11614_v19 = vld [vmem:[#allocation49_spill] sm:$0xff] }
 0x7f2   :  { %vm11615_vm11 = vnez %v11614_v19  ;;  %v9893_v19 = vld [vmem:[%s11004_s15] ss:$0 sm:$0xff] }
 0x7f3   :  { %3405 = vrot.lane.b32.xlu1 %v3384_v2, %s7286_s10 }
 0x7f6   :  { %v3360_v49 = vpop.permute.xlu0 %3359 }
 0x7f7   :  { %v3385_v7 = vadd.f32 %v3360_v49, %v9585_v48 }
 0x7f8   :  { %v3362_v0 = vpop.permute.xlu1 %3361 }
 0x7f9   :  { %v3386_v27 = vadd.f32 %v3362_v0, %v9594_v62  ;;  %3407 = vrot.lane.b32.xlu0 %v3385_v7, %s7286_s10 }
 0x7fb   :  { %3409 = vrot.lane.b32.xlu1 %v3386_v27, %s7286_s10 }
 0x7fe   :  { %v3364_v3 = vpop.permute.xlu0 %3363 }
 0x7ff   :  { %v3387_v34 = vadd.f32 %v3364_v3, %v9611_v57  ;;  %v11623_v3 = vld [vmem:[#allocation55_spill] sm:$0xff] }
 0x800   :  { %v3366_v9 = vpop.permute.xlu1 %3365  ;;  %vm11624_vm14 = vnez %v11623_v3 }
 0x801   :  { %v3388_v52 = vadd.f32 %v3366_v9, %v9620_v33  ;;  %3411 = vrot.lane.b32.xlu0 %v3387_v34, %s7286_s10  ;;  %v9759_v9 = vpop.f32.mrb[188].mxu1 }
 0x803   :  { %3413 = vrot.lane.b32.xlu1 %v3388_v52, %s7286_s10 }
 0x806   :  { %v3368_v32 = vpop.permute.xlu0 %3367 }
 0x807   :  { %v3389_v48 = vadd.f32 %v3368_v32, %v9637_v40  ;;  %v3829_v32 = vld [vmem:[#allocation17 + $0x18] sm:$0xff] }
 0x808   :  { %v3370_v31 = vpop.permute.xlu1 %3369 }
 0x809   :  { %v3390_v62 = vadd.f32 %v3370_v31, %v9646_v13  ;;  %3415 = vrot.lane.b32.xlu0 %v3389_v48, %s7286_s10 }
 0x80b   :  { %3417 = vrot.lane.b32.xlu1 %v3390_v62, %s7286_s10 }
 0x80e   :  { %v3372_v46 = vpop.permute.xlu0 %3371 }
 0x80f   :  { %v3391_v57 = vadd.f32 %v3372_v46, %v9663_v11 }
 0x810   :  { %v3374_v8 = vpop.permute.xlu1 %3373 }
 0x811   :  { %v3392_v29 = vadd.f32 %v3374_v8, %v3344_v39  ;;  %3419 = vrot.lane.b32.xlu0 %v3391_v57, %s7286_s10  ;;  %v6163_v8 = vcombine.low %v3829_v32, %v3829_v32 }
 0x813   :  { %3421 = vrot.lane.b32.xlu1 %v3392_v29, %s7286_s10 }
 0x816   :  { %v3376_v33 = vpop.permute.xlu0 %3375 }
 0x817   :  { %v3393_v37 = vadd.f32 %v3376_v33, %v3345_v20 }
 0x818   :  { %v3378_v12 = vpop.permute.xlu1 %3377 }
 0x819   :  { %v3394_v40 = vadd.f32 %v3378_v12, %v3346_v17  ;;  %3423 = vrot.lane.b32.xlu0 %v3393_v37, %s7286_s10 }
 0x81b   :  { %3425 = vrot.lane.b32.xlu1 %v3394_v40, %s7286_s10 }
 0x853   :  { %v3396_v13 = vpop.permute.xlu0 %3395 }
 0x854   :  { %v3427_v44 = vadd.f32 %v3396_v13, %v3379_v10 }
 0x855   :  { %v3398_v26 = vpop.permute.xlu1 %3397 }
 0x856   :  { %v3428_v1 = vadd.f32 %v3398_v26, %v3380_v55  ;;  %v11630_v26 = vld [vmem:[#allocation36_spill] sm:$0xff] }
 0x858   :  { %v6115_v50 = vpack.c.bf16 %v3428_v1, %v3427_v44 }
 0x85a   :  { %6617 = vmatprep.subr.msk.bf16.mxu0 %vm11612_vm6, %v6115_v50 }
 0x85b   :  { %v3400_v28 = vpop.permute.xlu0 %3399  ;;  %6618 = vmatpush3.bf16.msk.msra.mxu0 %vm11612_vm6, %v6115_v50 }
 0x85c   :  { %v3429_v11 = vadd.f32 %v3400_v28, %v3381_v24  ;;  %v11632_v28 = vld [vmem:[#allocation142_spill] sm:$0xff] }
 0x85d   :  { %v3402_v60 = vpop.permute.xlu1 %3401 }
 0x85e   :  { %v3430_v36 = vadd.f32 %v3402_v60, %v3382_v18 }
 0x860   :  { %v6118_v35 = vpack.c.bf16 %v3430_v36, %v3429_v11 }
 0x862   :  { %6619 = vmatprep.subr.msk.bf16.mxu0 %vm11612_vm6, %v6118_v35 }
 0x863   :  { %v3404_v51 = vpop.permute.xlu0 %3403  ;;  %6620 = vmatpush3.bf16.msk.msra.mxu0 %vm11612_vm6, %v6118_v35 }
 0x864   :  { %v3431_v58 = vadd.f32 %v3404_v51, %v3383_v53  ;;  %v11613_v53 = vmov 1.0|1.0  }
 0x865   :  { %v3406_v47 = vpop.permute.xlu1 %3405 }
 0x866   :  { %v3432_v43 = vadd.f32 %v3406_v47, %v3384_v2  ;;  %v11616_v2 = vld [vmem:[#allocation50_spill] sm:$0xff]  ;;  %v11633_v47 = vld [vmem:[#allocation37_spill] sm:$0xff] }
 0x867   :  { %vm11617_vm1 = vnez %v11616_v2 }
 0x868   :  { %v6121_v15 = vpack.c.bf16 %v3432_v43, %v3431_v58 }
 0x86a   :  { %6621 = vmatprep.subr.msk.bf16.mxu0 %vm11612_vm6, %v6121_v15 }
 0x86b   :  { %v3408_v23 = vpop.permute.xlu0 %3407  ;;  %6622 = vmatpush3.bf16.msk.msra.mxu0 %vm11612_vm6, %v6121_v15 }
 0x86c   :  { %v3433_v56 = vadd.f32 %v3408_v23, %v3385_v7 }
 0x86d   :  { %v3410_v61 = vpop.permute.xlu1 %3409 }
 0x86e   :  { %v3434_v30 = vadd.f32 %v3410_v61, %v3386_v27  ;;  %v11621_v27 = vld [vmem:[#allocation54_spill] sm:$0xff] }
 0x86f   :  { %vm11622_vm2 = vnez %v11621_v27 }
 0x870   :  { %v6124_v4 = vpack.c.bf16 %v3434_v30, %v3433_v56 }
 0x872   :  { %6623 = vmatprep.subr.msk.bf16.mxu0 %vm11612_vm6, %v6124_v4 }
 0x873   :  { %v3412_v21 = vpop.permute.xlu0 %3411  ;;  %6624 = vmatpush3.bf16.msk.msra.mxu0 %vm11612_vm6, %v6124_v4 }
 0x874   :  { %v3435_v54 = vadd.f32 %v3412_v21, %v3387_v34  ;;  %v11625_v34 = vmov 0   ;;  %v11640_v21 = vld [vmem:[#allocation38_spill] sm:$0xff] }
 0x875   :  { %v3414_v39 = vpop.permute.xlu1 %3413 }
 0x876   :  { %v3436_v59 = vadd.f32 %v3414_v39, %v3388_v52  ;;  %v3827_v52 = vld [vmem:[#allocation17 + $0x8] sm:$0xff] }
 0x877   :  { %v6160_v31 = vcombine.high %v3827_v52, %v3827_v52 }
 0x878   :  { %v6127_v42 = vpack.c.bf16 %v3436_v59, %v3435_v54 }
 0x87a   :  { %6625 = vmatprep.subr.msk.bf16.mxu0 %vm11612_vm6, %v6127_v42 }
 0x87b   :  { %v3416_v14 = vpop.permute.xlu0 %3415  ;;  %6626 = vmatpush3.bf16.msk.msra.mxu0 %vm11612_vm6, %v6127_v42 }
 0x87c   :  { %v3437_v41 = vadd.f32 %v3416_v14, %v3389_v48  ;;  %v9761_v48 = vpop.f32.mrb[189].mxu1 }
 0x87d   :  { %v3418_v16 = vpop.permute.xlu1 %3417  ;;  %v9763_v46 = vpop.f32.mrb[190].mxu1 }
 0x87e   :  { %v3438_v20 = vadd.f32 %v3418_v16, %v3390_v62  ;;  %v6159_v62 = vcombine.low %v3827_v52, %v3827_v52 }
 0x880   :  { %v6130_v22 = vpack.c.bf16 %v3438_v20, %v3437_v41 }
 0x882   :  { %6627 = vmatprep.subr.msk.bf16.mxu0 %vm11612_vm6, %v6130_v22 }
 0x883   :  { %v3420_v17 = vpop.permute.xlu0 %3419  ;;  %6628 = vmatpush3.bf16.msk.msra.mxu0 %vm11612_vm6, %v6130_v22  ;;  %v11650_v22 = vld [vmem:[#allocation39_spill] sm:$0xff] }
 0x884   :  { %v3439_v10 = vadd.f32 %v3420_v17, %v3391_v57  ;;  %v6164_v57 = vcombine.high %v3829_v32, %v3829_v32 }
 0x885   :  { %v3422_v45 = vpop.permute.xlu1 %3421 }
 0x886   :  { %v3440_v63 = vadd.f32 %v3422_v45, %v3392_v29  ;;  %v9765_v29 = vpop.f32.mrb[191].mxu1 }
 0x888   :  { %v6133_v55 = vpack.c.bf16 %v3440_v63, %v3439_v10 }
 0x88a   :  { %6629 = vmatprep.subr.msk.bf16.mxu0 %vm11612_vm6, %v6133_v55 }
 0x88b   :  { %v3424_v5 = vpop.permute.xlu0 %3423  ;;  %6630 = vmatpush3.bf16.msk.msra.mxu0 %vm11612_vm6, %v6133_v55 }
 0x88c   :  { %v3441_v25 = vadd.f32 %v3424_v5, %v3393_v37  ;;  %v9769_v37 = vpop.f32.mrb[192].mxu1 }
 0x88d   :  { %v3426_v24 = vpop.permute.xlu1 %3425  ;;  %v9771_v12 = vpop.f32.mrb[193].mxu1 }
 0x88e   :  { %v3442_v18 = vadd.f32 %v3426_v24, %v3394_v40  ;;  %v9775_v13 = vpop.f32.mrb[194].mxu1 }
 0x88f   :  { %v9779_v44 = vpop.f32.mrb[195].mxu1 }
 0x890   :  { %v6136_v38 = vpack.c.bf16 %v3442_v18, %v3441_v25  ;;  %v9781_v1 = vpop.f32.mrb[196].mxu1  ;;  %v11660_v18 = vld [vmem:[#allocation40_spill] sm:$0xff] }
 0x891   :  { %v9784_v50 = vpop.f32.mrb[197].mxu1 }
 0x892   :  { %6631 = vmatprep.subr.msk.bf16.mxu0 %vm11612_vm6, %v6136_v38  ;;  %v9787_v60 = vpop.f32.mrb[198].mxu1 }
 0x893   :  { %6632 = vmatpush3.bf16.msk.msra.mxu0 %vm11612_vm6, %v6136_v38  ;;  %v9789_v11 = vpop.f32.mrb[199].mxu1 }
 0x894   :  { %v9791_v36 = vpop.f32.mrb[200].mxu1 }
 0x895   :  { %v9793_v35 = vpop.f32.mrb[201].mxu1 }
 0x896   :  { %6634 = vmatmul.mubr.msk.bf16.vlgmr.msra.gmra.mrb[180].mxu0 %vm11615_vm11, %v11613_v53  ;;  %v9795_v51 = vpop.f32.mrb[202].mxu1 }
 0x897   :  { %6637 = vmatprep.mubr.msk.bf16.mxu0 %vm11617_vm1, %v11613_v53  ;;  %v9799_v58 = vpop.f32.mrb[203].mxu1 }
 0x898   :  { %v9802_v43 = vpop.f32.mrb[204].mxu1 }
 0x899   :  { %v9804_v15 = vpop.f32.mrb[205].mxu1 }
 0x89a   :  { %v9806_v23 = vpop.f32.mrb[206].mxu1 }
 0x89b   :  { %11635 = vst [vmem:[#allocation57_spill] sm:$0xff] %v9806_v23  ;;  %v9808_v61 = vpop.f32.mrb[207].mxu1 }
 0x89c   :  { %11636 = vst [vmem:[#allocation164_spill] sm:$0xff] %v9808_v61  ;;  %v9810_v56 = vpop.f32.mrb[208].mxu1 }
 0x89d   :  { %11637 = vst [vmem:[#allocation58_spill] sm:$0xff] %v9810_v56  ;;  %v9812_v30 = vpop.f32.mrb[209].mxu1 }
 0x89e   :  { %6638 = vmatmul.mubr.msk.bf16.gmra.mrb[184].mxu0 %vm8384_vm7, %v11613_v53  ;;  %vm11631_vm7 = vcmask 64512   ;;  %11638 = vst [vmem:[#allocation165_spill] sm:$0xff] %v9812_v30  ;;  %v9814_v4 = vpop.f32.mrb[210].mxu1 }
 0x89f   :  { %6641 = vmatprep.mubr.msk.bf16.mxu0 %vm8388_vm10, %v11613_v53  ;;  %11639 = vst [vmem:[#allocation60_spill] sm:$0xff] %v9814_v4  ;;  %v9818_v39 = vpop.f32.mrb[211].mxu1  ;;  %v11765_v4 = vld [vmem:[#allocation162_spill] sm:$0xff] }
 0x8a0   :  { %11642 = vst [vmem:[#allocation166_spill] sm:$0xff] %v9818_v39  ;;  %v9821_v54 = vpop.f32.mrb[212].mxu1 }
 0x8a1   :  { %11643 = vst [vmem:[#allocation61_spill] sm:$0xff] %v9821_v54  ;;  %v9823_v59 = vpop.f32.mrb[213].mxu1 }
 0x8a2   :  { %11644 = vst [vmem:[#allocation167_spill] sm:$0xff] %v9823_v59  ;;  %v9825_v42 = vpop.f32.mrb[214].mxu1 }
 0x8a3   :  { %11645 = vst [vmem:[#allocation62_spill] sm:$0xff] %v9825_v42  ;;  %v9827_v14 = vpop.f32.mrb[215].mxu1 }
 0x8a4   :  { %11646 = vst [vmem:[#allocation168_spill] sm:$0xff] %v9827_v14  ;;  %v9829_v16 = vpop.f32.mrb[216].mxu1 }
 0x8a5   :  { %11647 = vst [vmem:[#allocation63_spill] sm:$0xff] %v9829_v16  ;;  %v9831_v41 = vpop.f32.mrb[217].mxu1 }
 0x8a6   :  { %6642 = vmatmul.mubr.msk.bf16.gmra.mrb[188].mxu0 %vm8406_vm0, %v11613_v53  ;;  %11648 = vst [vmem:[#allocation169_spill] sm:$0xff] %v9831_v41  ;;  %v9833_v20 = vpop.f32.mrb[218].mxu1  ;;  %v11698_v41 = vld [vmem:[#allocation121_spill] sm:$0xff] }
 0x8a7   :  { %6645 = vmatprep.mubr.msk.bf16.mxu0 %vm11622_vm2, %v11613_v53  ;;  %vm11626_vm2 = vcmask 1043456   ;;  %11649 = vst [vmem:[#allocation64_spill] sm:$0xff] %v9833_v20  ;;  %v9837_v17 = vpop.f32.mrb[219].mxu1 }
 0x8a8   :  { %6174 = vmatprep.subr.msk.bf16.mxu0 %vm11626_vm2, %v6160_v31  ;;  %vm11627_vm0 = vmmov %vm11626_vm2  ;;  %11652 = vst [vmem:[#allocation170_spill] sm:$0xff] %v9837_v17  ;;  %v9840_v45 = vpop.f32.mrb[220].mxu1 }
 0x8a9   :  { %v3899_v33 = vsel %vm11627_vm0, %v6159_v62, 0  ;;  %vm11629_vm10 = vmmov %vm11627_vm0  ;;  %11653 = vst [vmem:[#allocation65_spill] sm:$0xff] %v9840_v45  ;;  %v9842_v10 = vpop.f32.mrb[221].mxu1 }
 0x8aa   :  { %4030 = vmatpush1.bf16.msra.mxu0 %v3899_v33  ;;  %v3911_v40 = vsel %vm11629_vm10, %v6163_v8, 0  ;;  %11654 = vst [vmem:[#allocation171_spill] sm:$0xff] %v9842_v10  ;;  %v9844_v63 = vpop.f32.mrb[222].mxu1 }
 0x8ab   :  { %11655 = vst [vmem:[#allocation66_spill] sm:$0xff] %v9844_v63  ;;  %v9846_v55 = vpop.f32.mrb[223].mxu1 }
 0x8ac   :  { %11656 = vst [vmem:[#allocation172_spill] sm:$0xff] %v9846_v55  ;;  %v9848_v5 = vpop.f32.mrb[224].mxu1 }
 0x8ad   :  { %11657 = vst [vmem:[#allocation67_spill] sm:$0xff] %v9848_v5  ;;  %v9850_v24 = vpop.f32.mrb[225].mxu1  ;;  %v11693_v5 = vld [vmem:[#allocation43_spill] sm:$0xff] }
 0x8ae   :  { %6646 = vmatmul.mubr.msk.bf16.gmra.mrb[192].mxu0 %vm11624_vm14, %v11613_v53  ;;  %vm11628_vm14 = vmmov %vm11627_vm0  ;;  %11658 = vst [vmem:[#allocation173_spill] sm:$0xff] %v9850_v24  ;;  %v9852_v25 = vpop.f32.mrb[226].mxu1 }
 0x8af   :  { %4061 = vmatprep.mubr.bf16.mxu0 %v11625_v34  ;;  %6192 = vmatprep.subr.msk.bf16.mxu0 %vm11628_vm14, %v6164_v57  ;;  %vm11634_vm0 = vmmov %vm11631_vm7  ;;  %11659 = vst [vmem:[#allocation68_spill] sm:$0xff] %v9852_v25  ;;  %v9856_v38 = vpop.f32.mrb[227].mxu1  ;;  %v11689_v25 = vld [vmem:[#allocation105_spill] sm:$0xff] }
 0x8b0   :  { %vm11641_vm10 = vmmov %vm11634_vm0  ;;  %11662 = vst [vmem:[#allocation174_spill] sm:$0xff] %v9856_v38  ;;  %v9859_v52 = vpop.f32.mrb[228].mxu1  ;;  %v9924_v38 = vld [vmem:[%s11012_s23] ss:$0 sm:$0xff] }
 0x8b1   :  { %vm11661_vm2 = vmmov %vm11634_vm0  ;;  %11663 = vst [vmem:[#allocation69_spill] sm:$0xff] %v9859_v52  ;;  %v9861_v32 = vpop.f32.mrb[229].mxu1 }
 0x8b2   :  { %11664 = vst [vmem:[#allocation175_spill] sm:$0xff] %v9861_v32  ;;  %v9863_v31 = vpop.f32.mrb[230].mxu1  ;;  %vm11671_vm14 = vmmov %vm11634_vm0 }
 0x8b3   :  { %11665 = vst [vmem:[#allocation29_spill] sm:$0xff] %v9863_v31  ;;  %v9865_v62 = vpop.f32.mrb[231].mxu1 }
 0x8b4   :  { %11666 = vst [vmem:[#allocation70_spill] sm:$0xff] %v9865_v62  ;;  %v9867_v57 = vpop.f32.mrb[232].mxu1 }
 0x8b5   :  { %11667 = vst [vmem:[#allocation176_spill] sm:$0xff] %v9867_v57  ;;  %v9869_v8 = vpop.f32.mrb[233].mxu1 }
 0x8b6   :  { %6175 = vmatmul.mubr.msk.bf16.vlgmr.msra.gmra.mrb[196].mxu0 %vm11631_vm7, %v11630_v26  ;;  %vm11651_vm7 = vmmov %vm11634_vm0  ;;  %11668 = vst [vmem:[#allocation71_spill] sm:$0xff] %v9869_v8  ;;  %v9871_v33 = vpop.f32.mrb[234].mxu1 }
 0x8b7   :  { %4071 = vmatprep.mubr.bf16.mxu0 %v11625_v34  ;;  %4256 = vmatpush1.bf16.msra.mxu0 %v3911_v40  ;;  %11669 = vst [vmem:[#allocation177_spill] sm:$0xff] %v9871_v33  ;;  %v11670_v40 = vld [vmem:[#allocation41_spill] sm:$0xff]  ;;  %v9910_v33 = vld [vmem:[%s11011_s22] ss:$0 sm:$0xff] }
 0x8b8   :  { %4594 = vmatprep.subr.bf16.mxu0 %v11632_v28  ;;  %v9875_v28 = vpop.f32.mrb[235].mxu1 }
 0x8b9   :  { %11672 = vst [vmem:[#allocation72_spill] sm:$0xff] %v9875_v28  ;;  %v9878_v3 = vpop.f32.mrb[236].mxu1  ;;  %v11680_v28 = vld [vmem:[#allocation42_spill] sm:$0xff] }
 0x8ba   :  { %11673 = vst [vmem:[#allocation178_spill] sm:$0xff] %v9878_v3  ;;  %v9880_v27 = vpop.f32.mrb[237].mxu1 }
 0x8bb   :  { %11674 = vst [vmem:[#allocation73_spill] sm:$0xff] %v9880_v27  ;;  %v9882_v0 = vpop.f32.mrb[238].mxu1 }
 0x8bc   :  { %11675 = vst [vmem:[#allocation179_spill] sm:$0xff] %v9882_v0  ;;  %v9884_v7 = vpop.f32.mrb[239].mxu1 }
 0x8bd   :  { %11676 = vst [vmem:[#allocation180_spill] sm:$0xff] %v9884_v7  ;;  %v9886_v49 = vpop.f32.mrb[240].mxu1 }
 0x8be   :  { %6176 = vmatmul.mubr.msk.bf16.gmra.mrb[200].mxu0 %vm11634_vm0, %v11633_v47  ;;  %11677 = vst [vmem:[#allocation74_spill] sm:$0xff] %v9886_v49  ;;  %v9888_v2 = vpop.f32.mrb[241].mxu1 }
 0x8bf   :  { %4081 = vmatprep.mubr.bf16.mxu0 %v11625_v34  ;;  %11678 = vst [vmem:[#allocation75_spill] sm:$0xff] %v9888_v2  ;;  %v9895_v6 = vpop.f32.mrb[242].mxu1 }
 0x8c0   :  { %11679 = vst [vmem:[#allocation183_spill] sm:$0xff] %v9895_v6  ;;  %v9899_v3 = vpop.f32.mrb[243].mxu1 }
 0x8c1   :  { %11681 = vst [vmem:[#allocation76_spill] sm:$0xff] %v9899_v3  ;;  %v9902_v7 = vpop.f32.mrb[244].mxu1  ;;  %v11685_v3 = vld [vmem:[#allocation99_spill] sm:$0xff] }
 0x8c2   :  { %11682 = vst [vmem:[#allocation184_spill] sm:$0xff] %v9902_v7  ;;  %v9905_v0 = vpop.f32.mrb[245].mxu1 }
 0x8c3   :  { %11683 = vst [vmem:[#allocation77_spill] sm:$0xff] %v9905_v0  ;;  %v9913_v57 = vpop.f32.mrb[246].mxu1 }
 0x8c4   :  { %11684 = vst [vmem:[#allocation187_spill] sm:$0xff] %v9913_v57  ;;  %v9917_v32 = vpop.f32.mrb[247].mxu1 }
 0x8c5   :  { %11686 = vst [vmem:[#allocation78_spill] sm:$0xff] %v9917_v32  ;;  %v11691_v32 = vld [vmem:[#allocation97_spill] sm:$0xff] }
 0x8c6   :  { %6177 = vmatmul.mubr.msk.bf16.gmra.mrb[204].mxu0 %vm11641_vm10, %v11640_v21  ;;  %vm11694_vm10 = vmmov %vm11634_vm0 }
 0x8c7   :  { %4091 = vmatprep.mubr.bf16.mxu0 %v11625_v34 }
 0x8ce   :  { %6178 = vmatmul.mubr.msk.bf16.gmra.mrb[208].mxu0 %vm11651_vm7, %v11650_v22  ;;  %vm11700_vm7 = vmmov %vm11634_vm0 }
 0x8cf   :  { %4101 = vmatprep.mubr.bf16.mxu0 %v11625_v34 }
 0x8d6   :  { %6179 = vmatmul.mubr.msk.bf16.gmra.mrb[212].mxu0 %vm11661_vm2, %v11660_v18  ;;  %vm11709_vm2 = vmmov %vm11634_vm0 }
 0x8d7   :  { %4111 = vmatprep.mubr.bf16.mxu0 %v11625_v34 }
 0x8de   :  { %6180 = vmatmul.mubr.msk.bf16.gmra.mrb[216].mxu0 %vm11671_vm14, %v11670_v40  ;;  %vm11718_vm14 = vmmov %vm11634_vm0 }
 0x8df   :  { %4121 = vmatprep.mubr.bf16.mxu0 %v11625_v34 }
 0x8e6   :  { %6181 = vmatmul.mubr.msk.bf16.gmra.mrb[220].mxu0 %vm11634_vm0, %v11680_v28 }
 0x8e7   :  { %4131 = vmatprep.mubr.bf16.mxu0 %v11625_v34 }
 0x8ee   :  { %6182 = vmatmul.mubr.msk.bf16.gmra.mrb[224].mxu0 %vm11694_vm10, %v11693_v5  ;;  %vm11728_vm10 = vmmov %vm11634_vm0 }
 0x8ef   :  { %4287 = vmatprep.mubr.bf16.mxu0 %v11625_v34 }
 0x8f6   :  { %6193 = vmatmul.mubr.msk.bf16.vlgmr.msra.gmra.mrb[228].mxu0 %vm11700_vm7, %v11630_v26  ;;  %vm11735_vm7 = vmmov %vm11634_vm0 }
 0x8f7   :  { %4297 = vmatprep.mubr.bf16.mxu0 %v11625_v34 }
 0x8fe   :  { %6194 = vmatmul.mubr.msk.bf16.gmra.mrb[232].mxu0 %vm11709_vm2, %v11633_v47 }
 0x8ff   :  { %4307 = vmatprep.mubr.bf16.mxu0 %v11625_v34 }
 0x906   :  { %6195 = vmatmul.mubr.msk.bf16.gmra.mrb[236].mxu0 %vm11718_vm14, %v11640_v21 }
 0x907   :  { %4317 = vmatprep.mubr.bf16.mxu0 %v11625_v34 }
 0x90e   :  { %6196 = vmatmul.mubr.msk.bf16.gmra.mrb[240].mxu0 %vm11634_vm0, %v11650_v22 }
 0x90f   :  { %4327 = vmatprep.mubr.bf16.mxu0 %v11625_v34 }
 0x916   :  { %6197 = vmatmul.mubr.msk.bf16.gmra.mrb[244].mxu0 %vm11728_vm10, %v11660_v18 }
 0x917   :  { %4337 = vmatprep.mubr.bf16.mxu0 %v11625_v34 }
 0x91e   :  { %6198 = vmatmul.mubr.msk.bf16.gmra.mrb[248].mxu0 %vm11735_vm7, %v11670_v40 }
 0x91f   :  { %4347 = vmatprep.mubr.bf16.mxu0 %v11625_v34 }
 0x969   :  { %v6635_v27 = vpop.f32.mrb[180].mxu0 }
 0x96a   :  { %v3734_v49 = vadd.f32 %v6635_v27, %v9893_v19  ;;  %v3662_v2 = vpop.f32.mrb[181].mxu0  ;;  %v11687_v27 = vld [vmem:[#allocation91_spill] sm:$0xff] }
 0x96b   :  { %v3732_v6 = vadd.f32 %v9893_v19, %v3662_v2  ;;  %v6636_v8 = vpop.f32.mrb[182].mxu0  ;;  %v9926_v2 = vpop.f32.mrb[248].mxu1 }
 0x96c   :  { %v3750_v62 = vmul.f32 %v3734_v49, %v11685_v3  ;;  %v3735_v31 = vadd.f32 %v6636_v8, %v9893_v19  ;;  %v3665_v7 = vpop.f32.mrb[183].mxu0  ;;  %11688 = vst [vmem:[#allocation190_spill] sm:$0xff] %v9926_v2  ;;  %v9930_v3 = vpop.f32.mrb[249].mxu1 }
 0x96d   :  { %v3748_v52 = vmul.f32 %v3732_v6, %v11687_v27  ;;  %v3733_v0 = vadd.f32 %v9893_v19, %v3665_v7  ;;  %11690 = vst [vmem:[#allocation79_spill] sm:$0xff] %v9930_v3  ;;  %v9934_v6 = vpop.f32.mrb[250].mxu1  ;;  %v11696_v3 = vld [vmem:[#allocation115_spill] sm:$0xff] }
 0x96e   :  { %v3773_v57 = vmul.f32 %v9910_v33, %v3750_v62  ;;  %v3751_v49 = vmul.f32 %v3735_v31, %v11689_v25  ;;  %11692 = vst [vmem:[#allocation80_spill] sm:$0xff] %v9934_v6  ;;  %v9940_v2 = vpop.f32.mrb[251].mxu1 }
 0x96f   :  { %v3771_v8 = vmul.f32 %v9910_v33, %v3748_v52  ;;  %v3749_v24 = vmul.f32 %v3733_v0, %v11691_v32  ;;  %11695 = vst [vmem:[#allocation195_spill] sm:$0xff] %v9940_v2 }
 0x970   :  { %v3774_v7 = vmul.f32 %v9910_v33, %v3751_v49  ;;  %v3796_v27 = vadd.f32 %v9924_v38, %v3773_v57 }
 0x971   :  { %v3772_v62 = vmul.f32 %v9910_v33, %v3749_v24  ;;  %v6639_v25 = vpop.f32.mrb[184].mxu0  ;;  %v3794_v31 = vadd.f32 %v9924_v38, %v3771_v8  ;;  %v11697_v8 = vld [vmem:[#allocation107_spill] sm:$0xff] }
 0x972   :  { %v3738_v0 = vadd.f32 %v6639_v25, %v9893_v19  ;;  %v3678_v52 = vpop.f32.mrb[185].mxu0  ;;  %v3797_v32 = vadd.f32 %v9924_v38, %v3774_v7  ;;  %v3812_v63 = vmax.f32 %v3796_v27, 0.0 }
 0x973   :  { %v3736_v49 = vadd.f32 %v9893_v19, %v3678_v52  ;;  %v6640_v57 = vpop.f32.mrb[186].mxu0  ;;  %v3795_v6 = vadd.f32 %v9924_v38, %v3772_v62  ;;  %v3810_v25 = vmax.f32 %v3794_v31, 0.0  ;;  %v11702_v31 = vld [vmem:[#allocation144_spill] sm:$0xff] }
 0x974   :  { %v3754_v55 = vmul.f32 %v3738_v0, %v11696_v3  ;;  %v3739_v2 = vadd.f32 %v6640_v57, %v9893_v19  ;;  %v3681_v24 = vpop.f32.mrb[187].mxu0  ;;  %v3813_v10 = vmax.f32 %v3797_v32, 0.0  ;;  %v11699_v3 = vld [vmem:[#allocation113_spill] sm:$0xff] }
 0x975   :  { %v3752_v45 = vmul.f32 %v3736_v49, %v11697_v8  ;;  %v3737_v17 = vadd.f32 %v9893_v19, %v3681_v24  ;;  %v3811_v20 = vmax.f32 %v3795_v6, 0.0  ;;  %v11703_v49 = vld [vmem:[#allocation124_spill] sm:$0xff] }
 0x976   :  { %v3777_v7 = vmul.f32 %v9910_v33, %v3754_v55  ;;  %v3755_v52 = vmul.f32 %v3739_v2, %v11698_v41  ;;  %v9955_v16 = vpack.c.bf16 %v3813_v10, %v3812_v63  ;;  %v11701_v10 = vld [vmem:[#allocation143_spill] sm:$0xff] }
 0x977   :  { %v3775_v62 = vmul.f32 %v9910_v33, %v3752_v45  ;;  %v3753_v0 = vmul.f32 %v3737_v17, %v11699_v3  ;;  %v9959_v57 = vpack.c.bf16 %v3811_v20, %v3810_v25  ;;  %4595 = vmatpush1.bf16.msra.mxu0 %v11701_v10  ;;  %v11705_v10 = vld [vmem:[#allocation126_spill] sm:$0xff] }
 0x978   :  { %v3778_v27 = vmul.f32 %v9910_v33, %v3755_v52  ;;  %v3800_v32 = vadd.f32 %v9924_v38, %v3777_v7  ;;  %4596 = vmatprep.subr.bf16.mxu0 %v11702_v31 }
 0x979   :  { %v3776_v6 = vmul.f32 %v9910_v33, %v3753_v0  ;;  %v6643_v55 = vpop.f32.mrb[188].mxu0  ;;  %6649 = vmatprep.subr.bf16.mxu1 %v9959_v57  ;;  %v3798_v41 = vadd.f32 %v9924_v38, %v3775_v62  ;;  %v11704_v62 = vld [vmem:[#allocation122_spill] sm:$0xff] }
 0x97a   :  { %v3742_v17 = vadd.f32 %v6643_v55, %v9893_v19  ;;  %v3694_v20 = vpop.f32.mrb[189].mxu0  ;;  %6650 = vmatpush3.bf16.msra.mxu1 %v9959_v57  ;;  %v3801_v45 = vadd.f32 %v9924_v38, %v3778_v27  ;;  %v3816_v7 = vmax.f32 %v3800_v32, 0.0  ;;  %v11707_v32 = vld [vmem:[#allocation123_spill] sm:$0xff] }
 0x97b   :  { %v3740_v26 = vadd.f32 %v9893_v19, %v3694_v20  ;;  %v6644_v63 = vpop.f32.mrb[190].mxu0  ;;  %6651 = vmatprep.subr.bf16.mxu1 %v9955_v16  ;;  %v3799_v2 = vadd.f32 %v9924_v38, %v3776_v6  ;;  %v3814_v27 = vmax.f32 %v3798_v41, 0.0 }
 0x97c   :  { %v3758_v24 = vmul.f32 %v3742_v17, %v11703_v49  ;;  %v3743_v8 = vadd.f32 %v6644_v63, %v9893_v19  ;;  %v3697_v25 = vpop.f32.mrb[191].mxu0  ;;  %v3817_v52 = vmax.f32 %v3801_v45, 0.0  ;;  %v11706_v17 = vld [vmem:[#allocation145_spill] sm:$0xff] }
 0x97d   :  { %v3756_v3 = vmul.f32 %v3740_v26, %v11704_v62  ;;  %v3741_v0 = vadd.f32 %v9893_v19, %v3697_v25  ;;  %v3815_v55 = vmax.f32 %v3799_v2, 0.0  ;;  %4597 = vmatpush1.bf16.msra.mxu0 %v11706_v17  ;;  %v11708_v26 = vld [vmem:[#allocation146_spill] sm:$0xff] }
 0x97e   :  { %v3781_v20 = vmul.f32 %v9910_v33, %v3758_v24  ;;  %v3759_v14 = vmul.f32 %v3743_v8, %v11705_v10  ;;  %6652 = vmatpush3.bf16.msra.mxu1 %v9955_v16  ;;  %v9984_v6 = vpack.c.bf16 %v3817_v52, %v3816_v7  ;;  %4598 = vmatprep.subr.bf16.mxu0 %v11708_v26  ;;  %v11710_v52 = vld [vmem:[#allocation147_spill] sm:$0xff] }
 0x97f   :  { %v3779_v63 = vmul.f32 %v9910_v33, %v3756_v3  ;;  %v3757_v45 = vmul.f32 %v3741_v0, %v11707_v32  ;;  %v9989_v31 = vpack.c.bf16 %v3815_v55, %v3814_v27  ;;  %v11711_v0 = vld [vmem:[#allocation148_spill] sm:$0xff]  ;;  %v11712_v27 = vld [vmem:[#allocation135_spill] sm:$0xff]  ;;  %v11713_v32 = vld [vmem:[#allocation130_spill] sm:$0xff] }
 0x980   :  { %v3782_v41 = vmul.f32 %v9910_v33, %v3759_v14  ;;  %v3804_v2 = vadd.f32 %v9924_v38, %v3781_v20 }
 0x981   :  { %v3780_v49 = vmul.f32 %v9910_v33, %v3757_v45  ;;  %v6647_v24 = vpop.f32.mrb[192].mxu0  ;;  %6653 = vmatprep.subr.bf16.mxu1 %v9989_v31  ;;  %v3802_v8 = vadd.f32 %v9924_v38, %v3779_v63  ;;  %4599 = vmatpush1.bf16.msra.mxu0 %v11710_v52  ;;  %v11714_v52 = vld [vmem:[#allocation137_spill] sm:$0xff] }
 0x982   :  { %v3746_v25 = vadd.f32 %v6647_v24, %v9893_v19  ;;  %v3710_v7 = vpop.f32.mrb[193].mxu0  ;;  %6654 = vmatpush3.bf16.msra.mxu1 %v9989_v31  ;;  %v3805_v14 = vadd.f32 %v9924_v38, %v3782_v41  ;;  %4600 = vmatprep.subr.bf16.mxu0 %v11711_v0  ;;  %v3820_v17 = vmax.f32 %v3804_v2, 0.0  ;;  %v11716_v2 = vld [vmem:[#allocation131_spill] sm:$0xff] }
 0x983   :  { %v3744_v47 = vadd.f32 %v9893_v19, %v3710_v7  ;;  %v6648_v62 = vpop.f32.mrb[194].mxu0  ;;  %6655 = vmatprep.subr.bf16.mxu1 %v9984_v6  ;;  %v3803_v3 = vadd.f32 %v9924_v38, %v3780_v49  ;;  %v3818_v41 = vmax.f32 %v3802_v8, 0.0 }
 0x984   :  { %v3762_v55 = vmul.f32 %v3746_v25, %v11712_v27  ;;  %v3747_v20 = vadd.f32 %v6648_v62, %v9893_v19  ;;  %v3713_v10 = vpop.f32.mrb[195].mxu0  ;;  %v3821_v63 = vmax.f32 %v3805_v14, 0.0  ;;  %v11715_v25 = vld [vmem:[#allocation149_spill] sm:$0xff] }
 0x985   :  { %v3760_v45 = vmul.f32 %v3744_v47, %v11713_v32  ;;  %v3745_v26 = vadd.f32 %v9893_v19, %v3713_v10  ;;  %v3819_v24 = vmax.f32 %v3803_v3, 0.0  ;;  %4601 = vmatpush1.bf16.msra.mxu0 %v11715_v25  ;;  %v11717_v47 = vld [vmem:[#allocation150_spill] sm:$0xff]  ;;  %v11720_v10 = vld [vmem:[#allocation152_spill] sm:$0xff]  ;;  %v11727_v25 = vld [vmem:[#allocation163_spill] sm:$0xff] }
 0x986   :  { %v3785_v7 = vmul.f32 %v9910_v33, %v3762_v55  ;;  %v3763_v42 = vmul.f32 %v3747_v20, %v11714_v52  ;;  %6656 = vmatpush3.bf16.msra.mxu1 %v9984_v6  ;;  %v10015_v49 = vpack.c.bf16 %v3821_v63, %v3820_v17  ;;  %4602 = vmatprep.subr.bf16.mxu0 %v11717_v47  ;;  %v11719_v20 = vld [vmem:[#allocation151_spill] sm:$0xff] }
 0x987   :  { %v3783_v62 = vmul.f32 %v9910_v33, %v3760_v45  ;;  %v3761_v14 = vmul.f32 %v3745_v26, %v11716_v2  ;;  %v10020_v0 = vpack.c.bf16 %v3819_v24, %v3818_v41  ;;  %v11721_v45 = vld [vmem:[#allocation153_spill] sm:$0xff]  ;;  %v11722_v41 = vld [vmem:[#allocation154_spill] sm:$0xff]  ;;  %v11724_v24 = vld [vmem:[#allocation159_spill] sm:$0xff] }
 0x988   :  { %v3786_v19 = vmul.f32 %v9910_v33, %v3763_v42  ;;  %v3808_v8 = vadd.f32 %v9924_v38, %v3785_v7  ;;  %v11725_v7 = vld [vmem:[#allocation158_spill] sm:$0xff]  ;;  %v11726_v52 = vld [vmem:[#allocation59_spill] sm:$0xff]  ;;  %v11731_v2 = vld [vmem:[#allocation56_spill] sm:$0xff] }
 0x989   :  { %v3784_v3 = vmul.f32 %v9910_v33, %v3761_v14  ;;  %6657 = vmatprep.subr.bf16.mxu1 %v10020_v0  ;;  %v3806_v27 = vadd.f32 %v9924_v38, %v3783_v62  ;;  %4603 = vmatpush1.bf16.msra.mxu0 %v11719_v20  ;;  %v11732_v14 = vld [vmem:[#allocation125_spill] sm:$0xff]  ;;  %v11733_v47 = vld [vmem:[#allocation127_spill] sm:$0xff]  ;;  %v11741_v20 = vld [vmem:[#allocation136_spill] sm:$0xff] }
 0x98a   :  { %6658 = vmatpush3.bf16.msra.mxu1 %v10020_v0  ;;  %v3809_v55 = vadd.f32 %v9924_v38, %v3786_v19  ;;  %4604 = vmatprep.subr.bf16.mxu0 %v11720_v10  ;;  %v3824_v21 = vmax.f32 %v3808_v8, 0.0  ;;  %v11734_v19 = vld [vmem:[#allocation129_spill] sm:$0xff]  ;;  %v11745_v10 = vld [vmem:[#allocation134_spill] sm:$0xff] }
 0x98b   :  { %6659 = vmatprep.subr.bf16.mxu1 %v10015_v49  ;;  %v3807_v42 = vadd.f32 %v9924_v38, %v3784_v3  ;;  %v3822_v17 = vmax.f32 %v3806_v27, 0.0  ;;  %v11723_v38 = vld [vmem:[#allocation155_spill] sm:$0xff]  ;;  %v11738_v3 = vld [vmem:[#allocation128_spill] sm:$0xff] }
 0x98c   :  { %v3825_v33 = vmax.f32 %v3809_v55, 0.0  ;;  %v11739_v27 = vld [vmem:[#allocation132_spill] sm:$0xff]  ;;  %v11740_v55 = vld [vmem:[#allocation133_spill] sm:$0xff] }
 0x98d   :  { %v3823_v63 = vmax.f32 %v3807_v42, 0.0  ;;  %4605 = vmatpush1.bf16.msra.mxu0 %v11721_v45  ;;  %v11752_v45 = vld [vmem:[#allocation156_spill] sm:$0xff] }
 0x98e   :  { %6660 = vmatpush3.bf16.msra.mxu1 %v10015_v49  ;;  %v10038_v32 = vpack.c.bf16 %v3825_v33, %v3824_v21  ;;  %4606 = vmatprep.subr.bf16.mxu0 %v11722_v41  ;;  %v11746_v21 = vld [vmem:[#allocation138_spill] sm:$0xff]  ;;  %v11747_v33 = vld [vmem:[#allocation139_spill] sm:$0xff]  ;;  %v11753_v41 = vld [vmem:[#allocation157_spill] sm:$0xff] }
 0x98f   :  { %v10041_v26 = vpack.c.bf16 %v3823_v63, %v3822_v17  ;;  %v11748_v17 = vld [vmem:[#allocation140_spill] sm:$0xff]  ;;  %v11751_v63 = vld [vmem:[#allocation141_spill] sm:$0xff] }
 0x991   :  { %6661 = vmatprep.subr.bf16.mxu1 %v10041_v26  ;;  %4607 = vmatpush1.bf16.msra.mxu0 %v11723_v38  ;;  %v11754_v38 = vld [vmem:[#allocation160_spill] sm:$0xff] }
 0x992   :  { %6662 = vmatpush3.bf16.msra.mxu1 %v10041_v26  ;;  %4608 = vmatprep.subr.bf16.mxu0 %v11724_v24  ;;  %v10106_v24 = vpop.f32.mrb[196].mxu0 }
 0x993   :  { %6663 = vmatprep.subr.bf16.mxu1 %v10038_v32 }
 0x995   :  { %4609 = vmatpush1.bf16.msra.mxu0 %v11725_v7  ;;  %v10108_v7 = vpop.f32.mrb[197].mxu0 }
 0x996   :  { %6664 = vmatpush3.bf16.msra.mxu1 %v10038_v32  ;;  %4820 = vmatprep.subr.bf16.mxu0 %v11727_v25 }
 0x997   :  { %4481 = vmatprep.subr.bf16.mxu1 %v11726_v52 }
 0x999   :  { %6666 = vmatmul.mubr.msk.bf16.vlgmr.msra.gmra.mrb[252].mxu1 %vm7721_vm5, %v11613_v53  ;;  %vm11742_vm5 = vmmov %vm11634_vm0 }
 0x99a   :  { %6669 = vmatprep.mubr.msk.bf16.mxu1 %vm7737_vm9, %v11613_v53  ;;  %4482 = vmatpush1.bf16.msra.mxu1 %v11731_v2  ;;  %vm11749_vm9 = vmmov %vm11634_vm0 }
 0x99b   :  { %4483 = vmatprep.subr.bf16.mxu1 %v11732_v14  ;;  %6199 = vmatmul.mubr.msk.bf16.gmra.mrb[252].mxu0 %vm11742_vm5, %v11680_v28 }
 0x99c   :  { %4357 = vmatprep.mubr.bf16.mxu0 %v11625_v34 }
 0x99e   :  { %4484 = vmatpush1.bf16.msra.mxu1 %v11733_v47 }
 0x99f   :  { %4485 = vmatprep.subr.bf16.mxu1 %v11734_v19 }
 0x9a1   :  { %6670 = vmatmul.mubr.msk.bf16.gmra.mrb[0].mxu1 %vm7746_vm12, %v11613_v53 }
 0x9a2   :  { %6673 = vmatprep.mubr.msk.bf16.mxu1 %vm7755_vm15, %v11613_v53  ;;  %4486 = vmatpush1.bf16.msra.mxu1 %v11738_v3 }
 0x9a3   :  { %4487 = vmatprep.subr.bf16.mxu1 %v11739_v27  ;;  %6200 = vmatmul.mubr.msk.bf16.gmra.mrb[0].mxu0 %vm11749_vm9, %v11693_v5  ;;  %v10110_v5 = vpop.f32.mrb[198].mxu0 }
 0x9a4   :  { %4626 = vmatprep.mubr.bf16.mxu0 %v11625_v34  ;;  %v10112_v52 = vpop.f32.mrb[199].mxu0 }
 0x9a5   :  { %v10114_v25 = vpop.f32.mrb[200].mxu0 }
 0x9a6   :  { %4488 = vmatpush1.bf16.msra.mxu1 %v11740_v55  ;;  %v10116_v22 = vpop.f32.mrb[201].mxu0 }
 0x9a7   :  { %4489 = vmatprep.subr.bf16.mxu1 %v11741_v20  ;;  %v10118_v62 = vpop.f32.mrb[202].mxu0 }
 0x9a8   :  { %v10120_v2 = vpop.f32.mrb[203].mxu0 }
 0x9a9   :  { %6674 = vmatmul.mubr.msk.bf16.gmra.mrb[4].mxu1 %vm7764_vm3, %v11613_v53  ;;  %v10122_v14 = vpop.f32.mrb[204].mxu0 }
 0x9aa   :  { %6677 = vmatprep.mubr.msk.bf16.mxu1 %vm7773_vm8, %v11613_v53  ;;  %4490 = vmatpush1.bf16.msra.mxu1 %v11745_v10  ;;  %v10124_v47 = vpop.f32.mrb[205].mxu0 }
 0x9ab   :  { %4491 = vmatprep.subr.bf16.mxu1 %v11746_v21  ;;  %v10126_v19 = vpop.f32.mrb[206].mxu0 }
 0x9ac   :  { %v10128_v18 = vpop.f32.mrb[207].mxu0 }
 0x9ad   :  { %v10130_v8 = vpop.f32.mrb[208].mxu0 }
 0x9ae   :  { %4492 = vmatpush1.bf16.msra.mxu1 %v11747_v33  ;;  %v10132_v3 = vpop.f32.mrb[209].mxu0 }
 0x9af   :  { %4493 = vmatprep.subr.bf16.mxu1 %v11748_v17  ;;  %v10134_v27 = vpop.f32.mrb[210].mxu0 }
 0x9b0   :  { %v10136_v55 = vpop.f32.mrb[211].mxu0 }
 0x9b1   :  { %6678 = vmatmul.mubr.msk.bf16.gmra.mrb[8].mxu1 %vm7782_vm13, %v11613_v53  ;;  %v10138_v20 = vpop.f32.mrb[212].mxu0 }
 0x9b2   :  { %4494 = vmatpush1.bf16.msra.mxu1 %v11751_v63  ;;  %4513 = vmatprep.mubr.bf16.mxu1 %v11625_v34  ;;  %11755 = vst [vmem:[#allocation196_spill] sm:$0xff] %v10138_v20  ;;  %v10140_v40 = vpop.f32.mrb[213].mxu0  ;;  %v11797_v20 = vld [vmem:[#allocation213_spill] sm:$0xff] }
 0x9b3   :  { %4495 = vmatprep.subr.bf16.mxu1 %v11752_v45  ;;  %11756 = vst [vmem:[#allocation81_spill] sm:$0xff] %v10140_v40  ;;  %v10142_v42 = vpop.f32.mrb[214].mxu0  ;;  %v11786_v40 = vld [vmem:[#allocation201_spill] sm:$0xff] }
 0x9b4   :  { %11757 = vst [vmem:[#allocation199_spill] sm:$0xff] %v10142_v42  ;;  %v10144_v10 = vpop.f32.mrb[215].mxu0  ;;  %v11774_v42 = vld [vmem:[#allocation189_spill] sm:$0xff] }
 0x9b5   :  { %11758 = vst [vmem:[#allocation202_spill] sm:$0xff] %v10144_v10  ;;  %v10146_v21 = vpop.f32.mrb[216].mxu0 }
 0x9b6   :  { %4496 = vmatpush1.bf16.msra.mxu1 %v11753_v41  ;;  %11759 = vst [vmem:[#allocation82_spill] sm:$0xff] %v10146_v21  ;;  %v10148_v17 = vpop.f32.mrb[217].mxu0 }
 0x9b7   :  { %4707 = vmatprep.subr.bf16.mxu1 %v11754_v38  ;;  %11760 = vst [vmem:[#allocation83_spill] sm:$0xff] %v10148_v17  ;;  %v10150_v63 = vpop.f32.mrb[218].mxu0 }
 0x9b8   :  { %11761 = vst [vmem:[#allocation207_spill] sm:$0xff] %v10150_v63  ;;  %v10152_v41 = vpop.f32.mrb[219].mxu0  ;;  %v11764_v63 = vld [vmem:[#allocation161_spill] sm:$0xff] }
 0x9b9   :  { %11762 = vst [vmem:[#allocation84_spill] sm:$0xff] %v10152_v41  ;;  %v10162_v39 = vpop.f32.mrb[220].mxu0 }
 0x9ba   :  { %11763 = vst [vmem:[#allocation208_spill] sm:$0xff] %v10162_v39 }
 0xa6c   :  { %v6667_v33 = vpop.f32.mrb[252].mxu1 }
 0xa6d   :  { %v4410_v28 = vpop.f32.mrb[253].mxu1 }
 0xa6e   :  { %v6668_v45 = vpop.f32.mrb[254].mxu1 }
 0xa6f   :  { %v10154_v38 = vpack.c.bf16 %v6668_v45, %v6667_v33  ;;  %v4413_v59 = vpop.f32.mrb[255].mxu1  ;;  %v10166_v33 = vpop.f32.mrb[221].mxu0 }
 0xa70   :  { %v10156_v54 = vpack.c.bf16 %v4413_v59, %v4410_v28  ;;  %11766 = vst [vmem:[#allocation85_spill] sm:$0xff] %v10166_v33  ;;  %v11767_v59 = vld [vmem:[#allocation181_spill] sm:$0xff]  ;;  %v11768_v28 = vld [vmem:[#allocation182_spill] sm:$0xff]  ;;  %v10170_v41 = vpop.f32.mrb[222].mxu0  ;;  %v11773_v33 = vld [vmem:[#allocation188_spill] sm:$0xff] }
 0xa71   :  { %11769 = vst [vmem:[#allocation211_spill] sm:$0xff] %v10170_v41  ;;  %v10172_v30 = vpop.f32.mrb[223].mxu0 }
 0xa72   :  { %4514 = vmatmul.mubr.bf16.vlgmr.msra.gmra.mrb[12].mxu1 %v10156_v54  ;;  %4627 = vmatmul.mubr.bf16.vlgmr.msra.gmra.mrb[4].mxu0 %v10156_v54  ;;  %11770 = vst [vmem:[#allocation214_spill] sm:$0xff] %v10172_v30 }
 0xa73   :  { %4523 = vmatprep.mubr.bf16.mxu1 %v11625_v34  ;;  %4636 = vmatprep.mubr.bf16.mxu0 %v11625_v34 }
 0xa74   :  { %v6671_v17 = vpop.f32.mrb[0].mxu1  ;;  %4708 = vmatpush1.bf16.msra.mxu1 %v11764_v63  ;;  %4821 = vmatpush1.bf16.msra.mxu0 %v11765_v4  ;;  %v11771_v63 = vld [vmem:[#allocation185_spill] sm:$0xff]  ;;  %v11772_v4 = vld [vmem:[#allocation186_spill] sm:$0xff] }
 0xa75   :  { %v4426_v45 = vpop.f32.mrb[1].mxu1  ;;  %4709 = vmatprep.subr.bf16.mxu1 %v11767_v59  ;;  %4822 = vmatprep.subr.bf16.mxu0 %v11768_v28  ;;  %v11779_v28 = vld [vmem:[#allocation193_spill] sm:$0xff] }
 0xa76   :  { %v6672_v21 = vpop.f32.mrb[2].mxu1 }
 0xa77   :  { %v10174_v56 = vpack.c.bf16 %v6672_v21, %v6671_v17  ;;  %v4429_v39 = vpop.f32.mrb[3].mxu1  ;;  %v10186_v21 = vpop.f32.mrb[224].mxu0  ;;  %v11776_v17 = vld [vmem:[#allocation191_spill] sm:$0xff] }
 0xa78   :  { %v10176_v10 = vpack.c.bf16 %v4429_v39, %v4426_v45  ;;  %4710 = vmatpush1.bf16.msra.mxu1 %v11771_v63  ;;  %4823 = vmatpush1.bf16.msra.mxu0 %v11772_v4  ;;  %11775 = vst [vmem:[#allocation86_spill] sm:$0xff] %v10186_v21  ;;  %v11777_v45 = vld [vmem:[#allocation192_spill] sm:$0xff]  ;;  %v10190_v59 = vpop.f32.mrb[225].mxu0 }
 0xa79   :  { %4711 = vmatprep.subr.bf16.mxu1 %v11773_v33  ;;  %4824 = vmatprep.subr.bf16.mxu0 %v11774_v42  ;;  %11778 = vst [vmem:[#allocation87_spill] sm:$0xff] %v10190_v59  ;;  %v11780_v42 = vld [vmem:[#allocation194_spill] sm:$0xff]  ;;  %v10194_v63 = vpop.f32.mrb[226].mxu0  ;;  %v11785_v59 = vld [vmem:[#allocation200_spill] sm:$0xff] }
 0xa7a   :  { %4524 = vmatmul.mubr.bf16.gmra.mrb[16].mxu1 %v10154_v38  ;;  %4637 = vmatmul.mubr.bf16.gmra.mrb[8].mxu0 %v10154_v38  ;;  %11781 = vst [vmem:[#allocation88_spill] sm:$0xff] %v10194_v63  ;;  %v10196_v30 = vpop.f32.mrb[227].mxu0 }
 0xa7b   :  { %4533 = vmatprep.mubr.bf16.mxu1 %v11625_v34  ;;  %4646 = vmatprep.mubr.bf16.mxu0 %v11625_v34  ;;  %11782 = vst [vmem:[#allocation89_spill] sm:$0xff] %v10196_v30 }
 0xa7c   :  { %v6675_v39 = vpop.f32.mrb[4].mxu1  ;;  %4712 = vmatpush1.bf16.msra.mxu1 %v11776_v17  ;;  %4825 = vmatpush1.bf16.msra.mxu0 %v11777_v45  ;;  %v11783_v17 = vld [vmem:[#allocation197_spill] sm:$0xff]  ;;  %v11784_v45 = vld [vmem:[#allocation198_spill] sm:$0xff] }
 0xa7d   :  { %v4442_v33 = vpop.f32.mrb[5].mxu1  ;;  %4713 = vmatprep.subr.bf16.mxu1 %v11779_v28  ;;  %4826 = vmatprep.subr.bf16.mxu0 %v11780_v42  ;;  %v11789_v28 = vld [vmem:[#allocation204_spill] sm:$0xff] }
 0xa7e   :  { %v6676_v4 = vpop.f32.mrb[6].mxu1 }
 0xa7f   :  { %v10198_v41 = vpack.c.bf16 %v6676_v4, %v6675_v39  ;;  %v4445_v21 = vpop.f32.mrb[7].mxu1  ;;  %v10210_v39 = vpop.f32.mrb[228].mxu0  ;;  %v11791_v4 = vld [vmem:[#allocation205_spill] sm:$0xff] }
 0xa80   :  { %v10200_v61 = vpack.c.bf16 %v4445_v21, %v4442_v33  ;;  %4714 = vmatpush1.bf16.msra.mxu1 %v11783_v17  ;;  %4827 = vmatpush1.bf16.msra.mxu0 %v11784_v45  ;;  %11787 = vst [vmem:[#allocation90_spill] sm:$0xff] %v10210_v39  ;;  %v11788_v33 = vld [vmem:[#allocation203_spill] sm:$0xff]  ;;  %v10214_v42 = vpop.f32.mrb[229].mxu0 }
 0xa81   :  { %4715 = vmatprep.subr.bf16.mxu1 %v11785_v59  ;;  %4828 = vmatprep.subr.bf16.mxu0 %v11786_v40  ;;  %11790 = vst [vmem:[#allocation92_spill] sm:$0xff] %v10214_v42  ;;  %v11792_v40 = vld [vmem:[#allocation206_spill] sm:$0xff]  ;;  %v10218_v17 = vpop.f32.mrb[230].mxu0  ;;  %v11796_v42 = vld [vmem:[#allocation212_spill] sm:$0xff] }
 0xa82   :  { %4534 = vmatmul.mubr.bf16.gmra.mrb[20].mxu1 %v10176_v10  ;;  %4647 = vmatmul.mubr.bf16.gmra.mrb[12].mxu0 %v10176_v10  ;;  %v10220_v30 = vpop.f32.mrb[231].mxu0 }
 0xa83   :  { %4543 = vmatprep.mubr.bf16.mxu1 %v11625_v34  ;;  %4656 = vmatprep.mubr.bf16.mxu0 %v11625_v34  ;;  %11793 = vst [vmem:[#allocation93_spill] sm:$0xff] %v10220_v30  ;;  %v11806_v30 = vld [vmem:[#allocation219_spill] sm:$0xff] }
 0xa84   :  { %v6679_v21 = vpop.f32.mrb[8].mxu1  ;;  %4716 = vmatpush1.bf16.msra.mxu1 %v11788_v33  ;;  %4829 = vmatpush1.bf16.msra.mxu0 %v11789_v28  ;;  %v11794_v33 = vld [vmem:[#allocation209_spill] sm:$0xff]  ;;  %v11795_v28 = vld [vmem:[#allocation210_spill] sm:$0xff] }
 0xa85   :  { %v4458_v59 = vpop.f32.mrb[9].mxu1  ;;  %4717 = vmatprep.subr.bf16.mxu1 %v11791_v4  ;;  %4830 = vmatprep.subr.bf16.mxu0 %v11792_v40  ;;  %v10232_v4 = vpop.f32.mrb[232].mxu0 }
 0xa86   :  { %v6680_v45 = vpop.f32.mrb[10].mxu1  ;;  %11798 = vst [vmem:[#allocation94_spill] sm:$0xff] %v10232_v4 }
 0xa87   :  { %v10222_v63 = vpack.c.bf16 %v6680_v45, %v6679_v21  ;;  %v4461_v39 = vpop.f32.mrb[11].mxu1  ;;  %v11800_v21 = vld [vmem:[#allocation215_spill] sm:$0xff] }
 0xa88   :  { %v10224_v23 = vpack.c.bf16 %v4461_v39, %v4458_v59  ;;  %4718 = vmatpush1.bf16.msra.mxu1 %v11794_v33  ;;  %4831 = vmatpush1.bf16.msra.mxu0 %v11795_v28  ;;  %v10236_v39 = vpop.f32.mrb[233].mxu0  ;;  %v11801_v59 = vld [vmem:[#allocation216_spill] sm:$0xff]  ;;  %v6990_v45 = vld [vmem:[#allocation19] sm:$0xff]  }
 0xa89   :  { %4719 = vmatprep.subr.bf16.mxu1 %v11796_v42  ;;  %4832 = vmatprep.subr.bf16.mxu0 %v11797_v20  ;;  %11799 = vst [vmem:[#allocation95_spill] sm:$0xff] %v10236_v39  ;;  %v10240_v40 = vpop.f32.mrb[234].mxu0  ;;  %v11802_v42 = vld [vmem:[#allocation217_spill] sm:$0xff]  ;;  %v11803_v20 = vld [vmem:[#allocation218_spill] sm:$0xff]  ;;  %v11807_v39 = vld [vmem:[#allocation220_spill] sm:$0xff] }
 0xa8a   :  { %4544 = vmatmul.mubr.bf16.gmra.mrb[24].mxu1 %v10174_v56  ;;  %4657 = vmatmul.mubr.bf16.gmra.mrb[16].mxu0 %v10174_v56  ;;  %v10244_v33 = vpop.f32.mrb[235].mxu0 }
 0xa8b   :  { %4553 = vmatprep.mubr.bf16.mxu1 %v11625_v34  ;;  %4666 = vmatprep.mubr.bf16.mxu0 %v11625_v34  ;;  %v10246_v28 = vpop.f32.mrb[236].mxu0 }
 0xa8c   :  { %4720 = vmatpush1.bf16.msra.mxu1 %v11800_v21  ;;  %4833 = vmatpush1.bf16.msra.mxu0 %v11801_v59  ;;  %11804 = vst [vmem:[#allocation96_spill] sm:$0xff] %v10246_v28  ;;  %v10248_v4 = vpop.f32.mrb[237].mxu0 }
 0xa8d   :  { %4721 = vmatprep.subr.bf16.mxu1 %v11802_v42  ;;  %4834 = vmatprep.subr.bf16.mxu0 %v11803_v20  ;;  %11805 = vst [vmem:[#allocation98_spill] sm:$0xff] %v10248_v4  ;;  %v10252_v21 = vpop.f32.mrb[238].mxu0 }
 0xa8e   :  { %11808 = vst [vmem:[#allocation221_spill] sm:$0xff] %v10252_v21  ;;  %v10254_v59 = vpop.f32.mrb[239].mxu0 }
 0xa8f   :  { %11809 = vst [vmem:[#allocation100_spill] sm:$0xff] %v10254_v59  ;;  %v10258_v42 = vpop.f32.mrb[240].mxu0 }
 0xa90   :  { %4722 = vmatpush1.bf16.msra.mxu1 %v11806_v30  ;;  %4835 = vmatpush1.bf16.msra.mxu0 %v11807_v39  ;;  %11810 = vst [vmem:[#allocation222_spill] sm:$0xff] %v10258_v42  ;;  %v10262_v20 = vpop.f32.mrb[241].mxu0 }
 0xa91   :  { %6681 = vmatprep.subr.bf16.mxu1 %v6990_v45  ;;  %11811 = vst [vmem:[#allocation101_spill] sm:$0xff] %v10262_v20  ;;  %v10264_v30 = vpop.f32.mrb[242].mxu0 }
 0xa92   :  { %4554 = vmatmul.mubr.bf16.gmra.mrb[28].mxu1 %v10200_v61  ;;  %4667 = vmatmul.mubr.bf16.gmra.mrb[20].mxu0 %v10200_v61  ;;  %11812 = vst [vmem:[#allocation103_spill] sm:$0xff] %v10264_v30  ;;  %v10266_v39 = vpop.f32.mrb[243].mxu0 }
 0xa93   :  { %4563 = vmatprep.mubr.bf16.mxu1 %v11625_v34  ;;  %4676 = vmatprep.mubr.bf16.mxu0 %v11625_v34  ;;  %11813 = vst [vmem:[#allocation223_spill] sm:$0xff] %v10266_v39  ;;  %v10268_v21 = vpop.f32.mrb[244].mxu0 }
 0xa94   :  { %11814 = vst [vmem:[#allocation224_spill] sm:$0xff] %v10268_v21  ;;  %v10270_v4 = vpop.f32.mrb[245].mxu0 }
 0xa95   :  { %11815 = vst [vmem:[#allocation102_spill] sm:$0xff] %v10270_v4  ;;  %v10272_v59 = vpop.f32.mrb[246].mxu0 }
 0xa96   :  { %11816 = vst [vmem:[#allocation104_spill] sm:$0xff] %v10272_v59  ;;  %v10274_v28 = vpop.f32.mrb[247].mxu0 }
 0xa97   :  { %11817 = vst [vmem:[#allocation225_spill] sm:$0xff] %v10274_v28  ;;  %v10278_v42 = vpop.f32.mrb[248].mxu0 }
 0xa98   :  { %11818 = vst [vmem:[#allocation106_spill] sm:$0xff] %v10278_v42  ;;  %v10282_v30 = vpop.f32.mrb[249].mxu0 }
 0xa99   :  { %v10284_v39 = vpop.f32.mrb[250].mxu0 }
 0xa9a   :  { %4564 = vmatmul.mubr.bf16.gmra.mrb[32].mxu1 %v10198_v41  ;;  %4677 = vmatmul.mubr.bf16.gmra.mrb[24].mxu0 %v10198_v41  ;;  %11819 = vst [vmem:[#allocation226_spill] sm:$0xff] %v10284_v39  ;;  %v10286_v21 = vpop.f32.mrb[251].mxu0 }
 0xa9b   :  { %4573 = vmatprep.mubr.bf16.mxu1 %v11625_v34  ;;  %4686 = vmatprep.mubr.bf16.mxu0 %v11625_v34  ;;  %11820 = vst [vmem:[#allocation108_spill] sm:$0xff] %v10286_v21  ;;  %v10288_v4 = vpop.f32.mrb[252].mxu0 }
 0xa9c   :  { %11821 = vst [vmem:[#allocation109_spill] sm:$0xff] %v10288_v4  ;;  %v10290_v59 = vpop.f32.mrb[253].mxu0 }
 0xa9d   :  { %v10292_v28 = vpop.f32.mrb[254].mxu0 }
 0xa9e   :  { %v10294_v20 = vpop.f32.mrb[255].mxu0 }
 0xa9f   :  { %11822 = vst [vmem:[#allocation227_spill] sm:$0xff] %v10294_v20  ;;  %v10298_v42 = vpop.f32.mrb[0].mxu0  ;;  %v6991_v20 = vld [vmem:[#allocation19 + $0x8] sm:$0xff]  }
 0xaa0   :  { %11823 = vst [vmem:[#allocation228_spill] sm:$0xff] %v10298_v42  ;;  %v10302_v39 = vpop.f32.mrb[1].mxu0 }
 0xaa1   :  { %11824 = vst [vmem:[#allocation110_spill] sm:$0xff] %v10302_v39  ;;  %v10304_v21 = vpop.f32.mrb[2].mxu0  ;;  %v6995_v39 = vld [vmem:[#allocation19 + $0x28] sm:$0xff]  }
 0xaa2   :  { %4574 = vmatmul.mubr.bf16.gmra.mrb[36].mxu1 %v10224_v23  ;;  %4687 = vmatmul.mubr.bf16.gmra.mrb[28].mxu0 %v10224_v23  ;;  %11825 = vst [vmem:[#allocation111_spill] sm:$0xff] %v10304_v21  ;;  %v10306_v4 = vpop.f32.mrb[3].mxu0  ;;  %v6993_v21 = vld [vmem:[#allocation19 + $0x18] sm:$0xff]  }
 0xaa3   :  { %4583 = vmatprep.mubr.bf16.mxu1 %v11625_v34  ;;  %4696 = vmatprep.mubr.bf16.mxu0 %v11625_v34  ;;  %11826 = vst [vmem:[#allocation229_spill] sm:$0xff] %v10306_v4  ;;  %v6992_v4 = vld [vmem:[#allocation19 + $0x10] sm:$0xff]  }
 0xaaa   :  { %4584 = vmatmul.mubr.bf16.gmra.mrb[40].mxu1 %v10222_v63  ;;  %4697 = vmatmul.mubr.bf16.gmra.mrb[32].mxu0 %v10222_v63 }
 0xaab   :  { %4739 = vmatprep.mubr.bf16.mxu1 %v11625_v34  ;;  %4852 = vmatprep.mubr.bf16.mxu0 %v11625_v34 }
 0xab2   :  { %4740 = vmatmul.mubr.bf16.vlgmr.msra.gmra.mrb[44].mxu1 %v10156_v54  ;;  %4853 = vmatmul.mubr.bf16.vlgmr.msra.gmra.mrb[36].mxu0 %v10156_v54  ;;  %v6994_v54 = vld [vmem:[#allocation19 + $0x20] sm:$0xff]  }
 0xab3   :  { %4749 = vmatprep.mubr.bf16.mxu1 %v11625_v34  ;;  %4862 = vmatprep.mubr.bf16.mxu0 %v11625_v34 }
 0xab4   :  { %6682 = vmatpush3.bf16.msra.mxu1 %v6990_v45  ;;  %v6997_v45 = vld [vmem:[#allocation19 + $0x38] sm:$0xff]  }
 0xab5   :  { %6683 = vmatprep.subr.bf16.mxu1 %v6991_v20 }
 0xab8   :  { %6684 = vmatpush3.bf16.msra.mxu1 %v6991_v20 }
 0xab9   :  { %6685 = vmatprep.subr.bf16.mxu1 %v6992_v4 }
 0xaba   :  { %4750 = vmatmul.mubr.bf16.gmra.mrb[48].mxu1 %v10154_v38  ;;  %4863 = vmatmul.mubr.bf16.gmra.mrb[40].mxu0 %v10154_v38  ;;  %v6996_v38 = vld [vmem:[#allocation19 + $0x30] sm:$0xff]  }
 0xabb   :  { %4759 = vmatprep.mubr.bf16.mxu1 %v11625_v34  ;;  %4872 = vmatprep.mubr.bf16.mxu0 %v11625_v34 }
 0xabc   :  { %6686 = vmatpush3.bf16.msra.mxu1 %v6992_v4 }
 0xabd   :  { %6687 = vmatprep.subr.bf16.mxu1 %v6993_v21 }
 0xac0   :  { %6688 = vmatpush3.bf16.msra.mxu1 %v6993_v21 }
 0xac1   :  { %6689 = vmatprep.subr.bf16.mxu1 %v6994_v54 }
 0xac2   :  { %4760 = vmatmul.mubr.bf16.gmra.mrb[52].mxu1 %v10176_v10  ;;  %4873 = vmatmul.mubr.bf16.gmra.mrb[44].mxu0 %v10176_v10 }
 0xac3   :  { %4769 = vmatprep.mubr.bf16.mxu1 %v11625_v34  ;;  %4882 = vmatprep.mubr.bf16.mxu0 %v11625_v34 }
 0xac4   :  { %6690 = vmatpush3.bf16.msra.mxu1 %v6994_v54 }
 0xac5   :  { %6691 = vmatprep.subr.bf16.mxu1 %v6995_v39 }
 0xac8   :  { %6692 = vmatpush3.bf16.msra.mxu1 %v6995_v39 }
 0xac9   :  { %6693 = vmatprep.subr.bf16.mxu1 %v6996_v38 }
 0xaca   :  { %4770 = vmatmul.mubr.bf16.gmra.mrb[56].mxu1 %v10174_v56  ;;  %4883 = vmatmul.mubr.bf16.gmra.mrb[48].mxu0 %v10174_v56 }
 0xacb   :  { %4779 = vmatprep.mubr.bf16.mxu1 %v11625_v34  ;;  %4892 = vmatprep.mubr.bf16.mxu0 %v11625_v34 }
 0xacc   :  { %6694 = vmatpush3.bf16.msra.mxu1 %v6996_v38 }
 0xacd   :  { %6695 = vmatprep.subr.bf16.mxu1 %v6997_v45 }
 0xad0   :  { %6696 = vmatpush3.bf16.msra.mxu1 %v6997_v45 }
 0xad2   :  { %4780 = vmatmul.mubr.bf16.gmra.mrb[60].mxu1 %v10200_v61  ;;  %4893 = vmatmul.mubr.bf16.gmra.mrb[52].mxu0 %v10200_v61  ;;  %v11828_v61 = vld [vmem:[#allocation45_spill] sm:$0xff] }
 0xad3   :  { %4789 = vmatprep.mubr.bf16.mxu1 %v11625_v34  ;;  %4902 = vmatprep.mubr.bf16.mxu0 %v11625_v34 }
 0xada   :  { %4790 = vmatmul.mubr.bf16.gmra.mrb[64].mxu1 %v10198_v41  ;;  %4903 = vmatmul.mubr.bf16.gmra.mrb[56].mxu0 %v10198_v41 }
 0xadb   :  { %4799 = vmatprep.mubr.bf16.mxu1 %v11625_v34  ;;  %4912 = vmatprep.mubr.bf16.mxu0 %v11625_v34 }
 0xae2   :  { %4800 = vmatmul.mubr.bf16.gmra.mrb[68].mxu1 %v10224_v23  ;;  %4913 = vmatmul.mubr.bf16.gmra.mrb[60].mxu0 %v10224_v23  ;;  %v10356_v23 = vld [vmem:[%s11006_s17] sm:$0xff] }
 0xae3   :  { %4809 = vmatprep.mubr.bf16.mxu1 %v11625_v34  ;;  %4922 = vmatprep.mubr.bf16.mxu0 %v11625_v34  ;;  %v10360_v56 = vrot.slane %v10356_v23, %v11828_v61 }
 0xae5   :  { %v3955_v20 = vadd.f32 %v9763_v46, %v10360_v56 }
 0xaea   :  { %4810 = vmatmul.mubr.bf16.gmra.mrb[72].mxu1 %v10222_v63  ;;  %4923 = vmatmul.mubr.bf16.gmra.mrb[64].mxu0 %v10222_v63 }
 0xaeb   :  { %6697 = vmatprep.mubr.bf16.mxu1 %v9959_v57 }
 0xaf2   :  { %6698 = vmatmul.mubr.bf16.vlgmr.msra.gmra.mrb[76].mxu1 %v9955_v16  ;;  %v11829_v16 = vld [vmem:[#allocation44_spill] sm:$0xff] }
 0xaf3   :  { %6701 = vmatprep.mubr.bf16.mxu1 %v9989_v31  ;;  %v11830_v57 = vsub.s32 2, %v11829_v16  ;;  %v11831_v31 = vld [vmem:[#allocation46_spill] sm:$0xff] }
 0xafa   :  { %6702 = vmatmul.mubr.bf16.gmra.mrb[80].mxu1 %v9984_v6  ;;  %v10365_v6 = vrot.slane %v10356_v23, %v11830_v57 }
 0xafb   :  { %6705 = vmatprep.mubr.bf16.mxu1 %v10020_v0  ;;  %v11832_v0 = vsub.s32 3, %v11829_v16 }
 0xafc   :  { %v4064_v10 = vadd.f32 %v10106_v24, %v10365_v6  ;;  %v4068_v39 = vadd.f32 %v10110_v5, %v10365_v6 }
 0xb02   :  { %6706 = vmatmul.mubr.bf16.gmra.mrb[84].mxu1 %v10015_v49  ;;  %v10369_v49 = vrot.slane %v10356_v23, %v11831_v31 }
 0xb03   :  { %6709 = vmatprep.mubr.bf16.mxu1 %v10041_v26  ;;  %v3951_v26 = vadd.f32 %v9759_v9, %v10360_v56 }
 0xb04   :  { %v3953_v41 = vadd.f32 %v9761_v48, %v10369_v49  ;;  %v3957_v24 = vadd.f32 %v9765_v29, %v10369_v49  ;;  %v3963_v29 = vadd.f32 %v9771_v12, %v10369_v49  ;;  %v4078_v12 = vadd.f32 %v10118_v62, %v10365_v6 }
 0xb0a   :  { %6710 = vmatmul.mubr.bf16.gmra.mrb[88].mxu1 %v10038_v32  ;;  %v10374_v32 = vrot.slane %v10356_v23, %v11832_v0 }
 0xb0b   :  { %6729 = vmatprep.mubr.msk.bf16.mxu1 %vm8233_vm4, %v11613_v53  ;;  %vm7294_vm4 = vmmov 0  }
 0xb0c   :  { %v4066_v63 = vadd.f32 %v10108_v7, %v10374_v32  ;;  %v4070_v48 = vadd.f32 %v10112_v52, %v10374_v32  ;;  %v4074_v52 = vadd.f32 %v10114_v25, %v10365_v6 }
 0xb45   :  { %v4515_v4 = vpop.f32.mrb[12].mxu1  ;;  %v4628_v21 = vpop.f32.mrb[4].mxu0 }
 0xb46   :  { %v4933_v54 = vmul.f32 %v4515_v4, %v3951_v26  ;;  %v4997_v38 = vmul.f32 %v4628_v21, %v4064_v10  ;;  %v4517_v9 = vpop.f32.mrb[13].mxu1  ;;  %v4630_v45 = vpop.f32.mrb[5].mxu0  ;;  %v3961_v21 = vadd.f32 %v9769_v37, %v10360_v56  ;;  %v3967_v37 = vadd.f32 %v9779_v44, %v10369_v49 }
 0xb47   :  { %v4965_v34 = vmul.f32 %v4517_v9, %v3953_v41  ;;  %v5029_v7 = vmul.f32 %v4630_v45, %v4066_v63  ;;  %v4519_v61 = vpop.f32.mrb[14].mxu1  ;;  %v4632_v57 = vpop.f32.mrb[6].mxu0  ;;  %v3965_v41 = vadd.f32 %v9775_v13, %v10360_v56  ;;  %v4076_v63 = vadd.f32 %v10116_v22, %v10374_v32 }
 0xb48   :  { %v4934_v31 = vmul.f32 %v4519_v61, %v3955_v20  ;;  %v4998_v0 = vmul.f32 %v4632_v57, %v4068_v39  ;;  %v4521_v46 = vpop.f32.mrb[15].mxu1  ;;  %v4634_v53 = vpop.f32.mrb[7].mxu0  ;;  %v4080_v13 = vadd.f32 %v10120_v2, %v10374_v32  ;;  %v3973_v2 = vadd.f32 %v9784_v50, %v10369_v49 }
 0xb49   :  { %v4981_v42 = vadd.f32 %v4965_v34, %v4933_v54  ;;  %v4966_v5 = vmul.f32 %v4521_v46, %v3957_v24  ;;  %v5030_v26 = vmul.f32 %v4634_v53, %v4070_v48  ;;  %v4088_v50 = vadd.f32 %v10126_v19, %v10365_v6 }
 0xb4b   :  { %v5013_v10 = vadd.f32 %v4997_v38, %v4981_v42  ;;  %v4982_v4 = vadd.f32 %v4966_v5, %v4934_v31 }
 0xb4d   :  { %v10402_v20 = vadd.f32 %v5029_v7, %v5013_v10  ;;  %v5014_v53 = vadd.f32 %v4998_v0, %v4982_v4  ;;  %v4525_v42 = vpop.f32.mrb[16].mxu1  ;;  %v4638_v39 = vpop.f32.mrb[8].mxu0  ;;  %v3971_v10 = vadd.f32 %v9781_v1, %v10360_v56  ;;  %v3975_v4 = vadd.f32 %v9787_v60, %v10360_v56 }
 0xb4e   :  { %v4935_v54 = vmul.f32 %v4525_v42, %v3961_v21  ;;  %v4999_v38 = vmul.f32 %v4638_v39, %v4074_v52  ;;  %v4527_v25 = vpop.f32.mrb[17].mxu1  ;;  %v4640_v9 = vpop.f32.mrb[9].mxu0  ;;  %v4086_v21 = vadd.f32 %v10124_v47, %v10374_v32  ;;  %v3977_v1 = vadd.f32 %v9789_v11, %v10369_v49 }
 0xb4f   :  { %v10410_v45 = vadd.f32 %v5030_v26, %v5014_v53  ;;  %v4967_v22 = vmul.f32 %v4527_v25, %v3963_v29  ;;  %v5031_v24 = vmul.f32 %v4640_v9, %v4076_v63  ;;  %v4529_v48 = vpop.f32.mrb[18].mxu1  ;;  %v4642_v34 = vpop.f32.mrb[10].mxu0  ;;  %v4084_v26 = vadd.f32 %v10122_v14, %v10365_v6 }
 0xb50   :  { %v4936_v7 = vmul.f32 %v4529_v48, %v3965_v41  ;;  %v5000_v61 = vmul.f32 %v4642_v34, %v4078_v12  ;;  %v4531_v57 = vpop.f32.mrb[19].mxu1  ;;  %v4644_v44 = vpop.f32.mrb[11].mxu0  ;;  %v4090_v60 = vadd.f32 %v10128_v18, %v10374_v32  ;;  %v3983_v18 = vadd.f32 %v9793_v35, %v10369_v49 }
 0xb51   :  { %v4983_v31 = vadd.f32 %v4967_v22, %v4935_v54  ;;  %v4968_v0 = vmul.f32 %v4531_v57, %v3967_v37  ;;  %v5032_v62 = vmul.f32 %v4644_v44, %v4080_v13  ;;  %v3985_v57 = vadd.f32 %v9795_v51, %v10360_v56 }
 0xb52   :  { %v4096_v44 = vadd.f32 %v10132_v3, %v10374_v32  ;;  %v4098_v35 = vadd.f32 %v10134_v27, %v10365_v6  ;;  %v4100_v51 = vadd.f32 %v10136_v55, %v10374_v32  ;;  %v3993_v55 = vadd.f32 %v9804_v15, %v10369_v49 }
 0xb53   :  { %v5015_v46 = vadd.f32 %v4999_v38, %v4983_v31  ;;  %v4984_v5 = vadd.f32 %v4968_v0, %v4936_v7  ;;  %v3981_v7 = vadd.f32 %v9791_v36, %v10360_v56  ;;  %v3987_v36 = vadd.f32 %v9799_v58, %v10369_v49 }
 0xb55   :  { %v10422_v29 = vadd.f32 %v5031_v24, %v5015_v46  ;;  %v5016_v52 = vadd.f32 %v5000_v61, %v4984_v5  ;;  %v4535_v41 = vpop.f32.mrb[20].mxu1  ;;  %v4648_v63 = vpop.f32.mrb[12].mxu0  ;;  %v4094_v61 = vadd.f32 %v10130_v8, %v10365_v6 }
 0xb56   :  { %v4937_v53 = vmul.f32 %v4535_v41, %v3971_v10  ;;  %v5001_v42 = vmul.f32 %v4648_v63, %v4084_v26  ;;  %v4537_v14 = vpop.f32.mrb[21].mxu1  ;;  %v4650_v39 = vpop.f32.mrb[13].mxu0 }
 0xb57   :  { %v10430_v37 = vadd.f32 %v5032_v62, %v5016_v52  ;;  %v4969_v47 = vmul.f32 %v4537_v14, %v3973_v2  ;;  %v5033_v12 = vmul.f32 %v4650_v39, %v4086_v21  ;;  %v4539_v54 = vpop.f32.mrb[22].mxu1  ;;  %v4652_v38 = vpop.f32.mrb[14].mxu0  ;;  %v3991_v39 = vadd.f32 %v9802_v43, %v10360_v56 }
 0xb58   :  { %v4938_v25 = vmul.f32 %v4539_v54, %v3975_v4  ;;  %v5002_v9 = vmul.f32 %v4652_v38, %v4088_v50  ;;  %v4541_v13 = vpop.f32.mrb[23].mxu1  ;;  %v4654_v11 = vpop.f32.mrb[15].mxu0  ;;  %v11835_v38 = vld [vmem:[#allocation81_spill] sm:$0xff] }
 0xb59   :  { %v4985_v22 = vadd.f32 %v4969_v47, %v4937_v53  ;;  %v4970_v24 = vmul.f32 %v4541_v13, %v3977_v1  ;;  %v5034_v19 = vmul.f32 %v4654_v11, %v4090_v60  ;;  %v11833_v60 = vld [vmem:[#allocation196_spill] sm:$0xff] }
 0xb5a   :  { %v4104_v47 = vadd.f32 %v11833_v60, %v10365_v6 }
 0xb5b   :  { %v5017_v48 = vadd.f32 %v5001_v42, %v4985_v22  ;;  %v4986_v34 = vadd.f32 %v4970_v24, %v4938_v25  ;;  %v4106_v25 = vadd.f32 %v11835_v38, %v10374_v32  ;;  %v11836_v24 = vld [vmem:[#allocation164_spill] sm:$0xff]  ;;  %v11845_v38 = vld [vmem:[#allocation207_spill] sm:$0xff] }
 0xb5c   :  { %v3997_v43 = vadd.f32 %v11836_v24, %v10369_v49 }
 0xb5d   :  { %v10442_v31 = vadd.f32 %v5033_v12, %v5017_v48  ;;  %v5018_v0 = vadd.f32 %v5002_v9, %v4986_v34  ;;  %v4545_v62 = vpop.f32.mrb[24].mxu1  ;;  %v4658_v46 = vpop.f32.mrb[16].mxu0  ;;  %v11834_v12 = vld [vmem:[#allocation57_spill] sm:$0xff] }
 0xb5e   :  { %v4939_v5 = vmul.f32 %v4545_v62, %v3981_v7  ;;  %v5003_v10 = vmul.f32 %v4658_v46, %v4094_v61  ;;  %v4547_v8 = vpop.f32.mrb[25].mxu1  ;;  %v4660_v2 = vpop.f32.mrb[17].mxu0  ;;  %v3995_v54 = vadd.f32 %v11834_v12, %v10360_v56  ;;  %v11838_v61 = vld [vmem:[#allocation202_spill] sm:$0xff] }
 0xb5f   :  { %v10450_v26 = vadd.f32 %v5034_v19, %v5018_v0  ;;  %v4971_v3 = vmul.f32 %v4547_v8, %v3983_v18  ;;  %v5035_v4 = vmul.f32 %v4660_v2, %v4096_v44  ;;  %v4549_v21 = vpop.f32.mrb[26].mxu1  ;;  %v4662_v52 = vpop.f32.mrb[18].mxu0  ;;  %v11837_v19 = vld [vmem:[#allocation199_spill] sm:$0xff]  ;;  %v11844_v12 = vld [vmem:[#allocation166_spill] sm:$0xff] }
 0xb60   :  { %v4940_v41 = vmul.f32 %v4549_v21, %v3985_v57  ;;  %v5004_v63 = vmul.f32 %v4662_v52, %v4098_v35  ;;  %v4551_v1 = vpop.f32.mrb[27].mxu1  ;;  %v4664_v58 = vpop.f32.mrb[19].mxu0  ;;  %v4108_v15 = vadd.f32 %v11837_v19, %v10365_v6  ;;  %v4110_v57 = vadd.f32 %v11838_v61, %v10374_v32  ;;  %v11839_v52 = vld [vmem:[#allocation58_spill] sm:$0xff] }
 0xb61   :  { %v4987_v50 = vadd.f32 %v4971_v3, %v4939_v5  ;;  %v4972_v53 = vmul.f32 %v4551_v1, %v3987_v36  ;;  %v5036_v27 = vmul.f32 %v4664_v58, %v4100_v51  ;;  %v11841_v58 = vld [vmem:[#allocation82_spill] sm:$0xff] }
 0xb63   :  { %v5019_v42 = vadd.f32 %v5003_v10, %v4987_v50  ;;  %v4988_v14 = vadd.f32 %v4972_v53, %v4940_v41  ;;  %v4001_v41 = vadd.f32 %v11839_v52, %v10360_v56  ;;  %v4114_v50 = vadd.f32 %v11841_v58, %v10365_v6  ;;  %v11842_v53 = vld [vmem:[#allocation60_spill] sm:$0xff]  ;;  %v11850_v52 = vld [vmem:[#allocation62_spill] sm:$0xff] }
 0xb65   :  { %v10462_v9 = vadd.f32 %v5035_v4, %v5019_v42  ;;  %v5020_v13 = vadd.f32 %v5004_v63, %v4988_v14  ;;  %v4555_v11 = vpop.f32.mrb[28].mxu1  ;;  %v4668_v22 = vpop.f32.mrb[20].mxu0  ;;  %v11840_v63 = vld [vmem:[#allocation165_spill] sm:$0xff]  ;;  %v11843_v42 = vld [vmem:[#allocation83_spill] sm:$0xff] }
 0xb66   :  { %v4941_v48 = vmul.f32 %v4555_v11, %v3991_v39  ;;  %v5005_v34 = vmul.f32 %v4668_v22, %v4104_v47  ;;  %v4557_v7 = vpop.f32.mrb[29].mxu1  ;;  %v4670_v18 = vpop.f32.mrb[21].mxu0  ;;  %v4003_v1 = vadd.f32 %v11840_v63, %v10369_v49  ;;  %v4116_v14 = vadd.f32 %v11843_v42, %v10374_v32  ;;  %v11851_v63 = vld [vmem:[#allocation85_spill] sm:$0xff]  ;;  %v11852_v42 = vld [vmem:[#allocation168_spill] sm:$0xff] }
 0xb67   :  { %v10470_v44 = vadd.f32 %v5036_v27, %v5020_v13  ;;  %v4973_v0 = vmul.f32 %v4557_v7, %v3993_v55  ;;  %v5037_v62 = vmul.f32 %v4670_v18, %v4106_v25  ;;  %v4559_v46 = vpop.f32.mrb[30].mxu1  ;;  %v4672_v36 = vpop.f32.mrb[22].mxu0  ;;  %v4005_v27 = vadd.f32 %v11842_v53, %v10360_v56 }
 0xb68   :  { %v4942_v35 = vmul.f32 %v4559_v46, %v3995_v54  ;;  %v5006_v5 = vmul.f32 %v4672_v36, %v4108_v15  ;;  %v4561_v10 = vpop.f32.mrb[31].mxu1  ;;  %v4674_v8 = vpop.f32.mrb[23].mxu0  ;;  %v4007_v54 = vadd.f32 %v11844_v12, %v10369_v49  ;;  %v4118_v25 = vadd.f32 %v11845_v38, %v10365_v6 }
 0xb69   :  { %v4989_v2 = vadd.f32 %v4973_v0, %v4941_v48  ;;  %v4974_v51 = vmul.f32 %v4561_v10, %v3997_v43  ;;  %v5038_v3 = vmul.f32 %v4674_v8, %v4110_v57  ;;  %v11846_v43 = vld [vmem:[#allocation84_spill] sm:$0xff]  ;;  %v11847_v8 = vld [vmem:[#allocation61_spill] sm:$0xff] }
 0xb6a   :  { %v4120_v19 = vadd.f32 %v11846_v43, %v10374_v32 }
 0xb6b   :  { %v5021_v4 = vadd.f32 %v5005_v34, %v4989_v2  ;;  %v4990_v21 = vadd.f32 %v4974_v51, %v4942_v35  ;;  %v4011_v2 = vadd.f32 %v11847_v8, %v10360_v56  ;;  %v11848_v51 = vld [vmem:[#allocation167_spill] sm:$0xff]  ;;  %v11857_v8 = vsub.s32 4, %v11829_v16 }
 0xb6d   :  { %v10482_v39 = vadd.f32 %v5037_v62, %v5021_v4  ;;  %v5022_v55 = vadd.f32 %v5006_v5, %v4990_v21  ;;  %v4565_v60 = vpop.f32.mrb[32].mxu1  ;;  %v4678_v47 = vpop.f32.mrb[24].mxu0  ;;  %v11849_v4 = vld [vmem:[#allocation208_spill] sm:$0xff] }
 0xb6e   :  { %v4943_v13 = vmul.f32 %v4565_v60, %v4001_v41  ;;  %v5007_v11 = vmul.f32 %v4678_v47, %v4114_v50  ;;  %v4567_v22 = vpop.f32.mrb[33].mxu1  ;;  %v4680_v24 = vpop.f32.mrb[25].mxu0  ;;  %v4124_v21 = vadd.f32 %v11849_v4, %v10365_v6  ;;  %v4015_v41 = vadd.f32 %v11850_v52, %v10360_v56  ;;  %v11859_v4 = vld [vmem:[#allocation64_spill] sm:$0xff]  ;;  %v11860_v52 = vld [vmem:[#allocation87_spill] sm:$0xff] }
 0xb6f   :  { %v10490_v15 = vadd.f32 %v5038_v3, %v5022_v55  ;;  %v4975_v48 = vmul.f32 %v4567_v22, %v4003_v1  ;;  %v5039_v34 = vmul.f32 %v4680_v24, %v4116_v14  ;;  %v4569_v7 = vpop.f32.mrb[34].mxu1  ;;  %v4682_v18 = vpop.f32.mrb[26].mxu0  ;;  %v4013_v3 = vadd.f32 %v11848_v51, %v10369_v49  ;;  %v11853_v55 = vld [vmem:[#allocation211_spill] sm:$0xff]  ;;  %v11858_v51 = vld [vmem:[#allocation86_spill] sm:$0xff] }
 0xb70   :  { %v4944_v61 = vmul.f32 %v4569_v7, %v4005_v27  ;;  %v5008_v57 = vmul.f32 %v4682_v18, %v4118_v25  ;;  %v4571_v0 = vpop.f32.mrb[35].mxu1  ;;  %v4684_v62 = vpop.f32.mrb[27].mxu0  ;;  %v4126_v1 = vadd.f32 %v11851_v63, %v10374_v32  ;;  %v4017_v14 = vadd.f32 %v11852_v42, %v10369_v49  ;;  %v11854_v25 = vld [vmem:[#allocation214_spill] sm:$0xff] }
 0xb71   :  { %v4991_v46 = vadd.f32 %v4975_v48, %v4943_v13  ;;  %v4976_v36 = vmul.f32 %v4571_v0, %v4007_v54  ;;  %v5040_v35 = vmul.f32 %v4684_v62, %v4120_v19  ;;  %v4128_v60 = vadd.f32 %v11853_v55, %v10365_v6 }
 0xb72   :  { %v4130_v13 = vadd.f32 %v11854_v25, %v10374_v32 }
 0xb73   :  { %v5023_v5 = vadd.f32 %v5007_v11, %v4991_v46  ;;  %v4992_v10 = vadd.f32 %v4976_v36, %v4944_v61  ;;  %v11855_v36 = vld [vmem:[#allocation63_spill] sm:$0xff] }
 0xb75   :  { %v10502_v58 = vadd.f32 %v5039_v34, %v5023_v5  ;;  %v5024_v50 = vadd.f32 %v5008_v57, %v4992_v10  ;;  %v4575_v53 = vpop.f32.mrb[36].mxu1  ;;  %v4688_v27 = vpop.f32.mrb[28].mxu0  ;;  %v4021_v5 = vadd.f32 %v11855_v36, %v10360_v56  ;;  %v11856_v10 = vld [vmem:[#allocation169_spill] sm:$0xff] }
 0xb76   :  { %v4945_v47 = vmul.f32 %v4575_v53, %v4011_v2  ;;  %v5009_v12 = vmul.f32 %v4688_v27, %v4124_v21  ;;  %v4577_v54 = vpop.f32.mrb[37].mxu1  ;;  %v4690_v38 = vpop.f32.mrb[29].mxu0  ;;  %v10519_v2 = vrot.slane %v10356_v23, %v11857_v8  ;;  %v4025_v21 = vadd.f32 %v11859_v4, %v10360_v56  ;;  %v11861_v27 = vld [vmem:[#allocation170_spill] sm:$0xff]  ;;  %v11863_v56 = vld [vmem:[#allocation89_spill] sm:$0xff]  ;;  %v11868_v8 = vld [vmem:[#allocation171_spill] sm:$0xff] }
 0xb77   :  { %v10510_v11 = vadd.f32 %v5040_v35, %v5024_v50  ;;  %v4977_v22 = vmul.f32 %v4577_v54, %v4013_v3  ;;  %v5041_v24 = vmul.f32 %v4690_v38, %v4126_v1  ;;  %v4579_v43 = vpop.f32.mrb[38].mxu1  ;;  %v4692_v19 = vpop.f32.mrb[30].mxu0  ;;  %v4023_v35 = vadd.f32 %v11856_v10, %v10369_v49  ;;  %v11867_v10 = vld [vmem:[#allocation65_spill] sm:$0xff] }
 0xb78   :  { %v4946_v48 = vmul.f32 %v4579_v43, %v4015_v41  ;;  %v5010_v34 = vmul.f32 %v4692_v19, %v4128_v60  ;;  %v4581_v7 = vpop.f32.mrb[39].mxu1  ;;  %v4694_v18 = vpop.f32.mrb[31].mxu0  ;;  %v4134_v3 = vadd.f32 %v11858_v51, %v10365_v6  ;;  %v4136_v41 = vadd.f32 %v11860_v52, %v10374_v32 }
 0xb79   :  { %v4993_v61 = vadd.f32 %v4977_v22, %v4945_v47  ;;  %v4978_v57 = vmul.f32 %v4581_v7, %v4017_v14  ;;  %v5042_v0 = vmul.f32 %v4694_v18, %v4130_v13  ;;  %v4027_v42 = vadd.f32 %v11861_v27, %v10369_v49  ;;  %v11862_v14 = vld [vmem:[#allocation88_spill] sm:$0xff] }
 0xb7a   :  { %v4138_v55 = vadd.f32 %v11862_v14, %v10365_v6  ;;  %v4140_v38 = vadd.f32 %v11863_v56, %v10374_v32  ;;  %v11864_v19 = vsub.s32 5, %v11829_v16  ;;  %v11865_v6 = vsub.s32 6, %v11829_v16  ;;  %v11873_v56 = vld [vmem:[#allocation93_spill] sm:$0xff] }
 0xb7b   :  { %v5025_v62 = vadd.f32 %v5009_v12, %v4993_v61  ;;  %v4994_v46 = vadd.f32 %v4978_v57, %v4946_v48  ;;  %v11866_v61 = vsub.s32 7, %v11829_v16 }
 0xb7c   :  { %v10540_v49 = vrot.slane %v10356_v23, %v11864_v19  ;;  %v10545_v48 = vrot.slane %v10356_v23, %v11865_v6 }
 0xb7d   :  { %v10527_v63 = vadd.f32 %v5041_v24, %v5025_v62  ;;  %v5026_v1 = vadd.f32 %v5010_v34, %v4994_v46  ;;  %v4585_v50 = vpop.f32.mrb[40].mxu1  ;;  %v4698_v53 = vpop.f32.mrb[32].mxu0  ;;  %v10550_v57 = vrot.slane %v10356_v23, %v11866_v61  ;;  %v11871_v23 = vld [vmem:[#allocation92_spill] sm:$0xff] }
 0xb7e   :  { %v4947_v60 = vmul.f32 %v4585_v50, %v4021_v5  ;;  %v5011_v47 = vmul.f32 %v4698_v53, %v4134_v3  ;;  %v4587_v12 = vpop.f32.mrb[41].mxu1  ;;  %v4700_v54 = vpop.f32.mrb[33].mxu0  ;;  %v4179_v51 = vadd.f32 %v11868_v8, %v10540_v49  ;;  %v11869_v3 = vld [vmem:[#allocation90_spill] sm:$0xff] }
 0xb7f   :  { %v10535_v25 = vadd.f32 %v5042_v0, %v5026_v1  ;;  %v4979_v13 = vmul.f32 %v4587_v12, %v4023_v35  ;;  %v5043_v22 = vmul.f32 %v4700_v54, %v4136_v41  ;;  %v4589_v24 = vpop.f32.mrb[42].mxu1  ;;  %v4702_v43 = vpop.f32.mrb[34].mxu0  ;;  %v4177_v35 = vadd.f32 %v11867_v10, %v10519_v2 }
 0xb80   :  { %v4948_v34 = vmul.f32 %v4589_v24, %v4025_v21  ;;  %v5012_v7 = vmul.f32 %v4702_v43, %v4138_v55  ;;  %v4591_v18 = vpop.f32.mrb[43].mxu1  ;;  %v4704_v32 = vpop.f32.mrb[35].mxu0  ;;  %v4290_v4 = vadd.f32 %v11869_v3, %v10545_v48  ;;  %v11870_v21 = vld [vmem:[#allocation66_spill] sm:$0xff]  ;;  %v4292_v41 = vadd.f32 %v11871_v23, %v10550_v57  ;;  %v11877_v3 = vld [vmem:[#allocation68_spill] sm:$0xff] }
 0xb81   :  { %v4995_v0 = vadd.f32 %v4979_v13, %v4947_v60  ;;  %v4980_v62 = vmul.f32 %v4591_v18, %v4027_v42  ;;  %v5044_v46 = vmul.f32 %v4704_v32, %v4140_v38  ;;  %v4181_v52 = vadd.f32 %v11870_v21, %v10519_v2  ;;  %v11872_v42 = vld [vmem:[#allocation172_spill] sm:$0xff]  ;;  %v11878_v21 = vld [vmem:[#allocation95_spill] sm:$0xff] }
 0xb82   :  { %v4183_v14 = vadd.f32 %v11872_v42, %v10540_v49  ;;  %v4294_v55 = vadd.f32 %v10218_v17, %v10545_v48  ;;  %v4296_v38 = vadd.f32 %v11873_v56, %v10550_v57 }
 0xb83   :  { %v5027_v36 = vadd.f32 %v5011_v47, %v4995_v0  ;;  %v4996_v5 = vadd.f32 %v4980_v62, %v4948_v34 }
 0xb85   :  { %v10562_v1 = vadd.f32 %v5043_v22, %v5027_v36  ;;  %v5028_v50 = vadd.f32 %v5012_v7, %v4996_v5  ;;  %v4741_v53 = vpop.f32.mrb[44].mxu1  ;;  %v4854_v27 = vpop.f32.mrb[36].mxu0  ;;  %v11874_v36 = vld [vmem:[#allocation67_spill] sm:$0xff] }
 0xb86   :  { %v5061_v60 = vmul.f32 %v4741_v53, %v4177_v35  ;;  %v5125_v47 = vmul.f32 %v4854_v27, %v4290_v4  ;;  %v4743_v12 = vpop.f32.mrb[45].mxu1  ;;  %v4856_v54 = vpop.f32.mrb[37].mxu0  ;;  %v4187_v5 = vadd.f32 %v11874_v36, %v10519_v2  ;;  %v4191_v4 = vadd.f32 %v11877_v3, %v10519_v2 }
 0xb87   :  { %v10570_v13 = vadd.f32 %v5044_v46, %v5028_v50  ;;  %v5093_v22 = vmul.f32 %v4743_v12, %v4179_v51  ;;  %v5157_v24 = vmul.f32 %v4856_v54, %v4292_v41  ;;  %v4745_v43 = vpop.f32.mrb[46].mxu1  ;;  %v4858_v19 = vpop.f32.mrb[38].mxu0  ;;  %v11875_v46 = vld [vmem:[#allocation94_spill] sm:$0xff]  ;;  %v11876_v51 = vld [vmem:[#allocation173_spill] sm:$0xff]  ;;  %v4306_v12 = vadd.f32 %v10244_v33, %v10550_v57 }
 0xb88   :  { %v5077_v6 = vadd.f32 %v5061_v60, %v10402_v20  ;;  %v5062_v34 = vmul.f32 %v4745_v43, %v4181_v52  ;;  %v5126_v7 = vmul.f32 %v4858_v19, %v4294_v55  ;;  %v4747_v18 = vpop.f32.mrb[47].mxu1  ;;  %v4860_v32 = vpop.f32.mrb[39].mxu0  ;;  %v4300_v10 = vadd.f32 %v11875_v46, %v10545_v48  ;;  %v11879_v60 = vld [vmem:[#allocation174_spill] sm:$0xff]  ;;  %v11882_v46 = vld [vmem:[#allocation175_spill] sm:$0xff] }
 0xb89   :  { %v5094_v17 = vmul.f32 %v4747_v18, %v4183_v14  ;;  %v5158_v61 = vmul.f32 %v4860_v32, %v4296_v38  ;;  %v4189_v20 = vadd.f32 %v11876_v51, %v10540_v49  ;;  %v4302_v52 = vadd.f32 %v11878_v21, %v10550_v57  ;;  %v11885_v51 = vld [vmem:[#allocation221_spill] sm:$0xff] }
 0xb8a   :  { %v5109_v0 = vadd.f32 %v5093_v22, %v5077_v6  ;;  %v5078_v62 = vadd.f32 %v5062_v34, %v10410_v45  ;;  %v4304_v45 = vadd.f32 %v10240_v40, %v10545_v48 }
 0xb8c   :  { %v5110_v35 = vadd.f32 %v5094_v17, %v5078_v62  ;;  %v5141_v8 = vadd.f32 %v5125_v47, %v5109_v0  ;;  %v4193_v47 = vadd.f32 %v11879_v60, %v10540_v49  ;;  %v11880_v17 = vld [vmem:[#allocation69_spill] sm:$0xff]  ;;  %v11881_v0 = vld [vmem:[#allocation96_spill] sm:$0xff] }
 0xb8d   :  { %v4751_v23 = vpop.f32.mrb[48].mxu1  ;;  %v4864_v41 = vpop.f32.mrb[40].mxu0  ;;  %v4310_v62 = vadd.f32 %v11881_v0, %v10545_v48 }
 0xb8e   :  { %v5063_v50 = vmul.f32 %v4751_v23, %v4187_v5  ;;  %v5127_v53 = vmul.f32 %v4864_v41, %v4300_v10  ;;  %v4753_v27 = vpop.f32.mrb[49].mxu1  ;;  %v4866_v42 = vpop.f32.mrb[41].mxu0  ;;  %v10586_v14 = vadd.f32 %v5157_v24, %v5141_v8  ;;  %v5142_v55 = vadd.f32 %v5126_v7, %v5110_v35  ;;  %v11883_v10 = vld [vmem:[#allocation29_spill] sm:$0xff]  ;;  %v11884_v8 = vld [vmem:[#allocation98_spill] sm:$0xff] }
 0xb8f   :  { %v5095_v54 = vmul.f32 %v4753_v27, %v4189_v20  ;;  %v5159_v56 = vmul.f32 %v4866_v42, %v4302_v52  ;;  %v4755_v38 = vpop.f32.mrb[50].mxu1  ;;  %v4868_v22 = vpop.f32.mrb[42].mxu0  ;;  %v4201_v35 = vadd.f32 %v11883_v10, %v10519_v2  ;;  %v4314_v20 = vadd.f32 %v11885_v51, %v10545_v48  ;;  %v11887_v42 = vld [vmem:[#allocation100_spill] sm:$0xff]  ;;  %v11893_v10 = vld [vmem:[#allocation103_spill] sm:$0xff] }
 0xb90   :  { %v5079_v40 = vadd.f32 %v5063_v50, %v10422_v29  ;;  %v5064_v43 = vmul.f32 %v4755_v38, %v4191_v4  ;;  %v5128_v19 = vmul.f32 %v4868_v22, %v4304_v45  ;;  %v4870_v6 = vpop.f32.mrb[43].mxu0  ;;  %5189 = vrot.lane.b32.xlu0 %v10586_v14, %s11221_s13  ;;  %v4757_v24 = vpop.f32.mrb[51].mxu1  ;;  %v10595_v34 = vadd.f32 %v5158_v61, %v5142_v55 }
 0xb91   :  { %v5160_v7 = vmul.f32 %v4870_v6, %v4306_v12  ;;  %v5096_v18 = vmul.f32 %v4757_v24, %v4193_v47  ;;  %v4197_v29 = vadd.f32 %v11880_v17, %v10519_v2  ;;  %v4199_v61 = vadd.f32 %v11882_v46, %v10540_v49  ;;  %v11889_v17 = vld [vmem:[#allocation222_spill] sm:$0xff] }
 0xb92   :  { %v5111_v32 = vadd.f32 %v5095_v54, %v5079_v40  ;;  %v5080_v33 = vadd.f32 %v5064_v43, %v10430_v37  ;;  %5191 = vrot.lane.b32.xlu1 %v10595_v34, %s11221_s13  ;;  %v4312_v37 = vadd.f32 %v11884_v8, %v10550_v57  ;;  %v4316_v55 = vadd.f32 %v11887_v42, %v10550_v57 }
 0xb94   :  { %v5143_v36 = vadd.f32 %v5127_v53, %v5111_v32  ;;  %v5112_v5 = vadd.f32 %v5096_v18, %v5080_v33  ;;  %v11886_v53 = vld [vmem:[#allocation70_spill] sm:$0xff]  ;;  %v11888_v33 = vld [vmem:[#allocation176_spill] sm:$0xff] }
 0xb95   :  { %v4761_v3 = vpop.f32.mrb[52].mxu1  ;;  %v4874_v4 = vpop.f32.mrb[44].mxu0  ;;  %v4203_v27 = vadd.f32 %v11886_v53, %v10540_v49 }
 0xb96   :  { %v10612_v21 = vadd.f32 %v5159_v56, %v5143_v36  ;;  %v5144_v52 = vadd.f32 %v5128_v19, %v5112_v5  ;;  %v5065_v45 = vmul.f32 %v4761_v3, %v4197_v29  ;;  %v5129_v23 = vmul.f32 %v4874_v4, %v4310_v62  ;;  %v4763_v41 = vpop.f32.mrb[53].mxu1  ;;  %v4876_v50 = vpop.f32.mrb[45].mxu0  ;;  %v11890_v36 = vld [vmem:[#allocation71_spill] sm:$0xff]  ;;  %v11891_v5 = vld [vmem:[#allocation177_spill] sm:$0xff] }
 0xb97   :  { %v5097_v60 = vmul.f32 %v4763_v41, %v4199_v61  ;;  %v5161_v47 = vmul.f32 %v4876_v50, %v4312_v37  ;;  %v4765_v12 = vpop.f32.mrb[54].mxu1  ;;  %v4878_v54 = vpop.f32.mrb[46].mxu0  ;;  %v4320_v29 = vadd.f32 %v11889_v17, %v10545_v48  ;;  %v4211_v46 = vadd.f32 %v11891_v5, %v10519_v2  ;;  %v11892_v61 = vld [vmem:[#allocation101_spill] sm:$0xff]  ;;  %v11895_v50 = vld [vmem:[#allocation223_spill] sm:$0xff]  ;;  %v11901_v5 = vld [vmem:[#allocation104_spill] sm:$0xff] }
 0xb98   :  { %v5081_v38 = vadd.f32 %v5065_v45, %v10442_v31  ;;  %v5066_v22 = vmul.f32 %v4765_v12, %v4201_v35  ;;  %v5130_v56 = vmul.f32 %v4878_v54, %v4314_v20  ;;  %v4880_v40 = vpop.f32.mrb[47].mxu0  ;;  %5193 = vrot.lane.b32.xlu0 %v10612_v21, %s11221_s13  ;;  %v4767_v43 = vpop.f32.mrb[55].mxu1  ;;  %v10621_v19 = vadd.f32 %v5160_v7, %v5144_v52 }
 0xb99   :  { %v5162_v6 = vmul.f32 %v4880_v40, %v4316_v55  ;;  %v5098_v24 = vmul.f32 %v4767_v43, %v4203_v27  ;;  %v4207_v31 = vadd.f32 %v11888_v33, %v10519_v2  ;;  %v4209_v7 = vadd.f32 %v11890_v36, %v10540_v49  ;;  %v11897_v33 = vld [vmem:[#allocation224_spill] sm:$0xff] }
 0xb9a   :  { %v5113_v18 = vadd.f32 %v5097_v60, %v5081_v38  ;;  %v5082_v32 = vadd.f32 %v5066_v22, %v10450_v26  ;;  %5195 = vrot.lane.b32.xlu1 %v10621_v19, %s11221_s13  ;;  %v4322_v26 = vadd.f32 %v11892_v61, %v10550_v57  ;;  %v4324_v35 = vadd.f32 %v11893_v10, %v10545_v48 }
 0xb9b   :  { %v4326_v53 = vadd.f32 %v11895_v50, %v10550_v57 }
 0xb9c   :  { %v5145_v0 = vadd.f32 %v5129_v23, %v5113_v18  ;;  %v5114_v62 = vadd.f32 %v5098_v24, %v5082_v32  ;;  %v11894_v23 = vld [vmem:[#allocation72_spill] sm:$0xff]  ;;  %v11896_v32 = vld [vmem:[#allocation178_spill] sm:$0xff] }
 0xb9d   :  { %v4771_v8 = vpop.f32.mrb[56].mxu1  ;;  %v4884_v37 = vpop.f32.mrb[48].mxu0  ;;  %v4213_v41 = vadd.f32 %v11894_v23, %v10540_v49 }
 0xb9e   :  { %v10638_v51 = vadd.f32 %v5161_v47, %v5145_v0  ;;  %v5146_v20 = vadd.f32 %v5130_v56, %v5114_v62  ;;  %v5067_v3 = vmul.f32 %v4771_v8, %v4207_v31  ;;  %v5131_v4 = vmul.f32 %v4884_v37, %v4320_v29  ;;  %v4773_v52 = vpop.f32.mrb[57].mxu1  ;;  %v4886_v45 = vpop.f32.mrb[49].mxu0  ;;  %v11898_v0 = vld [vmem:[#allocation73_spill] sm:$0xff]  ;;  %v11899_v62 = vld [vmem:[#allocation179_spill] sm:$0xff] }
 0xb9f   :  { %v5099_v27 = vmul.f32 %v4773_v52, %v4209_v7  ;;  %v5163_v42 = vmul.f32 %v4886_v45, %v4322_v26  ;;  %v4775_v55 = vpop.f32.mrb[58].mxu1  ;;  %v4888_v60 = vpop.f32.mrb[50].mxu0  ;;  %v4330_v31 = vadd.f32 %v11897_v33, %v10545_v48  ;;  %v4221_v36 = vadd.f32 %v11899_v62, %v10519_v2  ;;  %v11900_v7 = vld [vmem:[#allocation102_spill] sm:$0xff]  ;;  %v11903_v45 = vld [vmem:[#allocation225_spill] sm:$0xff] }
 0xba0   :  { %v5083_v12 = vadd.f32 %v5067_v3, %v10462_v9  ;;  %v5068_v54 = vmul.f32 %v4775_v55, %v4211_v46  ;;  %v5132_v47 = vmul.f32 %v4888_v60, %v4324_v35  ;;  %v4890_v38 = vpop.f32.mrb[51].mxu0  ;;  %5197 = vrot.lane.b32.xlu0 %v10638_v51, %s11221_s13  ;;  %v4777_v22 = vpop.f32.mrb[59].mxu1  ;;  %v10647_v56 = vadd.f32 %v5162_v6, %v5146_v20 }
 0xba1   :  { %v5164_v40 = vmul.f32 %v4890_v38, %v4326_v53  ;;  %v5100_v43 = vmul.f32 %v4777_v22, %v4213_v41  ;;  %v4217_v9 = vadd.f32 %v11896_v32, %v10519_v2  ;;  %v4219_v6 = vadd.f32 %v11898_v0, %v10540_v49  ;;  %v11905_v32 = vld [vmem:[#allocation106_spill] sm:$0xff] }
 0xba2   :  { %v5115_v24 = vadd.f32 %v5099_v27, %v5083_v12  ;;  %v5084_v18 = vadd.f32 %v5068_v54, %v10470_v44  ;;  %5199 = vrot.lane.b32.xlu1 %v10647_v56, %s11221_s13  ;;  %v4332_v44 = vadd.f32 %v11900_v7, %v10550_v57  ;;  %v4334_v46 = vadd.f32 %v11901_v5, %v10545_v48 }
 0xba3   :  { %v4336_v23 = vadd.f32 %v11903_v45, %v10550_v57 }
 0xba4   :  { %v5147_v17 = vadd.f32 %v5131_v4, %v5115_v24  ;;  %v5116_v29 = vadd.f32 %v5100_v43, %v5084_v18  ;;  %v11902_v4 = vld [vmem:[#allocation180_spill] sm:$0xff]  ;;  %v11904_v18 = vld [vmem:[#allocation74_spill] sm:$0xff] }
 0xba5   :  { %v4781_v61 = vpop.f32.mrb[60].mxu1  ;;  %v4894_v26 = vpop.f32.mrb[52].mxu0  ;;  %v4223_v52 = vadd.f32 %v11902_v4, %v10540_v49 }
 0xba6   :  { %v10664_v10 = vadd.f32 %v5163_v42, %v5147_v17  ;;  %v5148_v35 = vadd.f32 %v5132_v47, %v5116_v29  ;;  %v5069_v8 = vmul.f32 %v4781_v61, %v4217_v9  ;;  %v5133_v37 = vmul.f32 %v4894_v26, %v4330_v31  ;;  %v4783_v20 = vpop.f32.mrb[61].mxu1  ;;  %v4896_v3 = vpop.f32.mrb[53].mxu0  ;;  %v11906_v17 = vld [vmem:[#allocation75_spill] sm:$0xff] }
 0xba7   :  { %v5101_v41 = vmul.f32 %v4783_v20, %v4219_v6  ;;  %v5165_v50 = vmul.f32 %v4896_v3, %v4332_v44  ;;  %v4785_v53 = vpop.f32.mrb[62].mxu1  ;;  %v4898_v27 = vpop.f32.mrb[54].mxu0  ;;  %v4340_v9 = vadd.f32 %v11905_v32, %v10545_v48  ;;  %v11907_v29 = vld [vmem:[#allocation183_spill] sm:$0xff]  ;;  %v11908_v6 = vld [vmem:[#allocation226_spill] sm:$0xff]  ;;  %v11910_v20 = vld [vmem:[#allocation108_spill] sm:$0xff] }
 0xba8   :  { %v5085_v55 = vadd.f32 %v5069_v8, %v10482_v39  ;;  %v5070_v60 = vmul.f32 %v4785_v53, %v4221_v36  ;;  %v5134_v42 = vmul.f32 %v4898_v27, %v4334_v46  ;;  %v4900_v12 = vpop.f32.mrb[55].mxu0  ;;  %5201 = vrot.lane.b32.xlu0 %v10664_v10, %s11221_s13  ;;  %v4787_v54 = vpop.f32.mrb[63].mxu1  ;;  %v10673_v47 = vadd.f32 %v5164_v40, %v5148_v35  ;;  %v11909_v8 = vld [vmem:[#allocation76_spill] sm:$0xff]  ;;  %v11913_v32 = vld [vmem:[#allocation77_spill] sm:$0xff] }
 0xba9   :  { %v5166_v38 = vmul.f32 %v4900_v12, %v4336_v23  ;;  %v5102_v22 = vmul.f32 %v4787_v54, %v4223_v52  ;;  %v4227_v39 = vadd.f32 %v11904_v18, %v10519_v2  ;;  %v4229_v40 = vadd.f32 %v11906_v17, %v10540_v49 }
 0xbaa   :  { %v5117_v43 = vadd.f32 %v5101_v41, %v5085_v55  ;;  %v5086_v24 = vadd.f32 %v5070_v60, %v10490_v15  ;;  %5203 = vrot.lane.b32.xlu1 %v10673_v47, %s11221_s13  ;;  %v4231_v0 = vadd.f32 %v11907_v29, %v10519_v2  ;;  %v4342_v15 = vadd.f32 %v10282_v30, %v10550_v57 }
 0xbab   :  { %v4344_v62 = vadd.f32 %v11908_v6, %v10545_v48  ;;  %v4346_v3 = vadd.f32 %v11910_v20, %v10550_v57 }
 0xbac   :  { %v5149_v33 = vadd.f32 %v5133_v37, %v5117_v43  ;;  %v5118_v31 = vadd.f32 %v5102_v22, %v5086_v24  ;;  %v4233_v37 = vadd.f32 %v11909_v8, %v10540_v49  ;;  %v11911_v22 = vld [vmem:[#allocation184_spill] sm:$0xff]  ;;  %v11912_v43 = vld [vmem:[#allocation109_spill] sm:$0xff] }
 0xbad   :  { %v4791_v36 = vpop.f32.mrb[64].mxu1  ;;  %v4904_v7 = vpop.f32.mrb[56].mxu0  ;;  %v4350_v24 = vadd.f32 %v11912_v43, %v10545_v48  ;;  %v11921_v43 = vld [vmem:[#allocation110_spill] sm:$0xff] }
 0xbae   :  { %v10690_v44 = vadd.f32 %v5165_v50, %v5149_v33  ;;  %v5150_v5 = vadd.f32 %v5134_v42, %v5118_v31  ;;  %v5071_v46 = vmul.f32 %v4791_v36, %v4227_v39  ;;  %v5135_v61 = vmul.f32 %v4904_v7, %v4340_v9  ;;  %v4793_v26 = vpop.f32.mrb[65].mxu1  ;;  %v4906_v35 = vpop.f32.mrb[57].mxu0  ;;  %v11914_v9 = vld [vmem:[#allocation187_spill] sm:$0xff]  ;;  %v11915_v7 = vld [vmem:[#allocation78_spill] sm:$0xff] }
 0xbaf   :  { %v5103_v4 = vmul.f32 %v4793_v26, %v4229_v40  ;;  %v5167_v30 = vmul.f32 %v4906_v35, %v4342_v15  ;;  %v4795_v52 = vpop.f32.mrb[66].mxu1  ;;  %v4908_v45 = vpop.f32.mrb[58].mxu0  ;;  %v4241_v33 = vadd.f32 %v11914_v9, %v10519_v2  ;;  %v4354_v31 = vadd.f32 %v10292_v28, %v10545_v48 }
 0xbb0   :  { %v5087_v23 = vadd.f32 %v5071_v46, %v10502_v58  ;;  %v5072_v41 = vmul.f32 %v4795_v52, %v4231_v0  ;;  %v5136_v50 = vmul.f32 %v4908_v45, %v4344_v62  ;;  %v4910_v53 = vpop.f32.mrb[59].mxu0  ;;  %5205 = vrot.lane.b32.xlu0 %v10690_v44, %s11221_s13  ;;  %v4797_v27 = vpop.f32.mrb[67].mxu1  ;;  %v10699_v55 = vadd.f32 %v5166_v38, %v5150_v5  ;;  %v11916_v46 = vld [vmem:[#allocation227_spill] sm:$0xff] }
 0xbb1   :  { %v5168_v60 = vmul.f32 %v4910_v53, %v4346_v3  ;;  %v5104_v42 = vmul.f32 %v4797_v27, %v4233_v37  ;;  %v4237_v58 = vadd.f32 %v11911_v22, %v10519_v2  ;;  %v4239_v38 = vadd.f32 %v11913_v32, %v10540_v49  ;;  %v11918_v53 = vld [vmem:[#allocation228_spill] sm:$0xff] }
 0xbb2   :  { %v5119_v12 = vadd.f32 %v5103_v4, %v5087_v23  ;;  %v5088_v54 = vadd.f32 %v5072_v41, %v10510_v11  ;;  %5207 = vrot.lane.b32.xlu1 %v10699_v55, %s11221_s13  ;;  %v4352_v11 = vadd.f32 %v10290_v59, %v10550_v57  ;;  %v4243_v5 = vadd.f32 %v11915_v7, %v10540_v49  ;;  %v11920_v22 = vld [vmem:[#allocation80_spill] sm:$0xff] }
 0xbb3   :  { %v4360_v27 = vadd.f32 %v11918_v53, %v10545_v48 }
 0xbb4   :  { %v5151_v18 = vadd.f32 %v5135_v61, %v5119_v12  ;;  %v5120_v39 = vadd.f32 %v5104_v42, %v5088_v54  ;;  %v4356_v61 = vadd.f32 %v11916_v46, %v10550_v57  ;;  %v11919_v54 = vld [vmem:[#allocation79_spill] sm:$0xff] }
 0xbb5   :  { %v4801_v17 = vpop.f32.mrb[68].mxu1  ;;  %v4914_v40 = vpop.f32.mrb[60].mxu0 }
 0xbb6   :  { %v10716_v29 = vadd.f32 %v5167_v30, %v5151_v18  ;;  %v5152_v0 = vadd.f32 %v5136_v50, %v5120_v39  ;;  %v5073_v15 = vmul.f32 %v4801_v17, %v4237_v58  ;;  %v5137_v6 = vmul.f32 %v4914_v40, %v4350_v24  ;;  %v4803_v62 = vpop.f32.mrb[69].mxu1  ;;  %v4916_v36 = vpop.f32.mrb[61].mxu0  ;;  %v11917_v50 = vld [vmem:[#allocation190_spill] sm:$0xff]  ;;  %v11922_v24 = vld [vmem:[#allocation111_spill] sm:$0xff] }
 0xbb7   :  { %v5105_v26 = vmul.f32 %v4803_v62, %v4239_v38  ;;  %v5169_v59 = vmul.f32 %v4916_v36, %v4352_v11  ;;  %v4805_v35 = vpop.f32.mrb[70].mxu1  ;;  %v4918_v8 = vpop.f32.mrb[62].mxu0  ;;  %v4251_v58 = vadd.f32 %v11920_v22, %v10519_v2  ;;  %v4364_v18 = vadd.f32 %v11922_v24, %v10545_v48  ;;  %v11923_v40 = vld [vmem:[#allocation195_spill] sm:$0xff] }
 0xbb8   :  { %v5089_v28 = vadd.f32 %v5073_v15, %v10527_v63  ;;  %v5074_v37 = vmul.f32 %v4805_v35, %v4241_v33  ;;  %v5138_v20 = vmul.f32 %v4918_v8, %v4354_v31  ;;  %v4920_v3 = vpop.f32.mrb[63].mxu0  ;;  %5209 = vrot.lane.b32.xlu0 %v10716_v29, %s11221_s13  ;;  %v4807_v4 = vpop.f32.mrb[71].mxu1  ;;  %v10725_v30 = vadd.f32 %v5168_v60, %v5152_v0 }
 0xbb9   :  { %v5170_v52 = vmul.f32 %v4920_v3, %v4356_v61  ;;  %v5106_v45 = vmul.f32 %v4807_v4, %v4243_v5  ;;  %v4247_v63 = vadd.f32 %v11917_v50, %v10519_v2  ;;  %v4249_v60 = vadd.f32 %v11919_v54, %v10540_v49  ;;  %v11924_v2 = vld [vmem:[#allocation229_spill] sm:$0xff] }
 0xbba   :  { %v5121_v23 = vadd.f32 %v5105_v26, %v5089_v28  ;;  %v5090_v41 = vadd.f32 %v5074_v37, %v10535_v25  ;;  %5211 = vrot.lane.b32.xlu1 %v10725_v30, %s11221_s13  ;;  %v4362_v25 = vadd.f32 %v11921_v43, %v10550_v57  ;;  %v4253_v0 = vadd.f32 %v11923_v40, %v10540_v49 }
 0xbbb   :  { %v4366_v15 = vadd.f32 %v11924_v2, %v10550_v57 }
 0xbbc   :  { %v5153_v42 = vadd.f32 %v5137_v6, %v5121_v23  ;;  %v5122_v12 = vadd.f32 %v5106_v45, %v5090_v41 }
 0xbbd   :  { %v4811_v39 = vpop.f32.mrb[72].mxu1  ;;  %v4924_v32 = vpop.f32.mrb[64].mxu0 }
 0xbbe   :  { %v10742_v38 = vadd.f32 %v5169_v59, %v5153_v42  ;;  %v5154_v9 = vadd.f32 %v5138_v20, %v5122_v12  ;;  %v5075_v33 = vmul.f32 %v4811_v39, %v4247_v63  ;;  %v5139_v11 = vmul.f32 %v4924_v32, %v4360_v27  ;;  %v4813_v31 = vpop.f32.mrb[73].mxu1  ;;  %v4926_v17 = vpop.f32.mrb[65].mxu0 }
 0xbbf   :  { %v5107_v6 = vmul.f32 %v4813_v31, %v4249_v60  ;;  %v5171_v62 = vmul.f32 %v4926_v17, %v4362_v25  ;;  %v4815_v36 = vpop.f32.mrb[74].mxu1  ;;  %v4928_v7 = vpop.f32.mrb[66].mxu0 }
 0xbc0   :  { %v5091_v48 = vadd.f32 %v5075_v33, %v10562_v1  ;;  %v5076_v5 = vmul.f32 %v4815_v36, %v4251_v58  ;;  %v5140_v46 = vmul.f32 %v4928_v7, %v4364_v18  ;;  %v4930_v61 = vpop.f32.mrb[67].mxu0  ;;  %5213 = vrot.lane.b32.xlu0 %v10742_v38, %s11221_s13  ;;  %v4817_v26 = vpop.f32.mrb[75].mxu1  ;;  %v5186_v59 = vadd.f32 %v5170_v52, %v5154_v9 }
 0xbc1   :  { %v5172_v35 = vmul.f32 %v4930_v61, %v4366_v15  ;;  %v5108_v8 = vmul.f32 %v4817_v26, %v4253_v0 }
 0xbc2   :  { %v5123_v49 = vadd.f32 %v5107_v6, %v5091_v48  ;;  %v5092_v28 = vadd.f32 %v5076_v5, %v10570_v13  ;;  %5215 = vrot.lane.b32.xlu1 %v5186_v59, %s11221_s13 }
 0xbc4   :  { %v5155_v57 = vadd.f32 %v5139_v11, %v5123_v49  ;;  %v5124_v37 = vadd.f32 %v5108_v8, %v5092_v28 }
 0xbc6   :  { %v5187_v20 = vadd.f32 %v5171_v62, %v5155_v57  ;;  %v5156_v3 = vadd.f32 %v5140_v46, %v5124_v37 }
 0xbc8   :  { %5217 = vrot.lane.b32.xlu0 %v5187_v20, %s11221_s13  ;;  %v5188_v1 = vadd.f32 %v5172_v35, %v5156_v3 }
 0xbca   :  { %5219 = vrot.lane.b32.xlu1 %v5188_v1, %s11221_s13 }
 0xc02   :  { %v5190_v4 = vpop.permute.xlu0 %5189 }
 0xc03   :  { %v5221_v45 = vadd.f32 %v5190_v4, %v10586_v14 }
 0xc04   :  { %v5192_v52 = vpop.permute.xlu1 %5191 }
 0xc05   :  { %v5222_v23 = vadd.f32 %v5192_v52, %v10595_v34  ;;  %5237 = vrot.lane.b32.xlu0 %v5221_v45, %s7286_s10 }
 0xc07   :  { %5239 = vrot.lane.b32.xlu1 %v5222_v23, %s7286_s10 }
 0xc0a   :  { %v5194_v13 = vpop.permute.xlu0 %5193 }
 0xc0b   :  { %v5223_v41 = vadd.f32 %v5194_v13, %v10612_v21 }
 0xc0c   :  { %v5196_v50 = vpop.permute.xlu1 %5195 }
 0xc0d   :  { %v5224_v63 = vadd.f32 %v5196_v50, %v10621_v19  ;;  %5241 = vrot.lane.b32.xlu0 %v5223_v41, %s7286_s10 }
 0xc0f   :  { %5243 = vrot.lane.b32.xlu1 %v5224_v63, %s7286_s10 }
 0xc12   :  { %v5198_v53 = vpop.permute.xlu0 %5197 }
 0xc13   :  { %v5225_v14 = vadd.f32 %v5198_v53, %v10638_v51 }
 0xc14   :  { %v5200_v27 = vpop.permute.xlu1 %5199 }
 0xc15   :  { %v5226_v34 = vadd.f32 %v5200_v27, %v10647_v56  ;;  %5245 = vrot.lane.b32.xlu0 %v5225_v14, %s7286_s10 }
 0xc17   :  { %5247 = vrot.lane.b32.xlu1 %v5226_v34, %s7286_s10 }
 0xc1a   :  { %v5202_v42 = vpop.permute.xlu0 %5201 }
 0xc1b   :  { %v5227_v21 = vadd.f32 %v5202_v42, %v10664_v10  ;;  %v5654_v42 = vld [vmem:[%s11013_s24 + $0x48] sm:$0xff] }
 0xc1c   :  { %v5204_v12 = vpop.permute.xlu1 %5203 }
 0xc1d   :  { %v5228_v19 = vadd.f32 %v5204_v12, %v10673_v47  ;;  %5249 = vrot.lane.b32.xlu0 %v5227_v21, %s7286_s10  ;;  %v11930_v12 = vld [vmem:[#allocation51_spill] sm:$0xff] }
 0xc1e   :  { %vm11931_vm12 = vnez %v11930_v12  ;;  %v5655_v12 = vld [vmem:[%s11013_s24 + $0x50] sm:$0xff] }
 0xc1f   :  { %5251 = vrot.lane.b32.xlu1 %v5228_v19, %s7286_s10 }
 0xc22   :  { %v5206_v54 = vpop.permute.xlu0 %5205 }
 0xc23   :  { %v5229_v51 = vadd.f32 %v5206_v54, %v10690_v44  ;;  %v11934_v54 = vld [vmem:[#allocation53_spill] sm:$0xff] }
 0xc24   :  { %v5208_v60 = vpop.permute.xlu1 %5207  ;;  %vm11935_vm3 = vnez %v11934_v54 }
 0xc25   :  { %v5230_v56 = vadd.f32 %v5208_v60, %v10699_v55  ;;  %5253 = vrot.lane.b32.xlu0 %v5229_v51, %s7286_s10  ;;  %v11938_v60 = vld [vmem:[#allocation55_spill] sm:$0xff] }
 0xc26   :  { %vm11939_vm13 = vnez %v11938_v60  ;;  %v5658_v60 = vld [vmem:[%s11013_s24 + $0x68] sm:$0xff] }
 0xc27   :  { %5255 = vrot.lane.b32.xlu1 %v5230_v56, %s7286_s10 }
 0xc2a   :  { %v5210_v22 = vpop.permute.xlu0 %5209 }
 0xc2b   :  { %v5231_v10 = vadd.f32 %v5210_v22, %v10716_v29  ;;  %v7295_v22 = vmov 0.0|0.0  }
 0xc2c   :  { %v5212_v58 = vpop.permute.xlu1 %5211 }
 0xc2d   :  { %v5232_v47 = vadd.f32 %v5212_v58, %v10725_v30  ;;  %5257 = vrot.lane.b32.xlu0 %v5231_v10, %s7286_s10  ;;  %v5638_v30 = vld [vmem:[%s11925_s11] sm:$0xff] }
 0xc2e   :  { %v6265_v58 = vld [vmem:[%s11008_s19] ss:$0 sm:$0xff] }
 0xc2f   :  { %5259 = vrot.lane.b32.xlu1 %v5232_v47, %s7286_s10 }
 0xc32   :  { %v5214_v43 = vpop.permute.xlu0 %5213 }
 0xc33   :  { %v5233_v44 = vadd.f32 %v5214_v43, %v10742_v38 }
 0xc34   :  { %v5216_v25 = vpop.permute.xlu1 %5215 }
 0xc35   :  { %v5234_v24 = vadd.f32 %v5216_v25, %v5186_v59  ;;  %5261 = vrot.lane.b32.xlu0 %v5233_v44, %s7286_s10 }
 0xc37   :  { %5263 = vrot.lane.b32.xlu1 %v5234_v24, %s7286_s10 }
 0xc3a   :  { %v5218_v55 = vpop.permute.xlu0 %5217 }
 0xc3b   :  { %v5235_v18 = vadd.f32 %v5218_v55, %v5187_v20 }
 0xc3c   :  { %v5220_v39 = vpop.permute.xlu1 %5219 }
 0xc3d   :  { %v5236_v29 = vadd.f32 %v5220_v39, %v5188_v1  ;;  %5265 = vrot.lane.b32.xlu0 %v5235_v18, %s7286_s10 }
 0xc3f   :  { %5267 = vrot.lane.b32.xlu1 %v5236_v29, %s7286_s10 }
 0xc41   :  { %5641 = vperm.xlu0 %6954, %v5638_v30  }
 0xc77   :  { %v5238_v32 = vpop.permute.xlu0 %5237 }
 0xc78   :  { %v5269_v9 = vadd.f32 %v5238_v32, %v5221_v45 }
 0xc79   :  { %v5240_v38 = vpop.permute.xlu1 %5239 }
 0xc7a   :  { %v5270_v33 = vadd.f32 %v5240_v38, %v5222_v23 }
 0xc7c   :  { %v6226_v11 = vpack.c.bf16 %v5270_v33, %v5269_v9 }
 0xc7e   :  { %6713 = vmatprep.subr.msk.bf16.mxu1 %vm11612_vm6, %v6226_v11 }
 0xc7f   :  { %v5242_v17 = vpop.permute.xlu0 %5241  ;;  %6714 = vmatpush3.bf16.msk.msra.mxu1 %vm11612_vm6, %v6226_v11 }
 0xc80   :  { %v5271_v0 = vadd.f32 %v5242_v17, %v5223_v41 }
 0xc81   :  { %v5244_v40 = vpop.permute.xlu1 %5243 }
 0xc82   :  { %v5272_v2 = vadd.f32 %v5244_v40, %v5224_v63 }
 0xc84   :  { %v6229_v15 = vpack.c.bf16 %v5272_v2, %v5271_v0 }
 0xc86   :  { %6715 = vmatprep.subr.msk.bf16.mxu1 %vm11612_vm6, %v6229_v15 }
 0xc87   :  { %v5246_v6 = vpop.permute.xlu0 %5245  ;;  %6716 = vmatpush3.bf16.msk.msra.mxu1 %vm11612_vm6, %v6229_v15 }
 0xc88   :  { %v5273_v36 = vadd.f32 %v5246_v6, %v5225_v14 }
 0xc89   :  { %v5248_v62 = vpop.permute.xlu1 %5247 }
 0xc8a   :  { %v5274_v7 = vadd.f32 %v5248_v62, %v5226_v34  ;;  %v11927_v34 = vmov 1.0|1.0  }
 0xc8c   :  { %v6232_v48 = vpack.c.bf16 %v5274_v7, %v5273_v36 }
 0xc8e   :  { %6717 = vmatprep.subr.msk.bf16.mxu1 %vm11612_vm6, %v6232_v48 }
 0xc8f   :  { %v5250_v5 = vpop.permute.xlu0 %5249  ;;  %6718 = vmatpush3.bf16.msk.msra.mxu1 %vm11612_vm6, %v6232_v48 }
 0xc90   :  { %v5275_v61 = vadd.f32 %v5250_v5, %v5227_v21 }
 0xc91   :  { %v5252_v46 = vpop.permute.xlu1 %5251 }
 0xc92   :  { %v5276_v26 = vadd.f32 %v5252_v46, %v5228_v19  ;;  %v11932_v19 = vld [vmem:[#allocation52_spill] sm:$0xff] }
 0xc93   :  { %vm11933_vm15 = vnez %v11932_v19  ;;  %v5656_v19 = vld [vmem:[%s11013_s24 + $0x58] sm:$0xff] }
 0xc94   :  { %v6235_v59 = vpack.c.bf16 %v5276_v26, %v5275_v61  ;;  %v6851_v54 = vpack.c.bf16 %v5656_v19, %v5655_v12 }
 0xc96   :  { %6719 = vmatprep.subr.msk.bf16.mxu1 %vm11612_vm6, %v6235_v59 }
 0xc97   :  { %v5254_v35 = vpop.permute.xlu0 %5253  ;;  %6720 = vmatpush3.bf16.msk.msra.mxu1 %vm11612_vm6, %v6235_v59 }
 0xc98   :  { %v5277_v49 = vadd.f32 %v5254_v35, %v5229_v51  ;;  %v11936_v51 = vld [vmem:[#allocation54_spill] sm:$0xff] }
 0xc99   :  { %v5256_v8 = vpop.permute.xlu1 %5255  ;;  %vm11937_vm8 = vnez %v11936_v51  ;;  %v5657_v51 = vld [vmem:[%s11013_s24 + $0x60] sm:$0xff] }
 0xc9a   :  { %v5278_v28 = vadd.f32 %v5256_v8, %v5230_v56  ;;  %v7293_v56 = vmov 0.0  }
 0xc9b   :  { %6745 = vmatprep.subr.bf16.mxu0 %v7293_v56  ;;  %6761 = vmatprep.mubr.msk.bf16.mxu0 %vm7294_vm4, %v7293_v56 }
 0xc9c   :  { %v6238_v57 = vpack.c.bf16 %v5278_v28, %v5277_v49 }
 0xc9e   :  { %6721 = vmatprep.subr.msk.bf16.mxu1 %vm11612_vm6, %v6238_v57 }
 0xc9f   :  { %v5258_v37 = vpop.permute.xlu0 %5257  ;;  %6722 = vmatpush3.bf16.msk.msra.mxu1 %vm11612_vm6, %v6238_v57 }
 0xca0   :  { %v5279_v3 = vadd.f32 %v5258_v37, %v5231_v10 }
 0xca1   :  { %v5260_v20 = vpop.permute.xlu1 %5259 }
 0xca2   :  { %v5280_v1 = vadd.f32 %v5260_v20, %v5232_v47 }
 0xca4   :  { %v6241_v4 = vpack.c.bf16 %v5280_v1, %v5279_v3  ;;  %v5886_v1 = vld [vmem:[#allocation5] ss:$0 sm:$0xff] }
 0xca6   :  { %6723 = vmatprep.subr.msk.bf16.mxu1 %vm11612_vm6, %v6241_v4 }
 0xca7   :  { %v5262_v45 = vpop.permute.xlu0 %5261  ;;  %6724 = vmatpush3.bf16.msk.msra.mxu1 %vm11612_vm6, %v6241_v4  ;;  %v5645_v4 = vld [vmem:[%s11013_s24] sm:$0xff] }
 0xca8   :  { %v5281_v23 = vadd.f32 %v5262_v45, %v5233_v44  ;;  %v5646_v45 = vld [vmem:[%s11013_s24 + $0x8] sm:$0xff] }
 0xca9   :  { %v5264_v52 = vpop.permute.xlu1 %5263 }
 0xcaa   :  { %v5282_v13 = vadd.f32 %v5264_v52, %v5234_v24  ;;  %v6836_v52 = vpack.c.bf16 %v5646_v45, %v5645_v4 }
 0xcac   :  { %v6244_v41 = vpack.c.bf16 %v5282_v13, %v5281_v23  ;;  %v5647_v23 = vld [vmem:[%s11013_s24 + $0x10] sm:$0xff] }
 0xcae   :  { %6725 = vmatprep.subr.msk.bf16.mxu1 %vm11612_vm6, %v6244_v41 }
 0xcaf   :  { %v5266_v50 = vpop.permute.xlu0 %5265  ;;  %6726 = vmatpush3.bf16.msk.msra.mxu1 %vm11612_vm6, %v6244_v41  ;;  %v5649_v41 = vld [vmem:[%s11013_s24 + $0x20] sm:$0xff] }
 0xcb0   :  { %v5283_v53 = vadd.f32 %v5266_v50, %v5235_v18  ;;  %v5650_v50 = vld [vmem:[%s11013_s24 + $0x28] sm:$0xff] }
 0xcb1   :  { %v5268_v63 = vpop.permute.xlu1 %5267 }
 0xcb2   :  { %v5284_v14 = vadd.f32 %v5268_v63, %v5236_v29  ;;  %v6842_v63 = vpack.c.bf16 %v5650_v50, %v5649_v41 }
 0xcb4   :  { %v6247_v27 = vpack.c.bf16 %v5284_v14, %v5283_v53  ;;  %v5651_v53 = vld [vmem:[%s11013_s24 + $0x30] sm:$0xff]  ;;  %v5652_v14 = vld [vmem:[%s11013_s24 + $0x38] sm:$0xff] }
 0xcb6   :  { %6727 = vmatprep.subr.msk.bf16.mxu1 %vm11612_vm6, %v6247_v27 }
 0xcb7   :  { %6728 = vmatpush3.bf16.msk.msra.mxu1 %vm11612_vm6, %v6247_v27  ;;  %vm469_vm6 = vcmp.eq.s32.totalorder %v11829_v16, %v5886_v1  ;;  %v5648_v16 = vld [vmem:[%s11013_s24 + $0x18] sm:$0xff]  ;;  %v6845_v27 = vpack.c.bf16 %v5652_v14, %v5651_v53 }
 0xcb8   :  { %6859 = vmatprep.subr.bf16.mxu1 %v7295_v22  ;;  %v6839_v13 = vpack.c.bf16 %v5648_v16, %v5647_v23 }
 0xcba   :  { %6730 = vmatmul.mubr.msk.bf16.vlgmr.msra.gmra.mrb[76].mxu1 %vm11615_vm11, %v11927_v34  ;;  %vm6266_vm11 = vmpackc.low %vm469_vm6, %vm469_vm6 }
 0xcbb   :  { %6733 = vmatprep.mubr.msk.bf16.mxu1 %vm11617_vm1, %v11927_v34 }
 0xcc2   :  { %6734 = vmatmul.mubr.msk.bf16.gmra.mrb[80].mxu1 %vm11931_vm12, %v11927_v34 }
 0xcc3   :  { %6737 = vmatprep.mubr.msk.bf16.mxu1 %vm11933_vm15, %v11927_v34 }
 0xcca   :  { %6738 = vmatmul.mubr.msk.bf16.gmra.mrb[84].mxu1 %vm11935_vm3, %v11927_v34 }
 0xccb   :  { %6741 = vmatprep.mubr.msk.bf16.mxu1 %vm11937_vm8, %v11927_v34 }
 0xcd2   :  { %6742 = vmatmul.mubr.msk.bf16.gmra.mrb[88].mxu1 %vm11939_vm13, %v11927_v34 }
 0xcd3   :  { %6832 = vmatprep.mubr.msk.f32.mxu1 %vm7294_vm4, %v7293_v56 }
 0xd8d   :  { %v6731_v10 = vpop.f32.mrb[76].mxu1 }
 0xd8e   :  { %v5504_v47 = vpop.f32.mrb[77].mxu1  ;;  %v5576_v44 = vadd.f32 %v6731_v10, %v6265_v58  ;;  %v5659_v10 = vld [vmem:[%s11013_s24 + $0x70] sm:$0xff] }
 0xd8f   :  { %v6732_v43 = vpop.f32.mrb[78].mxu1  ;;  %v5574_v55 = vadd.f32 %v6265_v58, %v5504_v47 }
 0xd90   :  { %v5577_v25 = vadd.f32 %v6732_v43, %v6265_v58  ;;  %v5507_v24 = vpop.f32.mrb[79].mxu1  ;;  %v5739_v43 = vld [vmem:[%s11015_s26] sm:$0xff] }
 0xd91   :  { %v5575_v18 = vadd.f32 %v6265_v58, %v5507_v24 }
 0xd92   :  { %v5591_v39 = vpack.c.bf16 %v5577_v25, %v5576_v44  ;;  %v5740_v44 = vld [vmem:[%s11015_s26 + $0x8] sm:$0xff]  ;;  %v5741_v25 = vld [vmem:[%s11015_s26 + $0x10] sm:$0xff] }
 0xd93   :  { %v5590_v29 = vpack.c.bf16 %v5575_v18, %v5574_v55  ;;  %v6860_v24 = vpack.c.bf16 %v5740_v44, %v5739_v43  ;;  %v5742_v55 = vld [vmem:[%s11015_s26 + $0x18] sm:$0xff] }
 0xd94   :  { %v6863_v18 = vpack.c.bf16 %v5742_v55, %v5741_v25 }
 0xd95   :  { %v6735_v30 = vpop.f32.mrb[80].mxu1  ;;  %6746 = vmatpush3.bf16.msra.mxu0 %v5590_v29  ;;  %6861 = vmatpush3.bf16.msra.mxu1 %v6860_v24  ;;  %v5744_v29 = vld [vmem:[%s11015_s26 + $0x28] sm:$0xff] }
 0xd96   :  { %v5520_v32 = vpop.f32.mrb[81].mxu1  ;;  %6747 = vmatprep.subr.bf16.mxu0 %v7293_v56  ;;  %v5580_v9 = vadd.f32 %v6735_v30, %v6265_v58  ;;  %6862 = vmatprep.subr.bf16.mxu1 %v7295_v22 }
 0xd97   :  { %v6736_v38 = vpop.f32.mrb[82].mxu1  ;;  %v5578_v31 = vadd.f32 %v6265_v58, %v5520_v32  ;;  %v5745_v32 = vld [vmem:[%s11015_s26 + $0x30] sm:$0xff] }
 0xd98   :  { %v5581_v33 = vadd.f32 %v6736_v38, %v6265_v58  ;;  %v5523_v11 = vpop.f32.mrb[83].mxu1  ;;  %v5746_v38 = vld [vmem:[%s11015_s26 + $0x38] sm:$0xff] }
 0xd99   :  { %v5579_v17 = vadd.f32 %v6265_v58, %v5523_v11  ;;  %6748 = vmatpush3.bf16.msra.mxu0 %v5591_v39  ;;  %v5743_v39 = vld [vmem:[%s11015_s26 + $0x20] sm:$0xff]  ;;  %6864 = vmatpush3.bf16.msra.mxu1 %v6863_v18  ;;  %v5748_v11 = vld [vmem:[%s11015_s26 + $0x48] sm:$0xff] }
 0xd9a   :  { %v5593_v40 = vpack.c.bf16 %v5581_v33, %v5580_v9  ;;  %6749 = vmatprep.subr.bf16.mxu0 %v7293_v56  ;;  %v6866_v30 = vpack.c.bf16 %v5744_v29, %v5743_v39  ;;  %6865 = vmatprep.subr.bf16.mxu1 %v7295_v22  ;;  %v6869_v9 = vpack.c.bf16 %v5746_v38, %v5745_v32  ;;  %v5747_v33 = vld [vmem:[%s11015_s26 + $0x40] sm:$0xff] }
 0xd9b   :  { %v5592_v0 = vpack.c.bf16 %v5579_v17, %v5578_v31  ;;  %v6872_v31 = vpack.c.bf16 %v5748_v11, %v5747_v33  ;;  %v5749_v17 = vld [vmem:[%s11015_s26 + $0x50] sm:$0xff] }
 0xd9d   :  { %v6739_v2 = vpop.f32.mrb[84].mxu1  ;;  %6750 = vmatpush3.bf16.msra.mxu0 %v5592_v0  ;;  %6867 = vmatpush3.bf16.msra.mxu1 %v6866_v30 }
 0xd9e   :  { %v5536_v15 = vpop.f32.mrb[85].mxu1  ;;  %6751 = vmatprep.subr.bf16.mxu0 %v7293_v56  ;;  %v5584_v62 = vadd.f32 %v6739_v2, %v6265_v58  ;;  %6868 = vmatprep.subr.bf16.mxu1 %v7295_v22  ;;  %v5751_v2 = vld [vmem:[%s11015_s26 + $0x60] sm:$0xff] }
 0xd9f   :  { %v6740_v6 = vpop.f32.mrb[86].mxu1  ;;  %v5582_v48 = vadd.f32 %v6265_v58, %v5536_v15  ;;  %v5752_v15 = vld [vmem:[%s11015_s26 + $0x68] sm:$0xff] }
 0xda0   :  { %v5585_v36 = vadd.f32 %v6740_v6, %v6265_v58  ;;  %v5539_v7 = vpop.f32.mrb[87].mxu1  ;;  %v6878_v6 = vpack.c.bf16 %v5752_v15, %v5751_v2 }
 0xda1   :  { %v5583_v5 = vadd.f32 %v6265_v58, %v5539_v7  ;;  %6752 = vmatpush3.bf16.msra.mxu0 %v5593_v40  ;;  %6870 = vmatpush3.bf16.msra.mxu1 %v6869_v9  ;;  %v5750_v40 = vld [vmem:[%s11015_s26 + $0x58] sm:$0xff] }
 0xda2   :  { %v5595_v46 = vpack.c.bf16 %v5585_v36, %v5584_v62  ;;  %6753 = vmatprep.subr.bf16.mxu0 %v7293_v56  ;;  %6871 = vmatprep.subr.bf16.mxu1 %v7295_v22  ;;  %v6875_v0 = vpack.c.bf16 %v5750_v40, %v5749_v17  ;;  %v5642_v62 = vpop.permute.xlu0 %5641 }
 0xda3   :  { %v5594_v61 = vpack.c.bf16 %v5583_v5, %v5582_v48 }
 0xda5   :  { %v6743_v26 = vpop.f32.mrb[88].mxu1  ;;  %6754 = vmatpush3.bf16.msra.mxu0 %v5594_v61  ;;  %6873 = vmatpush3.bf16.msra.mxu1 %v6872_v31  ;;  %v5753_v61 = vld [vmem:[%s11015_s26 + $0x70] sm:$0xff] }
 0xda6   :  { %v5552_v59 = vpop.f32.mrb[89].mxu1  ;;  %6755 = vmatprep.subr.bf16.mxu0 %v7293_v56  ;;  %v5588_v8 = vadd.f32 %v6743_v26, %v6265_v58  ;;  %6874 = vmatprep.subr.bf16.mxu1 %v7295_v22  ;;  %v5754_v26 = vld [vmem:[%s11015_s26 + $0x78] sm:$0xff] }
 0xda7   :  { %v6744_v35 = vpop.f32.mrb[90].mxu1  ;;  %v5586_v57 = vadd.f32 %v6265_v58, %v5552_v59  ;;  %v6881_v59 = vpack.c.bf16 %v5754_v26, %v5753_v61 }
 0xda8   :  { %v5589_v49 = vadd.f32 %v6744_v35, %v6265_v58  ;;  %v5555_v28 = vpop.f32.mrb[91].mxu1 }
 0xda9   :  { %v5587_v37 = vadd.f32 %v6265_v58, %v5555_v28  ;;  %6756 = vmatpush3.bf16.msra.mxu0 %v5595_v46  ;;  %v5660_v58 = vld [vmem:[%s11013_s24 + $0x78] sm:$0xff]  ;;  %6876 = vmatpush3.bf16.msra.mxu1 %v6875_v0 }
 0xdaa   :  { %v5597_v20 = vpack.c.bf16 %v5589_v49, %v5588_v8  ;;  %6757 = vmatprep.subr.bf16.mxu0 %v7293_v56  ;;  %v6857_v47 = vpack.c.bf16 %v5660_v58, %v5659_v10  ;;  %6877 = vmatprep.subr.bf16.mxu1 %v7295_v22 }
 0xdab   :  { %v5596_v3 = vpack.c.bf16 %v5587_v37, %v5586_v57  ;;  %v6269_v57 = vld [vmem:[%s11941_s3] ss:$0 sm:$0xff] }
 0xdad   :  { %6758 = vmatpush3.bf16.msra.mxu0 %v5596_v3  ;;  %6879 = vmatpush3.bf16.msra.mxu1 %v6878_v6 }
 0xdae   :  { %6759 = vmatprep.subr.bf16.mxu0 %v7293_v56  ;;  %6880 = vmatprep.subr.bf16.mxu1 %v7295_v22 }
 0xdb1   :  { %6760 = vmatpush3.bf16.msra.mxu0 %v5597_v20  ;;  %6882 = vmatpush3.bf16.msra.mxu1 %v6881_v59 }
 0xdb2   :  { %6835 = vmatprep.subr.bf16.mxu0 %v7295_v22 }
 0xdb4   :  { %6762 = vmatmul.mubr.msk.bf16.vlgmr.msra.gmra.mrb[68].mxu0 %vm6266_vm11, %v11927_v34  ;;  %v5653_v34 = vld [vmem:[%s11013_s24 + $0x40] sm:$0xff]  ;;  %s7296_s24 = smov [#allocation20]  }
 0xdb5   :  { %6837 = vmatpush3.bf16.msra.mxu0 %v6836_v52  ;;  %6797 = vmatprep.mubr.msk.f32.mxu0 %vm7294_vm4, %v7293_v56  ;;  %v6848_v21 = vpack.c.bf16 %v5654_v42, %v5653_v34  ;;  %v6854_v56 = vpack.c.bf16 %v5658_v60, %v5657_v51  ;;  %s5839_s30 = sshll.u32 %s7296_s24, 4  ;;  %s5840_s30 = int_to_ptr.vmem [resolvable:$true] %s5839_s30 }
 0xdb6   :  { %6838 = vmatprep.subr.bf16.mxu0 %v7295_v22  ;;  %s7240_s26 = scalar_lea.vmem %s5840_s30, 128  ;;  %p7245_p5 = scmp.lt.s32.totalorder %s5840_s30, %s5840_s30 }
 0xdb7   :  { %p7241_p4 = scmp.ne.s32.totalorder %s5840_s30, %s7240_s26  ;;  %p7246_p6 = scmp.lt.s32.totalorder %s7240_s26, %s7240_s26 }
 0xdb9   :  { %6840 = vmatpush3.bf16.msra.mxu0 %v6839_v13  ;;  %p7247_p7 = por %p7246_p6, %p7245_p5 }
 0xdba   :  { %6841 = vmatprep.subr.bf16.mxu0 %v7295_v22 }
 0xdbb   :  { %p7248_p8 = pnand %p7247_p7, %p7241_p4 }
 0xdbd   :  { %6843 = vmatpush3.bf16.msra.mxu0 %v6842_v63 }
 0xdbe   :  { %6844 = vmatprep.subr.bf16.mxu0 %v7295_v22 }
 0xdc1   :  { %6846 = vmatpush3.bf16.msra.mxu0 %v6845_v27 }
 0xdc2   :  { %6847 = vmatprep.subr.bf16.mxu0 %v7295_v22 }
 0xdc5   :  { %6849 = vmatpush3.bf16.msra.mxu0 %v6848_v21 }
 0xdc6   :  { %6850 = vmatprep.subr.bf16.mxu0 %v7295_v22 }
 0xdc9   :  { %6852 = vmatpush3.bf16.msra.mxu0 %v6851_v54 }
 0xdca   :  { %6853 = vmatprep.subr.bf16.mxu0 %v7295_v22 }
 0xdcd   :  { %6855 = vmatpush3.bf16.msra.mxu0 %v6854_v56 }
 0xdce   :  { %6856 = vmatprep.subr.bf16.mxu0 %v7295_v22  ;;  %v6268_v22 = vld [vmem:[%s11940_s12] ss:$0 sm:$0xff] }
 0xdd1   :  { %6858 = vmatpush3.bf16.msra.mxu0 %v6857_v47 }
 0xe87   :  { %v5632_v36 = vpop.f32.mrb[68].mxu0 }
 0xe88   :  { %v5644_v7 = vmul.f32 %v5642_v62, %v5632_v36  ;;  %v6763_v48 = vpop.f32.mrb[69].mxu0 }
 0xe89   :  { %v5635_v5 = vpop.f32.mrb[70].mxu0 }
 0xe8a   :  { %6798 = vmatmul.mubr.f32.vlgmr.msra.gmra.mrb[72].mxu0 %v5644_v7  ;;  %v6764_v46 = vpop.f32.mrb[71].mxu0 }
 0xf5d   :  { %v5734_v35 = vpop.f32.mrb[72].mxu0 }
 0xf5e   :  { %v5735_v8 = vadd.f32 %v6268_v22, %v5734_v35  ;;  %v6799_v49 = vpop.f32.mrb[73].mxu0 }
 0xf60   :  { %v5738_v28 = vmax.f32 %v5735_v8, 0.0 }
 0xf62   :  { %6833 = vmatmul.mubr.f32.vlgmr.msra.gmra.mrb[92].mxu1 %v5738_v28 }
0x1035   :  { %v5828_v37 = vpop.f32.mrb[92].mxu1 }
0x1036   :  { %v5829_v20 = vadd.f32 %v6269_v57, %v5828_v37  ;;  %v6834_v3 = vpop.f32.mrb[93].mxu1 }
0x1038   :  { %5832 = vst [vmem:[#allocation20] sm:$0xff] %v5829_v20 }
0x1039   :  { %7251 = shalt.err (!%p7248_p8)
}
0x103a   :  { %s11942_s7 = sld [smem:[#allocation246_spill]] }
0x1040   :  { %s7252_s5 = scalar_lea.hbm %s11942_s7, 128 }
0x1041   :  { %p7253_p9 = scmp.ne.s32.totalorder %s11942_s7, %s7252_s5  ;;  %p7256_p10 = scmp.lt.u32.totalorder %s7252_s5, %s11942_s7 }
0x1043   :  { %p7258_p11 = pnand %p7256_p10, %p7253_p9 }
0x1045   :  { %7261 = shalt.err (!%p7258_p11)
}
0x1046   :  { %5842 = dma.vmem_to_hbm [thread:$0]  %s5840_s30, 128, %s11942_s7, [#allocation4]  }
0x1047   :  { %7274 = dma.done.wait [#allocation4], 128  }
0x1048   :  { %7275 = vsyncadd [#allocation4], 4294967168 }
0x1049   :  { %5846 = vsyncpa [#allocation3], 1 }
0x104a   :  { %5847 = vsyncpa [#allocation6], 1 }
0x104b   :  { %5848 = vsyncpa [#allocation9], 1 }
0x104c   :  { %5849 = vsyncpa [#allocation12], 1 }
0x104d   :  { %5850 = vsyncpa [#allocation15], 1 }
0x104e   :  { %5851 = vsyncpa [#allocation18], 1 }
0x104f   :  { %5852 = vsyncpa [#allocation4], 1 }

</bundles_post_ra>
